<compile_context>
chip_gen: v7x
topology: tpu7x:2x2x1
jax: 0.10.0
libtpu: 0.0.40
codegen_flags: <defaults>
</compile_context>

<pallas_src>
import random

import jax
import jax.numpy as jnp
from jax.experimental import pallas as pl
from jax.experimental.pallas import tpu as pltpu

SRC_VOCAB = 32
TRG_VOCAB = 32          # decoder.out_sz
EMB = 16
ENC_HID = 32
DEC_HID = 32
ATTN = DEC_HID
SRC_LEN = 8
TRG_LEN = 8
BATCH = 2
F32 = jnp.float32

# ----------------------------------------------------------------------------
# Weight-slab layout: one f32 [SLAB_ROWS, 128] array, each entry 8-row aligned.
# ----------------------------------------------------------------------------
_SLAB_ENTRIES = [
    ('emb_src', SRC_VOCAB, EMB),
    ('emb_trg', TRG_VOCAB, EMB),
    ('wif', EMB, 3 * ENC_HID), ('whf', ENC_HID, 3 * ENC_HID),
    ('bif', 1, 3 * ENC_HID), ('bhf', 1, 3 * ENC_HID),
    ('wib', EMB, 3 * ENC_HID), ('whb', ENC_HID, 3 * ENC_HID),
    ('bib', 1, 3 * ENC_HID), ('bhb', 1, 3 * ENC_HID),
    ('wfcf', ENC_HID, DEC_HID), ('wfcb', ENC_HID, DEC_HID), ('bfc', 1, DEC_HID),
    ('wah', DEC_HID, ATTN), ('wae', 2 * ENC_HID, ATTN), ('ba', 1, ATTN),
    ('v', ATTN, 1),
    ('wie', EMB, 3 * DEC_HID), ('wiw', 2 * ENC_HID, 3 * DEC_HID),
    ('whd', DEC_HID, 3 * DEC_HID), ('bid', 1, 3 * DEC_HID), ('bhd', 1, 3 * DEC_HID),
    ('woh', DEC_HID, TRG_VOCAB), ('wow', 2 * ENC_HID, TRG_VOCAB),
    ('woe', EMB, TRG_VOCAB), ('bo', 1, TRG_VOCAB),
]


def _build_layout(entries):
    layout, off = {}, 0
    for name, rows, cols in entries:
        layout[name] = (off, rows, cols)
        off += ((rows + 7) // 8) * 8          # keep every slice sublane-aligned
    return layout, ((off + 7) // 8) * 8


_LAYOUT, SLAB_ROWS = _build_layout(_SLAB_ENTRIES)


# ----------------------------------------------------------------------------
# Fused kernel: whole forward (encoder + bridge + all decoder steps), batch in rows.
# ----------------------------------------------------------------------------
def seq2seq_kernel(tf_ref,                    # SMEM [TRG_LEN] int32 (scalar prefetch)
                   slab_ref,                  # VMEM [SLAB_ROWS, 128] packed weights
                   src_ids_ref, trg_ids_ref,  # VMEM [B*S,1], [B*T,1] int32 (b-major)
                   out_ref,                   # VMEM [TRG_LEN, BATCH, TRG_VOCAB]
                   eo_scr, emb_scr):          # VMEM [B,S,2He], [B,E]
    def dot(a, b):
        return jnp.dot(a, b, preferred_element_type=jnp.float32)

    def W(name):                              # slice weights at use sites (no hoist)
        off, rows, cols = _LAYOUT[name]
        return slab_ref[off:off + rows, :cols]

    def gru_cell(gi, h, wh_name, bh_name, hid):
        # gi already contains x @ W_ih + b_ih for this step (hoisted projection)
        gh = dot(h, W(wh_name)) + W(bh_name)
        rz = jax.nn.sigmoid(gi[:, :2 * hid] + gh[:, :2 * hid])   # fused r|z sigmoid
        r, z = rz[:, :hid], rz[:, hid:]
        n = jnp.tanh(gi[:, 2 * hid:] + r * gh[:, 2 * hid:])
        return (1.0 - z) * n + z * h

    # ---- embedding lookups in-kernel: one-hot @ table on the MXU ----
    src_oh = (jax.lax.broadcasted_iota(jnp.int32, (BATCH * SRC_LEN, SRC_VOCAB), 1)
              == src_ids_ref[...]).astype(F32)
    src_emb = dot(src_oh, W('emb_src'))                               # [B*S, E]
    trg_oh = (jax.lax.broadcasted_iota(jnp.int32, (BATCH * TRG_LEN, TRG_VOCAB), 1)
              == trg_ids_ref[...]).astype(F32)
    trg_emb = dot(trg_oh, W('emb_trg')).reshape(BATCH, TRG_LEN, EMB)  # [B, T, E]

    # ---- encoder: hoisted input projections + batched fwd/bwd recurrences ----
    gi_f = (dot(src_emb, W('wif')) + W('bif')).reshape(BATCH, SRC_LEN, 3 * ENC_HID)
    gi_b = (dot(src_emb, W('wib')) + W('bib')).reshape(BATCH, SRC_LEN, 3 * ENC_HID)

    hf = jnp.zeros((BATCH, ENC_HID), F32)
    for t in range(SRC_LEN):
        hf = gru_cell(gi_f[:, t, :], hf, 'whf', 'bhf', ENC_HID)
        eo_scr[:, t:t + 1, 0:ENC_HID] = hf.reshape(BATCH, 1, ENC_HID)
    hb = jnp.zeros((BATCH, ENC_HID), F32)
    for t in range(SRC_LEN - 1, -1, -1):
        hb = gru_cell(gi_b[:, t, :], hb, 'whb', 'bhb', ENC_HID)
        eo_scr[:, t:t + 1, ENC_HID:2 * ENC_HID] = hb.reshape(BATCH, 1, ENC_HID)

    # hidden = tanh(fc([h_fwd_final ; h_bwd_final]))
    h = jnp.tanh(dot(hf, W('wfcf')) + dot(hb, W('wfcb')) + W('bfc'))  # [B, Hd]

    # ---- attention loop-invariants ----
    eo3 = eo_scr[...]                                                 # [B, S, 2He]
    eo_flat = eo3.reshape(BATCH * SRC_LEN, 2 * ENC_HID)
    e_in = (dot(eo_flat, W('wae')) + W('ba')).reshape(BATCH, SRC_LEN, ATTN)

    out_ref[0, :, :] = jnp.zeros((BATCH, TRG_VOCAB), F32)             # outputs[0] = 0
    emb_scr[...] = trg_emb[:, 0, :]                                   # first input = trg[0]

    # ---- decoder: all TRG_LEN-1 steps, hidden carried in registers ----
    for t in range(1, TRG_LEN):
        emb_in = emb_scr[...]                                         # [B, E]

        # Bahdanau attention: softmax_s( v . tanh(W_a [h ; eo_s]) )
        hw = dot(h, W('wah'))                                         # [B, A]
        energy = jnp.tanh(e_in + hw[:, None, :])                      # [B, S, A]
        score = dot(energy.reshape(BATCH * SRC_LEN, ATTN),
                    W('v')).reshape(BATCH, SRC_LEN, 1)                # [B, S, 1]
        m = jnp.max(score, axis=1, keepdims=True)
        p = jnp.exp(score - m)
        a = p / jnp.sum(p, axis=1, keepdims=True)
        w = jnp.sum(a * eo3, axis=1)                                  # context [B, 2He]

        # GRU cell on cat(emb, context) -- fused gate matmuls
        gi = dot(emb_in, W('wie')) + dot(w, W('wiw')) + W('bid')      # [B, 3Hd]
        gh = dot(h, W('whd')) + W('bhd')
        rz = jax.nn.sigmoid(gi[:, :2 * DEC_HID] + gh[:, :2 * DEC_HID])
        r, z = rz[:, :DEC_HID], rz[:, DEC_HID:]
        n = jnp.tanh(gi[:, 2 * DEC_HID:] + r * gh[:, 2 * DEC_HID:])
        h = (1.0 - z) * n + z * h

        # fc_out(cat(h, context, emb))
        pred = dot(h, W('woh')) + dot(w, W('wow')) + dot(emb_in, W('woe')) + W('bo')
        out_ref[t, :, :] = pred

        if t < TRG_LEN - 1:
            # default: teacher embedding; argmax chain only runs when TF is off
            emb_scr[...] = trg_emb[:, t, :]

            @pl.when(tf_ref[t] == 0)
            def _(pred=pred):
                mx = jnp.max(pred, axis=1, keepdims=True)
                iota = jax.lax.broadcasted_iota(jnp.int32, (BATCH, TRG_VOCAB), 1)
                first = jnp.min(jnp.where(pred >= mx, iota, TRG_VOCAB),
                                axis=1, keepdims=True)
                onehot = (iota == first).astype(F32)
                emb_scr[...] = dot(onehot, W('emb_trg'))              # [B, E]


# ----------------------------------------------------------------------------
# pallas_call glue (single grid step; everything resident in VMEM)
# ----------------------------------------------------------------------------
@jax.jit
def _forward_jit(src, trg, tf_mask, slab):
    # b-major flat ids so [B*S, X] <-> [B, S, X] reshapes are layout-free (S == 8)
    src_ids = src.T.reshape(BATCH * SRC_LEN, 1).astype(jnp.int32)
    trg_ids = trg.T.reshape(BATCH * TRG_LEN, 1).astype(jnp.int32)

    grid_spec = pltpu.PrefetchScalarGridSpec(
        num_scalar_prefetch=1,
        grid=(1,),
        in_specs=[
            pl.BlockSpec((SLAB_ROWS, 128), lambda i, tf: (0, 0)),
            pl.BlockSpec((BATCH * SRC_LEN, 1), lambda i, tf: (0, 0)),
            pl.BlockSpec((BATCH * TRG_LEN, 1), lambda i, tf: (0, 0)),
        ],
        out_specs=pl.BlockSpec((TRG_LEN, BATCH, TRG_VOCAB), lambda i, tf: (0, 0, 0)),
        scratch_shapes=[pltpu.VMEM((BATCH, SRC_LEN, 2 * ENC_HID), F32),
                        pltpu.VMEM((BATCH, EMB), F32)])

    return pl.pallas_call(
        seq2seq_kernel,
        grid_spec=grid_spec,
        out_shape=jax.ShapeDtypeStruct((TRG_LEN, BATCH, TRG_VOCAB), F32),
        compiler_params=pltpu.CompilerParams(dimension_semantics=("arbitrary",)),
    )(tf_mask, slab, src_ids, trg_ids)


def seq2seq_forward(src, trg, slab, teacher_forcing_ratio=0.5):
    random.seed(0)                                        # deterministic teacher forcing
    tf = [0] + [1 if random.random() < teacher_forcing_ratio else 0
                for _ in range(1, TRG_LEN)]
    tf_mask = jnp.asarray(tf, dtype=jnp.int32)
    return _forward_jit(src, trg, tf_mask, slab)


# ----------------------------------------------------------------------------
# Parameters (deterministic init, kernel-ready orientation, packed into one slab)
# ----------------------------------------------------------------------------
def uinit(key, shape, scale):
    return jax.random.uniform(key, shape, F32, minval=-scale, maxval=scale)


def make_gru_params(key, in_dim, hid):
    k = jax.random.split(key, 4)
    s = hid ** -0.5
    return (uinit(k[0], (3 * hid, in_dim), s), uinit(k[1], (3 * hid, hid), s),
            uinit(k[2], (3 * hid,), s), uinit(k[3], (3 * hid,), s))


def init_params(key):
    ks = iter(jax.random.split(key, 16))
    P = {}
    P['emb_src'] = uinit(next(ks), (SRC_VOCAB, EMB), 0.1)
    P['emb_trg'] = uinit(next(ks), (TRG_VOCAB, EMB), 0.1)

    for tag in ('f', 'b'):                               # encoder fwd / bwd GRU
        W_ih, W_hh, b_ih, b_hh = make_gru_params(next(ks), EMB, ENC_HID)
        P[f'wi{tag}'] = W_ih.T                           # [E, 3*He]  gate order r|z|n
        P[f'wh{tag}'] = W_hh.T                           # [He, 3*He]
        P[f'bi{tag}'] = b_ih.reshape(1, 3 * ENC_HID)
        P[f'bh{tag}'] = b_hh.reshape(1, 3 * ENC_HID)

    s_fc = (2 * ENC_HID) ** -0.5
    W_fc = uinit(next(ks), (DEC_HID, 2 * ENC_HID), s_fc)
    P['wfcf'] = W_fc[:, :ENC_HID].T
    P['wfcb'] = W_fc[:, ENC_HID:].T
    P['bfc'] = uinit(next(ks), (1, DEC_HID), s_fc)

    s_a = (DEC_HID + 2 * ENC_HID) ** -0.5
    W_attn = uinit(next(ks), (ATTN, DEC_HID + 2 * ENC_HID), s_a)
    P['wah'] = W_attn[:, :DEC_HID].T                     # [Hd, A]
    P['wae'] = W_attn[:, DEC_HID:].T                     # [2*He, A]
    P['ba'] = uinit(next(ks), (1, ATTN), s_a)
    P['v'] = uinit(next(ks), (1, ATTN), ATTN ** -0.5).T  # column [A, 1] (MXU score)

    W_ih, W_hh, b_ih, b_hh = make_gru_params(next(ks), EMB + 2 * ENC_HID, DEC_HID)
    P['wie'] = W_ih[:, :EMB].T                           # [E, 3*Hd]
    P['wiw'] = W_ih[:, EMB:].T                           # [2*He, 3*Hd]
    P['whd'] = W_hh.T                                    # [Hd, 3*Hd]
    P['bid'] = b_ih.reshape(1, 3 * DEC_HID)
    P['bhd'] = b_hh.reshape(1, 3 * DEC_HID)

    s_o = (DEC_HID + 2 * ENC_HID + EMB) ** -0.5
    W_out = uinit(next(ks), (TRG_VOCAB, DEC_HID + 2 * ENC_HID + EMB), s_o)
    P['woh'] = W_out[:, :DEC_HID].T                                   # [Hd, V]
    P['wow'] = W_out[:, DEC_HID:DEC_HID + 2 * ENC_HID].T              # [2He, V]
    P['woe'] = W_out[:, DEC_HID + 2 * ENC_HID:].T                     # [E, V]
    P['bo'] = uinit(next(ks), (1, TRG_VOCAB), s_o)
    return P


def pack_slab(P):
    slab = jnp.zeros((SLAB_ROWS, 128), F32)
    for name, (off, rows, cols) in _LAYOUT.items():
        slab = slab.at[off:off + rows, :cols].set(P[name].reshape(rows, cols))
    return slab


if __name__ == "__main__":
    key = jax.random.PRNGKey(0)
    kp, ksrc, ktrg = jax.random.split(key, 3)
    params = init_params(kp)
    slab = pack_slab(params)
    src = jax.random.randint(ksrc, (SRC_LEN, BATCH), 0, SRC_VOCAB, dtype=jnp.int32)
    trg = jax.random.randint(ktrg, (TRG_LEN, BATCH), 0, TRG_VOCAB, dtype=jnp.int32)

    outputs = seq2seq_forward(src, trg, slab, teacher_forcing_ratio=0.5)
    outputs = jax.block_until_ready(outputs)

    assert outputs.shape == (TRG_LEN, BATCH, TRG_VOCAB)
    assert bool(jnp.all(jnp.isfinite(outputs)))
    assert bool(jnp.all(outputs[0] == 0.0))
    print("KERNEL_OK")
</pallas_src>

<mosaic_0001>
module attributes {stable_mosaic.version = 11 : i64} {
  func.func @seq2seq_kernel(%arg0: i32, %arg1: memref<8xi32, #tpu.memory_space<smem>>, %arg2: memref<648x128xf32, #tpu.memory_space<vmem>>, %arg3: memref<16x1xi32, #tpu.memory_space<vmem>>, %arg4: memref<16x1xi32, #tpu.memory_space<vmem>>, %arg5: memref<8x2x32xf32, #tpu.memory_space<vmem>>, %arg6: memref<2x8x64xf32, #tpu.memory_space<vmem>>, %arg7: memref<2x16xf32, #tpu.memory_space<vmem>>) attributes {dimension_semantics = [#tpu.dimension_semantics<arbitrary>], iteration_bounds = array<i64: 1>, scalar_prefetch = 1 : i64, scratch_operands = 2 : i64, tpu.core_type = #tpu.core_type<tc>, window_params = [{pipeline_mode = #tpu.pipeline_mode<synchronous>, transform_indices = @transform_0, window_bounds = array<i64: 648, 128>}, {pipeline_mode = #tpu.pipeline_mode<synchronous>, transform_indices = @transform_1, window_bounds = array<i64: 16, 1>}, {pipeline_mode = #tpu.pipeline_mode<synchronous>, transform_indices = @transform_2, window_bounds = array<i64: 16, 1>}, {pipeline_mode = #tpu.pipeline_mode<synchronous>, transform_indices = @transform_3, window_bounds = array<i64: 8, 2, 32>}]} {
    %0 = tpu.iota {dimensions = array<i32: 1>} : vector<16x32xi32>
    %c0 = arith.constant 0 : index
    %c0_0 = arith.constant 0 : index
    %1 = vector.load %arg3[%c0, %c0_0] : memref<16x1xi32, #tpu.memory_space<vmem>>, vector<16x1xi32>
    %2 = vector.broadcast %1 : vector<16x1xi32> to vector<16x32xi32>
    %3 = arith.cmpi eq, %0, %2 : vector<16x32xi32>
    %4 = arith.extui %3 : vector<16x32xi1> to vector<16x32xi32>
    %5 = arith.sitofp %4 : vector<16x32xi32> to vector<16x32xf32>
    %c0_1 = arith.constant 0 : index
    %c0_2 = arith.constant 0 : index
    %6 = vector.load %arg2[%c0_1, %c0_2] : memref<648x128xf32, #tpu.memory_space<vmem>>, vector<32x16xf32>
    %cst = arith.constant dense<0.000000e+00> : vector<16x16xf32>
    %7 = tpu.matmul %5, %6, %cst {dimension_numbers = #tpu.dot_dimension_numbers<[1], [0], [0], [1], [0, 0, 1, 1], [], []>} : vector<16x32xf32>, vector<32x16xf32>, vector<16x16xf32> -> vector<16x16xf32>
    %8 = tpu.iota {dimensions = array<i32: 1>} : vector<16x32xi32>
    %c0_3 = arith.constant 0 : index
    %c0_4 = arith.constant 0 : index
    %9 = vector.load %arg4[%c0_3, %c0_4] : memref<16x1xi32, #tpu.memory_space<vmem>>, vector<16x1xi32>
    %10 = vector.broadcast %9 : vector<16x1xi32> to vector<16x32xi32>
    %11 = arith.cmpi eq, %8, %10 : vector<16x32xi32>
    %12 = arith.extui %11 : vector<16x32xi1> to vector<16x32xi32>
    %13 = arith.sitofp %12 : vector<16x32xi32> to vector<16x32xf32>
    %c32 = arith.constant 32 : index
    %c0_5 = arith.constant 0 : index
    %14 = vector.load %arg2[%c32, %c0_5] : memref<648x128xf32, #tpu.memory_space<vmem>>, vector<32x16xf32>
    %cst_6 = arith.constant dense<0.000000e+00> : vector<16x16xf32>
    %15 = tpu.matmul %13, %14, %cst_6 {dimension_numbers = #tpu.dot_dimension_numbers<[1], [0], [0], [1], [0, 0, 1, 1], [], []>} : vector<16x32xf32>, vector<32x16xf32>, vector<16x16xf32> -> vector<16x16xf32>
    %16 = vector.shape_cast %15 : vector<16x16xf32> to vector<2x8x16xf32>
    %c64 = arith.constant 64 : index
    %c0_7 = arith.constant 0 : index
    %17 = vector.load %arg2[%c64, %c0_7] : memref<648x128xf32, #tpu.memory_space<vmem>>, vector<16x96xf32>
    %cst_8 = arith.constant dense<0.000000e+00> : vector<16x96xf32>
    %18 = tpu.matmul %7, %17, %cst_8 {dimension_numbers = #tpu.dot_dimension_numbers<[1], [0], [0], [1], [0, 0, 1, 1], [], []>} : vector<16x16xf32>, vector<16x96xf32>, vector<16x96xf32> -> vector<16x96xf32>
    %c112 = arith.constant 112 : index
    %c0_9 = arith.constant 0 : index
    %19 = vector.load %arg2[%c112, %c0_9] : memref<648x128xf32, #tpu.memory_space<vmem>>, vector<1x96xf32>
    %20 = vector.broadcast %19 : vector<1x96xf32> to vector<16x96xf32>
    %21 = arith.addf %18, %20 : vector<16x96xf32>
    %22 = vector.shape_cast %21 : vector<16x96xf32> to vector<2x8x96xf32>
    %c128 = arith.constant 128 : index
    %c0_10 = arith.constant 0 : index
    %23 = vector.load %arg2[%c128, %c0_10] : memref<648x128xf32, #tpu.memory_space<vmem>>, vector<16x96xf32>
    %cst_11 = arith.constant dense<0.000000e+00> : vector<16x96xf32>
    %24 = tpu.matmul %7, %23, %cst_11 {dimension_numbers = #tpu.dot_dimension_numbers<[1], [0], [0], [1], [0, 0, 1, 1], [], []>} : vector<16x16xf32>, vector<16x96xf32>, vector<16x96xf32> -> vector<16x96xf32>
    %c176 = arith.constant 176 : index
    %c0_12 = arith.constant 0 : index
    %25 = vector.load %arg2[%c176, %c0_12] : memref<648x128xf32, #tpu.memory_space<vmem>>, vector<1x96xf32>
    %26 = vector.broadcast %25 : vector<1x96xf32> to vector<16x96xf32>
    %27 = arith.addf %24, %26 : vector<16x96xf32>
    %28 = vector.shape_cast %27 : vector<16x96xf32> to vector<2x8x96xf32>
    %cst_13 = arith.constant 0.000000e+00 : f32
    %29 = vector.broadcast %cst_13 : f32 to vector<2x32xf32>
    %30 = vector.extract_strided_slice %22 {offsets = [0, 0, 0], sizes = [2, 1, 96], strides = [1, 1, 1]} : vector<2x8x96xf32> to vector<2x1x96xf32>
    %31 = vector.shape_cast %30 : vector<2x1x96xf32> to vector<2x96xf32>
    %c80 = arith.constant 80 : index
    %c0_14 = arith.constant 0 : index
    %32 = vector.load %arg2[%c80, %c0_14] : memref<648x128xf32, #tpu.memory_space<vmem>>, vector<32x96xf32>
    %cst_15 = arith.constant dense<0.000000e+00> : vector<2x96xf32>
    %33 = tpu.matmul %29, %32, %cst_15 {dimension_numbers = #tpu.dot_dimension_numbers<[1], [0], [0], [1], [0, 0, 1, 1], [], []>} : vector<2x32xf32>, vector<32x96xf32>, vector<2x96xf32> -> vector<2x96xf32>
    %c120 = arith.constant 120 : index
    %c0_16 = arith.constant 0 : index
    %34 = vector.load %arg2[%c120, %c0_16] : memref<648x128xf32, #tpu.memory_space<vmem>>, vector<1x96xf32>
    %35 = vector.broadcast %34 : vector<1x96xf32> to vector<2x96xf32>
    %36 = arith.addf %33, %35 : vector<2x96xf32>
    %37 = vector.extract_strided_slice %31 {offsets = [0, 0], sizes = [2, 64], strides = [1, 1]} : vector<2x96xf32> to vector<2x64xf32>
    %38 = vector.extract_strided_slice %36 {offsets = [0, 0], sizes = [2, 64], strides = [1, 1]} : vector<2x96xf32> to vector<2x64xf32>
    %39 = arith.addf %37, %38 : vector<2x64xf32>
    %40 = arith.negf %39 : vector<2x64xf32>
    %41 = math.exp %40 : vector<2x64xf32>
    %cst_17 = arith.constant 1.000000e+00 : f32
    %42 = vector.broadcast %cst_17 : f32 to vector<2x64xf32>
    %43 = arith.addf %42, %41 : vector<2x64xf32>
    %44 = arith.divf %42, %43 : vector<2x64xf32>
    %45 = vector.extract_strided_slice %44 {offsets = [0, 0], sizes = [2, 32], strides = [1, 1]} : vector<2x64xf32> to vector<2x32xf32>
    %46 = vector.extract_strided_slice %44 {offsets = [0, 32], sizes = [2, 32], strides = [1, 1]} : vector<2x64xf32> to vector<2x32xf32>
    %47 = vector.extract_strided_slice %31 {offsets = [0, 64], sizes = [2, 32], strides = [1, 1]} : vector<2x96xf32> to vector<2x32xf32>
    %48 = vector.extract_strided_slice %36 {offsets = [0, 64], sizes = [2, 32], strides = [1, 1]} : vector<2x96xf32> to vector<2x32xf32>
    %49 = arith.mulf %45, %48 : vector<2x32xf32>
    %50 = arith.addf %47, %49 : vector<2x32xf32>
    %51 = math.tanh %50 : vector<2x32xf32>
    %cst_18 = arith.constant 1.000000e+00 : f32
    %52 = vector.broadcast %cst_18 : f32 to vector<2x32xf32>
    %53 = arith.subf %52, %46 : vector<2x32xf32>
    %54 = arith.mulf %53, %51 : vector<2x32xf32>
    %55 = arith.mulf %46, %29 : vector<2x32xf32>
    %56 = arith.addf %54, %55 : vector<2x32xf32>
    %57 = vector.shape_cast %56 : vector<2x32xf32> to vector<2x1x32xf32>
    %c0_19 = arith.constant 0 : index
    %c0_20 = arith.constant 0 : index
    %c0_21 = arith.constant 0 : index
    %58 = vector.load %arg6[%c0_19, %c0_20, %c0_21] : memref<2x8x64xf32, #tpu.memory_space<vmem>>, vector<2x1x32xf32>
    tpu.vector_store %arg6[%c0_19, %c0_20, %c0_21], %57 {strides = array<i32>} : memref<2x8x64xf32, #tpu.memory_space<vmem>>, vector<2x1x32xf32>,
    %59 = vector.extract_strided_slice %22 {offsets = [0, 1, 0], sizes = [2, 1, 96], strides = [1, 1, 1]} : vector<2x8x96xf32> to vector<2x1x96xf32>
    %60 = vector.shape_cast %59 : vector<2x1x96xf32> to vector<2x96xf32>
    %c80_22 = arith.constant 80 : index
    %c0_23 = arith.constant 0 : index
    %61 = vector.load %arg2[%c80_22, %c0_23] : memref<648x128xf32, #tpu.memory_space<vmem>>, vector<32x96xf32>
    %cst_24 = arith.constant dense<0.000000e+00> : vector<2x96xf32>
    %62 = tpu.matmul %56, %61, %cst_24 {dimension_numbers = #tpu.dot_dimension_numbers<[1], [0], [0], [1], [0, 0, 1, 1], [], []>} : vector<2x32xf32>, vector<32x96xf32>, vector<2x96xf32> -> vector<2x96xf32>
    %c120_25 = arith.constant 120 : index
    %c0_26 = arith.constant 0 : index
    %63 = vector.load %arg2[%c120_25, %c0_26] : memref<648x128xf32, #tpu.memory_space<vmem>>, vector<1x96xf32>
    %64 = vector.broadcast %63 : vector<1x96xf32> to vector<2x96xf32>
    %65 = arith.addf %62, %64 : vector<2x96xf32>
    %66 = vector.extract_strided_slice %60 {offsets = [0, 0], sizes = [2, 64], strides = [1, 1]} : vector<2x96xf32> to vector<2x64xf32>
    %67 = vector.extract_strided_slice %65 {offsets = [0, 0], sizes = [2, 64], strides = [1, 1]} : vector<2x96xf32> to vector<2x64xf32>
    %68 = arith.addf %66, %67 : vector<2x64xf32>
    %69 = arith.negf %68 : vector<2x64xf32>
    %70 = math.exp %69 : vector<2x64xf32>
    %cst_27 = arith.constant 1.000000e+00 : f32
    %71 = vector.broadcast %cst_27 : f32 to vector<2x64xf32>
    %72 = arith.addf %71, %70 : vector<2x64xf32>
    %73 = arith.divf %71, %72 : vector<2x64xf32>
    %74 = vector.extract_strided_slice %73 {offsets = [0, 0], sizes = [2, 32], strides = [1, 1]} : vector<2x64xf32> to vector<2x32xf32>
    %75 = vector.extract_strided_slice %73 {offsets = [0, 32], sizes = [2, 32], strides = [1, 1]} : vector<2x64xf32> to vector<2x32xf32>
    %76 = vector.extract_strided_slice %60 {offsets = [0, 64], sizes = [2, 32], strides = [1, 1]} : vector<2x96xf32> to vector<2x32xf32>
    %77 = vector.extract_strided_slice %65 {offsets = [0, 64], sizes = [2, 32], strides = [1, 1]} : vector<2x96xf32> to vector<2x32xf32>
    %78 = arith.mulf %74, %77 : vector<2x32xf32>
    %79 = arith.addf %76, %78 : vector<2x32xf32>
    %80 = math.tanh %79 : vector<2x32xf32>
    %cst_28 = arith.constant 1.000000e+00 : f32
    %81 = vector.broadcast %cst_28 : f32 to vector<2x32xf32>
    %82 = arith.subf %81, %75 : vector<2x32xf32>
    %83 = arith.mulf %82, %80 : vector<2x32xf32>
    %84 = arith.mulf %75, %56 : vector<2x32xf32>
    %85 = arith.addf %83, %84 : vector<2x32xf32>
    %86 = vector.shape_cast %85 : vector<2x32xf32> to vector<2x1x32xf32>
    %c0_29 = arith.constant 0 : index
    %c1 = arith.constant 1 : index
    %c0_30 = arith.constant 0 : index
    %87 = vector.load %arg6[%c0_29, %c1, %c0_30] : memref<2x8x64xf32, #tpu.memory_space<vmem>>, vector<2x1x32xf32>
    tpu.vector_store %arg6[%c0_29, %c1, %c0_30], %86 {strides = array<i32>} : memref<2x8x64xf32, #tpu.memory_space<vmem>>, vector<2x1x32xf32>,
    %88 = vector.extract_strided_slice %22 {offsets = [0, 2, 0], sizes = [2, 1, 96], strides = [1, 1, 1]} : vector<2x8x96xf32> to vector<2x1x96xf32>
    %89 = vector.shape_cast %88 : vector<2x1x96xf32> to vector<2x96xf32>
    %c80_31 = arith.constant 80 : index
    %c0_32 = arith.constant 0 : index
    %90 = vector.load %arg2[%c80_31, %c0_32] : memref<648x128xf32, #tpu.memory_space<vmem>>, vector<32x96xf32>
    %cst_33 = arith.constant dense<0.000000e+00> : vector<2x96xf32>
    %91 = tpu.matmul %85, %90, %cst_33 {dimension_numbers = #tpu.dot_dimension_numbers<[1], [0], [0], [1], [0, 0, 1, 1], [], []>} : vector<2x32xf32>, vector<32x96xf32>, vector<2x96xf32> -> vector<2x96xf32>
    %c120_34 = arith.constant 120 : index
    %c0_35 = arith.constant 0 : index
    %92 = vector.load %arg2[%c120_34, %c0_35] : memref<648x128xf32, #tpu.memory_space<vmem>>, vector<1x96xf32>
    %93 = vector.broadcast %92 : vector<1x96xf32> to vector<2x96xf32>
    %94 = arith.addf %91, %93 : vector<2x96xf32>
    %95 = vector.extract_strided_slice %89 {offsets = [0, 0], sizes = [2, 64], strides = [1, 1]} : vector<2x96xf32> to vector<2x64xf32>
    %96 = vector.extract_strided_slice %94 {offsets = [0, 0], sizes = [2, 64], strides = [1, 1]} : vector<2x96xf32> to vector<2x64xf32>
    %97 = arith.addf %95, %96 : vector<2x64xf32>
    %98 = arith.negf %97 : vector<2x64xf32>
    %99 = math.exp %98 : vector<2x64xf32>
    %cst_36 = arith.constant 1.000000e+00 : f32
    %100 = vector.broadcast %cst_36 : f32 to vector<2x64xf32>
    %101 = arith.addf %100, %99 : vector<2x64xf32>
    %102 = arith.divf %100, %101 : vector<2x64xf32>
    %103 = vector.extract_strided_slice %102 {offsets = [0, 0], sizes = [2, 32], strides = [1, 1]} : vector<2x64xf32> to vector<2x32xf32>
    %104 = vector.extract_strided_slice %102 {offsets = [0, 32], sizes = [2, 32], strides = [1, 1]} : vector<2x64xf32> to vector<2x32xf32>
    %105 = vector.extract_strided_slice %89 {offsets = [0, 64], sizes = [2, 32], strides = [1, 1]} : vector<2x96xf32> to vector<2x32xf32>
    %106 = vector.extract_strided_slice %94 {offsets = [0, 64], sizes = [2, 32], strides = [1, 1]} : vector<2x96xf32> to vector<2x32xf32>
    %107 = arith.mulf %103, %106 : vector<2x32xf32>
    %108 = arith.addf %105, %107 : vector<2x32xf32>
    %109 = math.tanh %108 : vector<2x32xf32>
    %cst_37 = arith.constant 1.000000e+00 : f32
    %110 = vector.broadcast %cst_37 : f32 to vector<2x32xf32>
    %111 = arith.subf %110, %104 : vector<2x32xf32>
    %112 = arith.mulf %111, %109 : vector<2x32xf32>
    %113 = arith.mulf %104, %85 : vector<2x32xf32>
    %114 = arith.addf %112, %113 : vector<2x32xf32>
    %115 = vector.shape_cast %114 : vector<2x32xf32> to vector<2x1x32xf32>
    %c0_38 = arith.constant 0 : index
    %c2 = arith.constant 2 : index
    %c0_39 = arith.constant 0 : index
    %116 = vector.load %arg6[%c0_38, %c2, %c0_39] : memref<2x8x64xf32, #tpu.memory_space<vmem>>, vector<2x1x32xf32>
    tpu.vector_store %arg6[%c0_38, %c2, %c0_39], %115 {strides = array<i32>} : memref<2x8x64xf32, #tpu.memory_space<vmem>>, vector<2x1x32xf32>,
    %117 = vector.extract_strided_slice %22 {offsets = [0, 3, 0], sizes = [2, 1, 96], strides = [1, 1, 1]} : vector<2x8x96xf32> to vector<2x1x96xf32>
    %118 = vector.shape_cast %117 : vector<2x1x96xf32> to vector<2x96xf32>
    %c80_40 = arith.constant 80 : index
    %c0_41 = arith.constant 0 : index
    %119 = vector.load %arg2[%c80_40, %c0_41] : memref<648x128xf32, #tpu.memory_space<vmem>>, vector<32x96xf32>
    %cst_42 = arith.constant dense<0.000000e+00> : vector<2x96xf32>
    %120 = tpu.matmul %114, %119, %cst_42 {dimension_numbers = #tpu.dot_dimension_numbers<[1], [0], [0], [1], [0, 0, 1, 1], [], []>} : vector<2x32xf32>, vector<32x96xf32>, vector<2x96xf32> -> vector<2x96xf32>
    %c120_43 = arith.constant 120 : index
    %c0_44 = arith.constant 0 : index
    %121 = vector.load %arg2[%c120_43, %c0_44] : memref<648x128xf32, #tpu.memory_space<vmem>>, vector<1x96xf32>
    %122 = vector.broadcast %121 : vector<1x96xf32> to vector<2x96xf32>
    %123 = arith.addf %120, %122 : vector<2x96xf32>
    %124 = vector.extract_strided_slice %118 {offsets = [0, 0], sizes = [2, 64], strides = [1, 1]} : vector<2x96xf32> to vector<2x64xf32>
    %125 = vector.extract_strided_slice %123 {offsets = [0, 0], sizes = [2, 64], strides = [1, 1]} : vector<2x96xf32> to vector<2x64xf32>
    %126 = arith.addf %124, %125 : vector<2x64xf32>
    %127 = arith.negf %126 : vector<2x64xf32>
    %128 = math.exp %127 : vector<2x64xf32>
    %cst_45 = arith.constant 1.000000e+00 : f32
    %129 = vector.broadcast %cst_45 : f32 to vector<2x64xf32>
    %130 = arith.addf %129, %128 : vector<2x64xf32>
    %131 = arith.divf %129, %130 : vector<2x64xf32>
    %132 = vector.extract_strided_slice %131 {offsets = [0, 0], sizes = [2, 32], strides = [1, 1]} : vector<2x64xf32> to vector<2x32xf32>
    %133 = vector.extract_strided_slice %131 {offsets = [0, 32], sizes = [2, 32], strides = [1, 1]} : vector<2x64xf32> to vector<2x32xf32>
    %134 = vector.extract_strided_slice %118 {offsets = [0, 64], sizes = [2, 32], strides = [1, 1]} : vector<2x96xf32> to vector<2x32xf32>
    %135 = vector.extract_strided_slice %123 {offsets = [0, 64], sizes = [2, 32], strides = [1, 1]} : vector<2x96xf32> to vector<2x32xf32>
    %136 = arith.mulf %132, %135 : vector<2x32xf32>
    %137 = arith.addf %134, %136 : vector<2x32xf32>
    %138 = math.tanh %137 : vector<2x32xf32>
    %cst_46 = arith.constant 1.000000e+00 : f32
    %139 = vector.broadcast %cst_46 : f32 to vector<2x32xf32>
    %140 = arith.subf %139, %133 : vector<2x32xf32>
    %141 = arith.mulf %140, %138 : vector<2x32xf32>
    %142 = arith.mulf %133, %114 : vector<2x32xf32>
    %143 = arith.addf %141, %142 : vector<2x32xf32>
    %144 = vector.shape_cast %143 : vector<2x32xf32> to vector<2x1x32xf32>
    %c0_47 = arith.constant 0 : index
    %c3 = arith.constant 3 : index
    %c0_48 = arith.constant 0 : index
    %145 = vector.load %arg6[%c0_47, %c3, %c0_48] : memref<2x8x64xf32, #tpu.memory_space<vmem>>, vector<2x1x32xf32>
    tpu.vector_store %arg6[%c0_47, %c3, %c0_48], %144 {strides = array<i32>} : memref<2x8x64xf32, #tpu.memory_space<vmem>>, vector<2x1x32xf32>,
    %146 = vector.extract_strided_slice %22 {offsets = [0, 4, 0], sizes = [2, 1, 96], strides = [1, 1, 1]} : vector<2x8x96xf32> to vector<2x1x96xf32>
    %147 = vector.shape_cast %146 : vector<2x1x96xf32> to vector<2x96xf32>
    %c80_49 = arith.constant 80 : index
    %c0_50 = arith.constant 0 : index
    %148 = vector.load %arg2[%c80_49, %c0_50] : memref<648x128xf32, #tpu.memory_space<vmem>>, vector<32x96xf32>
    %cst_51 = arith.constant dense<0.000000e+00> : vector<2x96xf32>
    %149 = tpu.matmul %143, %148, %cst_51 {dimension_numbers = #tpu.dot_dimension_numbers<[1], [0], [0], [1], [0, 0, 1, 1], [], []>} : vector<2x32xf32>, vector<32x96xf32>, vector<2x96xf32> -> vector<2x96xf32>
    %c120_52 = arith.constant 120 : index
    %c0_53 = arith.constant 0 : index
    %150 = vector.load %arg2[%c120_52, %c0_53] : memref<648x128xf32, #tpu.memory_space<vmem>>, vector<1x96xf32>
    %151 = vector.broadcast %150 : vector<1x96xf32> to vector<2x96xf32>
    %152 = arith.addf %149, %151 : vector<2x96xf32>
    %153 = vector.extract_strided_slice %147 {offsets = [0, 0], sizes = [2, 64], strides = [1, 1]} : vector<2x96xf32> to vector<2x64xf32>
    %154 = vector.extract_strided_slice %152 {offsets = [0, 0], sizes = [2, 64], strides = [1, 1]} : vector<2x96xf32> to vector<2x64xf32>
    %155 = arith.addf %153, %154 : vector<2x64xf32>
    %156 = arith.negf %155 : vector<2x64xf32>
    %157 = math.exp %156 : vector<2x64xf32>
    %cst_54 = arith.constant 1.000000e+00 : f32
    %158 = vector.broadcast %cst_54 : f32 to vector<2x64xf32>
    %159 = arith.addf %158, %157 : vector<2x64xf32>
    %160 = arith.divf %158, %159 : vector<2x64xf32>
    %161 = vector.extract_strided_slice %160 {offsets = [0, 0], sizes = [2, 32], strides = [1, 1]} : vector<2x64xf32> to vector<2x32xf32>
    %162 = vector.extract_strided_slice %160 {offsets = [0, 32], sizes = [2, 32], strides = [1, 1]} : vector<2x64xf32> to vector<2x32xf32>
    %163 = vector.extract_strided_slice %147 {offsets = [0, 64], sizes = [2, 32], strides = [1, 1]} : vector<2x96xf32> to vector<2x32xf32>
    %164 = vector.extract_strided_slice %152 {offsets = [0, 64], sizes = [2, 32], strides = [1, 1]} : vector<2x96xf32> to vector<2x32xf32>
    %165 = arith.mulf %161, %164 : vector<2x32xf32>
    %166 = arith.addf %163, %165 : vector<2x32xf32>
    %167 = math.tanh %166 : vector<2x32xf32>
    %cst_55 = arith.constant 1.000000e+00 : f32
    %168 = vector.broadcast %cst_55 : f32 to vector<2x32xf32>
    %169 = arith.subf %168, %162 : vector<2x32xf32>
    %170 = arith.mulf %169, %167 : vector<2x32xf32>
    %171 = arith.mulf %162, %143 : vector<2x32xf32>
    %172 = arith.addf %170, %171 : vector<2x32xf32>
    %173 = vector.shape_cast %172 : vector<2x32xf32> to vector<2x1x32xf32>
    %c0_56 = arith.constant 0 : index
    %c4 = arith.constant 4 : index
    %c0_57 = arith.constant 0 : index
    %174 = vector.load %arg6[%c0_56, %c4, %c0_57] : memref<2x8x64xf32, #tpu.memory_space<vmem>>, vector<2x1x32xf32>
    tpu.vector_store %arg6[%c0_56, %c4, %c0_57], %173 {strides = array<i32>} : memref<2x8x64xf32, #tpu.memory_space<vmem>>, vector<2x1x32xf32>,
    %175 = vector.extract_strided_slice %22 {offsets = [0, 5, 0], sizes = [2, 1, 96], strides = [1, 1, 1]} : vector<2x8x96xf32> to vector<2x1x96xf32>
    %176 = vector.shape_cast %175 : vector<2x1x96xf32> to vector<2x96xf32>
    %c80_58 = arith.constant 80 : index
    %c0_59 = arith.constant 0 : index
    %177 = vector.load %arg2[%c80_58, %c0_59] : memref<648x128xf32, #tpu.memory_space<vmem>>, vector<32x96xf32>
    %cst_60 = arith.constant dense<0.000000e+00> : vector<2x96xf32>
    %178 = tpu.matmul %172, %177, %cst_60 {dimension_numbers = #tpu.dot_dimension_numbers<[1], [0], [0], [1], [0, 0, 1, 1], [], []>} : vector<2x32xf32>, vector<32x96xf32>, vector<2x96xf32> -> vector<2x96xf32>
    %c120_61 = arith.constant 120 : index
    %c0_62 = arith.constant 0 : index
    %179 = vector.load %arg2[%c120_61, %c0_62] : memref<648x128xf32, #tpu.memory_space<vmem>>, vector<1x96xf32>
    %180 = vector.broadcast %179 : vector<1x96xf32> to vector<2x96xf32>
    %181 = arith.addf %178, %180 : vector<2x96xf32>
    %182 = vector.extract_strided_slice %176 {offsets = [0, 0], sizes = [2, 64], strides = [1, 1]} : vector<2x96xf32> to vector<2x64xf32>
    %183 = vector.extract_strided_slice %181 {offsets = [0, 0], sizes = [2, 64], strides = [1, 1]} : vector<2x96xf32> to vector<2x64xf32>
    %184 = arith.addf %182, %183 : vector<2x64xf32>
    %185 = arith.negf %184 : vector<2x64xf32>
    %186 = math.exp %185 : vector<2x64xf32>
    %cst_63 = arith.constant 1.000000e+00 : f32
    %187 = vector.broadcast %cst_63 : f32 to vector<2x64xf32>
    %188 = arith.addf %187, %186 : vector<2x64xf32>
    %189 = arith.divf %187, %188 : vector<2x64xf32>
    %190 = vector.extract_strided_slice %189 {offsets = [0, 0], sizes = [2, 32], strides = [1, 1]} : vector<2x64xf32> to vector<2x32xf32>
    %191 = vector.extract_strided_slice %189 {offsets = [0, 32], sizes = [2, 32], strides = [1, 1]} : vector<2x64xf32> to vector<2x32xf32>
    %192 = vector.extract_strided_slice %176 {offsets = [0, 64], sizes = [2, 32], strides = [1, 1]} : vector<2x96xf32> to vector<2x32xf32>
    %193 = vector.extract_strided_slice %181 {offsets = [0, 64], sizes = [2, 32], strides = [1, 1]} : vector<2x96xf32> to vector<2x32xf32>
    %194 = arith.mulf %190, %193 : vector<2x32xf32>
    %195 = arith.addf %192, %194 : vector<2x32xf32>
    %196 = math.tanh %195 : vector<2x32xf32>
    %cst_64 = arith.constant 1.000000e+00 : f32
    %197 = vector.broadcast %cst_64 : f32 to vector<2x32xf32>
    %198 = arith.subf %197, %191 : vector<2x32xf32>
    %199 = arith.mulf %198, %196 : vector<2x32xf32>
    %200 = arith.mulf %191, %172 : vector<2x32xf32>
    %201 = arith.addf %199, %200 : vector<2x32xf32>
    %202 = vector.shape_cast %201 : vector<2x32xf32> to vector<2x1x32xf32>
    %c0_65 = arith.constant 0 : index
    %c5 = arith.constant 5 : index
    %c0_66 = arith.constant 0 : index
    %203 = vector.load %arg6[%c0_65, %c5, %c0_66] : memref<2x8x64xf32, #tpu.memory_space<vmem>>, vector<2x1x32xf32>
    tpu.vector_store %arg6[%c0_65, %c5, %c0_66], %202 {strides = array<i32>} : memref<2x8x64xf32, #tpu.memory_space<vmem>>, vector<2x1x32xf32>,
    %204 = vector.extract_strided_slice %22 {offsets = [0, 6, 0], sizes = [2, 1, 96], strides = [1, 1, 1]} : vector<2x8x96xf32> to vector<2x1x96xf32>
    %205 = vector.shape_cast %204 : vector<2x1x96xf32> to vector<2x96xf32>
    %c80_67 = arith.constant 80 : index
    %c0_68 = arith.constant 0 : index
    %206 = vector.load %arg2[%c80_67, %c0_68] : memref<648x128xf32, #tpu.memory_space<vmem>>, vector<32x96xf32>
    %cst_69 = arith.constant dense<0.000000e+00> : vector<2x96xf32>
    %207 = tpu.matmul %201, %206, %cst_69 {dimension_numbers = #tpu.dot_dimension_numbers<[1], [0], [0], [1], [0, 0, 1, 1], [], []>} : vector<2x32xf32>, vector<32x96xf32>, vector<2x96xf32> -> vector<2x96xf32>
    %c120_70 = arith.constant 120 : index
    %c0_71 = arith.constant 0 : index
    %208 = vector.load %arg2[%c120_70, %c0_71] : memref<648x128xf32, #tpu.memory_space<vmem>>, vector<1x96xf32>
    %209 = vector.broadcast %208 : vector<1x96xf32> to vector<2x96xf32>
    %210 = arith.addf %207, %209 : vector<2x96xf32>
    %211 = vector.extract_strided_slice %205 {offsets = [0, 0], sizes = [2, 64], strides = [1, 1]} : vector<2x96xf32> to vector<2x64xf32>
    %212 = vector.extract_strided_slice %210 {offsets = [0, 0], sizes = [2, 64], strides = [1, 1]} : vector<2x96xf32> to vector<2x64xf32>
    %213 = arith.addf %211, %212 : vector<2x64xf32>
    %214 = arith.negf %213 : vector<2x64xf32>
    %215 = math.exp %214 : vector<2x64xf32>
    %cst_72 = arith.constant 1.000000e+00 : f32
    %216 = vector.broadcast %cst_72 : f32 to vector<2x64xf32>
    %217 = arith.addf %216, %215 : vector<2x64xf32>
    %218 = arith.divf %216, %217 : vector<2x64xf32>
    %219 = vector.extract_strided_slice %218 {offsets = [0, 0], sizes = [2, 32], strides = [1, 1]} : vector<2x64xf32> to vector<2x32xf32>
    %220 = vector.extract_strided_slice %218 {offsets = [0, 32], sizes = [2, 32], strides = [1, 1]} : vector<2x64xf32> to vector<2x32xf32>
    %221 = vector.extract_strided_slice %205 {offsets = [0, 64], sizes = [2, 32], strides = [1, 1]} : vector<2x96xf32> to vector<2x32xf32>
    %222 = vector.extract_strided_slice %210 {offsets = [0, 64], sizes = [2, 32], strides = [1, 1]} : vector<2x96xf32> to vector<2x32xf32>
    %223 = arith.mulf %219, %222 : vector<2x32xf32>
    %224 = arith.addf %221, %223 : vector<2x32xf32>
    %225 = math.tanh %224 : vector<2x32xf32>
    %cst_73 = arith.constant 1.000000e+00 : f32
    %226 = vector.broadcast %cst_73 : f32 to vector<2x32xf32>
    %227 = arith.subf %226, %220 : vector<2x32xf32>
    %228 = arith.mulf %227, %225 : vector<2x32xf32>
    %229 = arith.mulf %220, %201 : vector<2x32xf32>
    %230 = arith.addf %228, %229 : vector<2x32xf32>
    %231 = vector.shape_cast %230 : vector<2x32xf32> to vector<2x1x32xf32>
    %c0_74 = arith.constant 0 : index
    %c6 = arith.constant 6 : index
    %c0_75 = arith.constant 0 : index
    %232 = vector.load %arg6[%c0_74, %c6, %c0_75] : memref<2x8x64xf32, #tpu.memory_space<vmem>>, vector<2x1x32xf32>
    tpu.vector_store %arg6[%c0_74, %c6, %c0_75], %231 {strides = array<i32>} : memref<2x8x64xf32, #tpu.memory_space<vmem>>, vector<2x1x32xf32>,
    %233 = vector.extract_strided_slice %22 {offsets = [0, 7, 0], sizes = [2, 1, 96], strides = [1, 1, 1]} : vector<2x8x96xf32> to vector<2x1x96xf32>
    %234 = vector.shape_cast %233 : vector<2x1x96xf32> to vector<2x96xf32>
    %c80_76 = arith.constant 80 : index
    %c0_77 = arith.constant 0 : index
    %235 = vector.load %arg2[%c80_76, %c0_77] : memref<648x128xf32, #tpu.memory_space<vmem>>, vector<32x96xf32>
    %cst_78 = arith.constant dense<0.000000e+00> : vector<2x96xf32>
    %236 = tpu.matmul %230, %235, %cst_78 {dimension_numbers = #tpu.dot_dimension_numbers<[1], [0], [0], [1], [0, 0, 1, 1], [], []>} : vector<2x32xf32>, vector<32x96xf32>, vector<2x96xf32> -> vector<2x96xf32>
    %c120_79 = arith.constant 120 : index
    %c0_80 = arith.constant 0 : index
    %237 = vector.load %arg2[%c120_79, %c0_80] : memref<648x128xf32, #tpu.memory_space<vmem>>, vector<1x96xf32>
    %238 = vector.broadcast %237 : vector<1x96xf32> to vector<2x96xf32>
    %239 = arith.addf %236, %238 : vector<2x96xf32>
    %240 = vector.extract_strided_slice %234 {offsets = [0, 0], sizes = [2, 64], strides = [1, 1]} : vector<2x96xf32> to vector<2x64xf32>
    %241 = vector.extract_strided_slice %239 {offsets = [0, 0], sizes = [2, 64], strides = [1, 1]} : vector<2x96xf32> to vector<2x64xf32>
    %242 = arith.addf %240, %241 : vector<2x64xf32>
    %243 = arith.negf %242 : vector<2x64xf32>
    %244 = math.exp %243 : vector<2x64xf32>
    %cst_81 = arith.constant 1.000000e+00 : f32
    %245 = vector.broadcast %cst_81 : f32 to vector<2x64xf32>
    %246 = arith.addf %245, %244 : vector<2x64xf32>
    %247 = arith.divf %245, %246 : vector<2x64xf32>
    %248 = vector.extract_strided_slice %247 {offsets = [0, 0], sizes = [2, 32], strides = [1, 1]} : vector<2x64xf32> to vector<2x32xf32>
    %249 = vector.extract_strided_slice %247 {offsets = [0, 32], sizes = [2, 32], strides = [1, 1]} : vector<2x64xf32> to vector<2x32xf32>
    %250 = vector.extract_strided_slice %234 {offsets = [0, 64], sizes = [2, 32], strides = [1, 1]} : vector<2x96xf32> to vector<2x32xf32>
    %251 = vector.extract_strided_slice %239 {offsets = [0, 64], sizes = [2, 32], strides = [1, 1]} : vector<2x96xf32> to vector<2x32xf32>
    %252 = arith.mulf %248, %251 : vector<2x32xf32>
    %253 = arith.addf %250, %252 : vector<2x32xf32>
    %254 = math.tanh %253 : vector<2x32xf32>
    %cst_82 = arith.constant 1.000000e+00 : f32
    %255 = vector.broadcast %cst_82 : f32 to vector<2x32xf32>
    %256 = arith.subf %255, %249 : vector<2x32xf32>
    %257 = arith.mulf %256, %254 : vector<2x32xf32>
    %258 = arith.mulf %249, %230 : vector<2x32xf32>
    %259 = arith.addf %257, %258 : vector<2x32xf32>
    %260 = vector.shape_cast %259 : vector<2x32xf32> to vector<2x1x32xf32>
    %c0_83 = arith.constant 0 : index
    %c7 = arith.constant 7 : index
    %c0_84 = arith.constant 0 : index
    %261 = vector.load %arg6[%c0_83, %c7, %c0_84] : memref<2x8x64xf32, #tpu.memory_space<vmem>>, vector<2x1x32xf32>
    tpu.vector_store %arg6[%c0_83, %c7, %c0_84], %260 {strides = array<i32>} : memref<2x8x64xf32, #tpu.memory_space<vmem>>, vector<2x1x32xf32>,
    %cst_85 = arith.constant 0.000000e+00 : f32
    %262 = vector.broadcast %cst_85 : f32 to vector<2x32xf32>
    %263 = vector.extract_strided_slice %28 {offsets = [0, 7, 0], sizes = [2, 1, 96], strides = [1, 1, 1]} : vector<2x8x96xf32> to vector<2x1x96xf32>
    %264 = vector.shape_cast %263 : vector<2x1x96xf32> to vector<2x96xf32>
    %c144 = arith.constant 144 : index
    %c0_86 = arith.constant 0 : index
    %265 = vector.load %arg2[%c144, %c0_86] : memref<648x128xf32, #tpu.memory_space<vmem>>, vector<32x96xf32>
    %cst_87 = arith.constant dense<0.000000e+00> : vector<2x96xf32>
    %266 = tpu.matmul %262, %265, %cst_87 {dimension_numbers = #tpu.dot_dimension_numbers<[1], [0], [0], [1], [0, 0, 1, 1], [], []>} : vector<2x32xf32>, vector<32x96xf32>, vector<2x96xf32> -> vector<2x96xf32>
    %c184 = arith.constant 184 : index
    %c0_88 = arith.constant 0 : index
    %267 = vector.load %arg2[%c184, %c0_88] : memref<648x128xf32, #tpu.memory_space<vmem>>, vector<1x96xf32>
    %268 = vector.broadcast %267 : vector<1x96xf32> to vector<2x96xf32>
    %269 = arith.addf %266, %268 : vector<2x96xf32>
    %270 = vector.extract_strided_slice %264 {offsets = [0, 0], sizes = [2, 64], strides = [1, 1]} : vector<2x96xf32> to vector<2x64xf32>
    %271 = vector.extract_strided_slice %269 {offsets = [0, 0], sizes = [2, 64], strides = [1, 1]} : vector<2x96xf32> to vector<2x64xf32>
    %272 = arith.addf %270, %271 : vector<2x64xf32>
    %273 = arith.negf %272 : vector<2x64xf32>
    %274 = math.exp %273 : vector<2x64xf32>
    %cst_89 = arith.constant 1.000000e+00 : f32
    %275 = vector.broadcast %cst_89 : f32 to vector<2x64xf32>
    %276 = arith.addf %275, %274 : vector<2x64xf32>
    %277 = arith.divf %275, %276 : vector<2x64xf32>
    %278 = vector.extract_strided_slice %277 {offsets = [0, 0], sizes = [2, 32], strides = [1, 1]} : vector<2x64xf32> to vector<2x32xf32>
    %279 = vector.extract_strided_slice %277 {offsets = [0, 32], sizes = [2, 32], strides = [1, 1]} : vector<2x64xf32> to vector<2x32xf32>
    %280 = vector.extract_strided_slice %264 {offsets = [0, 64], sizes = [2, 32], strides = [1, 1]} : vector<2x96xf32> to vector<2x32xf32>
    %281 = vector.extract_strided_slice %269 {offsets = [0, 64], sizes = [2, 32], strides = [1, 1]} : vector<2x96xf32> to vector<2x32xf32>
    %282 = arith.mulf %278, %281 : vector<2x32xf32>
    %283 = arith.addf %280, %282 : vector<2x32xf32>
    %284 = math.tanh %283 : vector<2x32xf32>
    %cst_90 = arith.constant 1.000000e+00 : f32
    %285 = vector.broadcast %cst_90 : f32 to vector<2x32xf32>
    %286 = arith.subf %285, %279 : vector<2x32xf32>
    %287 = arith.mulf %286, %284 : vector<2x32xf32>
    %288 = arith.mulf %279, %262 : vector<2x32xf32>
    %289 = arith.addf %287, %288 : vector<2x32xf32>
    %290 = vector.shape_cast %289 : vector<2x32xf32> to vector<2x1x32xf32>
    %c0_91 = arith.constant 0 : index
    %c7_92 = arith.constant 7 : index
    %c32_93 = arith.constant 32 : index
    %291 = vector.load %arg6[%c0_91, %c7_92, %c32_93] : memref<2x8x64xf32, #tpu.memory_space<vmem>>, vector<2x1x32xf32>
    tpu.vector_store %arg6[%c0_91, %c7_92, %c32_93], %290 {strides = array<i32>} : memref<2x8x64xf32, #tpu.memory_space<vmem>>, vector<2x1x32xf32>,
    %292 = vector.extract_strided_slice %28 {offsets = [0, 6, 0], sizes = [2, 1, 96], strides = [1, 1, 1]} : vector<2x8x96xf32> to vector<2x1x96xf32>
    %293 = vector.shape_cast %292 : vector<2x1x96xf32> to vector<2x96xf32>
    %c144_94 = arith.constant 144 : index
    %c0_95 = arith.constant 0 : index
    %294 = vector.load %arg2[%c144_94, %c0_95] : memref<648x128xf32, #tpu.memory_space<vmem>>, vector<32x96xf32>
    %cst_96 = arith.constant dense<0.000000e+00> : vector<2x96xf32>
    %295 = tpu.matmul %289, %294, %cst_96 {dimension_numbers = #tpu.dot_dimension_numbers<[1], [0], [0], [1], [0, 0, 1, 1], [], []>} : vector<2x32xf32>, vector<32x96xf32>, vector<2x96xf32> -> vector<2x96xf32>
    %c184_97 = arith.constant 184 : index
    %c0_98 = arith.constant 0 : index
    %296 = vector.load %arg2[%c184_97, %c0_98] : memref<648x128xf32, #tpu.memory_space<vmem>>, vector<1x96xf32>
    %297 = vector.broadcast %296 : vector<1x96xf32> to vector<2x96xf32>
    %298 = arith.addf %295, %297 : vector<2x96xf32>
    %299 = vector.extract_strided_slice %293 {offsets = [0, 0], sizes = [2, 64], strides = [1, 1]} : vector<2x96xf32> to vector<2x64xf32>
    %300 = vector.extract_strided_slice %298 {offsets = [0, 0], sizes = [2, 64], strides = [1, 1]} : vector<2x96xf32> to vector<2x64xf32>
    %301 = arith.addf %299, %300 : vector<2x64xf32>
    %302 = arith.negf %301 : vector<2x64xf32>
    %303 = math.exp %302 : vector<2x64xf32>
    %cst_99 = arith.constant 1.000000e+00 : f32
    %304 = vector.broadcast %cst_99 : f32 to vector<2x64xf32>
    %305 = arith.addf %304, %303 : vector<2x64xf32>
    %306 = arith.divf %304, %305 : vector<2x64xf32>
    %307 = vector.extract_strided_slice %306 {offsets = [0, 0], sizes = [2, 32], strides = [1, 1]} : vector<2x64xf32> to vector<2x32xf32>
    %308 = vector.extract_strided_slice %306 {offsets = [0, 32], sizes = [2, 32], strides = [1, 1]} : vector<2x64xf32> to vector<2x32xf32>
    %309 = vector.extract_strided_slice %293 {offsets = [0, 64], sizes = [2, 32], strides = [1, 1]} : vector<2x96xf32> to vector<2x32xf32>
    %310 = vector.extract_strided_slice %298 {offsets = [0, 64], sizes = [2, 32], strides = [1, 1]} : vector<2x96xf32> to vector<2x32xf32>
    %311 = arith.mulf %307, %310 : vector<2x32xf32>
    %312 = arith.addf %309, %311 : vector<2x32xf32>
    %313 = math.tanh %312 : vector<2x32xf32>
    %cst_100 = arith.constant 1.000000e+00 : f32
    %314 = vector.broadcast %cst_100 : f32 to vector<2x32xf32>
    %315 = arith.subf %314, %308 : vector<2x32xf32>
    %316 = arith.mulf %315, %313 : vector<2x32xf32>
    %317 = arith.mulf %308, %289 : vector<2x32xf32>
    %318 = arith.addf %316, %317 : vector<2x32xf32>
    %319 = vector.shape_cast %318 : vector<2x32xf32> to vector<2x1x32xf32>
    %c0_101 = arith.constant 0 : index
    %c6_102 = arith.constant 6 : index
    %c32_103 = arith.constant 32 : index
    %320 = vector.load %arg6[%c0_101, %c6_102, %c32_103] : memref<2x8x64xf32, #tpu.memory_space<vmem>>, vector<2x1x32xf32>
    tpu.vector_store %arg6[%c0_101, %c6_102, %c32_103], %319 {strides = array<i32>} : memref<2x8x64xf32, #tpu.memory_space<vmem>>, vector<2x1x32xf32>,
    %321 = vector.extract_strided_slice %28 {offsets = [0, 5, 0], sizes = [2, 1, 96], strides = [1, 1, 1]} : vector<2x8x96xf32> to vector<2x1x96xf32>
    %322 = vector.shape_cast %321 : vector<2x1x96xf32> to vector<2x96xf32>
    %c144_104 = arith.constant 144 : index
    %c0_105 = arith.constant 0 : index
    %323 = vector.load %arg2[%c144_104, %c0_105] : memref<648x128xf32, #tpu.memory_space<vmem>>, vector<32x96xf32>
    %cst_106 = arith.constant dense<0.000000e+00> : vector<2x96xf32>
    %324 = tpu.matmul %318, %323, %cst_106 {dimension_numbers = #tpu.dot_dimension_numbers<[1], [0], [0], [1], [0, 0, 1, 1], [], []>} : vector<2x32xf32>, vector<32x96xf32>, vector<2x96xf32> -> vector<2x96xf32>
    %c184_107 = arith.constant 184 : index
    %c0_108 = arith.constant 0 : index
    %325 = vector.load %arg2[%c184_107, %c0_108] : memref<648x128xf32, #tpu.memory_space<vmem>>, vector<1x96xf32>
    %326 = vector.broadcast %325 : vector<1x96xf32> to vector<2x96xf32>
    %327 = arith.addf %324, %326 : vector<2x96xf32>
    %328 = vector.extract_strided_slice %322 {offsets = [0, 0], sizes = [2, 64], strides = [1, 1]} : vector<2x96xf32> to vector<2x64xf32>
    %329 = vector.extract_strided_slice %327 {offsets = [0, 0], sizes = [2, 64], strides = [1, 1]} : vector<2x96xf32> to vector<2x64xf32>
    %330 = arith.addf %328, %329 : vector<2x64xf32>
    %331 = arith.negf %330 : vector<2x64xf32>
    %332 = math.exp %331 : vector<2x64xf32>
    %cst_109 = arith.constant 1.000000e+00 : f32
    %333 = vector.broadcast %cst_109 : f32 to vector<2x64xf32>
    %334 = arith.addf %333, %332 : vector<2x64xf32>
    %335 = arith.divf %333, %334 : vector<2x64xf32>
    %336 = vector.extract_strided_slice %335 {offsets = [0, 0], sizes = [2, 32], strides = [1, 1]} : vector<2x64xf32> to vector<2x32xf32>
    %337 = vector.extract_strided_slice %335 {offsets = [0, 32], sizes = [2, 32], strides = [1, 1]} : vector<2x64xf32> to vector<2x32xf32>
    %338 = vector.extract_strided_slice %322 {offsets = [0, 64], sizes = [2, 32], strides = [1, 1]} : vector<2x96xf32> to vector<2x32xf32>
    %339 = vector.extract_strided_slice %327 {offsets = [0, 64], sizes = [2, 32], strides = [1, 1]} : vector<2x96xf32> to vector<2x32xf32>
    %340 = arith.mulf %336, %339 : vector<2x32xf32>
    %341 = arith.addf %338, %340 : vector<2x32xf32>
    %342 = math.tanh %341 : vector<2x32xf32>
    %cst_110 = arith.constant 1.000000e+00 : f32
    %343 = vector.broadcast %cst_110 : f32 to vector<2x32xf32>
    %344 = arith.subf %343, %337 : vector<2x32xf32>
    %345 = arith.mulf %344, %342 : vector<2x32xf32>
    %346 = arith.mulf %337, %318 : vector<2x32xf32>
    %347 = arith.addf %345, %346 : vector<2x32xf32>
    %348 = vector.shape_cast %347 : vector<2x32xf32> to vector<2x1x32xf32>
    %c0_111 = arith.constant 0 : index
    %c5_112 = arith.constant 5 : index
    %c32_113 = arith.constant 32 : index
    %349 = vector.load %arg6[%c0_111, %c5_112, %c32_113] : memref<2x8x64xf32, #tpu.memory_space<vmem>>, vector<2x1x32xf32>
    tpu.vector_store %arg6[%c0_111, %c5_112, %c32_113], %348 {strides = array<i32>} : memref<2x8x64xf32, #tpu.memory_space<vmem>>, vector<2x1x32xf32>,
    %350 = vector.extract_strided_slice %28 {offsets = [0, 4, 0], sizes = [2, 1, 96], strides = [1, 1, 1]} : vector<2x8x96xf32> to vector<2x1x96xf32>
    %351 = vector.shape_cast %350 : vector<2x1x96xf32> to vector<2x96xf32>
    %c144_114 = arith.constant 144 : index
    %c0_115 = arith.constant 0 : index
    %352 = vector.load %arg2[%c144_114, %c0_115] : memref<648x128xf32, #tpu.memory_space<vmem>>, vector<32x96xf32>
    %cst_116 = arith.constant dense<0.000000e+00> : vector<2x96xf32>
    %353 = tpu.matmul %347, %352, %cst_116 {dimension_numbers = #tpu.dot_dimension_numbers<[1], [0], [0], [1], [0, 0, 1, 1], [], []>} : vector<2x32xf32>, vector<32x96xf32>, vector<2x96xf32> -> vector<2x96xf32>
    %c184_117 = arith.constant 184 : index
    %c0_118 = arith.constant 0 : index
    %354 = vector.load %arg2[%c184_117, %c0_118] : memref<648x128xf32, #tpu.memory_space<vmem>>, vector<1x96xf32>
    %355 = vector.broadcast %354 : vector<1x96xf32> to vector<2x96xf32>
    %356 = arith.addf %353, %355 : vector<2x96xf32>
    %357 = vector.extract_strided_slice %351 {offsets = [0, 0], sizes = [2, 64], strides = [1, 1]} : vector<2x96xf32> to vector<2x64xf32>
    %358 = vector.extract_strided_slice %356 {offsets = [0, 0], sizes = [2, 64], strides = [1, 1]} : vector<2x96xf32> to vector<2x64xf32>
    %359 = arith.addf %357, %358 : vector<2x64xf32>
    %360 = arith.negf %359 : vector<2x64xf32>
    %361 = math.exp %360 : vector<2x64xf32>
    %cst_119 = arith.constant 1.000000e+00 : f32
    %362 = vector.broadcast %cst_119 : f32 to vector<2x64xf32>
    %363 = arith.addf %362, %361 : vector<2x64xf32>
    %364 = arith.divf %362, %363 : vector<2x64xf32>
    %365 = vector.extract_strided_slice %364 {offsets = [0, 0], sizes = [2, 32], strides = [1, 1]} : vector<2x64xf32> to vector<2x32xf32>
    %366 = vector.extract_strided_slice %364 {offsets = [0, 32], sizes = [2, 32], strides = [1, 1]} : vector<2x64xf32> to vector<2x32xf32>
    %367 = vector.extract_strided_slice %351 {offsets = [0, 64], sizes = [2, 32], strides = [1, 1]} : vector<2x96xf32> to vector<2x32xf32>
    %368 = vector.extract_strided_slice %356 {offsets = [0, 64], sizes = [2, 32], strides = [1, 1]} : vector<2x96xf32> to vector<2x32xf32>
    %369 = arith.mulf %365, %368 : vector<2x32xf32>
    %370 = arith.addf %367, %369 : vector<2x32xf32>
    %371 = math.tanh %370 : vector<2x32xf32>
    %cst_120 = arith.constant 1.000000e+00 : f32
    %372 = vector.broadcast %cst_120 : f32 to vector<2x32xf32>
    %373 = arith.subf %372, %366 : vector<2x32xf32>
    %374 = arith.mulf %373, %371 : vector<2x32xf32>
    %375 = arith.mulf %366, %347 : vector<2x32xf32>
    %376 = arith.addf %374, %375 : vector<2x32xf32>
    %377 = vector.shape_cast %376 : vector<2x32xf32> to vector<2x1x32xf32>
    %c0_121 = arith.constant 0 : index
    %c4_122 = arith.constant 4 : index
    %c32_123 = arith.constant 32 : index
    %378 = vector.load %arg6[%c0_121, %c4_122, %c32_123] : memref<2x8x64xf32, #tpu.memory_space<vmem>>, vector<2x1x32xf32>
    tpu.vector_store %arg6[%c0_121, %c4_122, %c32_123], %377 {strides = array<i32>} : memref<2x8x64xf32, #tpu.memory_space<vmem>>, vector<2x1x32xf32>,
    %379 = vector.extract_strided_slice %28 {offsets = [0, 3, 0], sizes = [2, 1, 96], strides = [1, 1, 1]} : vector<2x8x96xf32> to vector<2x1x96xf32>
    %380 = vector.shape_cast %379 : vector<2x1x96xf32> to vector<2x96xf32>
    %c144_124 = arith.constant 144 : index
    %c0_125 = arith.constant 0 : index
    %381 = vector.load %arg2[%c144_124, %c0_125] : memref<648x128xf32, #tpu.memory_space<vmem>>, vector<32x96xf32>
    %cst_126 = arith.constant dense<0.000000e+00> : vector<2x96xf32>
    %382 = tpu.matmul %376, %381, %cst_126 {dimension_numbers = #tpu.dot_dimension_numbers<[1], [0], [0], [1], [0, 0, 1, 1], [], []>} : vector<2x32xf32>, vector<32x96xf32>, vector<2x96xf32> -> vector<2x96xf32>
    %c184_127 = arith.constant 184 : index
    %c0_128 = arith.constant 0 : index
    %383 = vector.load %arg2[%c184_127, %c0_128] : memref<648x128xf32, #tpu.memory_space<vmem>>, vector<1x96xf32>
    %384 = vector.broadcast %383 : vector<1x96xf32> to vector<2x96xf32>
    %385 = arith.addf %382, %384 : vector<2x96xf32>
    %386 = vector.extract_strided_slice %380 {offsets = [0, 0], sizes = [2, 64], strides = [1, 1]} : vector<2x96xf32> to vector<2x64xf32>
    %387 = vector.extract_strided_slice %385 {offsets = [0, 0], sizes = [2, 64], strides = [1, 1]} : vector<2x96xf32> to vector<2x64xf32>
    %388 = arith.addf %386, %387 : vector<2x64xf32>
    %389 = arith.negf %388 : vector<2x64xf32>
    %390 = math.exp %389 : vector<2x64xf32>
    %cst_129 = arith.constant 1.000000e+00 : f32
    %391 = vector.broadcast %cst_129 : f32 to vector<2x64xf32>
    %392 = arith.addf %391, %390 : vector<2x64xf32>
    %393 = arith.divf %391, %392 : vector<2x64xf32>
    %394 = vector.extract_strided_slice %393 {offsets = [0, 0], sizes = [2, 32], strides = [1, 1]} : vector<2x64xf32> to vector<2x32xf32>
    %395 = vector.extract_strided_slice %393 {offsets = [0, 32], sizes = [2, 32], strides = [1, 1]} : vector<2x64xf32> to vector<2x32xf32>
    %396 = vector.extract_strided_slice %380 {offsets = [0, 64], sizes = [2, 32], strides = [1, 1]} : vector<2x96xf32> to vector<2x32xf32>
    %397 = vector.extract_strided_slice %385 {offsets = [0, 64], sizes = [2, 32], strides = [1, 1]} : vector<2x96xf32> to vector<2x32xf32>
    %398 = arith.mulf %394, %397 : vector<2x32xf32>
    %399 = arith.addf %396, %398 : vector<2x32xf32>
    %400 = math.tanh %399 : vector<2x32xf32>
    %cst_130 = arith.constant 1.000000e+00 : f32
    %401 = vector.broadcast %cst_130 : f32 to vector<2x32xf32>
    %402 = arith.subf %401, %395 : vector<2x32xf32>
    %403 = arith.mulf %402, %400 : vector<2x32xf32>
    %404 = arith.mulf %395, %376 : vector<2x32xf32>
    %405 = arith.addf %403, %404 : vector<2x32xf32>
    %406 = vector.shape_cast %405 : vector<2x32xf32> to vector<2x1x32xf32>
    %c0_131 = arith.constant 0 : index
    %c3_132 = arith.constant 3 : index
    %c32_133 = arith.constant 32 : index
    %407 = vector.load %arg6[%c0_131, %c3_132, %c32_133] : memref<2x8x64xf32, #tpu.memory_space<vmem>>, vector<2x1x32xf32>
    tpu.vector_store %arg6[%c0_131, %c3_132, %c32_133], %406 {strides = array<i32>} : memref<2x8x64xf32, #tpu.memory_space<vmem>>, vector<2x1x32xf32>,
    %408 = vector.extract_strided_slice %28 {offsets = [0, 2, 0], sizes = [2, 1, 96], strides = [1, 1, 1]} : vector<2x8x96xf32> to vector<2x1x96xf32>
    %409 = vector.shape_cast %408 : vector<2x1x96xf32> to vector<2x96xf32>
    %c144_134 = arith.constant 144 : index
    %c0_135 = arith.constant 0 : index
    %410 = vector.load %arg2[%c144_134, %c0_135] : memref<648x128xf32, #tpu.memory_space<vmem>>, vector<32x96xf32>
    %cst_136 = arith.constant dense<0.000000e+00> : vector<2x96xf32>
    %411 = tpu.matmul %405, %410, %cst_136 {dimension_numbers = #tpu.dot_dimension_numbers<[1], [0], [0], [1], [0, 0, 1, 1], [], []>} : vector<2x32xf32>, vector<32x96xf32>, vector<2x96xf32> -> vector<2x96xf32>
    %c184_137 = arith.constant 184 : index
    %c0_138 = arith.constant 0 : index
    %412 = vector.load %arg2[%c184_137, %c0_138] : memref<648x128xf32, #tpu.memory_space<vmem>>, vector<1x96xf32>
    %413 = vector.broadcast %412 : vector<1x96xf32> to vector<2x96xf32>
    %414 = arith.addf %411, %413 : vector<2x96xf32>
    %415 = vector.extract_strided_slice %409 {offsets = [0, 0], sizes = [2, 64], strides = [1, 1]} : vector<2x96xf32> to vector<2x64xf32>
    %416 = vector.extract_strided_slice %414 {offsets = [0, 0], sizes = [2, 64], strides = [1, 1]} : vector<2x96xf32> to vector<2x64xf32>
    %417 = arith.addf %415, %416 : vector<2x64xf32>
    %418 = arith.negf %417 : vector<2x64xf32>
    %419 = math.exp %418 : vector<2x64xf32>
    %cst_139 = arith.constant 1.000000e+00 : f32
    %420 = vector.broadcast %cst_139 : f32 to vector<2x64xf32>
    %421 = arith.addf %420, %419 : vector<2x64xf32>
    %422 = arith.divf %420, %421 : vector<2x64xf32>
    %423 = vector.extract_strided_slice %422 {offsets = [0, 0], sizes = [2, 32], strides = [1, 1]} : vector<2x64xf32> to vector<2x32xf32>
    %424 = vector.extract_strided_slice %422 {offsets = [0, 32], sizes = [2, 32], strides = [1, 1]} : vector<2x64xf32> to vector<2x32xf32>
    %425 = vector.extract_strided_slice %409 {offsets = [0, 64], sizes = [2, 32], strides = [1, 1]} : vector<2x96xf32> to vector<2x32xf32>
    %426 = vector.extract_strided_slice %414 {offsets = [0, 64], sizes = [2, 32], strides = [1, 1]} : vector<2x96xf32> to vector<2x32xf32>
    %427 = arith.mulf %423, %426 : vector<2x32xf32>
    %428 = arith.addf %425, %427 : vector<2x32xf32>
    %429 = math.tanh %428 : vector<2x32xf32>
    %cst_140 = arith.constant 1.000000e+00 : f32
    %430 = vector.broadcast %cst_140 : f32 to vector<2x32xf32>
    %431 = arith.subf %430, %424 : vector<2x32xf32>
    %432 = arith.mulf %431, %429 : vector<2x32xf32>
    %433 = arith.mulf %424, %405 : vector<2x32xf32>
    %434 = arith.addf %432, %433 : vector<2x32xf32>
    %435 = vector.shape_cast %434 : vector<2x32xf32> to vector<2x1x32xf32>
    %c0_141 = arith.constant 0 : index
    %c2_142 = arith.constant 2 : index
    %c32_143 = arith.constant 32 : index
    %436 = vector.load %arg6[%c0_141, %c2_142, %c32_143] : memref<2x8x64xf32, #tpu.memory_space<vmem>>, vector<2x1x32xf32>
    tpu.vector_store %arg6[%c0_141, %c2_142, %c32_143], %435 {strides = array<i32>} : memref<2x8x64xf32, #tpu.memory_space<vmem>>, vector<2x1x32xf32>,
    %437 = vector.extract_strided_slice %28 {offsets = [0, 1, 0], sizes = [2, 1, 96], strides = [1, 1, 1]} : vector<2x8x96xf32> to vector<2x1x96xf32>
    %438 = vector.shape_cast %437 : vector<2x1x96xf32> to vector<2x96xf32>
    %c144_144 = arith.constant 144 : index
    %c0_145 = arith.constant 0 : index
    %439 = vector.load %arg2[%c144_144, %c0_145] : memref<648x128xf32, #tpu.memory_space<vmem>>, vector<32x96xf32>
    %cst_146 = arith.constant dense<0.000000e+00> : vector<2x96xf32>
    %440 = tpu.matmul %434, %439, %cst_146 {dimension_numbers = #tpu.dot_dimension_numbers<[1], [0], [0], [1], [0, 0, 1, 1], [], []>} : vector<2x32xf32>, vector<32x96xf32>, vector<2x96xf32> -> vector<2x96xf32>
    %c184_147 = arith.constant 184 : index
    %c0_148 = arith.constant 0 : index
    %441 = vector.load %arg2[%c184_147, %c0_148] : memref<648x128xf32, #tpu.memory_space<vmem>>, vector<1x96xf32>
    %442 = vector.broadcast %441 : vector<1x96xf32> to vector<2x96xf32>
    %443 = arith.addf %440, %442 : vector<2x96xf32>
    %444 = vector.extract_strided_slice %438 {offsets = [0, 0], sizes = [2, 64], strides = [1, 1]} : vector<2x96xf32> to vector<2x64xf32>
    %445 = vector.extract_strided_slice %443 {offsets = [0, 0], sizes = [2, 64], strides = [1, 1]} : vector<2x96xf32> to vector<2x64xf32>
    %446 = arith.addf %444, %445 : vector<2x64xf32>
    %447 = arith.negf %446 : vector<2x64xf32>
    %448 = math.exp %447 : vector<2x64xf32>
    %cst_149 = arith.constant 1.000000e+00 : f32
    %449 = vector.broadcast %cst_149 : f32 to vector<2x64xf32>
    %450 = arith.addf %449, %448 : vector<2x64xf32>
    %451 = arith.divf %449, %450 : vector<2x64xf32>
    %452 = vector.extract_strided_slice %451 {offsets = [0, 0], sizes = [2, 32], strides = [1, 1]} : vector<2x64xf32> to vector<2x32xf32>
    %453 = vector.extract_strided_slice %451 {offsets = [0, 32], sizes = [2, 32], strides = [1, 1]} : vector<2x64xf32> to vector<2x32xf32>
    %454 = vector.extract_strided_slice %438 {offsets = [0, 64], sizes = [2, 32], strides = [1, 1]} : vector<2x96xf32> to vector<2x32xf32>
    %455 = vector.extract_strided_slice %443 {offsets = [0, 64], sizes = [2, 32], strides = [1, 1]} : vector<2x96xf32> to vector<2x32xf32>
    %456 = arith.mulf %452, %455 : vector<2x32xf32>
    %457 = arith.addf %454, %456 : vector<2x32xf32>
    %458 = math.tanh %457 : vector<2x32xf32>
    %cst_150 = arith.constant 1.000000e+00 : f32
    %459 = vector.broadcast %cst_150 : f32 to vector<2x32xf32>
    %460 = arith.subf %459, %453 : vector<2x32xf32>
    %461 = arith.mulf %460, %458 : vector<2x32xf32>
    %462 = arith.mulf %453, %434 : vector<2x32xf32>
    %463 = arith.addf %461, %462 : vector<2x32xf32>
    %464 = vector.shape_cast %463 : vector<2x32xf32> to vector<2x1x32xf32>
    %c0_151 = arith.constant 0 : index
    %c1_152 = arith.constant 1 : index
    %c32_153 = arith.constant 32 : index
    %465 = vector.load %arg6[%c0_151, %c1_152, %c32_153] : memref<2x8x64xf32, #tpu.memory_space<vmem>>, vector<2x1x32xf32>
    tpu.vector_store %arg6[%c0_151, %c1_152, %c32_153], %464 {strides = array<i32>} : memref<2x8x64xf32, #tpu.memory_space<vmem>>, vector<2x1x32xf32>,
    %466 = vector.extract_strided_slice %28 {offsets = [0, 0, 0], sizes = [2, 1, 96], strides = [1, 1, 1]} : vector<2x8x96xf32> to vector<2x1x96xf32>
    %467 = vector.shape_cast %466 : vector<2x1x96xf32> to vector<2x96xf32>
    %c144_154 = arith.constant 144 : index
    %c0_155 = arith.constant 0 : index
    %468 = vector.load %arg2[%c144_154, %c0_155] : memref<648x128xf32, #tpu.memory_space<vmem>>, vector<32x96xf32>
    %cst_156 = arith.constant dense<0.000000e+00> : vector<2x96xf32>
    %469 = tpu.matmul %463, %468, %cst_156 {dimension_numbers = #tpu.dot_dimension_numbers<[1], [0], [0], [1], [0, 0, 1, 1], [], []>} : vector<2x32xf32>, vector<32x96xf32>, vector<2x96xf32> -> vector<2x96xf32>
    %c184_157 = arith.constant 184 : index
    %c0_158 = arith.constant 0 : index
    %470 = vector.load %arg2[%c184_157, %c0_158] : memref<648x128xf32, #tpu.memory_space<vmem>>, vector<1x96xf32>
    %471 = vector.broadcast %470 : vector<1x96xf32> to vector<2x96xf32>
    %472 = arith.addf %469, %471 : vector<2x96xf32>
    %473 = vector.extract_strided_slice %467 {offsets = [0, 0], sizes = [2, 64], strides = [1, 1]} : vector<2x96xf32> to vector<2x64xf32>
    %474 = vector.extract_strided_slice %472 {offsets = [0, 0], sizes = [2, 64], strides = [1, 1]} : vector<2x96xf32> to vector<2x64xf32>
    %475 = arith.addf %473, %474 : vector<2x64xf32>
    %476 = arith.negf %475 : vector<2x64xf32>
    %477 = math.exp %476 : vector<2x64xf32>
    %cst_159 = arith.constant 1.000000e+00 : f32
    %478 = vector.broadcast %cst_159 : f32 to vector<2x64xf32>
    %479 = arith.addf %478, %477 : vector<2x64xf32>
    %480 = arith.divf %478, %479 : vector<2x64xf32>
    %481 = vector.extract_strided_slice %480 {offsets = [0, 0], sizes = [2, 32], strides = [1, 1]} : vector<2x64xf32> to vector<2x32xf32>
    %482 = vector.extract_strided_slice %480 {offsets = [0, 32], sizes = [2, 32], strides = [1, 1]} : vector<2x64xf32> to vector<2x32xf32>
    %483 = vector.extract_strided_slice %467 {offsets = [0, 64], sizes = [2, 32], strides = [1, 1]} : vector<2x96xf32> to vector<2x32xf32>
    %484 = vector.extract_strided_slice %472 {offsets = [0, 64], sizes = [2, 32], strides = [1, 1]} : vector<2x96xf32> to vector<2x32xf32>
    %485 = arith.mulf %481, %484 : vector<2x32xf32>
    %486 = arith.addf %483, %485 : vector<2x32xf32>
    %487 = math.tanh %486 : vector<2x32xf32>
    %cst_160 = arith.constant 1.000000e+00 : f32
    %488 = vector.broadcast %cst_160 : f32 to vector<2x32xf32>
    %489 = arith.subf %488, %482 : vector<2x32xf32>
    %490 = arith.mulf %489, %487 : vector<2x32xf32>
    %491 = arith.mulf %482, %463 : vector<2x32xf32>
    %492 = arith.addf %490, %491 : vector<2x32xf32>
    %493 = vector.shape_cast %492 : vector<2x32xf32> to vector<2x1x32xf32>
    %c0_161 = arith.constant 0 : index
    %c0_162 = arith.constant 0 : index
    %c32_163 = arith.constant 32 : index
    %494 = vector.load %arg6[%c0_161, %c0_162, %c32_163] : memref<2x8x64xf32, #tpu.memory_space<vmem>>, vector<2x1x32xf32>
    tpu.vector_store %arg6[%c0_161, %c0_162, %c32_163], %493 {strides = array<i32>} : memref<2x8x64xf32, #tpu.memory_space<vmem>>, vector<2x1x32xf32>,
    %c192 = arith.constant 192 : index
    %c0_164 = arith.constant 0 : index
    %495 = vector.load %arg2[%c192, %c0_164] : memref<648x128xf32, #tpu.memory_space<vmem>>, vector<32x32xf32>
    %cst_165 = arith.constant dense<0.000000e+00> : vector<2x32xf32>
    %496 = tpu.matmul %259, %495, %cst_165 {dimension_numbers = #tpu.dot_dimension_numbers<[1], [0], [0], [1], [0, 0, 1, 1], [], []>} : vector<2x32xf32>, vector<32x32xf32>, vector<2x32xf32> -> vector<2x32xf32>
    %c224 = arith.constant 224 : index
    %c0_166 = arith.constant 0 : index
    %497 = vector.load %arg2[%c224, %c0_166] : memref<648x128xf32, #tpu.memory_space<vmem>>, vector<32x32xf32>
    %cst_167 = arith.constant dense<0.000000e+00> : vector<2x32xf32>
    %498 = tpu.matmul %492, %497, %cst_167 {dimension_numbers = #tpu.dot_dimension_numbers<[1], [0], [0], [1], [0, 0, 1, 1], [], []>} : vector<2x32xf32>, vector<32x32xf32>, vector<2x32xf32> -> vector<2x32xf32>
    %499 = arith.addf %496, %498 : vector<2x32xf32>
    %c256 = arith.constant 256 : index
    %c0_168 = arith.constant 0 : index
    %500 = vector.load %arg2[%c256, %c0_168] : memref<648x128xf32, #tpu.memory_space<vmem>>, vector<1x32xf32>
    %501 = vector.broadcast %500 : vector<1x32xf32> to vector<2x32xf32>
    %502 = arith.addf %499, %501 : vector<2x32xf32>
    %503 = math.tanh %502 : vector<2x32xf32>
    %c0_169 = arith.constant 0 : index
    %c0_170 = arith.constant 0 : index
    %c0_171 = arith.constant 0 : index
    %504 = vector.load %arg6[%c0_169, %c0_170, %c0_171] : memref<2x8x64xf32, #tpu.memory_space<vmem>>, vector<2x8x64xf32>
    %505 = vector.shape_cast %504 : vector<2x8x64xf32> to vector<16x64xf32>
    %c296 = arith.constant 296 : index
    %c0_172 = arith.constant 0 : index
    %506 = vector.load %arg2[%c296, %c0_172] : memref<648x128xf32, #tpu.memory_space<vmem>>, vector<64x32xf32>
    %cst_173 = arith.constant dense<0.000000e+00> : vector<16x32xf32>
    %507 = tpu.matmul %505, %506, %cst_173 {dimension_numbers = #tpu.dot_dimension_numbers<[1], [0], [0], [1], [0, 0, 1, 1], [], []>} : vector<16x64xf32>, vector<64x32xf32>, vector<16x32xf32> -> vector<16x32xf32>
    %c360 = arith.constant 360 : index
    %c0_174 = arith.constant 0 : index
    %508 = vector.load %arg2[%c360, %c0_174] : memref<648x128xf32, #tpu.memory_space<vmem>>, vector<1x32xf32>
    %509 = vector.broadcast %508 : vector<1x32xf32> to vector<16x32xf32>
    %510 = arith.addf %507, %509 : vector<16x32xf32>
    %511 = vector.shape_cast %510 : vector<16x32xf32> to vector<2x8x32xf32>
    %cst_175 = arith.constant 0.000000e+00 : f32
    %512 = vector.broadcast %cst_175 : f32 to vector<2x32xf32>
    %c0_176 = arith.constant 0 : index
    %c0_177 = arith.constant 0 : index
    %c0_178 = arith.constant 0 : index
    %513 = vector.load %arg5[%c0_176, %c0_177, %c0_178] : memref<8x2x32xf32, #tpu.memory_space<vmem>>, vector<1x2x32xf32>
    %514 = vector.shape_cast %513 : vector<1x2x32xf32> to vector<2x32xf32>
    %515 = vector.shape_cast %512 : vector<2x32xf32> to vector<1x2x32xf32>
    tpu.vector_store %arg5[%c0_176, %c0_177, %c0_178], %515 {strides = array<i32>} : memref<8x2x32xf32, #tpu.memory_space<vmem>>, vector<1x2x32xf32>,
    %516 = vector.extract_strided_slice %16 {offsets = [0, 0, 0], sizes = [2, 1, 16], strides = [1, 1, 1]} : vector<2x8x16xf32> to vector<2x1x16xf32>
    %517 = vector.shape_cast %516 : vector<2x1x16xf32> to vector<2x16xf32>
    %c0_179 = arith.constant 0 : index
    %c0_180 = arith.constant 0 : index
    %518 = vector.load %arg7[%c0_179, %c0_180] : memref<2x16xf32, #tpu.memory_space<vmem>>, vector<2x16xf32>
    tpu.vector_store %arg7[%c0_179, %c0_180], %517 {strides = array<i32>} : memref<2x16xf32, #tpu.memory_space<vmem>>, vector<2x16xf32>,
    %c0_181 = arith.constant 0 : index
    %c0_182 = arith.constant 0 : index
    %519 = vector.load %arg7[%c0_181, %c0_182] : memref<2x16xf32, #tpu.memory_space<vmem>>, vector<2x16xf32>
    %c264 = arith.constant 264 : index
    %c0_183 = arith.constant 0 : index
    %520 = vector.load %arg2[%c264, %c0_183] : memref<648x128xf32, #tpu.memory_space<vmem>>, vector<32x32xf32>
    %cst_184 = arith.constant dense<0.000000e+00> : vector<2x32xf32>
    %521 = tpu.matmul %503, %520, %cst_184 {dimension_numbers = #tpu.dot_dimension_numbers<[1], [0], [0], [1], [0, 0, 1, 1], [], []>} : vector<2x32xf32>, vector<32x32xf32>, vector<2x32xf32> -> vector<2x32xf32>
    %522 = vector.shape_cast %521 : vector<2x32xf32> to vector<2x1x32xf32>
    %523 = vector.broadcast %522 : vector<2x1x32xf32> to vector<2x8x32xf32>
    %524 = arith.addf %511, %523 : vector<2x8x32xf32>
    %525 = math.tanh %524 : vector<2x8x32xf32>
    %526 = vector.shape_cast %525 : vector<2x8x32xf32> to vector<16x32xf32>
    %c368 = arith.constant 368 : index
    %c0_185 = arith.constant 0 : index
    %527 = vector.load %arg2[%c368, %c0_185] : memref<648x128xf32, #tpu.memory_space<vmem>>, vector<32x1xf32>
    %cst_186 = arith.constant dense<0.000000e+00> : vector<16x1xf32>
    %528 = tpu.matmul %526, %527, %cst_186 {dimension_numbers = #tpu.dot_dimension_numbers<[1], [0], [0], [1], [0, 0, 1, 1], [], []>} : vector<16x32xf32>, vector<32x1xf32>, vector<16x1xf32> -> vector<16x1xf32>
    %529 = vector.shape_cast %528 : vector<16x1xf32> to vector<2x8x1xf32>
    %cst_187 = arith.constant dense<0xFF800000> : vector<2x1xf32>
    %530 = vector.multi_reduction <maximumf>, %529, %cst_187 [1] : vector<2x8x1xf32> to vector<2x1xf32>
    %531 = vector.shape_cast %530 : vector<2x1xf32> to vector<2x1x1xf32>
    %532 = vector.broadcast %531 : vector<2x1x1xf32> to vector<2x8x1xf32>
    %533 = arith.subf %529, %532 : vector<2x8x1xf32>
    %534 = math.exp %533 : vector<2x8x1xf32>
    %cst_188 = arith.constant dense<0.000000e+00> : vector<2x1xf32>
    %535 = vector.multi_reduction <add>, %534, %cst_188 [1] : vector<2x8x1xf32> to vector<2x1xf32>
    %536 = vector.shape_cast %535 : vector<2x1xf32> to vector<2x1x1xf32>
    %537 = vector.broadcast %536 : vector<2x1x1xf32> to vector<2x8x1xf32>
    %538 = arith.divf %534, %537 : vector<2x8x1xf32>
    %539 = vector.broadcast %538 : vector<2x8x1xf32> to vector<2x8x64xf32>
    %540 = arith.mulf %539, %504 : vector<2x8x64xf32>
    %cst_189 = arith.constant dense<0.000000e+00> : vector<2x64xf32>
    %541 = vector.multi_reduction <add>, %540, %cst_189 [1] : vector<2x8x64xf32> to vector<2x64xf32>
    %c400 = arith.constant 400 : index
    %c0_190 = arith.constant 0 : index
    %542 = vector.load %arg2[%c400, %c0_190] : memref<648x128xf32, #tpu.memory_space<vmem>>, vector<16x96xf32>
    %cst_191 = arith.constant dense<0.000000e+00> : vector<2x96xf32>
    %543 = tpu.matmul %519, %542, %cst_191 {dimension_numbers = #tpu.dot_dimension_numbers<[1], [0], [0], [1], [0, 0, 1, 1], [], []>} : vector<2x16xf32>, vector<16x96xf32>, vector<2x96xf32> -> vector<2x96xf32>
    %c416 = arith.constant 416 : index
    %c0_192 = arith.constant 0 : index
    %544 = vector.load %arg2[%c416, %c0_192] : memref<648x128xf32, #tpu.memory_space<vmem>>, vector<64x96xf32>
    %cst_193 = arith.constant dense<0.000000e+00> : vector<2x96xf32>
    %545 = tpu.matmul %541, %544, %cst_193 {dimension_numbers = #tpu.dot_dimension_numbers<[1], [0], [0], [1], [0, 0, 1, 1], [], []>} : vector<2x64xf32>, vector<64x96xf32>, vector<2x96xf32> -> vector<2x96xf32>
    %546 = arith.addf %543, %545 : vector<2x96xf32>
    %c512 = arith.constant 512 : index
    %c0_194 = arith.constant 0 : index
    %547 = vector.load %arg2[%c512, %c0_194] : memref<648x128xf32, #tpu.memory_space<vmem>>, vector<1x96xf32>
    %548 = vector.broadcast %547 : vector<1x96xf32> to vector<2x96xf32>
    %549 = arith.addf %546, %548 : vector<2x96xf32>
    %c480 = arith.constant 480 : index
    %c0_195 = arith.constant 0 : index
    %550 = vector.load %arg2[%c480, %c0_195] : memref<648x128xf32, #tpu.memory_space<vmem>>, vector<32x96xf32>
    %cst_196 = arith.constant dense<0.000000e+00> : vector<2x96xf32>
    %551 = tpu.matmul %503, %550, %cst_196 {dimension_numbers = #tpu.dot_dimension_numbers<[1], [0], [0], [1], [0, 0, 1, 1], [], []>} : vector<2x32xf32>, vector<32x96xf32>, vector<2x96xf32> -> vector<2x96xf32>
    %c520 = arith.constant 520 : index
    %c0_197 = arith.constant 0 : index
    %552 = vector.load %arg2[%c520, %c0_197] : memref<648x128xf32, #tpu.memory_space<vmem>>, vector<1x96xf32>
    %553 = vector.broadcast %552 : vector<1x96xf32> to vector<2x96xf32>
    %554 = arith.addf %551, %553 : vector<2x96xf32>
    %555 = vector.extract_strided_slice %549 {offsets = [0, 0], sizes = [2, 64], strides = [1, 1]} : vector<2x96xf32> to vector<2x64xf32>
    %556 = vector.extract_strided_slice %554 {offsets = [0, 0], sizes = [2, 64], strides = [1, 1]} : vector<2x96xf32> to vector<2x64xf32>
    %557 = arith.addf %555, %556 : vector<2x64xf32>
    %558 = arith.negf %557 : vector<2x64xf32>
    %559 = math.exp %558 : vector<2x64xf32>
    %cst_198 = arith.constant 1.000000e+00 : f32
    %560 = vector.broadcast %cst_198 : f32 to vector<2x64xf32>
    %561 = arith.addf %560, %559 : vector<2x64xf32>
    %562 = arith.divf %560, %561 : vector<2x64xf32>
    %563 = vector.extract_strided_slice %562 {offsets = [0, 0], sizes = [2, 32], strides = [1, 1]} : vector<2x64xf32> to vector<2x32xf32>
    %564 = vector.extract_strided_slice %562 {offsets = [0, 32], sizes = [2, 32], strides = [1, 1]} : vector<2x64xf32> to vector<2x32xf32>
    %565 = vector.extract_strided_slice %549 {offsets = [0, 64], sizes = [2, 32], strides = [1, 1]} : vector<2x96xf32> to vector<2x32xf32>
    %566 = vector.extract_strided_slice %554 {offsets = [0, 64], sizes = [2, 32], strides = [1, 1]} : vector<2x96xf32> to vector<2x32xf32>
    %567 = arith.mulf %563, %566 : vector<2x32xf32>
    %568 = arith.addf %565, %567 : vector<2x32xf32>
    %569 = math.tanh %568 : vector<2x32xf32>
    %cst_199 = arith.constant 1.000000e+00 : f32
    %570 = vector.broadcast %cst_199 : f32 to vector<2x32xf32>
    %571 = arith.subf %570, %564 : vector<2x32xf32>
    %572 = arith.mulf %571, %569 : vector<2x32xf32>
    %573 = arith.mulf %564, %503 : vector<2x32xf32>
    %574 = arith.addf %572, %573 : vector<2x32xf32>
    %c528 = arith.constant 528 : index
    %c0_200 = arith.constant 0 : index
    %575 = vector.load %arg2[%c528, %c0_200] : memref<648x128xf32, #tpu.memory_space<vmem>>, vector<32x32xf32>
    %cst_201 = arith.constant dense<0.000000e+00> : vector<2x32xf32>
    %576 = tpu.matmul %574, %575, %cst_201 {dimension_numbers = #tpu.dot_dimension_numbers<[1], [0], [0], [1], [0, 0, 1, 1], [], []>} : vector<2x32xf32>, vector<32x32xf32>, vector<2x32xf32> -> vector<2x32xf32>
    %c560 = arith.constant 560 : index
    %c0_202 = arith.constant 0 : index
    %577 = vector.load %arg2[%c560, %c0_202] : memref<648x128xf32, #tpu.memory_space<vmem>>, vector<64x32xf32>
    %cst_203 = arith.constant dense<0.000000e+00> : vector<2x32xf32>
    %578 = tpu.matmul %541, %577, %cst_203 {dimension_numbers = #tpu.dot_dimension_numbers<[1], [0], [0], [1], [0, 0, 1, 1], [], []>} : vector<2x64xf32>, vector<64x32xf32>, vector<2x32xf32> -> vector<2x32xf32>
    %579 = arith.addf %576, %578 : vector<2x32xf32>
    %c624 = arith.constant 624 : index
    %c0_204 = arith.constant 0 : index
    %580 = vector.load %arg2[%c624, %c0_204] : memref<648x128xf32, #tpu.memory_space<vmem>>, vector<16x32xf32>
    %cst_205 = arith.constant dense<0.000000e+00> : vector<2x32xf32>
    %581 = tpu.matmul %519, %580, %cst_205 {dimension_numbers = #tpu.dot_dimension_numbers<[1], [0], [0], [1], [0, 0, 1, 1], [], []>} : vector<2x16xf32>, vector<16x32xf32>, vector<2x32xf32> -> vector<2x32xf32>
    %582 = arith.addf %579, %581 : vector<2x32xf32>
    %c640 = arith.constant 640 : index
    %c0_206 = arith.constant 0 : index
    %583 = vector.load %arg2[%c640, %c0_206] : memref<648x128xf32, #tpu.memory_space<vmem>>, vector<1x32xf32>
    %584 = vector.broadcast %583 : vector<1x32xf32> to vector<2x32xf32>
    %585 = arith.addf %582, %584 : vector<2x32xf32>
    %c1_207 = arith.constant 1 : index
    %c0_208 = arith.constant 0 : index
    %c0_209 = arith.constant 0 : index
    %586 = vector.load %arg5[%c1_207, %c0_208, %c0_209] : memref<8x2x32xf32, #tpu.memory_space<vmem>>, vector<1x2x32xf32>
    %587 = vector.shape_cast %586 : vector<1x2x32xf32> to vector<2x32xf32>
    %588 = vector.shape_cast %585 : vector<2x32xf32> to vector<1x2x32xf32>
    tpu.vector_store %arg5[%c1_207, %c0_208, %c0_209], %588 {strides = array<i32>} : memref<8x2x32xf32, #tpu.memory_space<vmem>>, vector<1x2x32xf32>,
    %589 = vector.extract_strided_slice %16 {offsets = [0, 1, 0], sizes = [2, 1, 16], strides = [1, 1, 1]} : vector<2x8x16xf32> to vector<2x1x16xf32>
    %590 = vector.shape_cast %589 : vector<2x1x16xf32> to vector<2x16xf32>
    %c0_210 = arith.constant 0 : index
    %c0_211 = arith.constant 0 : index
    %591 = vector.load %arg7[%c0_210, %c0_211] : memref<2x16xf32, #tpu.memory_space<vmem>>, vector<2x16xf32>
    tpu.vector_store %arg7[%c0_210, %c0_211], %590 {strides = array<i32>} : memref<2x16xf32, #tpu.memory_space<vmem>>, vector<2x16xf32>,
    %c1_212 = arith.constant 1 : index
    %592 = memref.load %arg1[%c1_212] : memref<8xi32, #tpu.memory_space<smem>>
    %c0_i32 = arith.constant 0 : i32
    %593 = arith.cmpi eq, %592, %c0_i32 : i32
    %594 = arith.extui %593 : i1 to i32
    %c0_i32_213 = arith.constant 0 : i32
    %595 = arith.cmpi ne, %594, %c0_i32_213 : i32
    scf.if %595 {
      %cst_479 = arith.constant dense<0xFF800000> : vector<2xf32>
      %1051 = vector.multi_reduction <maximumf>, %585, %cst_479 [1] : vector<2x32xf32> to vector<2xf32>
      %1052 = vector.shape_cast %1051 : vector<2xf32> to vector<2x1xf32>
      %1053 = tpu.iota {dimensions = array<i32: 1>} : vector<2x32xi32>
      %1054 = vector.broadcast %1052 : vector<2x1xf32> to vector<2x32xf32>
      %1055 = arith.cmpf oge, %585, %1054 : vector<2x32xf32>
      %c32_i32 = arith.constant 32 : i32
      %1056 = vector.broadcast %c32_i32 : i32 to vector<2x32xi32>
      %1057 = arith.select %1055, %1053, %1056 : vector<2x32xi1>, vector<2x32xi32>
      %cst_480 = arith.constant dense<2147483647> : vector<2xi32>
      %1058 = vector.multi_reduction <minsi>, %1057, %cst_480 [1] : vector<2x32xi32> to vector<2xi32>
      %1059 = vector.shape_cast %1058 : vector<2xi32> to vector<2x1xi32>
      %1060 = vector.broadcast %1059 : vector<2x1xi32> to vector<2x32xi32>
      %1061 = arith.cmpi eq, %1053, %1060 : vector<2x32xi32>
      %1062 = arith.extui %1061 : vector<2x32xi1> to vector<2x32xi32>
      %1063 = arith.sitofp %1062 : vector<2x32xi32> to vector<2x32xf32>
      %c32_481 = arith.constant 32 : index
      %c0_482 = arith.constant 0 : index
      %1064 = vector.load %arg2[%c32_481, %c0_482] : memref<648x128xf32, #tpu.memory_space<vmem>>, vector<32x16xf32>
      %cst_483 = arith.constant dense<0.000000e+00> : vector<2x16xf32>
      %1065 = tpu.matmul %1063, %1064, %cst_483 {dimension_numbers = #tpu.dot_dimension_numbers<[1], [0], [0], [1], [0, 0, 1, 1], [], []>} : vector<2x32xf32>, vector<32x16xf32>, vector<2x16xf32> -> vector<2x16xf32>
      %c0_484 = arith.constant 0 : index
      %c0_485 = arith.constant 0 : index
      %1066 = vector.load %arg7[%c0_484, %c0_485] : memref<2x16xf32, #tpu.memory_space<vmem>>, vector<2x16xf32>
      tpu.vector_store %arg7[%c0_484, %c0_485], %1065 {strides = array<i32>} : memref<2x16xf32, #tpu.memory_space<vmem>>, vector<2x16xf32>,
    } else {
    }
    %c0_214 = arith.constant 0 : index
    %c0_215 = arith.constant 0 : index
    %596 = vector.load %arg7[%c0_214, %c0_215] : memref<2x16xf32, #tpu.memory_space<vmem>>, vector<2x16xf32>
    %c264_216 = arith.constant 264 : index
    %c0_217 = arith.constant 0 : index
    %597 = vector.load %arg2[%c264_216, %c0_217] : memref<648x128xf32, #tpu.memory_space<vmem>>, vector<32x32xf32>
    %cst_218 = arith.constant dense<0.000000e+00> : vector<2x32xf32>
    %598 = tpu.matmul %574, %597, %cst_218 {dimension_numbers = #tpu.dot_dimension_numbers<[1], [0], [0], [1], [0, 0, 1, 1], [], []>} : vector<2x32xf32>, vector<32x32xf32>, vector<2x32xf32> -> vector<2x32xf32>
    %599 = vector.shape_cast %598 : vector<2x32xf32> to vector<2x1x32xf32>
    %600 = vector.broadcast %599 : vector<2x1x32xf32> to vector<2x8x32xf32>
    %601 = arith.addf %511, %600 : vector<2x8x32xf32>
    %602 = math.tanh %601 : vector<2x8x32xf32>
    %603 = vector.shape_cast %602 : vector<2x8x32xf32> to vector<16x32xf32>
    %c368_219 = arith.constant 368 : index
    %c0_220 = arith.constant 0 : index
    %604 = vector.load %arg2[%c368_219, %c0_220] : memref<648x128xf32, #tpu.memory_space<vmem>>, vector<32x1xf32>
    %cst_221 = arith.constant dense<0.000000e+00> : vector<16x1xf32>
    %605 = tpu.matmul %603, %604, %cst_221 {dimension_numbers = #tpu.dot_dimension_numbers<[1], [0], [0], [1], [0, 0, 1, 1], [], []>} : vector<16x32xf32>, vector<32x1xf32>, vector<16x1xf32> -> vector<16x1xf32>
    %606 = vector.shape_cast %605 : vector<16x1xf32> to vector<2x8x1xf32>
    %cst_222 = arith.constant dense<0xFF800000> : vector<2x1xf32>
    %607 = vector.multi_reduction <maximumf>, %606, %cst_222 [1] : vector<2x8x1xf32> to vector<2x1xf32>
    %608 = vector.shape_cast %607 : vector<2x1xf32> to vector<2x1x1xf32>
    %609 = vector.broadcast %608 : vector<2x1x1xf32> to vector<2x8x1xf32>
    %610 = arith.subf %606, %609 : vector<2x8x1xf32>
    %611 = math.exp %610 : vector<2x8x1xf32>
    %cst_223 = arith.constant dense<0.000000e+00> : vector<2x1xf32>
    %612 = vector.multi_reduction <add>, %611, %cst_223 [1] : vector<2x8x1xf32> to vector<2x1xf32>
    %613 = vector.shape_cast %612 : vector<2x1xf32> to vector<2x1x1xf32>
    %614 = vector.broadcast %613 : vector<2x1x1xf32> to vector<2x8x1xf32>
    %615 = arith.divf %611, %614 : vector<2x8x1xf32>
    %616 = vector.broadcast %615 : vector<2x8x1xf32> to vector<2x8x64xf32>
    %617 = arith.mulf %616, %504 : vector<2x8x64xf32>
    %cst_224 = arith.constant dense<0.000000e+00> : vector<2x64xf32>
    %618 = vector.multi_reduction <add>, %617, %cst_224 [1] : vector<2x8x64xf32> to vector<2x64xf32>
    %c400_225 = arith.constant 400 : index
    %c0_226 = arith.constant 0 : index
    %619 = vector.load %arg2[%c400_225, %c0_226] : memref<648x128xf32, #tpu.memory_space<vmem>>, vector<16x96xf32>
    %cst_227 = arith.constant dense<0.000000e+00> : vector<2x96xf32>
    %620 = tpu.matmul %596, %619, %cst_227 {dimension_numbers = #tpu.dot_dimension_numbers<[1], [0], [0], [1], [0, 0, 1, 1], [], []>} : vector<2x16xf32>, vector<16x96xf32>, vector<2x96xf32> -> vector<2x96xf32>
    %c416_228 = arith.constant 416 : index
    %c0_229 = arith.constant 0 : index
    %621 = vector.load %arg2[%c416_228, %c0_229] : memref<648x128xf32, #tpu.memory_space<vmem>>, vector<64x96xf32>
    %cst_230 = arith.constant dense<0.000000e+00> : vector<2x96xf32>
    %622 = tpu.matmul %618, %621, %cst_230 {dimension_numbers = #tpu.dot_dimension_numbers<[1], [0], [0], [1], [0, 0, 1, 1], [], []>} : vector<2x64xf32>, vector<64x96xf32>, vector<2x96xf32> -> vector<2x96xf32>
    %623 = arith.addf %620, %622 : vector<2x96xf32>
    %c512_231 = arith.constant 512 : index
    %c0_232 = arith.constant 0 : index
    %624 = vector.load %arg2[%c512_231, %c0_232] : memref<648x128xf32, #tpu.memory_space<vmem>>, vector<1x96xf32>
    %625 = vector.broadcast %624 : vector<1x96xf32> to vector<2x96xf32>
    %626 = arith.addf %623, %625 : vector<2x96xf32>
    %c480_233 = arith.constant 480 : index
    %c0_234 = arith.constant 0 : index
    %627 = vector.load %arg2[%c480_233, %c0_234] : memref<648x128xf32, #tpu.memory_space<vmem>>, vector<32x96xf32>
    %cst_235 = arith.constant dense<0.000000e+00> : vector<2x96xf32>
    %628 = tpu.matmul %574, %627, %cst_235 {dimension_numbers = #tpu.dot_dimension_numbers<[1], [0], [0], [1], [0, 0, 1, 1], [], []>} : vector<2x32xf32>, vector<32x96xf32>, vector<2x96xf32> -> vector<2x96xf32>
    %c520_236 = arith.constant 520 : index
    %c0_237 = arith.constant 0 : index
    %629 = vector.load %arg2[%c520_236, %c0_237] : memref<648x128xf32, #tpu.memory_space<vmem>>, vector<1x96xf32>
    %630 = vector.broadcast %629 : vector<1x96xf32> to vector<2x96xf32>
    %631 = arith.addf %628, %630 : vector<2x96xf32>
    %632 = vector.extract_strided_slice %626 {offsets = [0, 0], sizes = [2, 64], strides = [1, 1]} : vector<2x96xf32> to vector<2x64xf32>
    %633 = vector.extract_strided_slice %631 {offsets = [0, 0], sizes = [2, 64], strides = [1, 1]} : vector<2x96xf32> to vector<2x64xf32>
    %634 = arith.addf %632, %633 : vector<2x64xf32>
    %635 = arith.negf %634 : vector<2x64xf32>
    %636 = math.exp %635 : vector<2x64xf32>
    %cst_238 = arith.constant 1.000000e+00 : f32
    %637 = vector.broadcast %cst_238 : f32 to vector<2x64xf32>
    %638 = arith.addf %637, %636 : vector<2x64xf32>
    %639 = arith.divf %637, %638 : vector<2x64xf32>
    %640 = vector.extract_strided_slice %639 {offsets = [0, 0], sizes = [2, 32], strides = [1, 1]} : vector<2x64xf32> to vector<2x32xf32>
    %641 = vector.extract_strided_slice %639 {offsets = [0, 32], sizes = [2, 32], strides = [1, 1]} : vector<2x64xf32> to vector<2x32xf32>
    %642 = vector.extract_strided_slice %626 {offsets = [0, 64], sizes = [2, 32], strides = [1, 1]} : vector<2x96xf32> to vector<2x32xf32>
    %643 = vector.extract_strided_slice %631 {offsets = [0, 64], sizes = [2, 32], strides = [1, 1]} : vector<2x96xf32> to vector<2x32xf32>
    %644 = arith.mulf %640, %643 : vector<2x32xf32>
    %645 = arith.addf %642, %644 : vector<2x32xf32>
    %646 = math.tanh %645 : vector<2x32xf32>
    %cst_239 = arith.constant 1.000000e+00 : f32
    %647 = vector.broadcast %cst_239 : f32 to vector<2x32xf32>
    %648 = arith.subf %647, %641 : vector<2x32xf32>
    %649 = arith.mulf %648, %646 : vector<2x32xf32>
    %650 = arith.mulf %641, %574 : vector<2x32xf32>
    %651 = arith.addf %649, %650 : vector<2x32xf32>
    %c528_240 = arith.constant 528 : index
    %c0_241 = arith.constant 0 : index
    %652 = vector.load %arg2[%c528_240, %c0_241] : memref<648x128xf32, #tpu.memory_space<vmem>>, vector<32x32xf32>
    %cst_242 = arith.constant dense<0.000000e+00> : vector<2x32xf32>
    %653 = tpu.matmul %651, %652, %cst_242 {dimension_numbers = #tpu.dot_dimension_numbers<[1], [0], [0], [1], [0, 0, 1, 1], [], []>} : vector<2x32xf32>, vector<32x32xf32>, vector<2x32xf32> -> vector<2x32xf32>
    %c560_243 = arith.constant 560 : index
    %c0_244 = arith.constant 0 : index
    %654 = vector.load %arg2[%c560_243, %c0_244] : memref<648x128xf32, #tpu.memory_space<vmem>>, vector<64x32xf32>
    %cst_245 = arith.constant dense<0.000000e+00> : vector<2x32xf32>
    %655 = tpu.matmul %618, %654, %cst_245 {dimension_numbers = #tpu.dot_dimension_numbers<[1], [0], [0], [1], [0, 0, 1, 1], [], []>} : vector<2x64xf32>, vector<64x32xf32>, vector<2x32xf32> -> vector<2x32xf32>
    %656 = arith.addf %653, %655 : vector<2x32xf32>
    %c624_246 = arith.constant 624 : index
    %c0_247 = arith.constant 0 : index
    %657 = vector.load %arg2[%c624_246, %c0_247] : memref<648x128xf32, #tpu.memory_space<vmem>>, vector<16x32xf32>
    %cst_248 = arith.constant dense<0.000000e+00> : vector<2x32xf32>
    %658 = tpu.matmul %596, %657, %cst_248 {dimension_numbers = #tpu.dot_dimension_numbers<[1], [0], [0], [1], [0, 0, 1, 1], [], []>} : vector<2x16xf32>, vector<16x32xf32>, vector<2x32xf32> -> vector<2x32xf32>
    %659 = arith.addf %656, %658 : vector<2x32xf32>
    %c640_249 = arith.constant 640 : index
    %c0_250 = arith.constant 0 : index
    %660 = vector.load %arg2[%c640_249, %c0_250] : memref<648x128xf32, #tpu.memory_space<vmem>>, vector<1x32xf32>
    %661 = vector.broadcast %660 : vector<1x32xf32> to vector<2x32xf32>
    %662 = arith.addf %659, %661 : vector<2x32xf32>
    %c2_251 = arith.constant 2 : index
    %c0_252 = arith.constant 0 : index
    %c0_253 = arith.constant 0 : index
    %663 = vector.load %arg5[%c2_251, %c0_252, %c0_253] : memref<8x2x32xf32, #tpu.memory_space<vmem>>, vector<1x2x32xf32>
    %664 = vector.shape_cast %663 : vector<1x2x32xf32> to vector<2x32xf32>
    %665 = vector.shape_cast %662 : vector<2x32xf32> to vector<1x2x32xf32>
    tpu.vector_store %arg5[%c2_251, %c0_252, %c0_253], %665 {strides = array<i32>} : memref<8x2x32xf32, #tpu.memory_space<vmem>>, vector<1x2x32xf32>,
    %666 = vector.extract_strided_slice %16 {offsets = [0, 2, 0], sizes = [2, 1, 16], strides = [1, 1, 1]} : vector<2x8x16xf32> to vector<2x1x16xf32>
    %667 = vector.shape_cast %666 : vector<2x1x16xf32> to vector<2x16xf32>
    %c0_254 = arith.constant 0 : index
    %c0_255 = arith.constant 0 : index
    %668 = vector.load %arg7[%c0_254, %c0_255] : memref<2x16xf32, #tpu.memory_space<vmem>>, vector<2x16xf32>
    tpu.vector_store %arg7[%c0_254, %c0_255], %667 {strides = array<i32>} : memref<2x16xf32, #tpu.memory_space<vmem>>, vector<2x16xf32>,
    %c2_256 = arith.constant 2 : index
    %669 = memref.load %arg1[%c2_256] : memref<8xi32, #tpu.memory_space<smem>>
    %c0_i32_257 = arith.constant 0 : i32
    %670 = arith.cmpi eq, %669, %c0_i32_257 : i32
    %671 = arith.extui %670 : i1 to i32
    %c0_i32_258 = arith.constant 0 : i32
    %672 = arith.cmpi ne, %671, %c0_i32_258 : i32
    scf.if %672 {
      %cst_479 = arith.constant dense<0xFF800000> : vector<2xf32>
      %1051 = vector.multi_reduction <maximumf>, %662, %cst_479 [1] : vector<2x32xf32> to vector<2xf32>
      %1052 = vector.shape_cast %1051 : vector<2xf32> to vector<2x1xf32>
      %1053 = tpu.iota {dimensions = array<i32: 1>} : vector<2x32xi32>
      %1054 = vector.broadcast %1052 : vector<2x1xf32> to vector<2x32xf32>
      %1055 = arith.cmpf oge, %662, %1054 : vector<2x32xf32>
      %c32_i32 = arith.constant 32 : i32
      %1056 = vector.broadcast %c32_i32 : i32 to vector<2x32xi32>
      %1057 = arith.select %1055, %1053, %1056 : vector<2x32xi1>, vector<2x32xi32>
      %cst_480 = arith.constant dense<2147483647> : vector<2xi32>
      %1058 = vector.multi_reduction <minsi>, %1057, %cst_480 [1] : vector<2x32xi32> to vector<2xi32>
      %1059 = vector.shape_cast %1058 : vector<2xi32> to vector<2x1xi32>
      %1060 = vector.broadcast %1059 : vector<2x1xi32> to vector<2x32xi32>
      %1061 = arith.cmpi eq, %1053, %1060 : vector<2x32xi32>
      %1062 = arith.extui %1061 : vector<2x32xi1> to vector<2x32xi32>
      %1063 = arith.sitofp %1062 : vector<2x32xi32> to vector<2x32xf32>
      %c32_481 = arith.constant 32 : index
      %c0_482 = arith.constant 0 : index
      %1064 = vector.load %arg2[%c32_481, %c0_482] : memref<648x128xf32, #tpu.memory_space<vmem>>, vector<32x16xf32>
      %cst_483 = arith.constant dense<0.000000e+00> : vector<2x16xf32>
      %1065 = tpu.matmul %1063, %1064, %cst_483 {dimension_numbers = #tpu.dot_dimension_numbers<[1], [0], [0], [1], [0, 0, 1, 1], [], []>} : vector<2x32xf32>, vector<32x16xf32>, vector<2x16xf32> -> vector<2x16xf32>
      %c0_484 = arith.constant 0 : index
      %c0_485 = arith.constant 0 : index
      %1066 = vector.load %arg7[%c0_484, %c0_485] : memref<2x16xf32, #tpu.memory_space<vmem>>, vector<2x16xf32>
      tpu.vector_store %arg7[%c0_484, %c0_485], %1065 {strides = array<i32>} : memref<2x16xf32, #tpu.memory_space<vmem>>, vector<2x16xf32>,
    } else {
    }
    %c0_259 = arith.constant 0 : index
    %c0_260 = arith.constant 0 : index
    %673 = vector.load %arg7[%c0_259, %c0_260] : memref<2x16xf32, #tpu.memory_space<vmem>>, vector<2x16xf32>
    %c264_261 = arith.constant 264 : index
    %c0_262 = arith.constant 0 : index
    %674 = vector.load %arg2[%c264_261, %c0_262] : memref<648x128xf32, #tpu.memory_space<vmem>>, vector<32x32xf32>
    %cst_263 = arith.constant dense<0.000000e+00> : vector<2x32xf32>
    %675 = tpu.matmul %651, %674, %cst_263 {dimension_numbers = #tpu.dot_dimension_numbers<[1], [0], [0], [1], [0, 0, 1, 1], [], []>} : vector<2x32xf32>, vector<32x32xf32>, vector<2x32xf32> -> vector<2x32xf32>
    %676 = vector.shape_cast %675 : vector<2x32xf32> to vector<2x1x32xf32>
    %677 = vector.broadcast %676 : vector<2x1x32xf32> to vector<2x8x32xf32>
    %678 = arith.addf %511, %677 : vector<2x8x32xf32>
    %679 = math.tanh %678 : vector<2x8x32xf32>
    %680 = vector.shape_cast %679 : vector<2x8x32xf32> to vector<16x32xf32>
    %c368_264 = arith.constant 368 : index
    %c0_265 = arith.constant 0 : index
    %681 = vector.load %arg2[%c368_264, %c0_265] : memref<648x128xf32, #tpu.memory_space<vmem>>, vector<32x1xf32>
    %cst_266 = arith.constant dense<0.000000e+00> : vector<16x1xf32>
    %682 = tpu.matmul %680, %681, %cst_266 {dimension_numbers = #tpu.dot_dimension_numbers<[1], [0], [0], [1], [0, 0, 1, 1], [], []>} : vector<16x32xf32>, vector<32x1xf32>, vector<16x1xf32> -> vector<16x1xf32>
    %683 = vector.shape_cast %682 : vector<16x1xf32> to vector<2x8x1xf32>
    %cst_267 = arith.constant dense<0xFF800000> : vector<2x1xf32>
    %684 = vector.multi_reduction <maximumf>, %683, %cst_267 [1] : vector<2x8x1xf32> to vector<2x1xf32>
    %685 = vector.shape_cast %684 : vector<2x1xf32> to vector<2x1x1xf32>
    %686 = vector.broadcast %685 : vector<2x1x1xf32> to vector<2x8x1xf32>
    %687 = arith.subf %683, %686 : vector<2x8x1xf32>
    %688 = math.exp %687 : vector<2x8x1xf32>
    %cst_268 = arith.constant dense<0.000000e+00> : vector<2x1xf32>
    %689 = vector.multi_reduction <add>, %688, %cst_268 [1] : vector<2x8x1xf32> to vector<2x1xf32>
    %690 = vector.shape_cast %689 : vector<2x1xf32> to vector<2x1x1xf32>
    %691 = vector.broadcast %690 : vector<2x1x1xf32> to vector<2x8x1xf32>
    %692 = arith.divf %688, %691 : vector<2x8x1xf32>
    %693 = vector.broadcast %692 : vector<2x8x1xf32> to vector<2x8x64xf32>
    %694 = arith.mulf %693, %504 : vector<2x8x64xf32>
    %cst_269 = arith.constant dense<0.000000e+00> : vector<2x64xf32>
    %695 = vector.multi_reduction <add>, %694, %cst_269 [1] : vector<2x8x64xf32> to vector<2x64xf32>
    %c400_270 = arith.constant 400 : index
    %c0_271 = arith.constant 0 : index
    %696 = vector.load %arg2[%c400_270, %c0_271] : memref<648x128xf32, #tpu.memory_space<vmem>>, vector<16x96xf32>
    %cst_272 = arith.constant dense<0.000000e+00> : vector<2x96xf32>
    %697 = tpu.matmul %673, %696, %cst_272 {dimension_numbers = #tpu.dot_dimension_numbers<[1], [0], [0], [1], [0, 0, 1, 1], [], []>} : vector<2x16xf32>, vector<16x96xf32>, vector<2x96xf32> -> vector<2x96xf32>
    %c416_273 = arith.constant 416 : index
    %c0_274 = arith.constant 0 : index
    %698 = vector.load %arg2[%c416_273, %c0_274] : memref<648x128xf32, #tpu.memory_space<vmem>>, vector<64x96xf32>
    %cst_275 = arith.constant dense<0.000000e+00> : vector<2x96xf32>
    %699 = tpu.matmul %695, %698, %cst_275 {dimension_numbers = #tpu.dot_dimension_numbers<[1], [0], [0], [1], [0, 0, 1, 1], [], []>} : vector<2x64xf32>, vector<64x96xf32>, vector<2x96xf32> -> vector<2x96xf32>
    %700 = arith.addf %697, %699 : vector<2x96xf32>
    %c512_276 = arith.constant 512 : index
    %c0_277 = arith.constant 0 : index
    %701 = vector.load %arg2[%c512_276, %c0_277] : memref<648x128xf32, #tpu.memory_space<vmem>>, vector<1x96xf32>
    %702 = vector.broadcast %701 : vector<1x96xf32> to vector<2x96xf32>
    %703 = arith.addf %700, %702 : vector<2x96xf32>
    %c480_278 = arith.constant 480 : index
    %c0_279 = arith.constant 0 : index
    %704 = vector.load %arg2[%c480_278, %c0_279] : memref<648x128xf32, #tpu.memory_space<vmem>>, vector<32x96xf32>
    %cst_280 = arith.constant dense<0.000000e+00> : vector<2x96xf32>
    %705 = tpu.matmul %651, %704, %cst_280 {dimension_numbers = #tpu.dot_dimension_numbers<[1], [0], [0], [1], [0, 0, 1, 1], [], []>} : vector<2x32xf32>, vector<32x96xf32>, vector<2x96xf32> -> vector<2x96xf32>
    %c520_281 = arith.constant 520 : index
    %c0_282 = arith.constant 0 : index
    %706 = vector.load %arg2[%c520_281, %c0_282] : memref<648x128xf32, #tpu.memory_space<vmem>>, vector<1x96xf32>
    %707 = vector.broadcast %706 : vector<1x96xf32> to vector<2x96xf32>
    %708 = arith.addf %705, %707 : vector<2x96xf32>
    %709 = vector.extract_strided_slice %703 {offsets = [0, 0], sizes = [2, 64], strides = [1, 1]} : vector<2x96xf32> to vector<2x64xf32>
    %710 = vector.extract_strided_slice %708 {offsets = [0, 0], sizes = [2, 64], strides = [1, 1]} : vector<2x96xf32> to vector<2x64xf32>
    %711 = arith.addf %709, %710 : vector<2x64xf32>
    %712 = arith.negf %711 : vector<2x64xf32>
    %713 = math.exp %712 : vector<2x64xf32>
    %cst_283 = arith.constant 1.000000e+00 : f32
    %714 = vector.broadcast %cst_283 : f32 to vector<2x64xf32>
    %715 = arith.addf %714, %713 : vector<2x64xf32>
    %716 = arith.divf %714, %715 : vector<2x64xf32>
    %717 = vector.extract_strided_slice %716 {offsets = [0, 0], sizes = [2, 32], strides = [1, 1]} : vector<2x64xf32> to vector<2x32xf32>
    %718 = vector.extract_strided_slice %716 {offsets = [0, 32], sizes = [2, 32], strides = [1, 1]} : vector<2x64xf32> to vector<2x32xf32>
    %719 = vector.extract_strided_slice %703 {offsets = [0, 64], sizes = [2, 32], strides = [1, 1]} : vector<2x96xf32> to vector<2x32xf32>
    %720 = vector.extract_strided_slice %708 {offsets = [0, 64], sizes = [2, 32], strides = [1, 1]} : vector<2x96xf32> to vector<2x32xf32>
    %721 = arith.mulf %717, %720 : vector<2x32xf32>
    %722 = arith.addf %719, %721 : vector<2x32xf32>
    %723 = math.tanh %722 : vector<2x32xf32>
    %cst_284 = arith.constant 1.000000e+00 : f32
    %724 = vector.broadcast %cst_284 : f32 to vector<2x32xf32>
    %725 = arith.subf %724, %718 : vector<2x32xf32>
    %726 = arith.mulf %725, %723 : vector<2x32xf32>
    %727 = arith.mulf %718, %651 : vector<2x32xf32>
    %728 = arith.addf %726, %727 : vector<2x32xf32>
    %c528_285 = arith.constant 528 : index
    %c0_286 = arith.constant 0 : index
    %729 = vector.load %arg2[%c528_285, %c0_286] : memref<648x128xf32, #tpu.memory_space<vmem>>, vector<32x32xf32>
    %cst_287 = arith.constant dense<0.000000e+00> : vector<2x32xf32>
    %730 = tpu.matmul %728, %729, %cst_287 {dimension_numbers = #tpu.dot_dimension_numbers<[1], [0], [0], [1], [0, 0, 1, 1], [], []>} : vector<2x32xf32>, vector<32x32xf32>, vector<2x32xf32> -> vector<2x32xf32>
    %c560_288 = arith.constant 560 : index
    %c0_289 = arith.constant 0 : index
    %731 = vector.load %arg2[%c560_288, %c0_289] : memref<648x128xf32, #tpu.memory_space<vmem>>, vector<64x32xf32>
    %cst_290 = arith.constant dense<0.000000e+00> : vector<2x32xf32>
    %732 = tpu.matmul %695, %731, %cst_290 {dimension_numbers = #tpu.dot_dimension_numbers<[1], [0], [0], [1], [0, 0, 1, 1], [], []>} : vector<2x64xf32>, vector<64x32xf32>, vector<2x32xf32> -> vector<2x32xf32>
    %733 = arith.addf %730, %732 : vector<2x32xf32>
    %c624_291 = arith.constant 624 : index
    %c0_292 = arith.constant 0 : index
    %734 = vector.load %arg2[%c624_291, %c0_292] : memref<648x128xf32, #tpu.memory_space<vmem>>, vector<16x32xf32>
    %cst_293 = arith.constant dense<0.000000e+00> : vector<2x32xf32>
    %735 = tpu.matmul %673, %734, %cst_293 {dimension_numbers = #tpu.dot_dimension_numbers<[1], [0], [0], [1], [0, 0, 1, 1], [], []>} : vector<2x16xf32>, vector<16x32xf32>, vector<2x32xf32> -> vector<2x32xf32>
    %736 = arith.addf %733, %735 : vector<2x32xf32>
    %c640_294 = arith.constant 640 : index
    %c0_295 = arith.constant 0 : index
    %737 = vector.load %arg2[%c640_294, %c0_295] : memref<648x128xf32, #tpu.memory_space<vmem>>, vector<1x32xf32>
    %738 = vector.broadcast %737 : vector<1x32xf32> to vector<2x32xf32>
    %739 = arith.addf %736, %738 : vector<2x32xf32>
    %c3_296 = arith.constant 3 : index
    %c0_297 = arith.constant 0 : index
    %c0_298 = arith.constant 0 : index
    %740 = vector.load %arg5[%c3_296, %c0_297, %c0_298] : memref<8x2x32xf32, #tpu.memory_space<vmem>>, vector<1x2x32xf32>
    %741 = vector.shape_cast %740 : vector<1x2x32xf32> to vector<2x32xf32>
    %742 = vector.shape_cast %739 : vector<2x32xf32> to vector<1x2x32xf32>
    tpu.vector_store %arg5[%c3_296, %c0_297, %c0_298], %742 {strides = array<i32>} : memref<8x2x32xf32, #tpu.memory_space<vmem>>, vector<1x2x32xf32>,
    %743 = vector.extract_strided_slice %16 {offsets = [0, 3, 0], sizes = [2, 1, 16], strides = [1, 1, 1]} : vector<2x8x16xf32> to vector<2x1x16xf32>
    %744 = vector.shape_cast %743 : vector<2x1x16xf32> to vector<2x16xf32>
    %c0_299 = arith.constant 0 : index
    %c0_300 = arith.constant 0 : index
    %745 = vector.load %arg7[%c0_299, %c0_300] : memref<2x16xf32, #tpu.memory_space<vmem>>, vector<2x16xf32>
    tpu.vector_store %arg7[%c0_299, %c0_300], %744 {strides = array<i32>} : memref<2x16xf32, #tpu.memory_space<vmem>>, vector<2x16xf32>,
    %c3_301 = arith.constant 3 : index
    %746 = memref.load %arg1[%c3_301] : memref<8xi32, #tpu.memory_space<smem>>
    %c0_i32_302 = arith.constant 0 : i32
    %747 = arith.cmpi eq, %746, %c0_i32_302 : i32
    %748 = arith.extui %747 : i1 to i32
    %c0_i32_303 = arith.constant 0 : i32
    %749 = arith.cmpi ne, %748, %c0_i32_303 : i32
    scf.if %749 {
      %cst_479 = arith.constant dense<0xFF800000> : vector<2xf32>
      %1051 = vector.multi_reduction <maximumf>, %739, %cst_479 [1] : vector<2x32xf32> to vector<2xf32>
      %1052 = vector.shape_cast %1051 : vector<2xf32> to vector<2x1xf32>
      %1053 = tpu.iota {dimensions = array<i32: 1>} : vector<2x32xi32>
      %1054 = vector.broadcast %1052 : vector<2x1xf32> to vector<2x32xf32>
      %1055 = arith.cmpf oge, %739, %1054 : vector<2x32xf32>
      %c32_i32 = arith.constant 32 : i32
      %1056 = vector.broadcast %c32_i32 : i32 to vector<2x32xi32>
      %1057 = arith.select %1055, %1053, %1056 : vector<2x32xi1>, vector<2x32xi32>
      %cst_480 = arith.constant dense<2147483647> : vector<2xi32>
      %1058 = vector.multi_reduction <minsi>, %1057, %cst_480 [1] : vector<2x32xi32> to vector<2xi32>
      %1059 = vector.shape_cast %1058 : vector<2xi32> to vector<2x1xi32>
      %1060 = vector.broadcast %1059 : vector<2x1xi32> to vector<2x32xi32>
      %1061 = arith.cmpi eq, %1053, %1060 : vector<2x32xi32>
      %1062 = arith.extui %1061 : vector<2x32xi1> to vector<2x32xi32>
      %1063 = arith.sitofp %1062 : vector<2x32xi32> to vector<2x32xf32>
      %c32_481 = arith.constant 32 : index
      %c0_482 = arith.constant 0 : index
      %1064 = vector.load %arg2[%c32_481, %c0_482] : memref<648x128xf32, #tpu.memory_space<vmem>>, vector<32x16xf32>
      %cst_483 = arith.constant dense<0.000000e+00> : vector<2x16xf32>
      %1065 = tpu.matmul %1063, %1064, %cst_483 {dimension_numbers = #tpu.dot_dimension_numbers<[1], [0], [0], [1], [0, 0, 1, 1], [], []>} : vector<2x32xf32>, vector<32x16xf32>, vector<2x16xf32> -> vector<2x16xf32>
      %c0_484 = arith.constant 0 : index
      %c0_485 = arith.constant 0 : index
      %1066 = vector.load %arg7[%c0_484, %c0_485] : memref<2x16xf32, #tpu.memory_space<vmem>>, vector<2x16xf32>
      tpu.vector_store %arg7[%c0_484, %c0_485], %1065 {strides = array<i32>} : memref<2x16xf32, #tpu.memory_space<vmem>>, vector<2x16xf32>,
    } else {
    }
    %c0_304 = arith.constant 0 : index
    %c0_305 = arith.constant 0 : index
    %750 = vector.load %arg7[%c0_304, %c0_305] : memref<2x16xf32, #tpu.memory_space<vmem>>, vector<2x16xf32>
    %c264_306 = arith.constant 264 : index
    %c0_307 = arith.constant 0 : index
    %751 = vector.load %arg2[%c264_306, %c0_307] : memref<648x128xf32, #tpu.memory_space<vmem>>, vector<32x32xf32>
    %cst_308 = arith.constant dense<0.000000e+00> : vector<2x32xf32>
    %752 = tpu.matmul %728, %751, %cst_308 {dimension_numbers = #tpu.dot_dimension_numbers<[1], [0], [0], [1], [0, 0, 1, 1], [], []>} : vector<2x32xf32>, vector<32x32xf32>, vector<2x32xf32> -> vector<2x32xf32>
    %753 = vector.shape_cast %752 : vector<2x32xf32> to vector<2x1x32xf32>
    %754 = vector.broadcast %753 : vector<2x1x32xf32> to vector<2x8x32xf32>
    %755 = arith.addf %511, %754 : vector<2x8x32xf32>
    %756 = math.tanh %755 : vector<2x8x32xf32>
    %757 = vector.shape_cast %756 : vector<2x8x32xf32> to vector<16x32xf32>
    %c368_309 = arith.constant 368 : index
    %c0_310 = arith.constant 0 : index
    %758 = vector.load %arg2[%c368_309, %c0_310] : memref<648x128xf32, #tpu.memory_space<vmem>>, vector<32x1xf32>
    %cst_311 = arith.constant dense<0.000000e+00> : vector<16x1xf32>
    %759 = tpu.matmul %757, %758, %cst_311 {dimension_numbers = #tpu.dot_dimension_numbers<[1], [0], [0], [1], [0, 0, 1, 1], [], []>} : vector<16x32xf32>, vector<32x1xf32>, vector<16x1xf32> -> vector<16x1xf32>
    %760 = vector.shape_cast %759 : vector<16x1xf32> to vector<2x8x1xf32>
    %cst_312 = arith.constant dense<0xFF800000> : vector<2x1xf32>
    %761 = vector.multi_reduction <maximumf>, %760, %cst_312 [1] : vector<2x8x1xf32> to vector<2x1xf32>
    %762 = vector.shape_cast %761 : vector<2x1xf32> to vector<2x1x1xf32>
    %763 = vector.broadcast %762 : vector<2x1x1xf32> to vector<2x8x1xf32>
    %764 = arith.subf %760, %763 : vector<2x8x1xf32>
    %765 = math.exp %764 : vector<2x8x1xf32>
    %cst_313 = arith.constant dense<0.000000e+00> : vector<2x1xf32>
    %766 = vector.multi_reduction <add>, %765, %cst_313 [1] : vector<2x8x1xf32> to vector<2x1xf32>
    %767 = vector.shape_cast %766 : vector<2x1xf32> to vector<2x1x1xf32>
    %768 = vector.broadcast %767 : vector<2x1x1xf32> to vector<2x8x1xf32>
    %769 = arith.divf %765, %768 : vector<2x8x1xf32>
    %770 = vector.broadcast %769 : vector<2x8x1xf32> to vector<2x8x64xf32>
    %771 = arith.mulf %770, %504 : vector<2x8x64xf32>
    %cst_314 = arith.constant dense<0.000000e+00> : vector<2x64xf32>
    %772 = vector.multi_reduction <add>, %771, %cst_314 [1] : vector<2x8x64xf32> to vector<2x64xf32>
    %c400_315 = arith.constant 400 : index
    %c0_316 = arith.constant 0 : index
    %773 = vector.load %arg2[%c400_315, %c0_316] : memref<648x128xf32, #tpu.memory_space<vmem>>, vector<16x96xf32>
    %cst_317 = arith.constant dense<0.000000e+00> : vector<2x96xf32>
    %774 = tpu.matmul %750, %773, %cst_317 {dimension_numbers = #tpu.dot_dimension_numbers<[1], [0], [0], [1], [0, 0, 1, 1], [], []>} : vector<2x16xf32>, vector<16x96xf32>, vector<2x96xf32> -> vector<2x96xf32>
    %c416_318 = arith.constant 416 : index
    %c0_319 = arith.constant 0 : index
    %775 = vector.load %arg2[%c416_318, %c0_319] : memref<648x128xf32, #tpu.memory_space<vmem>>, vector<64x96xf32>
    %cst_320 = arith.constant dense<0.000000e+00> : vector<2x96xf32>
    %776 = tpu.matmul %772, %775, %cst_320 {dimension_numbers = #tpu.dot_dimension_numbers<[1], [0], [0], [1], [0, 0, 1, 1], [], []>} : vector<2x64xf32>, vector<64x96xf32>, vector<2x96xf32> -> vector<2x96xf32>
    %777 = arith.addf %774, %776 : vector<2x96xf32>
    %c512_321 = arith.constant 512 : index
    %c0_322 = arith.constant 0 : index
    %778 = vector.load %arg2[%c512_321, %c0_322] : memref<648x128xf32, #tpu.memory_space<vmem>>, vector<1x96xf32>
    %779 = vector.broadcast %778 : vector<1x96xf32> to vector<2x96xf32>
    %780 = arith.addf %777, %779 : vector<2x96xf32>
    %c480_323 = arith.constant 480 : index
    %c0_324 = arith.constant 0 : index
    %781 = vector.load %arg2[%c480_323, %c0_324] : memref<648x128xf32, #tpu.memory_space<vmem>>, vector<32x96xf32>
    %cst_325 = arith.constant dense<0.000000e+00> : vector<2x96xf32>
    %782 = tpu.matmul %728, %781, %cst_325 {dimension_numbers = #tpu.dot_dimension_numbers<[1], [0], [0], [1], [0, 0, 1, 1], [], []>} : vector<2x32xf32>, vector<32x96xf32>, vector<2x96xf32> -> vector<2x96xf32>
    %c520_326 = arith.constant 520 : index
    %c0_327 = arith.constant 0 : index
    %783 = vector.load %arg2[%c520_326, %c0_327] : memref<648x128xf32, #tpu.memory_space<vmem>>, vector<1x96xf32>
    %784 = vector.broadcast %783 : vector<1x96xf32> to vector<2x96xf32>
    %785 = arith.addf %782, %784 : vector<2x96xf32>
    %786 = vector.extract_strided_slice %780 {offsets = [0, 0], sizes = [2, 64], strides = [1, 1]} : vector<2x96xf32> to vector<2x64xf32>
    %787 = vector.extract_strided_slice %785 {offsets = [0, 0], sizes = [2, 64], strides = [1, 1]} : vector<2x96xf32> to vector<2x64xf32>
    %788 = arith.addf %786, %787 : vector<2x64xf32>
    %789 = arith.negf %788 : vector<2x64xf32>
    %790 = math.exp %789 : vector<2x64xf32>
    %cst_328 = arith.constant 1.000000e+00 : f32
    %791 = vector.broadcast %cst_328 : f32 to vector<2x64xf32>
    %792 = arith.addf %791, %790 : vector<2x64xf32>
    %793 = arith.divf %791, %792 : vector<2x64xf32>
    %794 = vector.extract_strided_slice %793 {offsets = [0, 0], sizes = [2, 32], strides = [1, 1]} : vector<2x64xf32> to vector<2x32xf32>
    %795 = vector.extract_strided_slice %793 {offsets = [0, 32], sizes = [2, 32], strides = [1, 1]} : vector<2x64xf32> to vector<2x32xf32>
    %796 = vector.extract_strided_slice %780 {offsets = [0, 64], sizes = [2, 32], strides = [1, 1]} : vector<2x96xf32> to vector<2x32xf32>
    %797 = vector.extract_strided_slice %785 {offsets = [0, 64], sizes = [2, 32], strides = [1, 1]} : vector<2x96xf32> to vector<2x32xf32>
    %798 = arith.mulf %794, %797 : vector<2x32xf32>
    %799 = arith.addf %796, %798 : vector<2x32xf32>
    %800 = math.tanh %799 : vector<2x32xf32>
    %cst_329 = arith.constant 1.000000e+00 : f32
    %801 = vector.broadcast %cst_329 : f32 to vector<2x32xf32>
    %802 = arith.subf %801, %795 : vector<2x32xf32>
    %803 = arith.mulf %802, %800 : vector<2x32xf32>
    %804 = arith.mulf %795, %728 : vector<2x32xf32>
    %805 = arith.addf %803, %804 : vector<2x32xf32>
    %c528_330 = arith.constant 528 : index
    %c0_331 = arith.constant 0 : index
    %806 = vector.load %arg2[%c528_330, %c0_331] : memref<648x128xf32, #tpu.memory_space<vmem>>, vector<32x32xf32>
    %cst_332 = arith.constant dense<0.000000e+00> : vector<2x32xf32>
    %807 = tpu.matmul %805, %806, %cst_332 {dimension_numbers = #tpu.dot_dimension_numbers<[1], [0], [0], [1], [0, 0, 1, 1], [], []>} : vector<2x32xf32>, vector<32x32xf32>, vector<2x32xf32> -> vector<2x32xf32>
    %c560_333 = arith.constant 560 : index
    %c0_334 = arith.constant 0 : index
    %808 = vector.load %arg2[%c560_333, %c0_334] : memref<648x128xf32, #tpu.memory_space<vmem>>, vector<64x32xf32>
    %cst_335 = arith.constant dense<0.000000e+00> : vector<2x32xf32>
    %809 = tpu.matmul %772, %808, %cst_335 {dimension_numbers = #tpu.dot_dimension_numbers<[1], [0], [0], [1], [0, 0, 1, 1], [], []>} : vector<2x64xf32>, vector<64x32xf32>, vector<2x32xf32> -> vector<2x32xf32>
    %810 = arith.addf %807, %809 : vector<2x32xf32>
    %c624_336 = arith.constant 624 : index
    %c0_337 = arith.constant 0 : index
    %811 = vector.load %arg2[%c624_336, %c0_337] : memref<648x128xf32, #tpu.memory_space<vmem>>, vector<16x32xf32>
    %cst_338 = arith.constant dense<0.000000e+00> : vector<2x32xf32>
    %812 = tpu.matmul %750, %811, %cst_338 {dimension_numbers = #tpu.dot_dimension_numbers<[1], [0], [0], [1], [0, 0, 1, 1], [], []>} : vector<2x16xf32>, vector<16x32xf32>, vector<2x32xf32> -> vector<2x32xf32>
    %813 = arith.addf %810, %812 : vector<2x32xf32>
    %c640_339 = arith.constant 640 : index
    %c0_340 = arith.constant 0 : index
    %814 = vector.load %arg2[%c640_339, %c0_340] : memref<648x128xf32, #tpu.memory_space<vmem>>, vector<1x32xf32>
    %815 = vector.broadcast %814 : vector<1x32xf32> to vector<2x32xf32>
    %816 = arith.addf %813, %815 : vector<2x32xf32>
    %c4_341 = arith.constant 4 : index
    %c0_342 = arith.constant 0 : index
    %c0_343 = arith.constant 0 : index
    %817 = vector.load %arg5[%c4_341, %c0_342, %c0_343] : memref<8x2x32xf32, #tpu.memory_space<vmem>>, vector<1x2x32xf32>
    %818 = vector.shape_cast %817 : vector<1x2x32xf32> to vector<2x32xf32>
    %819 = vector.shape_cast %816 : vector<2x32xf32> to vector<1x2x32xf32>
    tpu.vector_store %arg5[%c4_341, %c0_342, %c0_343], %819 {strides = array<i32>} : memref<8x2x32xf32, #tpu.memory_space<vmem>>, vector<1x2x32xf32>,
    %820 = vector.extract_strided_slice %16 {offsets = [0, 4, 0], sizes = [2, 1, 16], strides = [1, 1, 1]} : vector<2x8x16xf32> to vector<2x1x16xf32>
    %821 = vector.shape_cast %820 : vector<2x1x16xf32> to vector<2x16xf32>
    %c0_344 = arith.constant 0 : index
    %c0_345 = arith.constant 0 : index
    %822 = vector.load %arg7[%c0_344, %c0_345] : memref<2x16xf32, #tpu.memory_space<vmem>>, vector<2x16xf32>
    tpu.vector_store %arg7[%c0_344, %c0_345], %821 {strides = array<i32>} : memref<2x16xf32, #tpu.memory_space<vmem>>, vector<2x16xf32>,
    %c4_346 = arith.constant 4 : index
    %823 = memref.load %arg1[%c4_346] : memref<8xi32, #tpu.memory_space<smem>>
    %c0_i32_347 = arith.constant 0 : i32
    %824 = arith.cmpi eq, %823, %c0_i32_347 : i32
    %825 = arith.extui %824 : i1 to i32
    %c0_i32_348 = arith.constant 0 : i32
    %826 = arith.cmpi ne, %825, %c0_i32_348 : i32
    scf.if %826 {
      %cst_479 = arith.constant dense<0xFF800000> : vector<2xf32>
      %1051 = vector.multi_reduction <maximumf>, %816, %cst_479 [1] : vector<2x32xf32> to vector<2xf32>
      %1052 = vector.shape_cast %1051 : vector<2xf32> to vector<2x1xf32>
      %1053 = tpu.iota {dimensions = array<i32: 1>} : vector<2x32xi32>
      %1054 = vector.broadcast %1052 : vector<2x1xf32> to vector<2x32xf32>
      %1055 = arith.cmpf oge, %816, %1054 : vector<2x32xf32>
      %c32_i32 = arith.constant 32 : i32
      %1056 = vector.broadcast %c32_i32 : i32 to vector<2x32xi32>
      %1057 = arith.select %1055, %1053, %1056 : vector<2x32xi1>, vector<2x32xi32>
      %cst_480 = arith.constant dense<2147483647> : vector<2xi32>
      %1058 = vector.multi_reduction <minsi>, %1057, %cst_480 [1] : vector<2x32xi32> to vector<2xi32>
      %1059 = vector.shape_cast %1058 : vector<2xi32> to vector<2x1xi32>
      %1060 = vector.broadcast %1059 : vector<2x1xi32> to vector<2x32xi32>
      %1061 = arith.cmpi eq, %1053, %1060 : vector<2x32xi32>
      %1062 = arith.extui %1061 : vector<2x32xi1> to vector<2x32xi32>
      %1063 = arith.sitofp %1062 : vector<2x32xi32> to vector<2x32xf32>
      %c32_481 = arith.constant 32 : index
      %c0_482 = arith.constant 0 : index
      %1064 = vector.load %arg2[%c32_481, %c0_482] : memref<648x128xf32, #tpu.memory_space<vmem>>, vector<32x16xf32>
      %cst_483 = arith.constant dense<0.000000e+00> : vector<2x16xf32>
      %1065 = tpu.matmul %1063, %1064, %cst_483 {dimension_numbers = #tpu.dot_dimension_numbers<[1], [0], [0], [1], [0, 0, 1, 1], [], []>} : vector<2x32xf32>, vector<32x16xf32>, vector<2x16xf32> -> vector<2x16xf32>
      %c0_484 = arith.constant 0 : index
      %c0_485 = arith.constant 0 : index
      %1066 = vector.load %arg7[%c0_484, %c0_485] : memref<2x16xf32, #tpu.memory_space<vmem>>, vector<2x16xf32>
      tpu.vector_store %arg7[%c0_484, %c0_485], %1065 {strides = array<i32>} : memref<2x16xf32, #tpu.memory_space<vmem>>, vector<2x16xf32>,
    } else {
    }
    %c0_349 = arith.constant 0 : index
    %c0_350 = arith.constant 0 : index
    %827 = vector.load %arg7[%c0_349, %c0_350] : memref<2x16xf32, #tpu.memory_space<vmem>>, vector<2x16xf32>
    %c264_351 = arith.constant 264 : index
    %c0_352 = arith.constant 0 : index
    %828 = vector.load %arg2[%c264_351, %c0_352] : memref<648x128xf32, #tpu.memory_space<vmem>>, vector<32x32xf32>
    %cst_353 = arith.constant dense<0.000000e+00> : vector<2x32xf32>
    %829 = tpu.matmul %805, %828, %cst_353 {dimension_numbers = #tpu.dot_dimension_numbers<[1], [0], [0], [1], [0, 0, 1, 1], [], []>} : vector<2x32xf32>, vector<32x32xf32>, vector<2x32xf32> -> vector<2x32xf32>
    %830 = vector.shape_cast %829 : vector<2x32xf32> to vector<2x1x32xf32>
    %831 = vector.broadcast %830 : vector<2x1x32xf32> to vector<2x8x32xf32>
    %832 = arith.addf %511, %831 : vector<2x8x32xf32>
    %833 = math.tanh %832 : vector<2x8x32xf32>
    %834 = vector.shape_cast %833 : vector<2x8x32xf32> to vector<16x32xf32>
    %c368_354 = arith.constant 368 : index
    %c0_355 = arith.constant 0 : index
    %835 = vector.load %arg2[%c368_354, %c0_355] : memref<648x128xf32, #tpu.memory_space<vmem>>, vector<32x1xf32>
    %cst_356 = arith.constant dense<0.000000e+00> : vector<16x1xf32>
    %836 = tpu.matmul %834, %835, %cst_356 {dimension_numbers = #tpu.dot_dimension_numbers<[1], [0], [0], [1], [0, 0, 1, 1], [], []>} : vector<16x32xf32>, vector<32x1xf32>, vector<16x1xf32> -> vector<16x1xf32>
    %837 = vector.shape_cast %836 : vector<16x1xf32> to vector<2x8x1xf32>
    %cst_357 = arith.constant dense<0xFF800000> : vector<2x1xf32>
    %838 = vector.multi_reduction <maximumf>, %837, %cst_357 [1] : vector<2x8x1xf32> to vector<2x1xf32>
    %839 = vector.shape_cast %838 : vector<2x1xf32> to vector<2x1x1xf32>
    %840 = vector.broadcast %839 : vector<2x1x1xf32> to vector<2x8x1xf32>
    %841 = arith.subf %837, %840 : vector<2x8x1xf32>
    %842 = math.exp %841 : vector<2x8x1xf32>
    %cst_358 = arith.constant dense<0.000000e+00> : vector<2x1xf32>
    %843 = vector.multi_reduction <add>, %842, %cst_358 [1] : vector<2x8x1xf32> to vector<2x1xf32>
    %844 = vector.shape_cast %843 : vector<2x1xf32> to vector<2x1x1xf32>
    %845 = vector.broadcast %844 : vector<2x1x1xf32> to vector<2x8x1xf32>
    %846 = arith.divf %842, %845 : vector<2x8x1xf32>
    %847 = vector.broadcast %846 : vector<2x8x1xf32> to vector<2x8x64xf32>
    %848 = arith.mulf %847, %504 : vector<2x8x64xf32>
    %cst_359 = arith.constant dense<0.000000e+00> : vector<2x64xf32>
    %849 = vector.multi_reduction <add>, %848, %cst_359 [1] : vector<2x8x64xf32> to vector<2x64xf32>
    %c400_360 = arith.constant 400 : index
    %c0_361 = arith.constant 0 : index
    %850 = vector.load %arg2[%c400_360, %c0_361] : memref<648x128xf32, #tpu.memory_space<vmem>>, vector<16x96xf32>
    %cst_362 = arith.constant dense<0.000000e+00> : vector<2x96xf32>
    %851 = tpu.matmul %827, %850, %cst_362 {dimension_numbers = #tpu.dot_dimension_numbers<[1], [0], [0], [1], [0, 0, 1, 1], [], []>} : vector<2x16xf32>, vector<16x96xf32>, vector<2x96xf32> -> vector<2x96xf32>
    %c416_363 = arith.constant 416 : index
    %c0_364 = arith.constant 0 : index
    %852 = vector.load %arg2[%c416_363, %c0_364] : memref<648x128xf32, #tpu.memory_space<vmem>>, vector<64x96xf32>
    %cst_365 = arith.constant dense<0.000000e+00> : vector<2x96xf32>
    %853 = tpu.matmul %849, %852, %cst_365 {dimension_numbers = #tpu.dot_dimension_numbers<[1], [0], [0], [1], [0, 0, 1, 1], [], []>} : vector<2x64xf32>, vector<64x96xf32>, vector<2x96xf32> -> vector<2x96xf32>
    %854 = arith.addf %851, %853 : vector<2x96xf32>
    %c512_366 = arith.constant 512 : index
    %c0_367 = arith.constant 0 : index
    %855 = vector.load %arg2[%c512_366, %c0_367] : memref<648x128xf32, #tpu.memory_space<vmem>>, vector<1x96xf32>
    %856 = vector.broadcast %855 : vector<1x96xf32> to vector<2x96xf32>
    %857 = arith.addf %854, %856 : vector<2x96xf32>
    %c480_368 = arith.constant 480 : index
    %c0_369 = arith.constant 0 : index
    %858 = vector.load %arg2[%c480_368, %c0_369] : memref<648x128xf32, #tpu.memory_space<vmem>>, vector<32x96xf32>
    %cst_370 = arith.constant dense<0.000000e+00> : vector<2x96xf32>
    %859 = tpu.matmul %805, %858, %cst_370 {dimension_numbers = #tpu.dot_dimension_numbers<[1], [0], [0], [1], [0, 0, 1, 1], [], []>} : vector<2x32xf32>, vector<32x96xf32>, vector<2x96xf32> -> vector<2x96xf32>
    %c520_371 = arith.constant 520 : index
    %c0_372 = arith.constant 0 : index
    %860 = vector.load %arg2[%c520_371, %c0_372] : memref<648x128xf32, #tpu.memory_space<vmem>>, vector<1x96xf32>
    %861 = vector.broadcast %860 : vector<1x96xf32> to vector<2x96xf32>
    %862 = arith.addf %859, %861 : vector<2x96xf32>
    %863 = vector.extract_strided_slice %857 {offsets = [0, 0], sizes = [2, 64], strides = [1, 1]} : vector<2x96xf32> to vector<2x64xf32>
    %864 = vector.extract_strided_slice %862 {offsets = [0, 0], sizes = [2, 64], strides = [1, 1]} : vector<2x96xf32> to vector<2x64xf32>
    %865 = arith.addf %863, %864 : vector<2x64xf32>
    %866 = arith.negf %865 : vector<2x64xf32>
    %867 = math.exp %866 : vector<2x64xf32>
    %cst_373 = arith.constant 1.000000e+00 : f32
    %868 = vector.broadcast %cst_373 : f32 to vector<2x64xf32>
    %869 = arith.addf %868, %867 : vector<2x64xf32>
    %870 = arith.divf %868, %869 : vector<2x64xf32>
    %871 = vector.extract_strided_slice %870 {offsets = [0, 0], sizes = [2, 32], strides = [1, 1]} : vector<2x64xf32> to vector<2x32xf32>
    %872 = vector.extract_strided_slice %870 {offsets = [0, 32], sizes = [2, 32], strides = [1, 1]} : vector<2x64xf32> to vector<2x32xf32>
    %873 = vector.extract_strided_slice %857 {offsets = [0, 64], sizes = [2, 32], strides = [1, 1]} : vector<2x96xf32> to vector<2x32xf32>
    %874 = vector.extract_strided_slice %862 {offsets = [0, 64], sizes = [2, 32], strides = [1, 1]} : vector<2x96xf32> to vector<2x32xf32>
    %875 = arith.mulf %871, %874 : vector<2x32xf32>
    %876 = arith.addf %873, %875 : vector<2x32xf32>
    %877 = math.tanh %876 : vector<2x32xf32>
    %cst_374 = arith.constant 1.000000e+00 : f32
    %878 = vector.broadcast %cst_374 : f32 to vector<2x32xf32>
    %879 = arith.subf %878, %872 : vector<2x32xf32>
    %880 = arith.mulf %879, %877 : vector<2x32xf32>
    %881 = arith.mulf %872, %805 : vector<2x32xf32>
    %882 = arith.addf %880, %881 : vector<2x32xf32>
    %c528_375 = arith.constant 528 : index
    %c0_376 = arith.constant 0 : index
    %883 = vector.load %arg2[%c528_375, %c0_376] : memref<648x128xf32, #tpu.memory_space<vmem>>, vector<32x32xf32>
    %cst_377 = arith.constant dense<0.000000e+00> : vector<2x32xf32>
    %884 = tpu.matmul %882, %883, %cst_377 {dimension_numbers = #tpu.dot_dimension_numbers<[1], [0], [0], [1], [0, 0, 1, 1], [], []>} : vector<2x32xf32>, vector<32x32xf32>, vector<2x32xf32> -> vector<2x32xf32>
    %c560_378 = arith.constant 560 : index
    %c0_379 = arith.constant 0 : index
    %885 = vector.load %arg2[%c560_378, %c0_379] : memref<648x128xf32, #tpu.memory_space<vmem>>, vector<64x32xf32>
    %cst_380 = arith.constant dense<0.000000e+00> : vector<2x32xf32>
    %886 = tpu.matmul %849, %885, %cst_380 {dimension_numbers = #tpu.dot_dimension_numbers<[1], [0], [0], [1], [0, 0, 1, 1], [], []>} : vector<2x64xf32>, vector<64x32xf32>, vector<2x32xf32> -> vector<2x32xf32>
    %887 = arith.addf %884, %886 : vector<2x32xf32>
    %c624_381 = arith.constant 624 : index
    %c0_382 = arith.constant 0 : index
    %888 = vector.load %arg2[%c624_381, %c0_382] : memref<648x128xf32, #tpu.memory_space<vmem>>, vector<16x32xf32>
    %cst_383 = arith.constant dense<0.000000e+00> : vector<2x32xf32>
    %889 = tpu.matmul %827, %888, %cst_383 {dimension_numbers = #tpu.dot_dimension_numbers<[1], [0], [0], [1], [0, 0, 1, 1], [], []>} : vector<2x16xf32>, vector<16x32xf32>, vector<2x32xf32> -> vector<2x32xf32>
    %890 = arith.addf %887, %889 : vector<2x32xf32>
    %c640_384 = arith.constant 640 : index
    %c0_385 = arith.constant 0 : index
    %891 = vector.load %arg2[%c640_384, %c0_385] : memref<648x128xf32, #tpu.memory_space<vmem>>, vector<1x32xf32>
    %892 = vector.broadcast %891 : vector<1x32xf32> to vector<2x32xf32>
    %893 = arith.addf %890, %892 : vector<2x32xf32>
    %c5_386 = arith.constant 5 : index
    %c0_387 = arith.constant 0 : index
    %c0_388 = arith.constant 0 : index
    %894 = vector.load %arg5[%c5_386, %c0_387, %c0_388] : memref<8x2x32xf32, #tpu.memory_space<vmem>>, vector<1x2x32xf32>
    %895 = vector.shape_cast %894 : vector<1x2x32xf32> to vector<2x32xf32>
    %896 = vector.shape_cast %893 : vector<2x32xf32> to vector<1x2x32xf32>
    tpu.vector_store %arg5[%c5_386, %c0_387, %c0_388], %896 {strides = array<i32>} : memref<8x2x32xf32, #tpu.memory_space<vmem>>, vector<1x2x32xf32>,
    %897 = vector.extract_strided_slice %16 {offsets = [0, 5, 0], sizes = [2, 1, 16], strides = [1, 1, 1]} : vector<2x8x16xf32> to vector<2x1x16xf32>
    %898 = vector.shape_cast %897 : vector<2x1x16xf32> to vector<2x16xf32>
    %c0_389 = arith.constant 0 : index
    %c0_390 = arith.constant 0 : index
    %899 = vector.load %arg7[%c0_389, %c0_390] : memref<2x16xf32, #tpu.memory_space<vmem>>, vector<2x16xf32>
    tpu.vector_store %arg7[%c0_389, %c0_390], %898 {strides = array<i32>} : memref<2x16xf32, #tpu.memory_space<vmem>>, vector<2x16xf32>,
    %c5_391 = arith.constant 5 : index
    %900 = memref.load %arg1[%c5_391] : memref<8xi32, #tpu.memory_space<smem>>
    %c0_i32_392 = arith.constant 0 : i32
    %901 = arith.cmpi eq, %900, %c0_i32_392 : i32
    %902 = arith.extui %901 : i1 to i32
    %c0_i32_393 = arith.constant 0 : i32
    %903 = arith.cmpi ne, %902, %c0_i32_393 : i32
    scf.if %903 {
      %cst_479 = arith.constant dense<0xFF800000> : vector<2xf32>
      %1051 = vector.multi_reduction <maximumf>, %893, %cst_479 [1] : vector<2x32xf32> to vector<2xf32>
      %1052 = vector.shape_cast %1051 : vector<2xf32> to vector<2x1xf32>
      %1053 = tpu.iota {dimensions = array<i32: 1>} : vector<2x32xi32>
      %1054 = vector.broadcast %1052 : vector<2x1xf32> to vector<2x32xf32>
      %1055 = arith.cmpf oge, %893, %1054 : vector<2x32xf32>
      %c32_i32 = arith.constant 32 : i32
      %1056 = vector.broadcast %c32_i32 : i32 to vector<2x32xi32>
      %1057 = arith.select %1055, %1053, %1056 : vector<2x32xi1>, vector<2x32xi32>
      %cst_480 = arith.constant dense<2147483647> : vector<2xi32>
      %1058 = vector.multi_reduction <minsi>, %1057, %cst_480 [1] : vector<2x32xi32> to vector<2xi32>
      %1059 = vector.shape_cast %1058 : vector<2xi32> to vector<2x1xi32>
      %1060 = vector.broadcast %1059 : vector<2x1xi32> to vector<2x32xi32>
      %1061 = arith.cmpi eq, %1053, %1060 : vector<2x32xi32>
      %1062 = arith.extui %1061 : vector<2x32xi1> to vector<2x32xi32>
      %1063 = arith.sitofp %1062 : vector<2x32xi32> to vector<2x32xf32>
      %c32_481 = arith.constant 32 : index
      %c0_482 = arith.constant 0 : index
      %1064 = vector.load %arg2[%c32_481, %c0_482] : memref<648x128xf32, #tpu.memory_space<vmem>>, vector<32x16xf32>
      %cst_483 = arith.constant dense<0.000000e+00> : vector<2x16xf32>
      %1065 = tpu.matmul %1063, %1064, %cst_483 {dimension_numbers = #tpu.dot_dimension_numbers<[1], [0], [0], [1], [0, 0, 1, 1], [], []>} : vector<2x32xf32>, vector<32x16xf32>, vector<2x16xf32> -> vector<2x16xf32>
      %c0_484 = arith.constant 0 : index
      %c0_485 = arith.constant 0 : index
      %1066 = vector.load %arg7[%c0_484, %c0_485] : memref<2x16xf32, #tpu.memory_space<vmem>>, vector<2x16xf32>
      tpu.vector_store %arg7[%c0_484, %c0_485], %1065 {strides = array<i32>} : memref<2x16xf32, #tpu.memory_space<vmem>>, vector<2x16xf32>,
    } else {
    }
    %c0_394 = arith.constant 0 : index
    %c0_395 = arith.constant 0 : index
    %904 = vector.load %arg7[%c0_394, %c0_395] : memref<2x16xf32, #tpu.memory_space<vmem>>, vector<2x16xf32>
    %c264_396 = arith.constant 264 : index
    %c0_397 = arith.constant 0 : index
    %905 = vector.load %arg2[%c264_396, %c0_397] : memref<648x128xf32, #tpu.memory_space<vmem>>, vector<32x32xf32>
    %cst_398 = arith.constant dense<0.000000e+00> : vector<2x32xf32>
    %906 = tpu.matmul %882, %905, %cst_398 {dimension_numbers = #tpu.dot_dimension_numbers<[1], [0], [0], [1], [0, 0, 1, 1], [], []>} : vector<2x32xf32>, vector<32x32xf32>, vector<2x32xf32> -> vector<2x32xf32>
    %907 = vector.shape_cast %906 : vector<2x32xf32> to vector<2x1x32xf32>
    %908 = vector.broadcast %907 : vector<2x1x32xf32> to vector<2x8x32xf32>
    %909 = arith.addf %511, %908 : vector<2x8x32xf32>
    %910 = math.tanh %909 : vector<2x8x32xf32>
    %911 = vector.shape_cast %910 : vector<2x8x32xf32> to vector<16x32xf32>
    %c368_399 = arith.constant 368 : index
    %c0_400 = arith.constant 0 : index
    %912 = vector.load %arg2[%c368_399, %c0_400] : memref<648x128xf32, #tpu.memory_space<vmem>>, vector<32x1xf32>
    %cst_401 = arith.constant dense<0.000000e+00> : vector<16x1xf32>
    %913 = tpu.matmul %911, %912, %cst_401 {dimension_numbers = #tpu.dot_dimension_numbers<[1], [0], [0], [1], [0, 0, 1, 1], [], []>} : vector<16x32xf32>, vector<32x1xf32>, vector<16x1xf32> -> vector<16x1xf32>
    %914 = vector.shape_cast %913 : vector<16x1xf32> to vector<2x8x1xf32>
    %cst_402 = arith.constant dense<0xFF800000> : vector<2x1xf32>
    %915 = vector.multi_reduction <maximumf>, %914, %cst_402 [1] : vector<2x8x1xf32> to vector<2x1xf32>
    %916 = vector.shape_cast %915 : vector<2x1xf32> to vector<2x1x1xf32>
    %917 = vector.broadcast %916 : vector<2x1x1xf32> to vector<2x8x1xf32>
    %918 = arith.subf %914, %917 : vector<2x8x1xf32>
    %919 = math.exp %918 : vector<2x8x1xf32>
    %cst_403 = arith.constant dense<0.000000e+00> : vector<2x1xf32>
    %920 = vector.multi_reduction <add>, %919, %cst_403 [1] : vector<2x8x1xf32> to vector<2x1xf32>
    %921 = vector.shape_cast %920 : vector<2x1xf32> to vector<2x1x1xf32>
    %922 = vector.broadcast %921 : vector<2x1x1xf32> to vector<2x8x1xf32>
    %923 = arith.divf %919, %922 : vector<2x8x1xf32>
    %924 = vector.broadcast %923 : vector<2x8x1xf32> to vector<2x8x64xf32>
    %925 = arith.mulf %924, %504 : vector<2x8x64xf32>
    %cst_404 = arith.constant dense<0.000000e+00> : vector<2x64xf32>
    %926 = vector.multi_reduction <add>, %925, %cst_404 [1] : vector<2x8x64xf32> to vector<2x64xf32>
    %c400_405 = arith.constant 400 : index
    %c0_406 = arith.constant 0 : index
    %927 = vector.load %arg2[%c400_405, %c0_406] : memref<648x128xf32, #tpu.memory_space<vmem>>, vector<16x96xf32>
    %cst_407 = arith.constant dense<0.000000e+00> : vector<2x96xf32>
    %928 = tpu.matmul %904, %927, %cst_407 {dimension_numbers = #tpu.dot_dimension_numbers<[1], [0], [0], [1], [0, 0, 1, 1], [], []>} : vector<2x16xf32>, vector<16x96xf32>, vector<2x96xf32> -> vector<2x96xf32>
    %c416_408 = arith.constant 416 : index
    %c0_409 = arith.constant 0 : index
    %929 = vector.load %arg2[%c416_408, %c0_409] : memref<648x128xf32, #tpu.memory_space<vmem>>, vector<64x96xf32>
    %cst_410 = arith.constant dense<0.000000e+00> : vector<2x96xf32>
    %930 = tpu.matmul %926, %929, %cst_410 {dimension_numbers = #tpu.dot_dimension_numbers<[1], [0], [0], [1], [0, 0, 1, 1], [], []>} : vector<2x64xf32>, vector<64x96xf32>, vector<2x96xf32> -> vector<2x96xf32>
    %931 = arith.addf %928, %930 : vector<2x96xf32>
    %c512_411 = arith.constant 512 : index
    %c0_412 = arith.constant 0 : index
    %932 = vector.load %arg2[%c512_411, %c0_412] : memref<648x128xf32, #tpu.memory_space<vmem>>, vector<1x96xf32>
    %933 = vector.broadcast %932 : vector<1x96xf32> to vector<2x96xf32>
    %934 = arith.addf %931, %933 : vector<2x96xf32>
    %c480_413 = arith.constant 480 : index
    %c0_414 = arith.constant 0 : index
    %935 = vector.load %arg2[%c480_413, %c0_414] : memref<648x128xf32, #tpu.memory_space<vmem>>, vector<32x96xf32>
    %cst_415 = arith.constant dense<0.000000e+00> : vector<2x96xf32>
    %936 = tpu.matmul %882, %935, %cst_415 {dimension_numbers = #tpu.dot_dimension_numbers<[1], [0], [0], [1], [0, 0, 1, 1], [], []>} : vector<2x32xf32>, vector<32x96xf32>, vector<2x96xf32> -> vector<2x96xf32>
    %c520_416 = arith.constant 520 : index
    %c0_417 = arith.constant 0 : index
    %937 = vector.load %arg2[%c520_416, %c0_417] : memref<648x128xf32, #tpu.memory_space<vmem>>, vector<1x96xf32>
    %938 = vector.broadcast %937 : vector<1x96xf32> to vector<2x96xf32>
    %939 = arith.addf %936, %938 : vector<2x96xf32>
    %940 = vector.extract_strided_slice %934 {offsets = [0, 0], sizes = [2, 64], strides = [1, 1]} : vector<2x96xf32> to vector<2x64xf32>
    %941 = vector.extract_strided_slice %939 {offsets = [0, 0], sizes = [2, 64], strides = [1, 1]} : vector<2x96xf32> to vector<2x64xf32>
    %942 = arith.addf %940, %941 : vector<2x64xf32>
    %943 = arith.negf %942 : vector<2x64xf32>
    %944 = math.exp %943 : vector<2x64xf32>
    %cst_418 = arith.constant 1.000000e+00 : f32
    %945 = vector.broadcast %cst_418 : f32 to vector<2x64xf32>
    %946 = arith.addf %945, %944 : vector<2x64xf32>
    %947 = arith.divf %945, %946 : vector<2x64xf32>
    %948 = vector.extract_strided_slice %947 {offsets = [0, 0], sizes = [2, 32], strides = [1, 1]} : vector<2x64xf32> to vector<2x32xf32>
    %949 = vector.extract_strided_slice %947 {offsets = [0, 32], sizes = [2, 32], strides = [1, 1]} : vector<2x64xf32> to vector<2x32xf32>
    %950 = vector.extract_strided_slice %934 {offsets = [0, 64], sizes = [2, 32], strides = [1, 1]} : vector<2x96xf32> to vector<2x32xf32>
    %951 = vector.extract_strided_slice %939 {offsets = [0, 64], sizes = [2, 32], strides = [1, 1]} : vector<2x96xf32> to vector<2x32xf32>
    %952 = arith.mulf %948, %951 : vector<2x32xf32>
    %953 = arith.addf %950, %952 : vector<2x32xf32>
    %954 = math.tanh %953 : vector<2x32xf32>
    %cst_419 = arith.constant 1.000000e+00 : f32
    %955 = vector.broadcast %cst_419 : f32 to vector<2x32xf32>
    %956 = arith.subf %955, %949 : vector<2x32xf32>
    %957 = arith.mulf %956, %954 : vector<2x32xf32>
    %958 = arith.mulf %949, %882 : vector<2x32xf32>
    %959 = arith.addf %957, %958 : vector<2x32xf32>
    %c528_420 = arith.constant 528 : index
    %c0_421 = arith.constant 0 : index
    %960 = vector.load %arg2[%c528_420, %c0_421] : memref<648x128xf32, #tpu.memory_space<vmem>>, vector<32x32xf32>
    %cst_422 = arith.constant dense<0.000000e+00> : vector<2x32xf32>
    %961 = tpu.matmul %959, %960, %cst_422 {dimension_numbers = #tpu.dot_dimension_numbers<[1], [0], [0], [1], [0, 0, 1, 1], [], []>} : vector<2x32xf32>, vector<32x32xf32>, vector<2x32xf32> -> vector<2x32xf32>
    %c560_423 = arith.constant 560 : index
    %c0_424 = arith.constant 0 : index
    %962 = vector.load %arg2[%c560_423, %c0_424] : memref<648x128xf32, #tpu.memory_space<vmem>>, vector<64x32xf32>
    %cst_425 = arith.constant dense<0.000000e+00> : vector<2x32xf32>
    %963 = tpu.matmul %926, %962, %cst_425 {dimension_numbers = #tpu.dot_dimension_numbers<[1], [0], [0], [1], [0, 0, 1, 1], [], []>} : vector<2x64xf32>, vector<64x32xf32>, vector<2x32xf32> -> vector<2x32xf32>
    %964 = arith.addf %961, %963 : vector<2x32xf32>
    %c624_426 = arith.constant 624 : index
    %c0_427 = arith.constant 0 : index
    %965 = vector.load %arg2[%c624_426, %c0_427] : memref<648x128xf32, #tpu.memory_space<vmem>>, vector<16x32xf32>
    %cst_428 = arith.constant dense<0.000000e+00> : vector<2x32xf32>
    %966 = tpu.matmul %904, %965, %cst_428 {dimension_numbers = #tpu.dot_dimension_numbers<[1], [0], [0], [1], [0, 0, 1, 1], [], []>} : vector<2x16xf32>, vector<16x32xf32>, vector<2x32xf32> -> vector<2x32xf32>
    %967 = arith.addf %964, %966 : vector<2x32xf32>
    %c640_429 = arith.constant 640 : index
    %c0_430 = arith.constant 0 : index
    %968 = vector.load %arg2[%c640_429, %c0_430] : memref<648x128xf32, #tpu.memory_space<vmem>>, vector<1x32xf32>
    %969 = vector.broadcast %968 : vector<1x32xf32> to vector<2x32xf32>
    %970 = arith.addf %967, %969 : vector<2x32xf32>
    %c6_431 = arith.constant 6 : index
    %c0_432 = arith.constant 0 : index
    %c0_433 = arith.constant 0 : index
    %971 = vector.load %arg5[%c6_431, %c0_432, %c0_433] : memref<8x2x32xf32, #tpu.memory_space<vmem>>, vector<1x2x32xf32>
    %972 = vector.shape_cast %971 : vector<1x2x32xf32> to vector<2x32xf32>
    %973 = vector.shape_cast %970 : vector<2x32xf32> to vector<1x2x32xf32>
    tpu.vector_store %arg5[%c6_431, %c0_432, %c0_433], %973 {strides = array<i32>} : memref<8x2x32xf32, #tpu.memory_space<vmem>>, vector<1x2x32xf32>,
    %974 = vector.extract_strided_slice %16 {offsets = [0, 6, 0], sizes = [2, 1, 16], strides = [1, 1, 1]} : vector<2x8x16xf32> to vector<2x1x16xf32>
    %975 = vector.shape_cast %974 : vector<2x1x16xf32> to vector<2x16xf32>
    %c0_434 = arith.constant 0 : index
    %c0_435 = arith.constant 0 : index
    %976 = vector.load %arg7[%c0_434, %c0_435] : memref<2x16xf32, #tpu.memory_space<vmem>>, vector<2x16xf32>
    tpu.vector_store %arg7[%c0_434, %c0_435], %975 {strides = array<i32>} : memref<2x16xf32, #tpu.memory_space<vmem>>, vector<2x16xf32>,
    %c6_436 = arith.constant 6 : index
    %977 = memref.load %arg1[%c6_436] : memref<8xi32, #tpu.memory_space<smem>>
    %c0_i32_437 = arith.constant 0 : i32
    %978 = arith.cmpi eq, %977, %c0_i32_437 : i32
    %979 = arith.extui %978 : i1 to i32
    %c0_i32_438 = arith.constant 0 : i32
    %980 = arith.cmpi ne, %979, %c0_i32_438 : i32
    scf.if %980 {
      %cst_479 = arith.constant dense<0xFF800000> : vector<2xf32>
      %1051 = vector.multi_reduction <maximumf>, %970, %cst_479 [1] : vector<2x32xf32> to vector<2xf32>
      %1052 = vector.shape_cast %1051 : vector<2xf32> to vector<2x1xf32>
      %1053 = tpu.iota {dimensions = array<i32: 1>} : vector<2x32xi32>
      %1054 = vector.broadcast %1052 : vector<2x1xf32> to vector<2x32xf32>
      %1055 = arith.cmpf oge, %970, %1054 : vector<2x32xf32>
      %c32_i32 = arith.constant 32 : i32
      %1056 = vector.broadcast %c32_i32 : i32 to vector<2x32xi32>
      %1057 = arith.select %1055, %1053, %1056 : vector<2x32xi1>, vector<2x32xi32>
      %cst_480 = arith.constant dense<2147483647> : vector<2xi32>
      %1058 = vector.multi_reduction <minsi>, %1057, %cst_480 [1] : vector<2x32xi32> to vector<2xi32>
      %1059 = vector.shape_cast %1058 : vector<2xi32> to vector<2x1xi32>
      %1060 = vector.broadcast %1059 : vector<2x1xi32> to vector<2x32xi32>
      %1061 = arith.cmpi eq, %1053, %1060 : vector<2x32xi32>
      %1062 = arith.extui %1061 : vector<2x32xi1> to vector<2x32xi32>
      %1063 = arith.sitofp %1062 : vector<2x32xi32> to vector<2x32xf32>
      %c32_481 = arith.constant 32 : index
      %c0_482 = arith.constant 0 : index
      %1064 = vector.load %arg2[%c32_481, %c0_482] : memref<648x128xf32, #tpu.memory_space<vmem>>, vector<32x16xf32>
      %cst_483 = arith.constant dense<0.000000e+00> : vector<2x16xf32>
      %1065 = tpu.matmul %1063, %1064, %cst_483 {dimension_numbers = #tpu.dot_dimension_numbers<[1], [0], [0], [1], [0, 0, 1, 1], [], []>} : vector<2x32xf32>, vector<32x16xf32>, vector<2x16xf32> -> vector<2x16xf32>
      %c0_484 = arith.constant 0 : index
      %c0_485 = arith.constant 0 : index
      %1066 = vector.load %arg7[%c0_484, %c0_485] : memref<2x16xf32, #tpu.memory_space<vmem>>, vector<2x16xf32>
      tpu.vector_store %arg7[%c0_484, %c0_485], %1065 {strides = array<i32>} : memref<2x16xf32, #tpu.memory_space<vmem>>, vector<2x16xf32>,
    } else {
    }
    %c0_439 = arith.constant 0 : index
    %c0_440 = arith.constant 0 : index
    %981 = vector.load %arg7[%c0_439, %c0_440] : memref<2x16xf32, #tpu.memory_space<vmem>>, vector<2x16xf32>
    %c264_441 = arith.constant 264 : index
    %c0_442 = arith.constant 0 : index
    %982 = vector.load %arg2[%c264_441, %c0_442] : memref<648x128xf32, #tpu.memory_space<vmem>>, vector<32x32xf32>
    %cst_443 = arith.constant dense<0.000000e+00> : vector<2x32xf32>
    %983 = tpu.matmul %959, %982, %cst_443 {dimension_numbers = #tpu.dot_dimension_numbers<[1], [0], [0], [1], [0, 0, 1, 1], [], []>} : vector<2x32xf32>, vector<32x32xf32>, vector<2x32xf32> -> vector<2x32xf32>
    %984 = vector.shape_cast %983 : vector<2x32xf32> to vector<2x1x32xf32>
    %985 = vector.broadcast %984 : vector<2x1x32xf32> to vector<2x8x32xf32>
    %986 = arith.addf %511, %985 : vector<2x8x32xf32>
    %987 = math.tanh %986 : vector<2x8x32xf32>
    %988 = vector.shape_cast %987 : vector<2x8x32xf32> to vector<16x32xf32>
    %c368_444 = arith.constant 368 : index
    %c0_445 = arith.constant 0 : index
    %989 = vector.load %arg2[%c368_444, %c0_445] : memref<648x128xf32, #tpu.memory_space<vmem>>, vector<32x1xf32>
    %cst_446 = arith.constant dense<0.000000e+00> : vector<16x1xf32>
    %990 = tpu.matmul %988, %989, %cst_446 {dimension_numbers = #tpu.dot_dimension_numbers<[1], [0], [0], [1], [0, 0, 1, 1], [], []>} : vector<16x32xf32>, vector<32x1xf32>, vector<16x1xf32> -> vector<16x1xf32>
    %991 = vector.shape_cast %990 : vector<16x1xf32> to vector<2x8x1xf32>
    %cst_447 = arith.constant dense<0xFF800000> : vector<2x1xf32>
    %992 = vector.multi_reduction <maximumf>, %991, %cst_447 [1] : vector<2x8x1xf32> to vector<2x1xf32>
    %993 = vector.shape_cast %992 : vector<2x1xf32> to vector<2x1x1xf32>
    %994 = vector.broadcast %993 : vector<2x1x1xf32> to vector<2x8x1xf32>
    %995 = arith.subf %991, %994 : vector<2x8x1xf32>
    %996 = math.exp %995 : vector<2x8x1xf32>
    %cst_448 = arith.constant dense<0.000000e+00> : vector<2x1xf32>
    %997 = vector.multi_reduction <add>, %996, %cst_448 [1] : vector<2x8x1xf32> to vector<2x1xf32>
    %998 = vector.shape_cast %997 : vector<2x1xf32> to vector<2x1x1xf32>
    %999 = vector.broadcast %998 : vector<2x1x1xf32> to vector<2x8x1xf32>
    %1000 = arith.divf %996, %999 : vector<2x8x1xf32>
    %1001 = vector.broadcast %1000 : vector<2x8x1xf32> to vector<2x8x64xf32>
    %1002 = arith.mulf %1001, %504 : vector<2x8x64xf32>
    %cst_449 = arith.constant dense<0.000000e+00> : vector<2x64xf32>
    %1003 = vector.multi_reduction <add>, %1002, %cst_449 [1] : vector<2x8x64xf32> to vector<2x64xf32>
    %c400_450 = arith.constant 400 : index
    %c0_451 = arith.constant 0 : index
    %1004 = vector.load %arg2[%c400_450, %c0_451] : memref<648x128xf32, #tpu.memory_space<vmem>>, vector<16x96xf32>
    %cst_452 = arith.constant dense<0.000000e+00> : vector<2x96xf32>
    %1005 = tpu.matmul %981, %1004, %cst_452 {dimension_numbers = #tpu.dot_dimension_numbers<[1], [0], [0], [1], [0, 0, 1, 1], [], []>} : vector<2x16xf32>, vector<16x96xf32>, vector<2x96xf32> -> vector<2x96xf32>
    %c416_453 = arith.constant 416 : index
    %c0_454 = arith.constant 0 : index
    %1006 = vector.load %arg2[%c416_453, %c0_454] : memref<648x128xf32, #tpu.memory_space<vmem>>, vector<64x96xf32>
    %cst_455 = arith.constant dense<0.000000e+00> : vector<2x96xf32>
    %1007 = tpu.matmul %1003, %1006, %cst_455 {dimension_numbers = #tpu.dot_dimension_numbers<[1], [0], [0], [1], [0, 0, 1, 1], [], []>} : vector<2x64xf32>, vector<64x96xf32>, vector<2x96xf32> -> vector<2x96xf32>
    %1008 = arith.addf %1005, %1007 : vector<2x96xf32>
    %c512_456 = arith.constant 512 : index
    %c0_457 = arith.constant 0 : index
    %1009 = vector.load %arg2[%c512_456, %c0_457] : memref<648x128xf32, #tpu.memory_space<vmem>>, vector<1x96xf32>
    %1010 = vector.broadcast %1009 : vector<1x96xf32> to vector<2x96xf32>
    %1011 = arith.addf %1008, %1010 : vector<2x96xf32>
    %c480_458 = arith.constant 480 : index
    %c0_459 = arith.constant 0 : index
    %1012 = vector.load %arg2[%c480_458, %c0_459] : memref<648x128xf32, #tpu.memory_space<vmem>>, vector<32x96xf32>
    %cst_460 = arith.constant dense<0.000000e+00> : vector<2x96xf32>
    %1013 = tpu.matmul %959, %1012, %cst_460 {dimension_numbers = #tpu.dot_dimension_numbers<[1], [0], [0], [1], [0, 0, 1, 1], [], []>} : vector<2x32xf32>, vector<32x96xf32>, vector<2x96xf32> -> vector<2x96xf32>
    %c520_461 = arith.constant 520 : index
    %c0_462 = arith.constant 0 : index
    %1014 = vector.load %arg2[%c520_461, %c0_462] : memref<648x128xf32, #tpu.memory_space<vmem>>, vector<1x96xf32>
    %1015 = vector.broadcast %1014 : vector<1x96xf32> to vector<2x96xf32>
    %1016 = arith.addf %1013, %1015 : vector<2x96xf32>
    %1017 = vector.extract_strided_slice %1011 {offsets = [0, 0], sizes = [2, 64], strides = [1, 1]} : vector<2x96xf32> to vector<2x64xf32>
    %1018 = vector.extract_strided_slice %1016 {offsets = [0, 0], sizes = [2, 64], strides = [1, 1]} : vector<2x96xf32> to vector<2x64xf32>
    %1019 = arith.addf %1017, %1018 : vector<2x64xf32>
    %1020 = arith.negf %1019 : vector<2x64xf32>
    %1021 = math.exp %1020 : vector<2x64xf32>
    %cst_463 = arith.constant 1.000000e+00 : f32
    %1022 = vector.broadcast %cst_463 : f32 to vector<2x64xf32>
    %1023 = arith.addf %1022, %1021 : vector<2x64xf32>
    %1024 = arith.divf %1022, %1023 : vector<2x64xf32>
    %1025 = vector.extract_strided_slice %1024 {offsets = [0, 0], sizes = [2, 32], strides = [1, 1]} : vector<2x64xf32> to vector<2x32xf32>
    %1026 = vector.extract_strided_slice %1024 {offsets = [0, 32], sizes = [2, 32], strides = [1, 1]} : vector<2x64xf32> to vector<2x32xf32>
    %1027 = vector.extract_strided_slice %1011 {offsets = [0, 64], sizes = [2, 32], strides = [1, 1]} : vector<2x96xf32> to vector<2x32xf32>
    %1028 = vector.extract_strided_slice %1016 {offsets = [0, 64], sizes = [2, 32], strides = [1, 1]} : vector<2x96xf32> to vector<2x32xf32>
    %1029 = arith.mulf %1025, %1028 : vector<2x32xf32>
    %1030 = arith.addf %1027, %1029 : vector<2x32xf32>
    %1031 = math.tanh %1030 : vector<2x32xf32>
    %cst_464 = arith.constant 1.000000e+00 : f32
    %1032 = vector.broadcast %cst_464 : f32 to vector<2x32xf32>
    %1033 = arith.subf %1032, %1026 : vector<2x32xf32>
    %1034 = arith.mulf %1033, %1031 : vector<2x32xf32>
    %1035 = arith.mulf %1026, %959 : vector<2x32xf32>
    %1036 = arith.addf %1034, %1035 : vector<2x32xf32>
    %c528_465 = arith.constant 528 : index
    %c0_466 = arith.constant 0 : index
    %1037 = vector.load %arg2[%c528_465, %c0_466] : memref<648x128xf32, #tpu.memory_space<vmem>>, vector<32x32xf32>
    %cst_467 = arith.constant dense<0.000000e+00> : vector<2x32xf32>
    %1038 = tpu.matmul %1036, %1037, %cst_467 {dimension_numbers = #tpu.dot_dimension_numbers<[1], [0], [0], [1], [0, 0, 1, 1], [], []>} : vector<2x32xf32>, vector<32x32xf32>, vector<2x32xf32> -> vector<2x32xf32>
    %c560_468 = arith.constant 560 : index
    %c0_469 = arith.constant 0 : index
    %1039 = vector.load %arg2[%c560_468, %c0_469] : memref<648x128xf32, #tpu.memory_space<vmem>>, vector<64x32xf32>
    %cst_470 = arith.constant dense<0.000000e+00> : vector<2x32xf32>
    %1040 = tpu.matmul %1003, %1039, %cst_470 {dimension_numbers = #tpu.dot_dimension_numbers<[1], [0], [0], [1], [0, 0, 1, 1], [], []>} : vector<2x64xf32>, vector<64x32xf32>, vector<2x32xf32> -> vector<2x32xf32>
    %1041 = arith.addf %1038, %1040 : vector<2x32xf32>
    %c624_471 = arith.constant 624 : index
    %c0_472 = arith.constant 0 : index
    %1042 = vector.load %arg2[%c624_471, %c0_472] : memref<648x128xf32, #tpu.memory_space<vmem>>, vector<16x32xf32>
    %cst_473 = arith.constant dense<0.000000e+00> : vector<2x32xf32>
    %1043 = tpu.matmul %981, %1042, %cst_473 {dimension_numbers = #tpu.dot_dimension_numbers<[1], [0], [0], [1], [0, 0, 1, 1], [], []>} : vector<2x16xf32>, vector<16x32xf32>, vector<2x32xf32> -> vector<2x32xf32>
    %1044 = arith.addf %1041, %1043 : vector<2x32xf32>
    %c640_474 = arith.constant 640 : index
    %c0_475 = arith.constant 0 : index
    %1045 = vector.load %arg2[%c640_474, %c0_475] : memref<648x128xf32, #tpu.memory_space<vmem>>, vector<1x32xf32>
    %1046 = vector.broadcast %1045 : vector<1x32xf32> to vector<2x32xf32>
    %1047 = arith.addf %1044, %1046 : vector<2x32xf32>
    %c7_476 = arith.constant 7 : index
    %c0_477 = arith.constant 0 : index
    %c0_478 = arith.constant 0 : index
    %1048 = vector.load %arg5[%c7_476, %c0_477, %c0_478] : memref<8x2x32xf32, #tpu.memory_space<vmem>>, vector<1x2x32xf32>
    %1049 = vector.shape_cast %1048 : vector<1x2x32xf32> to vector<2x32xf32>
    %1050 = vector.shape_cast %1047 : vector<2x32xf32> to vector<1x2x32xf32>
    tpu.vector_store %arg5[%c7_476, %c0_477, %c0_478], %1050 {strides = array<i32>} : memref<8x2x32xf32, #tpu.memory_space<vmem>>, vector<1x2x32xf32>,
    return
  }
  func.func @transform_0(%arg0: i32, %arg1: memref<8xi32, #tpu.memory_space<smem>>) -> (i32, i32) {
    %c0_i32 = arith.constant 0 : i32
    %c0_i32_0 = arith.constant 0 : i32
    %c0_i32_1 = arith.constant 0 : i32
    return %c0_i32, %c0_i32_0 : i32, i32
  }
  func.func @transform_1(%arg0: i32, %arg1: memref<8xi32, #tpu.memory_space<smem>>) -> (i32, i32) {
    %c0_i32 = arith.constant 0 : i32
    %c0_i32_0 = arith.constant 0 : i32
    %c0_i32_1 = arith.constant 0 : i32
    return %c0_i32, %c0_i32_0 : i32, i32
  }
  func.func @transform_2(%arg0: i32, %arg1: memref<8xi32, #tpu.memory_space<smem>>) -> (i32, i32) {
    %c0_i32 = arith.constant 0 : i32
    %c0_i32_0 = arith.constant 0 : i32
    %c0_i32_1 = arith.constant 0 : i32
    return %c0_i32, %c0_i32_0 : i32, i32
  }
  func.func @transform_3(%arg0: i32, %arg1: memref<8xi32, #tpu.memory_space<smem>>) -> (i32, i32, i32) {
    %c0_i32 = arith.constant 0 : i32
    %c0_i32_0 = arith.constant 0 : i32
    %c0_i32_1 = arith.constant 0 : i32
    %c0_i32_2 = arith.constant 0 : i32
    return %c0_i32, %c0_i32_0, %c0_i32_1 : i32, i32, i32
  }
}

</mosaic_0001>

<bundles_post_ra>
// kernel: _forward_jit.1
= control target key start
LH: loop header
LB: loop body
LE: loop exit
PB: predicated region body
PF: predicated region fallthrough
CT: control target
= control target key end

     0   :  { %s13117_s0 = inlined_call_operand.vmem [shape: s32[8], index: 0, kind: input, shape index: {}]   ;;  %s13118_s1 = inlined_call_operand.hbm [shape: f32[648,128], index: 1, kind: input, shape index: {}]   ;;  %s13119_s2 = inlined_call_operand.vmem [shape: s32[16,1], index: 2, kind: input, shape index: {}]   ;;  %s13120_s3 = inlined_call_operand.vmem [shape: s32[16,1], index: 3, kind: input, shape index: {}]   ;;  %s13121_s4 = inlined_call_operand.hbm [shape: f32[8,2,32], index: 4, kind: output, shape index: {}]  }
   0x1   :  { %s9_s17 = sshll.u32 %s13117_s0, 4  ;;  %s10_s17 = int_to_ptr.vmem [resolvable:$true] %s9_s17 }
   0x2   :  { %s11757_s18 = scalar_lea.vmem %s10_s17, 16  ;;  %p11762_p1 = scmp.lt.s32.totalorder %s10_s17, %s10_s17 }
   0x3   :  { %p11758_p0 = scmp.ne.s32.totalorder %s10_s17, %s11757_s18  ;;  %p11763_p2 = scmp.lt.s32.totalorder %s11757_s18, %s11757_s18 }
   0x5   :  { %p11764_p3 = por %p11763_p2, %p11762_p1 }
   0x7   :  { %p11765_p4 = pnand %p11764_p3, %p11758_p0 }
   0x9   :  { %11768 = shalt.err (!%p11765_p4)  }
   0xa   :  { %s11819_s19 = smov [#allocation5]  }
   0xb   :  { %12 = dma.vmem_to_smem %s10_s17, 16, %s11819_s19, [#allocation4] }
   0xc   :  { %11813 = dma.done.wait [#allocation4], 16 }
   0xd   :  { %11814 = vsyncadd [#allocation4], 4294967280 }
   0xe   :  { %14 = sfence }
   0xf   :  { %15 = vsyncpa [#allocation7], 0 }
  0x10   :  { %16 = vsyncpa [#allocation8], 0  ;;  %s11820_s20 = smov [#allocation6]   ;;  %s11769_s23 = scalar_lea.hbm %s13118_s1, 10368 }
  0x11   :  { %s22_s21 = sshll.u32 %s11820_s20, 4  ;;  %p11770_p5 = scmp.ne.s32.totalorder %s13118_s1, %s11769_s23  ;;  %s23_s21 = int_to_ptr.vmem [resolvable:$true] %s22_s21 }
  0x12   :  { %p11773_p6 = scmp.lt.u32.totalorder %s11769_s23, %s13118_s1 }
  0x14   :  { %p11775_p7 = pnand %p11773_p6, %p11770_p5 }
  0x16   :  { %11778 = shalt.err (!%p11775_p7)
}
  0x17   :  { %s11779_s28 = scalar_lea.vmem %s23_s21, 10368  ;;  %p11784_p9 = scmp.lt.s32.totalorder %s23_s21, %s23_s21 }
  0x18   :  { %p11780_p8 = scmp.ne.s32.totalorder %s23_s21, %s11779_s28  ;;  %p11785_p10 = scmp.lt.s32.totalorder %s11779_s28, %s11779_s28 }
  0x1a   :  { %p11786_p11 = por %p11785_p10, %p11784_p9 }
  0x1c   :  { %p11787_p12 = pnand %p11786_p11, %p11780_p8 }
  0x1e   :  { %11790 = shalt.err (!%p11787_p12)
}
  0x1f   :  { %s11821_s29 = smov 128   ;;  %s11822_s30 = smov 8  }
  0x20   :  { %28 = dma.hbm_to_vmem [thread:$0]  %s13118_s1, 10368, %s23_s21, [#allocation7], %s11821_s29, %s11821_s29, %s11822_s30  }
  0x21   :  { %11815 = dma.done.wait [#allocation7], 10368  }
  0x22   :  { %11816 = vsyncadd [#allocation7], 4294956928  ;;  %s11891_s7 = sld [smem:[#allocation5 + $0x1]]  ;;  %v11823_v0 = vmov 0   ;;  %v38_v1 = vld [vmem:[%s13119_s2] sm:$0xff]  ;;  %v52_v2 = vld [vmem:[#allocation6] sm:$0xff]  ;;  %v36_v12 = vlaneseq }
  0x23   :  { %11429 = vset.pattern.permute.xlu0 %v11823_v0  ;;  %11430 = vset.pattern.permute.xlu1 %v11823_v0  ;;  %v53_v3 = vld [vmem:[#allocation6 + $0x8] sm:$0xff]  ;;  %v54_v4 = vld [vmem:[#allocation6 + $0x10] sm:$0xff]  ;;  %v55_v5 = vld [vmem:[#allocation6 + $0x18] sm:$0xff]  ;;  %vm56_vm0 = vcmask 261120   ;;  %v11824_v15 = vmov 0.0   ;;  %v11825_v19 = vmov 0.0|0.0  }
  0x24   :  { %41 = vperm.xlu0 %11429, %v38_v1   ;;  %v39_v6 = vld [vmem:[%s13119_s2 + $0x8] sm:$0xff]  ;;  %v10821_v7 = vpack.c.bf16 %v53_v3, %v52_v2  ;;  %v10825_v8 = vpack.c.bf16 %v55_v5, %v54_v4  ;;  %v237_v9 = vld [vmem:[#allocation6 + $0x40] sm:$0xff]  ;;  %v238_v10 = vld [vmem:[#allocation6 + $0x48] sm:$0xff]  ;;  %v11902_v13 = vand.u32 127, %v36_v12  ;;  %vm244_vm3 = vcmask 130048   ;;  %s11827_s2 = smov 64  }
  0x25   :  { %v10837_v11 = vpack.c.bf16 %v238_v10, %v237_v9  ;;  %v408_v20 = vld [vmem:[#allocation6 + $0x50] sm:$0xff]  ;;  %v409_v21 = vld [vmem:[#allocation6 + $0x58] sm:$0xff]  ;;  %v410_v25 = vld [vmem:[#allocation6 + $0x60] sm:$0xff]  ;;  %vm11826_vm4 = vmmov 0   ;;  %s11828_s11 = smov 96   ;;  %vm565_vm5 = vcmask 1041409  }
  0x26   :  { %10822 = vmatprep.subr.bf16.mxu0 %v10821_v7  ;;  %v11913_v23 = vpack.c.bf16 %v409_v21, %v408_v20  ;;  %v411_v26 = vld [vmem:[#allocation6 + $0x68] sm:$0xff]  ;;  %v11936_v30 = vld [vmem:[#allocation6 + $0x78] ss:$0 sm:$0xff]  ;;  %v9176_v35 = vld [vmem:[#allocation6 + $0x70] ss:$0 sm:$0xff]  ;;  %vm3877_vm8 = vcmask 1042434  }
  0x27   :  { %10824 = vmatpush3.bf16.msra.mxu0 %v10821_v7  ;;  %v11922_v27 = vpack.c.bf16 %v411_v26, %v410_v25  ;;  %v152_v56 = vld [vmem:[#allocation6 + $0x20] sm:$0xff]  ;;  %v153_v57 = vld [vmem:[#allocation6 + $0x28] sm:$0xff]  ;;  %v154_v62 = vld [vmem:[#allocation6 + $0x30] sm:$0xff]  ;;  %vm3100_vm9 = vcmask 123904   ;;  %vm3880_vm10 = vcmask 124929   ;;  %vm706_vm11 = vcmask 254977  }
  0x28   :  { %44 = vperm.xlu0 %11429, %v39_v6   ;;  %10826 = vmatprep.subr.bf16.mxu0 %v10825_v8  ;;  %v10829_v58 = vpack.c.bf16 %v153_v57, %v152_v56  ;;  %v138_v60 = vld [vmem:[%s13120_s3] sm:$0xff]  ;;  %v155_v63 = vld [vmem:[#allocation6 + $0x38] sm:$0xff]  ;;  %v326_v3 = vld [vmem:[#allocation6 + $0x80] sm:$0xff]  ;;  %vm2676_vm12 = vcmask 517377   ;;  %vm1017_vm13 = vcmask 257027   ;;  %vm2378_vm14 = vcmask 519427  }
  0x29   :  { %v10833_v1 = vpack.c.bf16 %v155_v63, %v154_v62  ;;  %v139_v2 = vld [vmem:[%s13120_s3 + $0x8] sm:$0xff]  ;;  %v327_v4 = vld [vmem:[#allocation6 + $0x88] sm:$0xff]  ;;  %vm1329_vm15 = vcmask 259077   ;;  %s11830_s3 = smov 32   ;;  %p9264_p13 = scmp.ne.s32.totalorder %s11891_s7, 0 }
  0x2a   :  { %10830 = vmatprep.subr.bf16.mxu1 %v10829_v58  ;;  %v10841_v5 = vpack.c.bf16 %v327_v4, %v326_v3 }
  0x2b   :  { %10828 = vmatpush3.bf16.msra.mxu0 %v10825_v8  ;;  %10832 = vmatpush3.bf16.msra.mxu1 %v10829_v58 }
  0x2c   :  { %10838 = vmatprep.subr.bf16.mxu0 %v10837_v11  ;;  %10834 = vmatprep.subr.bf16.mxu1 %v10833_v1 }
  0x2f   :  { %10836 = vmatpush3.bf16.msra.mxu1 %v10833_v1 }
  0x30   :  { %10842 = vmatprep.subr.bf16.mxu1 %v10841_v5 }
  0xa3   :  { %v42_v14 = vpop.permute.xlu0 %41 }
  0xa4   :  { %vm46_vm1 = vcmp.eq.s32.totalorder %v11902_v13, %v42_v14 }
  0xa5   :  { %v9168_v16 = vsel %vm46_vm1, 1.0, %v11824_v15  ;;  %vm2078_vm1 = vcmask 521477  }
  0xa6   :  { %9838 = vmatprep.mubr.msk.f32.mxu0 %vm56_vm0, %v9168_v16 }
  0xa7   :  { %v45_v17 = vpop.permute.xlu0 %44 }
  0xa8   :  { %vm47_vm2 = vcmp.eq.s32.totalorder %v11902_v13, %v45_v17 }
  0xa9   :  { %v9169_v18 = vsel %vm47_vm2, 1.0, %v11824_v15  ;;  %vm1641_vm2 = vcmask 261127  }
  0xaa   :  { %9839 = vmatmul.mubr.msk.f32.vlgmr.msra.gmra.mrb[0].mxu0 %vm56_vm0, %v9169_v18 }
  0xab   :  { %10840 = vmatpush3.bf16.msra.mxu0 %v10837_v11 }
  0xac   :  { %10845 = vmatprep.subr.bf16.mxu0 %v11825_v19 }
 0x17d   :  { %v11911_v22 = vpop.f32.mrb[0].mxu0 }
 0x17e   :  { %v11915_v24 = vpop.f32.mrb[1].mxu0 }
 0x17f   :  { %9856 = vmatprep.mubr.msk.f32.mxu0 %vm244_vm3, %v11915_v24 }
 0x180   :  { %9857 = vmatmul.mubr.msk.f32.vlgmr.msra.gmra.mrb[2].mxu0 %vm244_vm3, %v11911_v22 }
 0x181   :  { %10847 = vmatpush3.bf16.msra.mxu0 %v11913_v23  ;;  %9874 = vmatprep.mubr.msk.f32.mxu0 %vm11826_vm4, %v11824_v15 }
 0x182   :  { %10848 = vmatprep.subr.bf16.mxu0 %v11825_v19 }
 0x185   :  { %10850 = vmatpush3.bf16.msra.mxu0 %v11922_v27 }
 0x186   :  { %10857 = vmatprep.subr.bf16.mxu0 %v11825_v19 }
 0x188   :  { %9875 = vmatmul.mubr.f32.vlgmr.msra.gmra.mrb[4].mxu0 %v11824_v15 }
 0x189   :  { %10859 = vmatpush3.bf16.msra.mxu0 %v11913_v23  ;;  %9896 = vmatprep.mubr.msk.f32.mxu0 %vm11826_vm4, %v11824_v15 }
 0x18a   :  { %10860 = vmatprep.subr.bf16.mxu0 %v11825_v19 }
 0x18d   :  { %10862 = vmatpush3.bf16.msra.mxu0 %v11922_v27 }
 0x18e   :  { %10869 = vmatprep.subr.bf16.mxu0 %v11825_v19 }
 0x253   :  { %v9858_v28 = vpop.f32.mrb[2].mxu0 }
 0x254   :  { %v317_v29 = vpop.f32.mrb[3].mxu0  ;;  %v11941_v36 = vadd.f32 %v9858_v28, %v9176_v35 }
 0x255   :  { %v11944_v38 = vadd.f32 %v9176_v35, %v317_v29 }
 0x25b   :  { %v486_v31 = vpop.f32.mrb[4].mxu0 }
 0x25c   :  { %v487_v32 = vadd.f32 %v11936_v30, %v486_v31  ;;  %v9876_v33 = vpop.f32.mrb[5].mxu0 }
 0x25e   :  { %v491_v34 = vrot.slane %v487_v32, 1  ;;  %v494_v39 = vadd.f32 %v487_v32, %v11944_v38 }
 0x260   :  { %510 = vrot.lane.b32.xlu1 %v491_v34, %s11827_s2  ;;  %v495_v37 = vadd.f32 %v491_v34, %v11941_v36  ;;  %v9183_v41 = vmul.f32 -1.442695, %v494_v39 }
 0x262   :  { %v9184_v40 = vmul.f32 -1.442695, %v495_v37 }
 0x264   :  { %508 = vrot.lane.b32.xlu1 %v487_v32, %s11827_s2  ;;  %11431 = vpow2.f32 %v9184_v40 }
 0x265   :  { %11433 = vpow2.f32 %v9183_v41 }
 0x26e   :  { %v11432_v42 = vpop.eup %11431 }
 0x26f   :  { %v503_v43 = vadd.f32 1.0, %v11432_v42  ;;  %v11434_v44 = vpop.eup %11433 }
 0x270   :  { %v502_v45 = vadd.f32 1.0, %v11434_v44 }
 0x271   :  { %11435 = vrcp.f32 %v503_v43 }
 0x272   :  { %11437 = vrcp.f32 %v502_v45 }
 0x27b   :  { %v11436_v46 = vpop.eup %11435 }
 0x27c   :  { %v11438_v49 = vpop.eup %11437  ;;  %v529_v6 = vsub.f32 1.0, %v11436_v46  ;;  %v541_v8 = vmul.f32 0.0, %v11436_v46 }
 0x27d   :  { %v528_v11 = vsub.f32 1.0, %v11438_v49  ;;  %v540_v16 = vmul.f32 0.0, %v11438_v49 }
 0x2d2   :  { %v511_v47 = vpop.permute.xlu1 %510 }
 0x2d3   :  { %v515_v48 = vmul.f32 %v11436_v46, %v511_v47 }
 0x2d5   :  { %520 = vrot.lane.b32.xlu0 %v515_v48, %s11827_s2 }
 0x2d6   :  { %v509_v50 = vpop.permute.xlu1 %508 }
 0x2d7   :  { %v514_v51 = vmul.f32 %v11438_v49, %v509_v50 }
 0x2d9   :  { %518 = vrot.lane.b32.xlu1 %v514_v51, %s11827_s2 }
 0x347   :  { %v521_v52 = vpop.permute.xlu0 %520 }
 0x348   :  { %v525_v53 = vadd.f32 %v521_v52, %v11941_v36 }
 0x34a   :  { %11439 = vtanh.f32 %v525_v53 }
 0x34b   :  { %v519_v54 = vpop.permute.xlu1 %518 }
 0x34c   :  { %v524_v55 = vadd.f32 %v519_v54, %v11944_v38 }
 0x34e   :  { %11441 = vtanh.f32 %v524_v55 }
 0x354   :  { %v11440_v59 = vpop.eup %11439 }
 0x355   :  { %534 = vrot.lane.b32.xlu0 %v11440_v59, %s11828_s11 }
 0x358   :  { %v11442_v61 = vpop.eup %11441 }
 0x359   :  { %141 = vperm.xlu0 %11429, %v138_v60   ;;  %532 = vrot.lane.b32.xlu1 %v11442_v61, %s11828_s11 }
 0x35d   :  { %144 = vperm.xlu1 %11430, %v139_v2  }
 0x3c7   :  { %v535_v7 = vpop.permute.xlu0 %534 }
 0x3c8   :  { %v539_v9 = vmul.f32 %v535_v7, %v529_v6 }
 0x3ca   :  { %v11959_v10 = vadd.f32 %v541_v8, %v539_v9 }
 0x3cb   :  { %v533_v14 = vpop.permute.xlu1 %532 }
 0x3cc   :  { %v538_v17 = vmul.f32 %v533_v14, %v528_v11  ;;  %v564_v18 = vrot.slane %v11959_v10, 7 }
 0x3ce   :  { %v11962_v20 = vadd.f32 %v540_v16, %v538_v17 }
 0x3d0   :  { %v566_v21 = vsel %vm565_vm5, %v564_v18, %v11962_v20  ;;  %v691_v4 = vrot.slane %v11962_v20, 7 }
 0x3d1   :  { %567 = vrot.lane.b32.xlu0 %v566_v21, %s11828_s11 }
 0x3d8   :  { %v142_v25 = vpop.permute.xlu0 %141 }
 0x3d9   :  { %vm146_vm6 = vcmp.eq.s32.totalorder %v11902_v13, %v142_v25 }
 0x3da   :  { %v9172_v26 = vsel %vm146_vm6, 1.0, %v11824_v15  ;;  %vm1778_vm6 = vcmask 523527  }
 0x3db   :  { %9849 = vmatprep.mubr.msk.f32.mxu1 %vm56_vm0, %v9172_v26 }
 0x3dc   :  { %v145_v28 = vpop.permute.xlu1 %144 }
 0x3dd   :  { %vm147_vm7 = vcmp.eq.s32.totalorder %v11902_v13, %v145_v28 }
 0x3de   :  { %v9173_v29 = vsel %vm147_vm7, 1.0, %v11824_v15  ;;  %vm552_vm7 = vcmask 253952  }
 0x3df   :  { %9850 = vmatmul.mubr.msk.f32.vlgmr.msra.gmra.mrb[0].mxu1 %vm56_vm0, %v9173_v29 }
 0x3e0   :  { %10844 = vmatpush3.bf16.msra.mxu1 %v10841_v5  ;;  %9863 = vmatprep.mubr.msk.f32.mxu1 %vm244_vm3, %v11915_v24 }
 0x3e1   :  { %10851 = vmatprep.subr.bf16.mxu1 %v11825_v19 }
 0x3e3   :  { %9864 = vmatmul.mubr.msk.f32.vlgmr.msra.gmra.mrb[2].mxu1 %vm244_vm3, %v11911_v22 }
 0x3e4   :  { %10853 = vmatpush3.bf16.msra.mxu1 %v11913_v23  ;;  %9885 = vmatprep.mubr.msk.f32.mxu1 %vm11826_vm4, %v11824_v15 }
 0x3e5   :  { %10854 = vmatprep.subr.bf16.mxu1 %v11825_v19 }
 0x3e8   :  { %10856 = vmatpush3.bf16.msra.mxu1 %v11922_v27 }
 0x3e9   :  { %10863 = vmatprep.subr.bf16.mxu1 %v11825_v19 }
 0x443   :  { %v568_v31 = vpop.permute.xlu0 %567 }
 0x444   :  { %9886 = vmatmul.mubr.msk.f32.vlgmr.msra.gmra.mrb[4].mxu1 %vm56_vm0, %v568_v31 }
 0x445   :  { %10865 = vmatpush3.bf16.msra.mxu1 %v11913_v23  ;;  %9907 = vmatprep.mubr.msk.f32.mxu1 %vm11826_vm4, %v11824_v15 }
 0x446   :  { %10866 = vmatprep.subr.bf16.mxu1 %v11825_v19 }
 0x449   :  { %10868 = vmatpush3.bf16.msra.mxu1 %v11922_v27 }
 0x44a   :  { %10875 = vmatprep.subr.bf16.mxu1 %v11825_v19 }
 0x4b2   :  { %v9851_v22 = vpop.f32.mrb[0].mxu1 }
 0x4b3   :  { %v11993_v24 = vrot.slane %v9851_v22, 7  ;;  %v11995_v32 = vpop.f32.mrb[1].mxu1 }
 0x4b5   :  { %v3098_v33 = vsel %vm565_vm5, %v11993_v24, %v11995_v32  ;;  %v3878_v34 = vsel %vm3877_vm8, %v11993_v24, %v11995_v32  ;;  %vm2823_vm8 = vcmask 516352  }
 0x4b6   :  { %3101 = vst.msk [vmem:[#allocation3] sm:$0x3] %vm3100_vm9, %v3098_v33  ;;  %v12003_v35 = vpop.f32.mrb[2].mxu1 }
 0x4b7   :  { %v12005_v37 = vpop.f32.mrb[3].mxu1 }
 0x4bd   :  { %v12007_v39 = vld [vmem:[#allocation3] sm:$0x3] }
 0x4be   :  { %3881 = vst.msk [vmem:[#allocation3 - $0x1] sm:$0x6] %vm3880_vm10, %v3878_v34  ;;  %vm861_vm10 = vcmask 256002  }
 0x517   :  { %v637_v40 = vpop.f32.mrb[4].mxu1 }
 0x518   :  { %v638_v41 = vadd.f32 %v11936_v30, %v637_v40  ;;  %v9887_v42 = vpop.f32.mrb[5].mxu1 }
 0x51a   :  { %661 = vrot.lane.b32.xlu0 %v638_v41, %s11827_s2  ;;  %v642_v43 = vrot.slane %v638_v41, 7  ;;  %v646_v44 = vadd.f32 %v638_v41, %v11941_v36 }
 0x51c   :  { %659 = vrot.lane.b32.xlu1 %v642_v43, %s11827_s2  ;;  %v645_v45 = vadd.f32 %v642_v43, %v11944_v38  ;;  %v9188_v46 = vmul.f32 -1.442695, %v646_v44 }
 0x51e   :  { %v9187_v47 = vmul.f32 -1.442695, %v645_v45  ;;  %11443 = vpow2.f32 %v9188_v46 }
 0x520   :  { %11445 = vpow2.f32 %v9187_v47 }
 0x528   :  { %v11444_v48 = vpop.eup %11443 }
 0x529   :  { %v654_v50 = vadd.f32 1.0, %v11444_v48 }
 0x52a   :  { %v11446_v49 = vpop.eup %11445 }
 0x52b   :  { %v653_v51 = vadd.f32 1.0, %v11446_v49  ;;  %11447 = vrcp.f32 %v654_v50 }
 0x52d   :  { %11449 = vrcp.f32 %v653_v51 }
 0x535   :  { %v11448_v52 = vpop.eup %11447 }
 0x536   :  { %v680_v2 = vsub.f32 1.0, %v11448_v52  ;;  %v695_v9 = vmul.f32 %v11448_v52, %v564_v18 }
 0x537   :  { %v11450_v55 = vpop.eup %11449 }
 0x538   :  { %v679_v3 = vsub.f32 1.0, %v11450_v55  ;;  %v694_v7 = vmul.f32 %v11450_v55, %v691_v4 }
 0x58c   :  { %v662_v53 = vpop.permute.xlu0 %661 }
 0x58d   :  { %v666_v54 = vmul.f32 %v11448_v52, %v662_v53 }
 0x58e   :  { %v660_v56 = vpop.permute.xlu1 %659 }
 0x58f   :  { %v665_v57 = vmul.f32 %v11450_v55, %v660_v56  ;;  %671 = vrot.lane.b32.xlu0 %v666_v54, %s11827_s2 }
 0x591   :  { %669 = vrot.lane.b32.xlu1 %v665_v57, %s11827_s2 }
 0x601   :  { %v672_v58 = vpop.permute.xlu0 %671 }
 0x602   :  { %v676_v59 = vadd.f32 %v672_v58, %v11941_v36 }
 0x603   :  { %v670_v60 = vpop.permute.xlu1 %669 }
 0x604   :  { %11451 = vtanh.f32 %v676_v59  ;;  %v675_v61 = vadd.f32 %v670_v60, %v11944_v38 }
 0x606   :  { %11453 = vtanh.f32 %v675_v61 }
 0x60e   :  { %v11452_v62 = vpop.eup %11451 }
 0x60f   :  { %685 = vrot.lane.b32.xlu0 %v11452_v62, %s11828_s11 }
 0x610   :  { %v11454_v63 = vpop.eup %11453 }
 0x611   :  { %683 = vrot.lane.b32.xlu1 %v11454_v63, %s11828_s11 }
 0x681   :  { %v686_v1 = vpop.permute.xlu0 %685 }
 0x682   :  { %v690_v6 = vmul.f32 %v686_v1, %v680_v2 }
 0x683   :  { %v684_v5 = vpop.permute.xlu1 %683 }
 0x684   :  { %v689_v8 = vmul.f32 %v684_v5, %v679_v3  ;;  %v12025_v14 = vadd.f32 %v695_v9, %v690_v6 }
 0x686   :  { %v12023_v11 = vadd.f32 %v694_v7, %v689_v8  ;;  %v846_v57 = vrot.slane %v12025_v14, 7 }
 0x688   :  { %v718_v16 = vrot.slane %v12023_v11, 1  ;;  %v845_v60 = vrot.slane %v12023_v11, 7 }
 0x68a   :  { %v719_v17 = vsel %vm565_vm5, %v12025_v14, %v718_v16 }
 0x68b   :  { %720 = vrot.lane.b32.xlu1 %v719_v17, %s11828_s11 }
 0x6fd   :  { %v721_v21 = vpop.permute.xlu1 %720 }
 0x6fe   :  { %9897 = vmatmul.mubr.msk.f32.vlgmr.msra.gmra.mrb[6].mxu0 %vm56_vm0, %v721_v21 }
 0x6ff   :  { %10871 = vmatpush3.bf16.msra.mxu0 %v11913_v23  ;;  %9918 = vmatprep.mubr.msk.f32.mxu0 %vm11826_vm4, %v11824_v15 }
 0x700   :  { %10872 = vmatprep.subr.bf16.mxu0 %v11825_v19 }
 0x703   :  { %10874 = vmatpush3.bf16.msra.mxu0 %v11922_v27 }
 0x704   :  { %10881 = vmatprep.subr.bf16.mxu0 %v11825_v19 }
 0x7d1   :  { %v790_v18 = vpop.f32.mrb[6].mxu0 }
 0x7d2   :  { %v791_v25 = vadd.f32 %v11936_v30, %v790_v18  ;;  %v9898_v26 = vpop.f32.mrb[7].mxu0 }
 0x7d4   :  { %v795_v28 = vrot.slane %v791_v25, 6  ;;  %v796_v29 = vrot.slane %v791_v25, 7 }
 0x7d6   :  { %815 = vrot.lane.b32.xlu1 %v796_v29, %s11827_s2  ;;  %813 = vrot.lane.b32.xlu0 %v795_v28, %s11827_s2  ;;  %v799_v31 = vadd.f32 %v795_v28, %v11944_v38  ;;  %v800_v22 = vadd.f32 %v796_v29, %v11941_v36 }
 0x7d8   :  { %v9191_v33 = vmul.f32 -1.442695, %v799_v31  ;;  %v9192_v34 = vmul.f32 -1.442695, %v800_v22 }
 0x7da   :  { %11455 = vpow2.f32 %v9191_v33 }
 0x7db   :  { %11457 = vpow2.f32 %v9192_v34 }
 0x7e4   :  { %v11456_v40 = vpop.eup %11455 }
 0x7e5   :  { %v11458_v41 = vpop.eup %11457  ;;  %v807_v42 = vadd.f32 1.0, %v11456_v40 }
 0x7e6   :  { %v808_v43 = vadd.f32 1.0, %v11458_v41 }
 0x7e7   :  { %11459 = vrcp.f32 %v807_v42 }
 0x7e8   :  { %11461 = vrcp.f32 %v808_v43 }
 0x7f1   :  { %v11460_v44 = vpop.eup %11459 }
 0x7f2   :  { %v11462_v45 = vpop.eup %11461  ;;  %v833_v59 = vsub.f32 1.0, %v11460_v44  ;;  %v849_v1 = vmul.f32 %v11460_v44, %v845_v60 }
 0x7f3   :  { %v834_v56 = vsub.f32 1.0, %v11462_v45  ;;  %v850_v61 = vmul.f32 %v11462_v45, %v846_v57 }
 0x848   :  { %v816_v46 = vpop.permute.xlu1 %815  ;;  %v814_v47 = vpop.permute.xlu0 %813 }
 0x849   :  { %v820_v48 = vmul.f32 %v11462_v45, %v816_v46  ;;  %v819_v49 = vmul.f32 %v11460_v44, %v814_v47 }
 0x84b   :  { %825 = vrot.lane.b32.xlu1 %v820_v48, %s11827_s2  ;;  %823 = vrot.lane.b32.xlu0 %v819_v49, %s11827_s2 }
 0x8bd   :  { %v826_v50 = vpop.permute.xlu1 %825  ;;  %v824_v51 = vpop.permute.xlu0 %823 }
 0x8be   :  { %v830_v52 = vadd.f32 %v826_v50, %v11941_v36  ;;  %v829_v53 = vadd.f32 %v824_v51, %v11944_v38 }
 0x8c0   :  { %11463 = vtanh.f32 %v830_v52 }
 0x8c1   :  { %11465 = vtanh.f32 %v829_v53 }
 0x8ca   :  { %v11464_v54 = vpop.eup %11463 }
 0x8cb   :  { %v11466_v55 = vpop.eup %11465  ;;  %839 = vrot.lane.b32.xlu1 %v11464_v54, %s11828_s11 }
 0x8cc   :  { %837 = vrot.lane.b32.xlu0 %v11466_v55, %s11828_s11 }
 0x93d   :  { %v840_v58 = vpop.permute.xlu1 %839 }
 0x93e   :  { %v844_v62 = vmul.f32 %v840_v58, %v834_v56  ;;  %v838_v63 = vpop.permute.xlu0 %837 }
 0x93f   :  { %v843_v2 = vmul.f32 %v838_v63, %v833_v59 }
 0x940   :  { %v12051_v3 = vadd.f32 %v850_v61, %v844_v62 }
 0x941   :  { %v12053_v4 = vadd.f32 %v849_v1, %v843_v2 }
 0x942   :  { %v874_v5 = vrot.slane %v12051_v3, 1  ;;  %v1002_v53 = vrot.slane %v12051_v3, 7 }
 0x943   :  { %v873_v6 = vrot.slane %v12053_v4, 2  ;;  %v1001_v56 = vrot.slane %v12053_v4, 7 }
 0x945   :  { %v875_v7 = vsel %vm565_vm5, %v874_v5, %v873_v6 }
 0x946   :  { %876 = vrot.lane.b32.xlu0 %v875_v7, %s11828_s11 }
 0x9b8   :  { %v877_v8 = vpop.permute.xlu0 %876 }
 0x9b9   :  { %9908 = vmatmul.mubr.msk.f32.vlgmr.msra.gmra.mrb[6].mxu1 %vm56_vm0, %v877_v8 }
 0x9ba   :  { %10877 = vmatpush3.bf16.msra.mxu1 %v11913_v23  ;;  %9929 = vmatprep.mubr.msk.f32.mxu1 %vm11826_vm4, %v11824_v15 }
 0x9bb   :  { %10878 = vmatprep.subr.bf16.mxu1 %v11825_v19 }
 0x9be   :  { %10880 = vmatpush3.bf16.msra.mxu1 %v11922_v27 }
 0x9bf   :  { %10887 = vmatprep.subr.bf16.mxu1 %v11825_v19 }
 0xa8c   :  { %v946_v9 = vpop.f32.mrb[6].mxu1 }
 0xa8d   :  { %v947_v16 = vadd.f32 %v11936_v30, %v946_v9  ;;  %v9909_v17 = vpop.f32.mrb[7].mxu1 }
 0xa8f   :  { %v951_v21 = vrot.slane %v947_v16, 5  ;;  %v952_v18 = vrot.slane %v947_v16, 6 }
 0xa91   :  { %971 = vrot.lane.b32.xlu0 %v952_v18, %s11827_s2  ;;  %969 = vrot.lane.b32.xlu1 %v951_v21, %s11827_s2  ;;  %v955_v25 = vadd.f32 %v951_v21, %v11944_v38  ;;  %v956_v26 = vadd.f32 %v952_v18, %v11941_v36 }
 0xa93   :  { %v9195_v28 = vmul.f32 -1.442695, %v955_v25  ;;  %v9196_v29 = vmul.f32 -1.442695, %v956_v26 }
 0xa95   :  { %11467 = vpow2.f32 %v9195_v28 }
 0xa96   :  { %11469 = vpow2.f32 %v9196_v29 }
 0xa9f   :  { %v11468_v31 = vpop.eup %11467 }
 0xaa0   :  { %v11470_v22 = vpop.eup %11469  ;;  %v963_v33 = vadd.f32 1.0, %v11468_v31 }
 0xaa1   :  { %v964_v34 = vadd.f32 1.0, %v11470_v22 }
 0xaa2   :  { %11471 = vrcp.f32 %v963_v33 }
 0xaa3   :  { %11473 = vrcp.f32 %v964_v34 }
 0xaac   :  { %v11472_v40 = vpop.eup %11471 }
 0xaad   :  { %v11474_v41 = vpop.eup %11473  ;;  %v989_v55 = vsub.f32 1.0, %v11472_v40  ;;  %v1005_v60 = vmul.f32 %v11472_v40, %v1001_v56 }
 0xaae   :  { %v990_v52 = vsub.f32 1.0, %v11474_v41  ;;  %v1006_v57 = vmul.f32 %v11474_v41, %v1002_v53 }
 0xb03   :  { %v972_v42 = vpop.permute.xlu0 %971  ;;  %v970_v43 = vpop.permute.xlu1 %969 }
 0xb04   :  { %v976_v44 = vmul.f32 %v11474_v41, %v972_v42  ;;  %v975_v45 = vmul.f32 %v11472_v40, %v970_v43 }
 0xb06   :  { %981 = vrot.lane.b32.xlu0 %v976_v44, %s11827_s2  ;;  %979 = vrot.lane.b32.xlu1 %v975_v45, %s11827_s2 }
 0xb78   :  { %v982_v46 = vpop.permute.xlu0 %981  ;;  %v980_v47 = vpop.permute.xlu1 %979 }
 0xb79   :  { %v986_v48 = vadd.f32 %v982_v46, %v11941_v36  ;;  %v985_v49 = vadd.f32 %v980_v47, %v11944_v38 }
 0xb7b   :  { %11475 = vtanh.f32 %v986_v48 }
 0xb7c   :  { %11477 = vtanh.f32 %v985_v49 }
 0xb85   :  { %v11476_v50 = vpop.eup %11475 }
 0xb86   :  { %v11478_v51 = vpop.eup %11477  ;;  %995 = vrot.lane.b32.xlu0 %v11476_v50, %s11828_s11 }
 0xb87   :  { %993 = vrot.lane.b32.xlu1 %v11478_v51, %s11828_s11 }
 0xbf8   :  { %v996_v54 = vpop.permute.xlu0 %995 }
 0xbf9   :  { %v1000_v58 = vmul.f32 %v996_v54, %v990_v52  ;;  %v994_v59 = vpop.permute.xlu1 %993 }
 0xbfa   :  { %v999_v61 = vmul.f32 %v994_v59, %v989_v55 }
 0xbfb   :  { %v12079_v62 = vadd.f32 %v1006_v57, %v1000_v58 }
 0xbfc   :  { %v12081_v63 = vadd.f32 %v1005_v60, %v999_v61 }
 0xbfd   :  { %v1030_v1 = vrot.slane %v12079_v62, 2  ;;  %v1158_v49 = vrot.slane %v12079_v62, 7 }
 0xbfe   :  { %v1029_v2 = vrot.slane %v12081_v63, 3  ;;  %v1157_v52 = vrot.slane %v12081_v63, 7 }
 0xc00   :  { %v1031_v5 = vsel %vm565_vm5, %v1030_v1, %v1029_v2 }
 0xc01   :  { %1032 = vrot.lane.b32.xlu1 %v1031_v5, %s11828_s11 }
 0xc73   :  { %v1033_v6 = vpop.permute.xlu1 %1032 }
 0xc74   :  { %9919 = vmatmul.mubr.msk.f32.vlgmr.msra.gmra.mrb[8].mxu0 %vm56_vm0, %v1033_v6 }
 0xc75   :  { %10883 = vmatpush3.bf16.msra.mxu0 %v11913_v23  ;;  %9940 = vmatprep.mubr.msk.f32.mxu0 %vm11826_vm4, %v11824_v15 }
 0xc76   :  { %10884 = vmatprep.subr.bf16.mxu0 %v11825_v19 }
 0xc79   :  { %10886 = vmatpush3.bf16.msra.mxu0 %v11922_v27 }
 0xc7a   :  { %10893 = vmatprep.subr.bf16.mxu0 %v11825_v19 }
 0xd47   :  { %v1102_v7 = vpop.f32.mrb[8].mxu0 }
 0xd48   :  { %v1103_v8 = vadd.f32 %v11936_v30, %v1102_v7  ;;  %v9920_v9 = vpop.f32.mrb[9].mxu0 }
 0xd4a   :  { %v1107_v16 = vrot.slane %v1103_v8, 4  ;;  %v1108_v17 = vrot.slane %v1103_v8, 5 }
 0xd4c   :  { %1127 = vrot.lane.b32.xlu1 %v1108_v17, %s11827_s2  ;;  %1125 = vrot.lane.b32.xlu0 %v1107_v16, %s11827_s2  ;;  %v1111_v23 = vadd.f32 %v1107_v16, %v11944_v38  ;;  %v1112_v21 = vadd.f32 %v1108_v17, %v11941_v36 }
 0xd4e   :  { %v9199_v18 = vmul.f32 -1.442695, %v1111_v23  ;;  %v9200_v25 = vmul.f32 -1.442695, %v1112_v21 }
 0xd50   :  { %11479 = vpow2.f32 %v9199_v18 }
 0xd51   :  { %11481 = vpow2.f32 %v9200_v25 }
 0xd5a   :  { %v11480_v27 = vpop.eup %11479 }
 0xd5b   :  { %v11482_v26 = vpop.eup %11481  ;;  %v1119_v28 = vadd.f32 1.0, %v11480_v27 }
 0xd5c   :  { %v1120_v29 = vadd.f32 1.0, %v11482_v26 }
 0xd5d   :  { %11483 = vrcp.f32 %v1119_v28 }
 0xd5e   :  { %11485 = vrcp.f32 %v1120_v29 }
 0xd67   :  { %v11484_v31 = vpop.eup %11483 }
 0xd68   :  { %v11486_v22 = vpop.eup %11485  ;;  %v1145_v51 = vsub.f32 1.0, %v11484_v31  ;;  %v1161_v56 = vmul.f32 %v11484_v31, %v1157_v52 }
 0xd69   :  { %v1146_v48 = vsub.f32 1.0, %v11486_v22  ;;  %v1162_v53 = vmul.f32 %v11486_v22, %v1158_v49 }
 0xdbe   :  { %v1128_v33 = vpop.permute.xlu1 %1127  ;;  %v1126_v34 = vpop.permute.xlu0 %1125 }
 0xdbf   :  { %v1132_v40 = vmul.f32 %v11486_v22, %v1128_v33  ;;  %v1131_v41 = vmul.f32 %v11484_v31, %v1126_v34 }
 0xdc1   :  { %1137 = vrot.lane.b32.xlu1 %v1132_v40, %s11827_s2  ;;  %1135 = vrot.lane.b32.xlu0 %v1131_v41, %s11827_s2 }
 0xe33   :  { %v1138_v42 = vpop.permute.xlu1 %1137  ;;  %v1136_v43 = vpop.permute.xlu0 %1135 }
 0xe34   :  { %v1142_v44 = vadd.f32 %v1138_v42, %v11941_v36  ;;  %v1141_v45 = vadd.f32 %v1136_v43, %v11944_v38 }
 0xe36   :  { %11487 = vtanh.f32 %v1142_v44 }
 0xe37   :  { %11489 = vtanh.f32 %v1141_v45 }
 0xe40   :  { %v11488_v46 = vpop.eup %11487 }
 0xe41   :  { %v11490_v47 = vpop.eup %11489  ;;  %1151 = vrot.lane.b32.xlu1 %v11488_v46, %s11828_s11 }
 0xe42   :  { %1149 = vrot.lane.b32.xlu0 %v11490_v47, %s11828_s11 }
 0xeb3   :  { %v1152_v50 = vpop.permute.xlu1 %1151 }
 0xeb4   :  { %v1156_v54 = vmul.f32 %v1152_v50, %v1146_v48  ;;  %v1150_v55 = vpop.permute.xlu0 %1149 }
 0xeb5   :  { %v1155_v57 = vmul.f32 %v1150_v55, %v1145_v51 }
 0xeb6   :  { %v12107_v58 = vadd.f32 %v1162_v53, %v1156_v54 }
 0xeb7   :  { %v12109_v59 = vadd.f32 %v1161_v56, %v1155_v57 }
 0xeb8   :  { %v1186_v60 = vrot.slane %v12107_v58, 3  ;;  %v1314_v47 = vrot.slane %v12107_v58, 7 }
 0xeb9   :  { %v1185_v61 = vrot.slane %v12109_v59, 4  ;;  %v1313_v50 = vrot.slane %v12109_v59, 7 }
 0xebb   :  { %v1187_v1 = vsel %vm565_vm5, %v1186_v60, %v1185_v61 }
 0xebc   :  { %1188 = vrot.lane.b32.xlu0 %v1187_v1, %s11828_s11 }
 0xf2e   :  { %v1189_v2 = vpop.permute.xlu0 %1188 }
 0xf2f   :  { %9930 = vmatmul.mubr.msk.f32.vlgmr.msra.gmra.mrb[8].mxu1 %vm56_vm0, %v1189_v2  ;;  %v1644_v2 = vld [vmem:[#allocation6 + $0x90] sm:$0xff] }
 0xf30   :  { %9951 = vmatprep.mubr.msk.f32.mxu1 %vm11826_vm4, %v11824_v15 }
0x1002   :  { %v1258_v5 = vpop.f32.mrb[8].mxu1 }
0x1003   :  { %v1259_v6 = vadd.f32 %v11936_v30, %v1258_v5  ;;  %v9931_v7 = vpop.f32.mrb[9].mxu1  ;;  %v1645_v5 = vld [vmem:[#allocation6 + $0x98] sm:$0xff] }
0x1004   :  { %v1646_v7 = vld [vmem:[#allocation6 + $0xa0] sm:$0xff] }
0x1005   :  { %v1263_v8 = vrot.slane %v1259_v6, 3  ;;  %v1264_v9 = vrot.slane %v1259_v6, 4  ;;  %v12139_v6 = vpack.c.bf16 %v1645_v5, %v1644_v2 }
0x1007   :  { %1283 = vrot.lane.b32.xlu0 %v1264_v9, %s11827_s2  ;;  %1281 = vrot.lane.b32.xlu1 %v1263_v8, %s11827_s2  ;;  %v1267_v16 = vadd.f32 %v1263_v8, %v11944_v38  ;;  %v1268_v17 = vadd.f32 %v1264_v9, %v11941_v36  ;;  %v1647_v8 = vld [vmem:[#allocation6 + $0xa8] sm:$0xff] }
0x1009   :  { %v9203_v23 = vmul.f32 -1.442695, %v1267_v16  ;;  %v9204_v21 = vmul.f32 -1.442695, %v1268_v17  ;;  %v12143_v16 = vpack.c.bf16 %v1647_v8, %v1646_v7 }
0x100b   :  { %11491 = vpow2.f32 %v9203_v23 }
0x100c   :  { %11493 = vpow2.f32 %v9204_v21 }
0x1015   :  { %v11492_v18 = vpop.eup %11491 }
0x1016   :  { %v11494_v25 = vpop.eup %11493  ;;  %v1275_v27 = vadd.f32 1.0, %v11492_v18 }
0x1017   :  { %v1276_v26 = vadd.f32 1.0, %v11494_v25 }
0x1018   :  { %11495 = vrcp.f32 %v1275_v27  ;;  %v12160_v27 = vld [vmem:[#allocation6 + $0xb8] ss:$0 sm:$0xff] }
0x1019   :  { %11497 = vrcp.f32 %v1276_v26 }
0x1022   :  { %v11496_v28 = vpop.eup %11495 }
0x1023   :  { %v11498_v29 = vpop.eup %11497  ;;  %v1301_v49 = vsub.f32 1.0, %v11496_v28  ;;  %v1317_v54 = vmul.f32 %v11496_v28, %v1313_v50 }
0x1024   :  { %v1302_v46 = vsub.f32 1.0, %v11498_v29  ;;  %v1318_v51 = vmul.f32 %v11498_v29, %v1314_v47 }
0x1079   :  { %v1284_v31 = vpop.permute.xlu0 %1283  ;;  %v1282_v22 = vpop.permute.xlu1 %1281 }
0x107a   :  { %v1288_v33 = vmul.f32 %v11498_v29, %v1284_v31  ;;  %v1287_v34 = vmul.f32 %v11496_v28, %v1282_v22 }
0x107c   :  { %1293 = vrot.lane.b32.xlu0 %v1288_v33, %s11827_s2  ;;  %1291 = vrot.lane.b32.xlu1 %v1287_v34, %s11827_s2  ;;  %v9179_v34 = vld [vmem:[#allocation6 + $0xb0] ss:$0 sm:$0xff] }
0x10ee   :  { %v1294_v40 = vpop.permute.xlu0 %1293  ;;  %v1292_v41 = vpop.permute.xlu1 %1291 }
0x10ef   :  { %v1298_v42 = vadd.f32 %v1294_v40, %v11941_v36  ;;  %v1297_v43 = vadd.f32 %v1292_v41, %v11944_v38 }
0x10f1   :  { %11499 = vtanh.f32 %v1298_v42  ;;  %v12168_v42 = vadd.f32 %v9179_v34, %v12005_v37 }
0x10f2   :  { %11501 = vtanh.f32 %v1297_v43  ;;  %v12171_v43 = vadd.f32 %v12003_v35, %v9179_v34  ;;  %v1488_v34 = vld [vmem:[#allocation6 + $0x50] sm:$0xff] }
0x10fb   :  { %v11500_v44 = vpop.eup %11499 }
0x10fc   :  { %v11502_v45 = vpop.eup %11501  ;;  %1307 = vrot.lane.b32.xlu0 %v11500_v44, %s11828_s11 }
0x10fd   :  { %1305 = vrot.lane.b32.xlu1 %v11502_v45, %s11828_s11 }
0x116e   :  { %v1308_v48 = vpop.permute.xlu0 %1307 }
0x116f   :  { %v1312_v52 = vmul.f32 %v1308_v48, %v1302_v46  ;;  %v1306_v53 = vpop.permute.xlu1 %1305 }
0x1170   :  { %v1311_v55 = vmul.f32 %v1306_v53, %v1301_v49 }
0x1171   :  { %v12131_v56 = vadd.f32 %v1318_v51, %v1312_v52 }
0x1172   :  { %v12133_v57 = vadd.f32 %v1317_v54, %v1311_v55 }
0x1173   :  { %v1342_v60 = vrot.slane %v12131_v56, 4 }
0x1174   :  { %v1341_v61 = vrot.slane %v12133_v57, 5 }
0x1176   :  { %v1343_v1 = vsel %vm565_vm5, %v1342_v60, %v1341_v61 }
0x1177   :  { %1344 = vrot.lane.b32.xlu1 %v1343_v1, %s11828_s11 }
0x11e9   :  { %v1345_v9 = vpop.permute.xlu1 %1344 }
0x11ea   :  { %9941 = vmatmul.mubr.msk.f32.vlgmr.msra.gmra.mrb[10].mxu0 %vm56_vm0, %v1345_v9 }
0x11eb   :  { %10895 = vmatpush3.bf16.msra.mxu0 %v12139_v6  ;;  %9962 = vmatprep.mubr.msk.f32.mxu0 %vm11826_vm4, %v11824_v15 }
0x11ec   :  { %10896 = vmatprep.subr.bf16.mxu0 %v11825_v19 }
0x11ef   :  { %10898 = vmatpush3.bf16.msra.mxu0 %v12143_v16 }
0x11f0   :  { %10905 = vmatprep.subr.bf16.mxu0 %v11825_v19 }
0x11f2   :  { %9963 = vmatmul.mubr.f32.vlgmr.msra.gmra.mrb[12].mxu0 %v11824_v15 }
0x11f3   :  { %10907 = vmatpush3.bf16.msra.mxu0 %v12139_v6  ;;  %9984 = vmatprep.mubr.msk.f32.mxu0 %vm11826_vm4, %v11824_v15 }
0x11f4   :  { %10908 = vmatprep.subr.bf16.mxu0 %v11825_v19 }
0x11f7   :  { %10910 = vmatpush3.bf16.msra.mxu0 %v12143_v16 }
0x11f8   :  { %10917 = vmatprep.subr.bf16.mxu0 %v11825_v19 }
0x12bd   :  { %v1414_v17 = vpop.f32.mrb[10].mxu0 }
0x12be   :  { %v1415_v23 = vadd.f32 %v11936_v30, %v1414_v17  ;;  %v9942_v21 = vpop.f32.mrb[11].mxu0 }
0x12c0   :  { %v1419_v18 = vrot.slane %v1415_v23, 2  ;;  %v1420_v25 = vrot.slane %v1415_v23, 3 }
0x12c2   :  { %1439 = vrot.lane.b32.xlu1 %v1420_v25, %s11827_s2  ;;  %1437 = vrot.lane.b32.xlu0 %v1419_v18, %s11827_s2  ;;  %v1423_v30 = vadd.f32 %v1419_v18, %v11944_v38  ;;  %v1424_v33 = vadd.f32 %v1420_v25, %v11941_v36 }
0x12c4   :  { %v9207_v40 = vmul.f32 -1.442695, %v1423_v30  ;;  %v9208_v41 = vmul.f32 -1.442695, %v1424_v33 }
0x12c5   :  { %v1719_v26 = vpop.f32.mrb[12].mxu0 }
0x12c6   :  { %v1720_v28 = vadd.f32 %v12160_v27, %v1719_v26  ;;  %v9964_v29 = vpop.f32.mrb[13].mxu0  ;;  %11503 = vpow2.f32 %v9207_v40  ;;  %v1489_v40 = vld [vmem:[#allocation6 + $0x58] sm:$0xff] }
0x12c7   :  { %11505 = vpow2.f32 %v9208_v41  ;;  %v1490_v41 = vld [vmem:[#allocation6 + $0x60] sm:$0xff] }
0x12c8   :  { %v1724_v31 = vrot.slane %v1720_v28, 1  ;;  %v1725_v22 = vrot.slane %v1720_v28, 2 }
0x12ca   :  { %1744 = vrot.lane.b32.xlu1 %v1725_v22, %s11827_s2  ;;  %1742 = vrot.lane.b32.xlu0 %v1724_v31, %s11827_s2  ;;  %v1728_v44 = vadd.f32 %v1724_v31, %v12168_v42  ;;  %v1729_v45 = vadd.f32 %v1725_v22, %v12171_v43 }
0x12cc   :  { %v9214_v46 = vmul.f32 -1.442695, %v1728_v44  ;;  %v9215_v47 = vmul.f32 -1.442695, %v1729_v45  ;;  %v10888_v44 = vpack.c.bf16 %v1489_v40, %v1488_v34  ;;  %v1491_v45 = vld [vmem:[#allocation6 + $0x68] sm:$0xff] }
0x12ce   :  { %11507 = vpow2.f32 %v9214_v46  ;;  %10889 = vmatpush3.bf16.msra.mxu1 %v10888_v44  ;;  %v10891_v46 = vpack.c.bf16 %v1491_v45, %v1490_v41 }
0x12cf   :  { %11509 = vpow2.f32 %v9215_v47  ;;  %10890 = vmatprep.subr.bf16.mxu1 %v11825_v19 }
0x12d0   :  { %v11504_v48 = vpop.eup %11503 }
0x12d1   :  { %v11506_v49 = vpop.eup %11505  ;;  %v1431_v50 = vadd.f32 1.0, %v11504_v48 }
0x12d2   :  { %v1432_v51 = vadd.f32 1.0, %v11506_v49  ;;  %10892 = vmatpush3.bf16.msra.mxu1 %v10891_v46 }
0x12d3   :  { %11511 = vrcp.f32 %v1431_v50  ;;  %10899 = vmatprep.subr.bf16.mxu1 %v11825_v19  ;;  %v1470_v50 = vrot.slane %v12131_v56, 7 }
0x12d4   :  { %11513 = vrcp.f32 %v1432_v51 }
0x12d8   :  { %v11508_v37 = vpop.eup %11507 }
0x12d9   :  { %v11510_v52 = vpop.eup %11509  ;;  %v1736_v35 = vadd.f32 1.0, %v11508_v37 }
0x12da   :  { %v1737_v53 = vadd.f32 1.0, %v11510_v52  ;;  %v1469_v52 = vrot.slane %v12133_v57, 7 }
0x12db   :  { %11515 = vrcp.f32 %v1736_v35 }
0x12dc   :  { %11517 = vrcp.f32 %v1737_v53 }
0x12dd   :  { %v11512_v54 = vpop.eup %11511 }
0x12de   :  { %v11514_v55 = vpop.eup %11513  ;;  %v1457_v37 = vsub.f32 1.0, %v11512_v54 }
0x12df   :  { %v1458_v49 = vsub.f32 1.0, %v11514_v55  ;;  %v1474_v35 = vmul.f32 %v11514_v55, %v1470_v50 }
0x12e5   :  { %v11516_v5 = vpop.eup %11515 }
0x12e6   :  { %v11518_v7 = vpop.eup %11517 }
0x1334   :  { %v1440_v60 = vpop.permute.xlu1 %1439  ;;  %v1438_v61 = vpop.permute.xlu0 %1437 }
0x1335   :  { %v1444_v1 = vmul.f32 %v11514_v55, %v1440_v60  ;;  %v1443_v2 = vmul.f32 %v11512_v54, %v1438_v61  ;;  %v1473_v61 = vmul.f32 %v11512_v54, %v1469_v52  ;;  %v1774_v54 = vmul.f32 0.0, %v11516_v5 }
0x1337   :  { %1449 = vrot.lane.b32.xlu1 %v1444_v1, %s11827_s2  ;;  %1447 = vrot.lane.b32.xlu0 %v1443_v2, %s11827_s2 }
0x133c   :  { %v1745_v8 = vpop.permute.xlu1 %1744  ;;  %v1743_v9 = vpop.permute.xlu0 %1742 }
0x133d   :  { %v1749_v17 = vmul.f32 %v11518_v7, %v1745_v8  ;;  %v1748_v23 = vmul.f32 %v11516_v5, %v1743_v9 }
0x133f   :  { %1754 = vrot.lane.b32.xlu1 %v1749_v17, %s11827_s2  ;;  %1752 = vrot.lane.b32.xlu0 %v1748_v23, %s11827_s2  ;;  %v1763_v23 = vsub.f32 1.0, %v11518_v7 }
0x13a9   :  { %v1450_v21 = vpop.permute.xlu1 %1449  ;;  %v1448_v18 = vpop.permute.xlu0 %1447 }
0x13aa   :  { %v1454_v25 = vadd.f32 %v1450_v21, %v11941_v36  ;;  %v1453_v26 = vadd.f32 %v1448_v18, %v11944_v38  ;;  %v1762_v18 = vsub.f32 1.0, %v11516_v5 }
0x13ac   :  { %11519 = vtanh.f32 %v1454_v25 }
0x13ad   :  { %11521 = vtanh.f32 %v1453_v26  ;;  %v1775_v26 = vmul.f32 0.0, %v11518_v7 }
0x13b1   :  { %v1755_v28 = vpop.permute.xlu1 %1754  ;;  %v1753_v29 = vpop.permute.xlu0 %1752 }
0x13b2   :  { %v1759_v31 = vadd.f32 %v1755_v28, %v12171_v43  ;;  %v1758_v22 = vadd.f32 %v1753_v29, %v12168_v42 }
0x13b4   :  { %11523 = vtanh.f32 %v1759_v31 }
0x13b5   :  { %11525 = vtanh.f32 %v1758_v22 }
0x13b6   :  { %v11520_v30 = vpop.eup %11519 }
0x13b7   :  { %v11522_v33 = vpop.eup %11521  ;;  %1463 = vrot.lane.b32.xlu1 %v11520_v30, %s11828_s11 }
0x13b8   :  { %1461 = vrot.lane.b32.xlu0 %v11522_v33, %s11828_s11 }
0x13be   :  { %v11524_v47 = vpop.eup %11523 }
0x13bf   :  { %v11526_v48 = vpop.eup %11525  ;;  %1768 = vrot.lane.b32.xlu1 %v11524_v47, %s11828_s11 }
0x13c0   :  { %1766 = vrot.lane.b32.xlu0 %v11526_v48, %s11828_s11 }
0x1429   :  { %v1464_v51 = vpop.permute.xlu1 %1463 }
0x142a   :  { %v1468_v53 = vmul.f32 %v1464_v51, %v1458_v49  ;;  %v1462_v60 = vpop.permute.xlu0 %1461 }
0x142b   :  { %v1467_v1 = vmul.f32 %v1462_v60, %v1457_v37 }
0x142c   :  { %v12191_v2 = vadd.f32 %v1474_v35, %v1468_v53 }
0x142d   :  { %v12193_v8 = vadd.f32 %v1473_v61, %v1467_v1 }
0x142e   :  { %v1498_v9 = vrot.slane %v12191_v2, 5 }
0x142f   :  { %v1497_v17 = vrot.slane %v12193_v8, 6 }
0x1431   :  { %v1769_v21 = vpop.permute.xlu1 %1768  ;;  %v1499_v25 = vsel %vm565_vm5, %v1498_v9, %v1497_v17 }
0x1432   :  { %v1773_v28 = vmul.f32 %v1769_v21, %v1763_v23  ;;  %v1767_v55 = vpop.permute.xlu0 %1766  ;;  %1500 = vrot.lane.b32.xlu0 %v1499_v25, %s11828_s11 }
0x1433   :  { %v1772_v29 = vmul.f32 %v1767_v55, %v1762_v18 }
0x1434   :  { %v12199_v31 = vadd.f32 %v1775_v26, %v1773_v28 }
0x1435   :  { %v12201_v22 = vadd.f32 %v1774_v54, %v1772_v29 }
0x1436   :  { %v1793_v30 = vrot.slane %v12199_v31, 6 }
0x1437   :  { %v1792_v33 = vrot.slane %v12201_v22, 7 }
0x1439   :  { %v1794_v34 = vsel %vm565_vm5, %v1793_v30, %v1792_v33  ;;  %v1921_v30 = vrot.slane %v12199_v31, 1 }
0x143a   :  { %1795 = vrot.lane.b32.xlu1 %v1794_v34, %s11828_s11 }
0x14a4   :  { %v1501_v40 = vpop.permute.xlu0 %1500 }
0x14a5   :  { %9952 = vmatmul.mubr.msk.f32.vlgmr.msra.gmra.mrb[10].mxu1 %vm56_vm0, %v1501_v40  ;;  %v1920_v40 = vrot.slane %v12201_v22, 1 }
0x14a6   :  { %10901 = vmatpush3.bf16.msra.mxu1 %v12139_v6  ;;  %9973 = vmatprep.mubr.msk.f32.mxu1 %vm11826_vm4, %v11824_v15 }
0x14a7   :  { %10902 = vmatprep.subr.bf16.mxu1 %v11825_v19 }
0x14aa   :  { %10904 = vmatpush3.bf16.msra.mxu1 %v12143_v16 }
0x14ab   :  { %10911 = vmatprep.subr.bf16.mxu1 %v11825_v19 }
0x14ac   :  { %v1796_v5 = vpop.permute.xlu1 %1795 }
0x14ad   :  { %9974 = vmatmul.mubr.msk.f32.vlgmr.msra.gmra.mrb[12].mxu1 %vm56_vm0, %v1796_v5 }
0x14ae   :  { %10913 = vmatpush3.bf16.msra.mxu1 %v12139_v6  ;;  %9995 = vmatprep.mubr.msk.f32.mxu1 %vm11826_vm4, %v11824_v15 }
0x14af   :  { %10914 = vmatprep.subr.bf16.mxu1 %v11825_v19 }
0x14b2   :  { %10916 = vmatpush3.bf16.msra.mxu1 %v12143_v16 }
0x14b3   :  { %10923 = vmatprep.subr.bf16.mxu1 %v11825_v19 }
0x1578   :  { %v12221_v7 = vpop.f32.mrb[10].mxu1 }
0x1579   :  { %v9953_v41 = vpop.f32.mrb[11].mxu1 }
0x1580   :  { %v1865_v44 = vpop.f32.mrb[12].mxu1 }
0x1581   :  { %v1866_v45 = vadd.f32 %v12160_v27, %v1865_v44  ;;  %v9975_v46 = vpop.f32.mrb[13].mxu1 }
0x1583   :  { %v1870_v47 = vrot.slane %v1866_v45, 2  ;;  %v1871_v48 = vrot.slane %v1866_v45, 3 }
0x1585   :  { %1890 = vrot.lane.b32.xlu1 %v1871_v48, %s11827_s2  ;;  %1888 = vrot.lane.b32.xlu0 %v1870_v47, %s11827_s2  ;;  %v1874_v49 = vadd.f32 %v1870_v47, %v12168_v42  ;;  %v1875_v50 = vadd.f32 %v1871_v48, %v12171_v43 }
0x1587   :  { %v9218_v51 = vmul.f32 -1.442695, %v1874_v49  ;;  %v9219_v37 = vmul.f32 -1.442695, %v1875_v50 }
0x1589   :  { %11527 = vpow2.f32 %v9218_v51 }
0x158a   :  { %11529 = vpow2.f32 %v9219_v37 }
0x1593   :  { %v11528_v52 = vpop.eup %11527 }
0x1594   :  { %v11530_v35 = vpop.eup %11529  ;;  %v1882_v53 = vadd.f32 1.0, %v11528_v52 }
0x1595   :  { %v1883_v60 = vadd.f32 1.0, %v11530_v35 }
0x1596   :  { %11531 = vrcp.f32 %v1882_v53 }
0x1597   :  { %11533 = vrcp.f32 %v1883_v60 }
0x15a0   :  { %v11532_v61 = vpop.eup %11531 }
0x15a1   :  { %v11534_v1 = vpop.eup %11533  ;;  %v1908_v34 = vsub.f32 1.0, %v11532_v61  ;;  %v1924_v45 = vmul.f32 %v11532_v61, %v1920_v40 }
0x15a2   :  { %v1909_v29 = vsub.f32 1.0, %v11534_v1  ;;  %v1925_v5 = vmul.f32 %v11534_v1, %v1921_v30 }
0x15f7   :  { %v1891_v9 = vpop.permute.xlu1 %1890  ;;  %v1889_v17 = vpop.permute.xlu0 %1888 }
0x15f8   :  { %v1895_v23 = vmul.f32 %v11534_v1, %v1891_v9  ;;  %v1894_v21 = vmul.f32 %v11532_v61, %v1889_v17 }
0x15fa   :  { %1900 = vrot.lane.b32.xlu1 %v1895_v23, %s11827_s2  ;;  %1898 = vrot.lane.b32.xlu0 %v1894_v21, %s11827_s2 }
0x166c   :  { %v1901_v18 = vpop.permute.xlu1 %1900  ;;  %v1899_v25 = vpop.permute.xlu0 %1898 }
0x166d   :  { %v1905_v26 = vadd.f32 %v1901_v18, %v12171_v43  ;;  %v1904_v28 = vadd.f32 %v1899_v25, %v12168_v42 }
0x166f   :  { %11535 = vtanh.f32 %v1905_v26 }
0x1670   :  { %11537 = vtanh.f32 %v1904_v28 }
0x1679   :  { %v11536_v55 = vpop.eup %11535 }
0x167a   :  { %v11538_v54 = vpop.eup %11537  ;;  %1914 = vrot.lane.b32.xlu1 %v11536_v55, %s11828_s11 }
0x167b   :  { %1912 = vrot.lane.b32.xlu0 %v11538_v54, %s11828_s11 }
0x16ec   :  { %v1915_v33 = vpop.permute.xlu1 %1914 }
0x16ed   :  { %v1919_v41 = vmul.f32 %v1915_v33, %v1909_v29  ;;  %v1913_v44 = vpop.permute.xlu0 %1912 }
0x16ee   :  { %v1918_v46 = vmul.f32 %v1913_v44, %v1908_v34 }
0x16ef   :  { %v12236_v47 = vadd.f32 %v1925_v5, %v1919_v41 }
0x16f0   :  { %v12238_v48 = vadd.f32 %v1924_v45, %v1918_v46 }
0x16f1   :  { %v1943_v49 = vrot.slane %v12236_v47, 5 }
0x16f2   :  { %v1942_v50 = vrot.slane %v12238_v48, 6 }
0x16f4   :  { %v1944_v51 = vsel %vm565_vm5, %v1943_v49, %v1942_v50  ;;  %v2071_v49 = vrot.slane %v12236_v47, 1 }
0x16f5   :  { %1945 = vrot.lane.b32.xlu0 %v1944_v51, %s11828_s11 }
0x1767   :  { %v1946_v37 = vpop.permute.xlu0 %1945 }
0x1768   :  { %9985 = vmatmul.mubr.msk.f32.vlgmr.msra.gmra.mrb[14].mxu0 %vm56_vm0, %v1946_v37  ;;  %v2070_v37 = vrot.slane %v12238_v48, 1 }
0x1769   :  { %10919 = vmatpush3.bf16.msra.mxu0 %v12139_v6  ;;  %10006 = vmatprep.mubr.msk.f32.mxu0 %vm11826_vm4, %v11824_v15 }
0x176a   :  { %10920 = vmatprep.subr.bf16.mxu0 %v11825_v19 }
0x176d   :  { %10922 = vmatpush3.bf16.msra.mxu0 %v12143_v16 }
0x176e   :  { %10929 = vmatprep.subr.bf16.mxu0 %v11825_v19 }
0x183b   :  { %v2015_v52 = vpop.f32.mrb[14].mxu0 }
0x183c   :  { %v2016_v35 = vadd.f32 %v12160_v27, %v2015_v52  ;;  %v9986_v53 = vpop.f32.mrb[15].mxu0 }
0x183e   :  { %v2020_v60 = vrot.slane %v2016_v35, 3  ;;  %v2021_v61 = vrot.slane %v2016_v35, 4 }
0x1840   :  { %2040 = vrot.lane.b32.xlu0 %v2021_v61, %s11827_s2  ;;  %2038 = vrot.lane.b32.xlu1 %v2020_v60, %s11827_s2  ;;  %v2024_v1 = vadd.f32 %v2020_v60, %v12168_v42  ;;  %v2025_v9 = vadd.f32 %v2021_v61, %v12171_v43 }
0x1842   :  { %v9222_v17 = vmul.f32 -1.442695, %v2024_v1  ;;  %v9223_v23 = vmul.f32 -1.442695, %v2025_v9 }
0x1844   :  { %11539 = vpow2.f32 %v9222_v17 }
0x1845   :  { %11541 = vpow2.f32 %v9223_v23 }
0x184e   :  { %v11540_v21 = vpop.eup %11539 }
0x184f   :  { %v11542_v18 = vpop.eup %11541  ;;  %v2032_v25 = vadd.f32 1.0, %v11540_v21 }
0x1850   :  { %v2033_v26 = vadd.f32 1.0, %v11542_v18 }
0x1851   :  { %11543 = vrcp.f32 %v2032_v25 }
0x1852   :  { %11545 = vrcp.f32 %v2033_v26 }
0x185b   :  { %v11544_v28 = vpop.eup %11543 }
0x185c   :  { %v11546_v55 = vpop.eup %11545  ;;  %v2058_v51 = vsub.f32 1.0, %v11544_v28  ;;  %v2074_v60 = vmul.f32 %v11544_v28, %v2070_v37 }
0x185d   :  { %v2059_v46 = vsub.f32 1.0, %v11546_v55  ;;  %v2075_v52 = vmul.f32 %v11546_v55, %v2071_v49 }
0x18b2   :  { %v2041_v54 = vpop.permute.xlu0 %2040  ;;  %v2039_v29 = vpop.permute.xlu1 %2038 }
0x18b3   :  { %v2045_v30 = vmul.f32 %v11546_v55, %v2041_v54  ;;  %v2044_v33 = vmul.f32 %v11544_v28, %v2039_v29 }
0x18b5   :  { %2050 = vrot.lane.b32.xlu0 %v2045_v30, %s11827_s2  ;;  %2048 = vrot.lane.b32.xlu1 %v2044_v33, %s11827_s2 }
0x1927   :  { %v2051_v34 = vpop.permute.xlu0 %2050  ;;  %v2049_v40 = vpop.permute.xlu1 %2048 }
0x1928   :  { %v2055_v5 = vadd.f32 %v2051_v34, %v12171_v43  ;;  %v2054_v41 = vadd.f32 %v2049_v40, %v12168_v42 }
0x192a   :  { %11547 = vtanh.f32 %v2055_v5 }
0x192b   :  { %11549 = vtanh.f32 %v2054_v41 }
0x1934   :  { %v11548_v44 = vpop.eup %11547 }
0x1935   :  { %v11550_v45 = vpop.eup %11549  ;;  %2064 = vrot.lane.b32.xlu0 %v11548_v44, %s11828_s11 }
0x1936   :  { %2062 = vrot.lane.b32.xlu1 %v11550_v45, %s11828_s11 }
0x19a7   :  { %v2065_v50 = vpop.permute.xlu0 %2064 }
0x19a8   :  { %v2069_v35 = vmul.f32 %v2065_v50, %v2059_v46  ;;  %v2063_v53 = vpop.permute.xlu1 %2062 }
0x19a9   :  { %v2068_v61 = vmul.f32 %v2063_v53, %v2058_v51 }
0x19aa   :  { %v12264_v1 = vadd.f32 %v2075_v52, %v2069_v35 }
0x19ab   :  { %v12266_v9 = vadd.f32 %v2074_v60, %v2068_v61 }
0x19ac   :  { %v2093_v17 = vrot.slane %v12264_v1, 4 }
0x19ad   :  { %v2092_v23 = vrot.slane %v12266_v9, 5 }
0x19af   :  { %v2094_v21 = vsel %vm565_vm5, %v2093_v17, %v2092_v23 }
0x19b0   :  { %2095 = vrot.lane.b32.xlu1 %v2094_v21, %s11828_s11  ;;  %v2221_v21 = vrot.slane %v12264_v1, 1 }
0x1a22   :  { %v2096_v18 = vpop.permute.xlu1 %2095 }
0x1a23   :  { %9996 = vmatmul.mubr.msk.f32.vlgmr.msra.gmra.mrb[14].mxu1 %vm56_vm0, %v2096_v18 }
0x1a24   :  { %10925 = vmatpush3.bf16.msra.mxu1 %v12139_v6  ;;  %10017 = vmatprep.mubr.msk.f32.mxu1 %vm11826_vm4, %v11824_v15 }
0x1a25   :  { %10926 = vmatprep.subr.bf16.mxu1 %v11825_v19 }
0x1a28   :  { %10928 = vmatpush3.bf16.msra.mxu1 %v12143_v16 }
0x1a29   :  { %10935 = vmatprep.subr.bf16.mxu1 %v11825_v19 }
0x1af6   :  { %v2165_v25 = vpop.f32.mrb[14].mxu1 }
0x1af7   :  { %v2166_v26 = vadd.f32 %v12160_v27, %v2165_v25  ;;  %v9997_v28 = vpop.f32.mrb[15].mxu1 }
0x1af9   :  { %v2170_v55 = vrot.slane %v2166_v26, 4  ;;  %v2171_v54 = vrot.slane %v2166_v26, 5  ;;  %v2220_v26 = vrot.slane %v12266_v9, 1 }
0x1afb   :  { %2190 = vrot.lane.b32.xlu1 %v2171_v54, %s11827_s2  ;;  %2188 = vrot.lane.b32.xlu0 %v2170_v55, %s11827_s2  ;;  %v2174_v29 = vadd.f32 %v2170_v55, %v12168_v42  ;;  %v2175_v30 = vadd.f32 %v2171_v54, %v12171_v43 }
0x1afd   :  { %v9226_v33 = vmul.f32 -1.442695, %v2174_v29  ;;  %v9227_v34 = vmul.f32 -1.442695, %v2175_v30 }
0x1aff   :  { %11551 = vpow2.f32 %v9226_v33 }
0x1b00   :  { %11553 = vpow2.f32 %v9227_v34 }
0x1b09   :  { %v11552_v40 = vpop.eup %11551 }
0x1b0a   :  { %v11554_v5 = vpop.eup %11553  ;;  %v2182_v41 = vadd.f32 1.0, %v11552_v40 }
0x1b0b   :  { %v2183_v44 = vadd.f32 1.0, %v11554_v5 }
0x1b0c   :  { %11555 = vrcp.f32 %v2182_v41 }
0x1b0d   :  { %11557 = vrcp.f32 %v2183_v44 }
0x1b16   :  { %v11556_v45 = vpop.eup %11555 }
0x1b17   :  { %v11558_v46 = vpop.eup %11557  ;;  %v2208_v25 = vsub.f32 1.0, %v11556_v45  ;;  %v2224_v29 = vmul.f32 %v11556_v45, %v2220_v26 }
0x1b18   :  { %v2209_v23 = vsub.f32 1.0, %v11558_v46  ;;  %v2225_v28 = vmul.f32 %v11558_v46, %v2221_v21 }
0x1b6d   :  { %v2191_v49 = vpop.permute.xlu1 %2190  ;;  %v2189_v50 = vpop.permute.xlu0 %2188 }
0x1b6e   :  { %v2195_v51 = vmul.f32 %v11558_v46, %v2191_v49  ;;  %v2194_v37 = vmul.f32 %v11556_v45, %v2189_v50 }
0x1b70   :  { %2200 = vrot.lane.b32.xlu1 %v2195_v51, %s11827_s2  ;;  %2198 = vrot.lane.b32.xlu0 %v2194_v37, %s11827_s2 }
0x1be2   :  { %v2201_v52 = vpop.permute.xlu1 %2200  ;;  %v2199_v35 = vpop.permute.xlu0 %2198 }
0x1be3   :  { %v2205_v53 = vadd.f32 %v2201_v52, %v12171_v43  ;;  %v2204_v60 = vadd.f32 %v2199_v35, %v12168_v42 }
0x1be5   :  { %11559 = vtanh.f32 %v2205_v53 }
0x1be6   :  { %11561 = vtanh.f32 %v2204_v60 }
0x1bef   :  { %v11560_v61 = vpop.eup %11559 }
0x1bf0   :  { %v11562_v17 = vpop.eup %11561  ;;  %2214 = vrot.lane.b32.xlu1 %v11560_v61, %s11828_s11 }
0x1bf1   :  { %2212 = vrot.lane.b32.xlu0 %v11562_v17, %s11828_s11 }
0x1c62   :  { %v2215_v18 = vpop.permute.xlu1 %2214 }
0x1c63   :  { %v2219_v55 = vmul.f32 %v2215_v18, %v2209_v23  ;;  %v2213_v54 = vpop.permute.xlu0 %2212 }
0x1c64   :  { %v2218_v30 = vmul.f32 %v2213_v54, %v2208_v25 }
0x1c65   :  { %v12292_v33 = vadd.f32 %v2225_v28, %v2219_v55 }
0x1c66   :  { %v12294_v34 = vadd.f32 %v2224_v29, %v2218_v30 }
0x1c67   :  { %v2243_v40 = vrot.slane %v12292_v33, 3 }
0x1c68   :  { %v2242_v5 = vrot.slane %v12294_v34, 4 }
0x1c6a   :  { %v2244_v41 = vsel %vm565_vm5, %v2243_v40, %v2242_v5 }
0x1c6b   :  { %2245 = vrot.lane.b32.xlu0 %v2244_v41, %s11828_s11 }
0x1cdd   :  { %v2246_v44 = vpop.permute.xlu0 %2245 }
0x1cde   :  { %10007 = vmatmul.mubr.msk.f32.vlgmr.msra.gmra.mrb[16].mxu0 %vm56_vm0, %v2246_v44 }
0x1cdf   :  { %10931 = vmatpush3.bf16.msra.mxu0 %v12139_v6  ;;  %10028 = vmatprep.mubr.msk.f32.mxu0 %vm11826_vm4, %v11824_v15 }
0x1ce0   :  { %10932 = vmatprep.subr.bf16.mxu0 %v11825_v19 }
0x1ce3   :  { %10934 = vmatpush3.bf16.msra.mxu0 %v12143_v16 }
0x1ce4   :  { %10941 = vmatprep.subr.bf16.mxu0 %v11825_v19 }
0x1db1   :  { %v2315_v45 = vpop.f32.mrb[16].mxu0 }
0x1db2   :  { %v2316_v46 = vadd.f32 %v12160_v27, %v2315_v45  ;;  %v10008_v49 = vpop.f32.mrb[17].mxu0  ;;  %v2371_v45 = vrot.slane %v12292_v33, 1 }
0x1db4   :  { %v2320_v50 = vrot.slane %v2316_v46, 5  ;;  %v2321_v51 = vrot.slane %v2316_v46, 6 }
0x1db6   :  { %2340 = vrot.lane.b32.xlu0 %v2321_v51, %s11827_s2  ;;  %2338 = vrot.lane.b32.xlu1 %v2320_v50, %s11827_s2  ;;  %v2324_v37 = vadd.f32 %v2320_v50, %v12168_v42  ;;  %v2325_v52 = vadd.f32 %v2321_v51, %v12171_v43  ;;  %v2370_v50 = vrot.slane %v12294_v34, 1 }
0x1db8   :  { %v9230_v35 = vmul.f32 -1.442695, %v2324_v37  ;;  %v9231_v53 = vmul.f32 -1.442695, %v2325_v52 }
0x1dba   :  { %11563 = vpow2.f32 %v9230_v35 }
0x1dbb   :  { %11565 = vpow2.f32 %v9231_v53 }
0x1dc4   :  { %v11564_v60 = vpop.eup %11563 }
0x1dc5   :  { %v11566_v61 = vpop.eup %11565  ;;  %v2332_v17 = vadd.f32 1.0, %v11564_v60 }
0x1dc6   :  { %v2333_v23 = vadd.f32 1.0, %v11566_v61 }
0x1dc7   :  { %11567 = vrcp.f32 %v2332_v17 }
0x1dc8   :  { %11569 = vrcp.f32 %v2333_v23 }
0x1dd1   :  { %v11568_v21 = vpop.eup %11567 }
0x1dd2   :  { %v11570_v18 = vpop.eup %11569  ;;  %v2358_v49 = vsub.f32 1.0, %v11568_v21  ;;  %v2374_v35 = vmul.f32 %v11568_v21, %v2370_v50 }
0x1dd3   :  { %v2359_v44 = vsub.f32 1.0, %v11570_v18  ;;  %v2375_v51 = vmul.f32 %v11570_v18, %v2371_v45 }
0x1e28   :  { %v2341_v25 = vpop.permute.xlu0 %2340  ;;  %v2339_v26 = vpop.permute.xlu1 %2338 }
0x1e29   :  { %v2345_v28 = vmul.f32 %v11570_v18, %v2341_v25  ;;  %v2344_v55 = vmul.f32 %v11568_v21, %v2339_v26 }
0x1e2b   :  { %2350 = vrot.lane.b32.xlu0 %v2345_v28, %s11827_s2  ;;  %2348 = vrot.lane.b32.xlu1 %v2344_v55, %s11827_s2 }
0x1e9d   :  { %v2351_v54 = vpop.permute.xlu0 %2350  ;;  %v2349_v29 = vpop.permute.xlu1 %2348 }
0x1e9e   :  { %v2355_v30 = vadd.f32 %v2351_v54, %v12171_v43  ;;  %v2354_v40 = vadd.f32 %v2349_v29, %v12168_v42 }
0x1ea0   :  { %11571 = vtanh.f32 %v2355_v30 }
0x1ea1   :  { %11573 = vtanh.f32 %v2354_v40 }
0x1eaa   :  { %v11572_v5 = vpop.eup %11571 }
0x1eab   :  { %v11574_v41 = vpop.eup %11573  ;;  %2364 = vrot.lane.b32.xlu0 %v11572_v5, %s11828_s11 }
0x1eac   :  { %2362 = vrot.lane.b32.xlu1 %v11574_v41, %s11828_s11 }
0x1f1d   :  { %v2365_v46 = vpop.permute.xlu0 %2364 }
0x1f1e   :  { %v2369_v37 = vmul.f32 %v2365_v46, %v2359_v44  ;;  %v2363_v52 = vpop.permute.xlu1 %2362 }
0x1f1f   :  { %v2368_v53 = vmul.f32 %v2363_v52, %v2358_v49 }
0x1f20   :  { %v12320_v60 = vadd.f32 %v2375_v51, %v2369_v37 }
0x1f21   :  { %v12322_v61 = vadd.f32 %v2374_v35, %v2368_v53 }
0x1f22   :  { %v2393_v17 = vrot.slane %v12320_v60, 2 }
0x1f23   :  { %v2392_v23 = vrot.slane %v12322_v61, 3 }
0x1f25   :  { %v2394_v25 = vsel %vm565_vm5, %v2393_v17, %v2392_v23 }
0x1f26   :  { %2395 = vrot.lane.b32.xlu1 %v2394_v25, %s11828_s11 }
0x1f98   :  { %v2396_v26 = vpop.permute.xlu1 %2395 }
0x1f99   :  { %10018 = vmatmul.mubr.msk.f32.vlgmr.msra.gmra.mrb[16].mxu1 %vm56_vm0, %v2396_v26 }
0x1f9a   :  { %10937 = vmatpush3.bf16.msra.mxu1 %v12139_v6  ;;  %10039 = vmatprep.mubr.msk.f32.mxu1 %vm11826_vm4, %v11824_v15 }
0x1f9b   :  { %10938 = vmatprep.subr.bf16.mxu1 %v11825_v19 }
0x1f9e   :  { %10940 = vmatpush3.bf16.msra.mxu1 %v12143_v16 }
0x1f9f   :  { %10947 = vmatprep.subr.bf16.mxu1 %v11825_v19 }
0x206c   :  { %v2465_v21 = vpop.f32.mrb[16].mxu1 }
0x206d   :  { %v2466_v18 = vadd.f32 %v12160_v27, %v2465_v21  ;;  %v10019_v28 = vpop.f32.mrb[17].mxu1  ;;  %v2521_v21 = vrot.slane %v12320_v60, 1 }
0x206f   :  { %v2470_v55 = vrot.slane %v2466_v18, 6  ;;  %v2471_v54 = vrot.slane %v2466_v18, 7 }
0x2071   :  { %2490 = vrot.lane.b32.xlu1 %v2471_v54, %s11827_s2  ;;  %2488 = vrot.lane.b32.xlu0 %v2470_v55, %s11827_s2  ;;  %v2474_v6 = vadd.f32 %v2470_v55, %v12168_v42  ;;  %v2475_v29 = vadd.f32 %v2471_v54, %v12171_v43  ;;  %v2520_v55 = vrot.slane %v12322_v61, 1 }
0x2073   :  { %v9234_v30 = vmul.f32 -1.442695, %v2474_v6  ;;  %v9235_v40 = vmul.f32 -1.442695, %v2475_v29 }
0x2075   :  { %11575 = vpow2.f32 %v9234_v30 }
0x2076   :  { %11577 = vpow2.f32 %v9235_v40 }
0x207f   :  { %v11576_v16 = vpop.eup %11575 }
0x2080   :  { %v11578_v5 = vpop.eup %11577  ;;  %v2482_v41 = vadd.f32 1.0, %v11576_v16 }
0x2081   :  { %v2483_v44 = vadd.f32 1.0, %v11578_v5 }
0x2082   :  { %11579 = vrcp.f32 %v2482_v41 }
0x2083   :  { %11581 = vrcp.f32 %v2483_v44 }
0x208c   :  { %v11580_v45 = vpop.eup %11579 }
0x208d   :  { %v11582_v46 = vpop.eup %11581  ;;  %v2508_v28 = vsub.f32 1.0, %v11580_v45  ;;  %v2524_v30 = vmul.f32 %v11580_v45, %v2520_v55 }
0x208e   :  { %v2509_v26 = vsub.f32 1.0, %v11582_v46  ;;  %v2525_v54 = vmul.f32 %v11582_v46, %v2521_v21 }
0x20e3   :  { %v2491_v49 = vpop.permute.xlu1 %2490  ;;  %v2489_v50 = vpop.permute.xlu0 %2488 }
0x20e4   :  { %v2495_v51 = vmul.f32 %v11582_v46, %v2491_v49  ;;  %v2494_v37 = vmul.f32 %v11580_v45, %v2489_v50 }
0x20e6   :  { %2500 = vrot.lane.b32.xlu1 %v2495_v51, %s11827_s2  ;;  %2498 = vrot.lane.b32.xlu0 %v2494_v37, %s11827_s2 }
0x2158   :  { %v2501_v52 = vpop.permute.xlu1 %2500  ;;  %v2499_v35 = vpop.permute.xlu0 %2498 }
0x2159   :  { %v2505_v53 = vadd.f32 %v2501_v52, %v12171_v43  ;;  %v2504_v17 = vadd.f32 %v2499_v35, %v12168_v42 }
0x215b   :  { %11583 = vtanh.f32 %v2505_v53 }
0x215c   :  { %11585 = vtanh.f32 %v2504_v17 }
0x2165   :  { %v11584_v23 = vpop.eup %11583 }
0x2166   :  { %v11586_v25 = vpop.eup %11585  ;;  %2514 = vrot.lane.b32.xlu1 %v11584_v23, %s11828_s11 }
0x2167   :  { %2512 = vrot.lane.b32.xlu0 %v11586_v25, %s11828_s11 }
0x21d8   :  { %v2515_v18 = vpop.permute.xlu1 %2514 }
0x21d9   :  { %v2519_v6 = vmul.f32 %v2515_v18, %v2509_v26  ;;  %v2513_v29 = vpop.permute.xlu0 %2512 }
0x21da   :  { %v2518_v40 = vmul.f32 %v2513_v29, %v2508_v28 }
0x21db   :  { %v12348_v16 = vadd.f32 %v2525_v54, %v2519_v6 }
0x21dc   :  { %v12350_v5 = vadd.f32 %v2524_v30, %v2518_v40 }
0x21dd   :  { %v2543_v41 = vrot.slane %v12348_v16, 1 }
0x21de   :  { %v2542_v44 = vrot.slane %v12350_v5, 2 }
0x21e0   :  { %v2544_v49 = vsel %vm565_vm5, %v2543_v41, %v2542_v44 }
0x21e1   :  { %2545 = vrot.lane.b32.xlu0 %v2544_v49, %s11828_s11 }
0x2253   :  { %v2546_v50 = vpop.permute.xlu0 %2545 }
0x2254   :  { %10029 = vmatmul.mubr.msk.f32.vlgmr.msra.gmra.mrb[18].mxu0 %vm56_vm0, %v2546_v50  ;;  %v9209_v50 = vld [vmem:[#allocation6 + $0x78] ss:$0 sm:$0xff] }
0x2255   :  { %10050 = vmatprep.mubr.msk.f32.mxu0 %vm11826_vm4, %v11824_v15 }
0x2327   :  { %v2615_v45 = vpop.f32.mrb[18].mxu0 }
0x2328   :  { %v2616_v46 = vadd.f32 %v12160_v27, %v2615_v45  ;;  %v10030_v51 = vpop.f32.mrb[19].mxu0  ;;  %v1571_v45 = vadd.f32 %v9209_v50, %v12221_v7 }
0x232a   :  { %2639 = vrot.lane.b32.xlu0 %v2616_v46, %s11827_s2  ;;  %v2620_v37 = vrot.slane %v2616_v46, 7  ;;  %v2624_v52 = vadd.f32 %v2616_v46, %v12171_v43 }
0x232c   :  { %2637 = vrot.lane.b32.xlu1 %v2620_v37, %s11827_s2  ;;  %v2623_v35 = vadd.f32 %v2620_v37, %v12168_v42  ;;  %v9239_v53 = vmul.f32 -1.442695, %v2624_v52  ;;  %v1575_v37 = vrot.slane %v1571_v45, 1 }
0x232e   :  { %v9238_v17 = vmul.f32 -1.442695, %v2623_v35  ;;  %11587 = vpow2.f32 %v9239_v53 }
0x2330   :  { %11589 = vpow2.f32 %v9238_v17  ;;  %v2669_v17 = vrot.slane %v12350_v5, 1 }
0x2338   :  { %v11588_v23 = vpop.eup %11587 }
0x2339   :  { %v2632_v26 = vadd.f32 1.0, %v11588_v23 }
0x233a   :  { %v11590_v25 = vpop.eup %11589 }
0x233b   :  { %v2631_v21 = vadd.f32 1.0, %v11590_v25  ;;  %11591 = vrcp.f32 %v2632_v26 }
0x233d   :  { %11593 = vrcp.f32 %v2631_v21 }
0x2345   :  { %v11592_v18 = vpop.eup %11591 }
0x2346   :  { %v2658_v35 = vsub.f32 1.0, %v11592_v18 }
0x2347   :  { %v11594_v54 = vpop.eup %11593 }
0x2348   :  { %v2657_v53 = vsub.f32 1.0, %v11594_v54  ;;  %v2672_v26 = vmul.f32 %v11594_v54, %v2669_v17 }
0x239c   :  { %v2640_v28 = vpop.permute.xlu0 %2639 }
0x239d   :  { %v2644_v55 = vmul.f32 %v11592_v18, %v2640_v28  ;;  %v2673_v28 = vmul.f32 %v11592_v18, %v2543_v41  ;;  %v1579_v18 = vadd.f32 %v1575_v37, %v11944_v38 }
0x239e   :  { %v2638_v6 = vpop.permute.xlu1 %2637 }
0x239f   :  { %v2643_v29 = vmul.f32 %v11594_v54, %v2638_v6  ;;  %2649 = vrot.lane.b32.xlu0 %v2644_v55, %s11827_s2 }
0x23a1   :  { %2647 = vrot.lane.b32.xlu1 %v2643_v29, %s11827_s2 }
0x2411   :  { %v2650_v30 = vpop.permute.xlu0 %2649 }
0x2412   :  { %v2654_v40 = vadd.f32 %v2650_v30, %v12171_v43  ;;  %v1576_v30 = vrot.slane %v1571_v45, 2 }
0x2413   :  { %v2648_v44 = vpop.permute.xlu1 %2647 }
0x2414   :  { %11595 = vtanh.f32 %v2654_v40  ;;  %v2653_v49 = vadd.f32 %v2648_v44, %v12168_v42  ;;  %v1580_v41 = vadd.f32 %v1576_v30, %v11941_v36  ;;  %v9211_v44 = vmul.f32 -1.442695, %v1579_v18 }
0x2416   :  { %11597 = vtanh.f32 %v2653_v49  ;;  %v9212_v54 = vmul.f32 -1.442695, %v1580_v41 }
0x2418   :  { %11599 = vpow2.f32 %v9212_v54 }
0x2419   :  { %11601 = vpow2.f32 %v9211_v44 }
0x241e   :  { %v11596_v46 = vpop.eup %11595 }
0x241f   :  { %2663 = vrot.lane.b32.xlu0 %v11596_v46, %s11828_s11 }
0x2420   :  { %v11598_v51 = vpop.eup %11597 }
0x2421   :  { %2661 = vrot.lane.b32.xlu1 %v11598_v51, %s11828_s11 }
0x2422   :  { %v11600_v49 = vpop.eup %11599 }
0x2423   :  { %1593 = vrot.lane.b32.xlu0 %v1575_v37, %s11827_s2  ;;  %v11602_v50 = vpop.eup %11601  ;;  %v1588_v46 = vadd.f32 1.0, %v11600_v49 }
0x2424   :  { %v1587_v45 = vadd.f32 1.0, %v11602_v50 }
0x2425   :  { %11603 = vrcp.f32 %v1588_v46 }
0x2426   :  { %11605 = vrcp.f32 %v1587_v45 }
0x2491   :  { %v2664_v52 = vpop.permute.xlu0 %2663 }
0x2492   :  { %v2668_v25 = vmul.f32 %v2664_v52, %v2658_v35 }
0x2493   :  { %v2662_v23 = vpop.permute.xlu1 %2661 }
0x2494   :  { %v2667_v21 = vmul.f32 %v2662_v23, %v2657_v53  ;;  %v12375_v55 = vadd.f32 %v2673_v28, %v2668_v25  ;;  %v11604_v23 = vpop.eup %11603 }
0x2495   :  { %v1594_v37 = vpop.permute.xlu0 %1593 }
0x2496   :  { %v12373_v7 = vadd.f32 %v2672_v26, %v2667_v21  ;;  %v12392_v26 = vpop.eup %11605 }
0x2497   :  { %v1599_v21 = vmul.f32 %v12392_v26, %v1594_v37 }
0x2498   :  { %v2690_v6 = vrot.slane %v12373_v7, 1 }
0x249a   :  { %v2691_v29 = vsel %vm565_vm5, %v12375_v55, %v2690_v6 }
0x249b   :  { %2692 = vrot.lane.b32.xlu1 %v2691_v29, %s11828_s11 }
0x249f   :  { %1595 = vrot.lane.b32.xlu1 %v1576_v30, %s11827_s2 }
0x250d   :  { %v2693_v40 = vpop.permute.xlu1 %2692 }
0x250e   :  { %10040 = vmatmul.mubr.msk.f32.vlgmr.msra.gmra.mrb[18].mxu1 %vm56_vm0, %v2693_v40 }
0x250f   :  { %10061 = vmatprep.mubr.msk.f32.mxu1 %vm11826_vm4, %v11824_v15 }
0x2511   :  { %v1596_v53 = vpop.permute.xlu1 %1595 }
0x2512   :  { %v1600_v25 = vmul.f32 %v11604_v23, %v1596_v53 }
0x25e1   :  { %v2762_v51 = vpop.f32.mrb[18].mxu1 }
0x25e2   :  { %v2763_v52 = vadd.f32 %v12160_v27, %v2762_v51  ;;  %v10041_v35 = vpop.f32.mrb[19].mxu1 }
0x25e4   :  { %v2767_v17 = vrot.slane %v2763_v52, 1  ;;  %2784 = vrot.lane.b32.xlu1 %v2763_v52, %s11827_s2  ;;  %v2770_v27 = vadd.f32 %v2763_v52, %v12168_v42 }
0x25e6   :  { %2786 = vrot.lane.b32.xlu0 %v2767_v17, %s11827_s2  ;;  %v2771_v28 = vadd.f32 %v2767_v17, %v12171_v43  ;;  %v9242_v29 = vmul.f32 -1.442695, %v2770_v27 }
0x25e8   :  { %1605 = vrot.lane.b32.xlu1 %v1600_v25, %s11827_s2  ;;  %v9243_v30 = vmul.f32 -1.442695, %v2771_v28  ;;  %11607 = vpow2.f32 %v9242_v29  ;;  %v2826_v29 = vld [vmem:[#allocation6 + $0xc0] sm:$0xff] }
0x25ea   :  { %1603 = vrot.lane.b32.xlu0 %v1599_v21, %s11827_s2  ;;  %11609 = vpow2.f32 %v9243_v30  ;;  %v2827_v30 = vld [vmem:[#allocation6 + $0xc8] sm:$0xff] }
0x25f2   :  { %v11608_v40 = vpop.eup %11607 }
0x25f3   :  { %v2778_v18 = vadd.f32 1.0, %v11608_v40  ;;  %v10948_v40 = vpack.c.bf16 %v2827_v30, %v2826_v29  ;;  %v2832_v30 = vld [vmem:[#allocation6 + $0xf0] sm:$0xff] }
0x25f4   :  { %v11610_v41 = vpop.eup %11609 }
0x25f5   :  { %v2779_v54 = vadd.f32 1.0, %v11610_v41  ;;  %11611 = vrcp.f32 %v2778_v18  ;;  %10949 = vmatpush3.bf16.msra.mxu1 %v10948_v40  ;;  %v2829_v41 = vld [vmem:[#allocation6 + $0xd8] sm:$0xff] }
0x25f6   :  { %10950 = vmatprep.subr.bf16.mxu1 %v11825_v19  ;;  %v2833_v40 = vld [vmem:[#allocation6 + $0xf8] sm:$0xff] }
0x25f7   :  { %11613 = vrcp.f32 %v2779_v54 }
0x25ff   :  { %v12399_v44 = vpop.eup %11611 }
0x2601   :  { %v12402_v46 = vpop.eup %11613 }
0x2656   :  { %v2785_v49 = vpop.permute.xlu1 %2784 }
0x2657   :  { %v2790_v50 = vmul.f32 %v12399_v44, %v2785_v49  ;;  %v1626_v49 = vrot.slane %v12191_v2, 7 }
0x2658   :  { %v2787_v45 = vpop.permute.xlu0 %2786 }
0x2659   :  { %v2791_v51 = vmul.f32 %v12402_v46, %v2787_v45  ;;  %2794 = vrot.lane.b32.xlu1 %v2790_v50, %s11827_s2 }
0x265a   :  { %v1606_v52 = vpop.permute.xlu1 %1605 }
0x265b   :  { %v1610_v35 = vadd.f32 %v1606_v52, %v11941_v36  ;;  %2796 = vrot.lane.b32.xlu0 %v2791_v51, %s11827_s2  ;;  %v1613_v52 = vsub.f32 1.0, %v12392_v26 }
0x265c   :  { %v1604_v53 = vpop.permute.xlu0 %1603 }
0x265d   :  { %11615 = vtanh.f32 %v1610_v35  ;;  %v1609_v17 = vadd.f32 %v1604_v53, %v11944_v38  ;;  %v2828_v38 = vld [vmem:[#allocation6 + $0xd0] sm:$0xff]  ;;  %v1625_v35 = vrot.slane %v12193_v8, 7 }
0x265e   :  { %v10951_v18 = vpack.c.bf16 %v2829_v41, %v2828_v38  ;;  %v10945_v38 = vpack.c.bf16 %v2833_v40, %v2832_v30  ;;  %v9246_v40 = vld [vmem:[#allocation6 + $0x100] ss:$0 sm:$0xff] }
0x265f   :  { %11617 = vtanh.f32 %v1609_v17 }
0x2660   :  { %10952 = vmatpush3.bf16.msra.mxu1 %v10951_v18 }
0x2661   :  { %10969 = vmatprep.subr.bf16.mxu1 %v11825_v19 }
0x2667   :  { %v11616_v37 = vpop.eup %11615 }
0x2668   :  { %1619 = vrot.lane.b32.xlu1 %v11616_v37, %s11828_s11  ;;  %v1629_v37 = vmul.f32 %v12392_v26, %v1625_v35  ;;  %v2831_v26 = vld [vmem:[#allocation6 + $0xe8] sm:$0xff]  ;;  %v3005_v35 = vld [vmem:[#allocation6 + $0x160] sm:$0xff] }
0x2669   :  { %v11618_v25 = vpop.eup %11617 }
0x266a   :  { %1617 = vrot.lane.b32.xlu0 %v11618_v25, %s11828_s11 }
0x26cb   :  { %v2795_v21 = vpop.permute.xlu1 %2794 }
0x26cc   :  { %v2800_v27 = vadd.f32 %v2795_v21, %v12168_v42  ;;  %v1614_v42 = vsub.f32 1.0, %v11604_v23 }
0x26cd   :  { %v2797_v28 = vpop.permute.xlu0 %2796 }
0x26ce   :  { %11619 = vtanh.f32 %v2800_v27  ;;  %v2801_v36 = vadd.f32 %v2797_v28, %v12171_v43  ;;  %v1630_v43 = vmul.f32 %v11604_v23, %v1626_v49  ;;  %v2830_v23 = vld [vmem:[#allocation6 + $0xe0] sm:$0xff] }
0x26d0   :  { %11621 = vtanh.f32 %v2801_v36  ;;  %v10942_v36 = vpack.c.bf16 %v2831_v26, %v2830_v23  ;;  %v3106_v26 = vld [vmem:[#allocation6 + $0x120] sm:$0xff] }
0x26d2   :  { %10943 = vmatpush3.bf16.msra.mxu0 %v10942_v36 }
0x26d3   :  { %10944 = vmatprep.subr.bf16.mxu0 %v11825_v19 }
0x26d6   :  { %10946 = vmatpush3.bf16.msra.mxu0 %v10945_v38 }
0x26d8   :  { %v11620_v54 = vpop.eup %11619 }
0x26d9   :  { %2808 = vrot.lane.b32.xlu1 %v11620_v54, %s11828_s11 }
0x26da   :  { %v11622_v50 = vpop.eup %11621  ;;  %v1620_v45 = vpop.permute.xlu1 %1619 }
0x26db   :  { %v1624_v51 = vmul.f32 %v1620_v45, %v1614_v42  ;;  %2810 = vrot.lane.b32.xlu0 %v11622_v50, %s11828_s11  ;;  %v2819_v42 = vmul.f32 %v12399_v44, %v2690_v6 }
0x26dc   :  { %v1618_v53 = vpop.permute.xlu0 %1617 }
0x26dd   :  { %v1632_v17 = vadd.f32 %v1630_v43, %v1624_v51  ;;  %v1623_v25 = vmul.f32 %v1618_v53, %v1613_v52  ;;  %v2999_v51 = vld [vmem:[#allocation6 + $0x130] sm:$0xff] }
0x26df   :  { %v1631_v21 = vadd.f32 %v1629_v37, %v1623_v25  ;;  %v2913_v27 = vrot.slane %v1632_v17, 6 }
0x26e1   :  { %v2912_v28 = vrot.slane %v1631_v21, 7 }
0x26e3   :  { %v2914_v29 = vsel %vm565_vm5, %v2913_v27, %v2912_v28  ;;  %v3104_v28 = vld [vmem:[#allocation6 + $0x110] sm:$0xff] }
0x26e4   :  { %2915 = vrot.lane.b32.xlu1 %v2914_v29, %s11828_s11  ;;  %v3105_v29 = vld [vmem:[#allocation6 + $0x118] sm:$0xff] }
0x26e8   :  { %700 = vrot.lane.b32.xlu1 %v12023_v11, %s11828_s11 }
0x26ec   :  { %1011 = vrot.lane.b32.xlu1 %v12081_v63, %s11828_s11  ;;  %v2805_v63 = vsub.f32 1.0, %v12402_v46 }
0x26f0   :  { %1323 = vrot.lane.b32.xlu1 %v12133_v57, %s11828_s11  ;;  %v2816_v57 = vrot.slane %v12375_v55, 1 }
0x26f2   :  { %v2820_v54 = vmul.f32 %v12402_v46, %v2816_v57  ;;  %v2998_v46 = vld [vmem:[#allocation6 + $0x128] sm:$0xff] }
0x26f3   :  { %v10953_v52 = vpack.c.bf16 %v2999_v51, %v2998_v46 }
0x26f4   :  { %1635 = vrot.lane.b32.xlu1 %v1631_v21, %s11828_s11 }
0x26f5   :  { %10954 = vmatprep.subr.bf16.mxu0 %v10953_v52 }
0x26f8   :  { %702 = vrot.lane.b32.xlu1 %v12025_v14, %s11828_s11  ;;  %v2804_v14 = vsub.f32 1.0, %v12399_v44 }
0x26fc   :  { %1013 = vrot.lane.b32.xlu1 %v12079_v62, %s11828_s11 }
0x2700   :  { %1325 = vrot.lane.b32.xlu1 %v12131_v56, %s11828_s11 }
0x2704   :  { %1637 = vrot.lane.b32.xlu1 %v1632_v17, %s11828_s11 }
0x274b   :  { %v2809_v11 = vpop.permute.xlu1 %2808 }
0x274c   :  { %v2814_v18 = vmul.f32 %v2809_v11, %v2804_v14 }
0x274d   :  { %v2811_v41 = vpop.permute.xlu0 %2810 }
0x274e   :  { %v2815_v62 = vmul.f32 %v2811_v41, %v2805_v63  ;;  %v12447_v56 = vadd.f32 %v2819_v42, %v2814_v18  ;;  %v3217_v18 = vld [vmem:[#allocation6 + $0x170] sm:$0xff]  ;;  %v3219_v42 = vld [vmem:[#allocation6 + $0x180] sm:$0xff] }
0x2750   :  { %v12445_v49 = vadd.f32 %v2820_v54, %v2815_v62  ;;  %v3218_v54 = vld [vmem:[#allocation6 + $0x178] sm:$0xff] }
0x2751   :  { %v10975_v62 = vpack.c.bf16 %v3218_v54, %v3217_v18 }
0x2752   :  { %v2836_v50 = vrot.slane %v12445_v49, 7 }
0x2754   :  { %v2837_v45 = vsel %vm565_vm5, %v2836_v50, %v12447_v56  ;;  %v11829_v50 = vmov 1966171168  }
0x2755   :  { %2838 = vrot.lane.b32.xlu0 %v2837_v45, %s11828_s11  ;;  %v3182_v45 = vunpack.c.l.s4 %v11829_v50 }
0x2756   :  { %v2916_v43 = vpop.permute.xlu1 %2915 }
0x2757   :  { %10062 = vmatmul.mubr.msk.f32.vlgmr.msra.gmra.mrb[20].mxu1 %vm56_vm0, %v2916_v43  ;;  %v3183_v43 = vunpack.c.0.s8 %v3182_v45 }
0x2758   :  { %10091 = vmatprep.mubr.msk.f32.mxu1 %vm11826_vm4, %v11824_v15 }
0x2759   :  { %546 = vrot.lane.b32.xlu0 %v11962_v20, %s11828_s11 }
0x275a   :  { %v701_v6 = vpop.permute.xlu1 %700 }
0x275b   :  { %707 = vst.msk [vmem:[#allocation2] sm:$0x2] %vm706_vm11, %v701_v6  ;;  %v3185_v6 = vshrl.u32 %v36_v12, 7 }
0x275c   :  { %2677 = vst.msk [vmem:[#allocation2] sm:$0x2] %vm2676_vm12, %v12373_v7  ;;  %v3003_v7 = vld [vmem:[#allocation6 + $0x150] sm:$0xff] }
0x275d   :  { %855 = vrot.lane.b32.xlu0 %v12053_v4, %s11828_s11 }
0x275e   :  { %v1012_v44 = vpop.permute.xlu1 %1011 }
0x275f   :  { %1018 = vst.msk [vmem:[#allocation2] sm:$0x8] %vm1017_vm13, %v1012_v44  ;;  %v12539_v44 = vsub.s32 %v3183_v43, %v3185_v6 }
0x2760   :  { %2379 = vst.msk [vmem:[#allocation2] sm:$0x8] %vm2378_vm14, %v12322_v61 }
0x2761   :  { %1167 = vrot.lane.b32.xlu0 %v12109_v59, %s11828_s11 }
0x2762   :  { %v1324_v20 = vpop.permute.xlu1 %1323 }
0x2763   :  { %1330 = vst.msk [vmem:[#allocation2] sm:$0x20] %vm1329_vm15, %v1324_v20 }
0x2764   :  { %2079 = vst.msk [vmem:[#allocation2] sm:$0x20] %vm2078_vm1, %v12266_v9  ;;  %v3001_v9 = vld [vmem:[#allocation6 + $0x140] sm:$0xff] }
0x2765   :  { %1479 = vrot.lane.b32.xlu0 %v12193_v8, %s11828_s11 }
0x2766   :  { %v1636_v4 = vpop.permute.xlu1 %1635 }
0x2767   :  { %1642 = vst.msk [vmem:[#allocation2] sm:$0x80] %vm1641_vm2, %v1636_v4  ;;  %v9247_v4 = vld [vmem:[#allocation6 + $0x168] ss:$0 sm:$0xff] }
0x2768   :  { %1779 = vst.msk [vmem:[#allocation2] sm:$0x80] %vm1778_vm6, %v12201_v22 }
0x2769   :  { %548 = vrot.lane.b32.xlu0 %v11959_v10, %s11828_s11 }
0x276a   :  { %v703_v59 = vpop.permute.xlu1 %702 }
0x276b   :  { %708 = vst.msk [vmem:[#allocation2 + $0x8] sm:$0x2] %vm706_vm11, %v703_v59  ;;  %vm2528_vm11 = vcmask 518402  }
0x276c   :  { %2678 = vst.msk [vmem:[#allocation2 + $0x8] sm:$0x2] %vm2676_vm12, %v12375_v55  ;;  %v3004_v55 = vld [vmem:[#allocation6 + $0x158] sm:$0xff]  ;;  %vm1173_vm12 = vcmask 258052  }
0x276d   :  { %857 = vrot.lane.b32.xlu0 %v12051_v3, %s11828_s11  ;;  %v3000_v3 = vld [vmem:[#allocation6 + $0x138] sm:$0xff] }
0x276e   :  { %v1014_v8 = vpop.permute.xlu1 %1013 }
0x276f   :  { %1019 = vst.msk [vmem:[#allocation2 + $0x8] sm:$0x8] %vm1017_vm13, %v1014_v8  ;;  %vm2228_vm13 = vcmask 520452  }
0x2770   :  { %2380 = vst.msk [vmem:[#allocation2 + $0x8] sm:$0x8] %vm2378_vm14, %v12320_v60  ;;  %v10957_v60 = vpack.c.bf16 %v3001_v9, %v3000_v3  ;;  %vm1485_vm14 = vcmask 260102  }
0x2771   :  { %1169 = vrot.lane.b32.xlu0 %v12107_v58, %s11828_s11  ;;  %v3002_v58 = vld [vmem:[#allocation6 + $0x148] sm:$0xff] }
0x2772   :  { %v1326_v22 = vpop.permute.xlu1 %1325 }
0x2773   :  { %1331 = vst.msk [vmem:[#allocation2 + $0x8] sm:$0x20] %vm1329_vm15, %v1326_v22  ;;  %vm1928_vm15 = vcmask 522502  }
0x2774   :  { %2080 = vst.msk [vmem:[#allocation2 + $0x8] sm:$0x20] %vm2078_vm1, %v12264_v1  ;;  %v10961_v1 = vpack.c.bf16 %v3003_v7, %v3002_v58  ;;  %vm3011_vm1 = vcmask 523264   ;;  %v3367_v58 = vld [vmem:[#allocation6 + $0x190] sm:$0xff]  ;;  %v3368_v7 = vld [vmem:[#allocation6 + $0x198] sm:$0xff] }
0x2775   :  { %1481 = vrot.lane.b32.xlu0 %v12191_v2, %s11828_s11 }
0x2776   :  { %v1638_v10 = vpop.permute.xlu1 %1637 }
0x2777   :  { %1643 = vst.msk [vmem:[#allocation2 + $0x8] sm:$0x80] %vm1641_vm2, %v1638_v10  ;;  %vm3302_vm2 = vcmask 7168  }
0x2778   :  { %1780 = vst.msk [vmem:[#allocation2 + $0x8] sm:$0x80] %vm1778_vm6, %v12199_v31  ;;  %v10965_v31 = vpack.c.bf16 %v3005_v35, %v3004_v55  ;;  %v3531_v55 = vld [vmem:[#allocation6 + $0x1e0] sm:$0xff]  ;;  %v3532_v35 = vld [vmem:[#allocation6 + $0x1e8] sm:$0xff]  ;;  %vm3093_vm6 = vcmask 254976  }
0x2779   :  { %3094 = vst.msk [vmem:[#allocation9] sm:$0x3] %vm3093_vm6, %v11824_v15 }
0x27c7   :  { %v2839_v61 = vpop.permute.xlu0 %2838 }
0x27c8   :  { %10051 = vmatmul.mubr.msk.f32.vlgmr.msra.gmra.mrb[20].mxu0 %vm56_vm0, %v2839_v61 }
0x27c9   :  { %10956 = vmatpush3.bf16.msra.mxu0 %v10953_v52  ;;  %v12542_v52 = vsub.s32 0, %v3185_v6 }
0x27ca   :  { %10958 = vmatprep.subr.bf16.mxu0 %v10957_v60 }
0x27cb   :  { %v547_v2 = vpop.permute.xlu0 %546 }
0x27cc   :  { %553 = vst.msk [vmem:[#allocation2] sm:$0x1] %vm552_vm7, %v547_v2  ;;  %v10996_v2 = vpack.c.bf16 %v3368_v7, %v3367_v58 }
0x27cd   :  { %2824 = vst.msk [vmem:[#allocation2] sm:$0x1] %vm2823_vm8, %v12447_v56  ;;  %10960 = vmatpush3.bf16.msra.mxu0 %v10957_v60 }
0x27ce   :  { %10962 = vmatprep.subr.bf16.mxu0 %v10961_v1 }
0x27cf   :  { %v856_v53 = vpop.permute.xlu0 %855 }
0x27d0   :  { %862 = vst.msk [vmem:[#allocation2] sm:$0x4] %vm861_vm10, %v856_v53  ;;  %v10999_v53 = vpack.c.bf16 %v3532_v35, %v3531_v55  ;;  %v9256_v55 = vld [vmem:[#allocation6 + $0x208] ss:$0 sm:$0xff] }
0x27d1   :  { %2529 = vst.msk [vmem:[#allocation2] sm:$0x4] %vm2528_vm11, %v12350_v5  ;;  %10964 = vmatpush3.bf16.msra.mxu0 %v10961_v1 }
0x27d2   :  { %10966 = vmatprep.subr.bf16.mxu0 %v10965_v31 }
0x27d3   :  { %v1168_v17 = vpop.permute.xlu0 %1167 }
0x27d4   :  { %1174 = vst.msk [vmem:[#allocation2] sm:$0x10] %vm1173_vm12, %v1168_v17  ;;  %v3533_v17 = vld [vmem:[#allocation6 + $0x1f0] sm:$0xff] }
0x27d5   :  { %2229 = vst.msk [vmem:[#allocation2] sm:$0x10] %vm2228_vm13, %v12294_v34  ;;  %10968 = vmatpush3.bf16.msra.mxu0 %v10965_v31 }
0x27d6   :  { %10983 = vmatprep.subr.bf16.mxu0 %v11825_v19 }
0x27d7   :  { %v1480_v37 = vpop.permute.xlu0 %1479 }
0x27d8   :  { %1486 = vst.msk [vmem:[#allocation2] sm:$0x40] %vm1485_vm14, %v1480_v37  ;;  %v3534_v37 = vld [vmem:[#allocation6 + $0x1f8] sm:$0xff] }
0x27d9   :  { %1929 = vst.msk [vmem:[#allocation2] sm:$0x40] %vm1928_vm15, %v12238_v48 }
0x27db   :  { %v549_v5 = vpop.permute.xlu0 %548 }
0x27dc   :  { %554 = vst.msk [vmem:[#allocation2 + $0x8] sm:$0x1] %vm552_vm7, %v549_v5  ;;  %v11002_v5 = vpack.c.bf16 %v3534_v37, %v3533_v17  ;;  %v3643_v17 = vld [vmem:[#allocation6 + $0x230] sm:$0xff] }
0x27dd   :  { %2825 = vst.msk [vmem:[#allocation2 + $0x8] sm:$0x1] %vm2823_vm8, %v12445_v49  ;;  %v3220_v49 = vld [vmem:[#allocation6 + $0x188] sm:$0xff] }
0x27de   :  { %v10979_v56 = vpack.c.bf16 %v3220_v49, %v3219_v42 }
0x27df   :  { %v858_v25 = vpop.permute.xlu0 %857 }
0x27e0   :  { %863 = vst.msk [vmem:[#allocation2 + $0x8] sm:$0x4] %vm861_vm10, %v858_v25  ;;  %v12514_v34 = vld [vmem:[#allocation2] sm:$0xff]  ;;  %vm11832_vm10 = vmmov (!%p9264_p13), 0  }
0x27e1   :  { %2530 = vst.msk [vmem:[#allocation2 + $0x8] sm:$0x4] %vm2528_vm11, %v12348_v16  ;;  %10080 = vmatprep.mubr.msk.f32.mxu0 %vm3011_vm1, %v12514_v34  ;;  %v3103_v16 = vld [vmem:[#allocation6 + $0x108] sm:$0xff] }
0x27e2   :  { %v10970_v23 = vpack.c.bf16 %v3104_v28, %v3103_v16 }
0x27e3   :  { %v1170_v21 = vpop.permute.xlu0 %1169 }
0x27e4   :  { %1175 = vst.msk [vmem:[#allocation2 + $0x8] sm:$0x10] %vm1173_vm12, %v1170_v21  ;;  %10971 = vmatpush3.bf16.msra.mxu1 %v10970_v23 }
0x27e5   :  { %2230 = vst.msk [vmem:[#allocation2 + $0x8] sm:$0x10] %vm2228_vm13, %v12292_v33  ;;  %v10973_v33 = vpack.c.bf16 %v3106_v26, %v3105_v29  ;;  %10972 = vmatprep.subr.bf16.mxu1 %v11825_v19 }
0x27e7   :  { %v1482_v48 = vpop.permute.xlu0 %1481 }
0x27e8   :  { %1487 = vst.msk [vmem:[#allocation2 + $0x8] sm:$0x40] %vm1485_vm14, %v1482_v48  ;;  %10974 = vmatpush3.bf16.msra.mxu1 %v10973_v33 }
0x27e9   :  { %1930 = vst.msk [vmem:[#allocation2 + $0x8] sm:$0x40] %vm1928_vm15, %v12236_v47  ;;  %10976 = vmatprep.subr.bf16.mxu1 %v10975_v62 }
0x27f0   :  { %v12526_v27 = vld [vmem:[#allocation2 + $0x8] sm:$0xff] }
0x27f1   :  { %10081 = vmatmul.mubr.msk.f32.vlgmr.msra.gmra.mrb[22].mxu0 %vm3011_vm1, %v12526_v27 }
0x27f2   :  { %10121 = vmatprep.mubr.msk.f32.mxu0 %vm11826_vm4, %v11824_v15 }
0x282a   :  { %v2985_v30 = vpop.f32.mrb[20].mxu1 }
0x282b   :  { %v10063_v47 = vpop.f32.mrb[21].mxu1 }
0x289b   :  { %v2908_v36 = vpop.f32.mrb[20].mxu0 }
0x289c   :  { %v2986_v38 = vadd.f32 %v2985_v30, %v2908_v36  ;;  %v10052_v11 = vpop.f32.mrb[21].mxu0 }
0x289e   :  { %v2994_v14 = vadd.f32 %v9246_v40, %v2986_v38 }
0x28a0   :  { %11623 = vtanh.f32 %v2994_v14 }
0x28aa   :  { %v12533_v63 = vpop.eup %11623 }
0x28ab   :  { %10092 = vmatmul.mubr.msk.f32.vlgmr.msra.gmra.mrb[22].mxu1 %vm56_vm0, %v12533_v63 }
0x28ac   :  { %10978 = vmatpush3.bf16.msra.mxu1 %v10975_v62 }
0x28ad   :  { %10980 = vmatprep.subr.bf16.mxu1 %v10979_v56 }
0x28b0   :  { %10982 = vmatpush3.bf16.msra.mxu1 %v10979_v56 }
0x28b1   :  { %10995 = vmatprep.subr.bf16.mxu1 %v11825_v19 }
0x28c4   :  { %v10082_v57 = vpop.f32.mrb[22].mxu0 }
0x28c5   :  { %v3084_v41 = vpop.f32.mrb[23].mxu0  ;;  %v12549_v9 = vadd.f32 %v10082_v57, %v9247_v4 }
0x28c6   :  { %v12545_v22 = vadd.f32 %v9247_v4, %v3084_v41 }
0x297e   :  { %v3176_v46 = vpop.f32.mrb[22].mxu1 }
0x297f   :  { %v3187_v51 = vrot.slane %v3176_v46, %v12539_v44  ;;  %v10093_v20 = vpop.f32.mrb[23].mxu1 }
0x2981   :  { %v3188_v59 = vcombine.high %v3187_v51, %v3187_v51  ;;  %v3195_v8 = vrot.slane %v3187_v51, %v12539_v44 }
0x2983   :  { %v3202_v10 = vrot.slane %v3188_v59, %v12539_v44  ;;  %v3206_v3 = vrot.slane %v3195_v8, %v12542_v52 }
0x2985   :  { %v3210_v12 = vrot.slane %v3202_v10, %v12542_v52  ;;  %v3213_v60 = vadd.f32 %v3206_v3, %v12545_v22 }
0x2987   :  { %v3214_v61 = vadd.f32 %v3210_v12, %v12549_v9  ;;  %11625 = vtanh.f32 %v3213_v60 }
0x2989   :  { %11627 = vtanh.f32 %v3214_v61 }
0x2991   :  { %v11626_v1 = vpop.eup %11625 }
0x2992   :  { %10102 = vmatprep.mubr.msk.f32.mxu1 %vm56_vm0, %v11626_v1 }
0x2993   :  { %v11628_v31 = vpop.eup %11627 }
0x2994   :  { %10103 = vmatmul.mubr.msk.f32.vlgmr.msra.gmra.mrb[24].mxu1 %vm56_vm0, %v11628_v31  ;;  %v3369_v31 = vld [vmem:[#allocation6 + $0x1a0] sm:$0xff] }
0x2995   :  { %10997 = vmatpush3.bf16.msra.mxu1 %v10996_v2  ;;  %10128 = vmatprep.mubr.msk.f32.mxu1 %vm11826_vm4, %v11824_v15 }
0x2996   :  { %10998 = vmatprep.subr.bf16.mxu1 %v11825_v19 }
0x2998   :  { %10129 = vmatmul.mubr.msk.f32.vlgmr.msra.gmra.mrb[26].mxu1 %vm244_vm3, %v12007_v39 }
0x2999   :  { %11000 = vmatpush3.bf16.msra.mxu1 %v10999_v53  ;;  %10139 = vmatprep.mubr.msk.f32.mxu1 %vm11826_vm4, %v11824_v15  ;;  %v3370_v53 = vld [vmem:[#allocation6 + $0x1a8] sm:$0xff] }
0x299a   :  { %11001 = vmatprep.subr.bf16.mxu1 %v11825_v19  ;;  %v10984_v37 = vpack.c.bf16 %v3370_v53, %v3369_v31 }
0x299c   :  { %10985 = vmatpush3.bf16.msra.mxu0 %v10984_v37 }
0x299d   :  { %11003 = vmatpush3.bf16.msra.mxu1 %v11002_v5  ;;  %v3644_v5 = vld [vmem:[#allocation6 + $0x238] sm:$0xff]  ;;  %10986 = vmatprep.subr.bf16.mxu0 %v11825_v19 }
0x299e   :  { %11004 = vmatprep.subr.bf16.mxu1 %v11825_v19 }
0x29a0   :  { %10140 = vmatmul.mubr.msk.f32.vlgmr.msra.gmra.mrb[28].mxu1 %vm56_vm0, %v12533_v63 }
0x29a1   :  { %10158 = vmatprep.mubr.msk.f32.mxu1 %vm11826_vm4, %v11824_v15 }
0x2a67   :  { %v10104_v25 = vpop.f32.mrb[24].mxu1 }
0x2a68   :  { %v3310_v21 = vsel %vm3302_vm2, %v10104_v25, -inf  ;;  %v3293_v48 = vpop.f32.mrb[25].mxu1 }
0x2a69   :  { %v3311_v16 = vrot.slane %v3310_v21, 4  ;;  %v3303_v28 = vsel %vm3302_vm2, %v3293_v48, -inf }
0x2a6a   :  { %v3304_v29 = vrot.slane %v3303_v28, 4 }
0x2a6b   :  { %v3312_v23 = vmax.f32 %v3310_v21, %v3311_v16  ;;  %v12571_v26 = vpop.f32.mrb[26].mxu1  ;;  %v3372_v16 = vld [vmem:[#allocation6 + $0x1b8] sm:$0xff] }
0x2a6c   :  { %v3305_v33 = vmax.f32 %v3303_v28, %v3304_v29  ;;  %v10130_v30 = vpop.f32.mrb[27].mxu1  ;;  %v3645_v28 = vld [vmem:[#allocation6 + $0x240] sm:$0xff] }
0x2a6d   :  { %v3313_v47 = vrot.slane %v3312_v23, 2  ;;  %v3373_v30 = vld [vmem:[#allocation6 + $0x1c0] sm:$0xff] }
0x2a6e   :  { %v3306_v36 = vrot.slane %v3305_v33, 2 }
0x2a6f   :  { %v3314_v40 = vmax.f32 %v3312_v23, %v3313_v47  ;;  %v3646_v23 = vld [vmem:[#allocation6 + $0x248] sm:$0xff] }
0x2a70   :  { %v3307_v38 = vmax.f32 %v3305_v33, %v3306_v36  ;;  %v11008_v33 = vpack.c.bf16 %v3646_v23, %v3645_v28  ;;  %v3374_v47 = vld [vmem:[#allocation6 + $0x1c8] sm:$0xff]  ;;  %v3647_v36 = vld [vmem:[#allocation6 + $0x250] sm:$0xff] }
0x2a71   :  { %v3315_v11 = vrot.slane %v3314_v40, 1  ;;  %v3639_v23 = vld [vmem:[#allocation6 + $0x210] sm:$0xff] }
0x2a72   :  { %v3308_v14 = vrot.slane %v3307_v38, 1 }
0x2a73   :  { %v3316_v57 = vmax.f32 %v3314_v40, %v3315_v11  ;;  %v3606_v41 = vpop.f32.mrb[28].mxu1  ;;  %v10990_v40 = vpack.c.bf16 %v3374_v47, %v3373_v30  ;;  %v3642_v47 = vld [vmem:[#allocation6 + $0x228] sm:$0xff] }
0x2a74   :  { %v3309_v18 = vmax.f32 %v3307_v38, %v3308_v14  ;;  %v10141_v54 = vpop.f32.mrb[29].mxu1  ;;  %v12575_v21 = vadd.f32 %v9256_v55, %v3606_v41  ;;  %v3648_v38 = vld [vmem:[#allocation6 + $0x258] sm:$0xff]  ;;  %v3375_v14 = vld [vmem:[#allocation6 + $0x1d0] sm:$0xff]  ;;  %v3649_v41 = vld [vmem:[#allocation6 + $0x260] sm:$0xff] }
0x2a75   :  { %v3318_v62 = vsub.f32 %v10104_v25, %v3316_v57  ;;  %v11005_v25 = vpack.c.bf16 %v3644_v5, %v3643_v17  ;;  %v11011_v11 = vpack.c.bf16 %v3648_v38, %v3647_v36  ;;  %v3376_v57 = vld [vmem:[#allocation6 + $0x1d8] sm:$0xff]  ;;  %v3650_v54 = vld [vmem:[#allocation6 + $0x268] sm:$0xff] }
0x2a76   :  { %v3317_v42 = vsub.f32 %v3293_v48, %v3309_v18  ;;  %v3371_v48 = vld [vmem:[#allocation6 + $0x1b0] sm:$0xff]  ;;  %v10993_v18 = vpack.c.bf16 %v3376_v57, %v3375_v14 }
0x2a77   :  { %v3321_v49 = vmul.f32 1.442695, %v3318_v62  ;;  %11006 = vmatpush3.bf16.msra.mxu1 %v11005_v25  ;;  %v10987_v29 = vpack.c.bf16 %v3372_v16, %v3371_v48  ;;  %v11014_v62 = vpack.c.bf16 %v3650_v54, %v3649_v41  ;;  %v3797_v54 = vld [vmem:[#allocation6 + $0x278] sm:$0xff] }
0x2a78   :  { %v3319_v56 = vmul.f32 1.442695, %v3317_v42  ;;  %11007 = vmatprep.subr.bf16.mxu1 %v11825_v19 }
0x2a79   :  { %11629 = vpow2.f32 %v3321_v49  ;;  %10988 = vmatpush3.bf16.msra.mxu0 %v10987_v29 }
0x2a7a   :  { %11631 = vpow2.f32 %v3319_v56  ;;  %10989 = vmatprep.subr.bf16.mxu0 %v11825_v19 }
0x2a7b   :  { %11009 = vmatpush3.bf16.msra.mxu1 %v11008_v33  ;;  %v3640_v33 = vld [vmem:[#allocation6 + $0x218] sm:$0xff] }
0x2a7c   :  { %11010 = vmatprep.subr.bf16.mxu1 %v11825_v19  ;;  %v11017_v30 = vpack.c.bf16 %v3640_v33, %v3639_v23 }
0x2a7d   :  { %10991 = vmatpush3.bf16.msra.mxu0 %v10990_v40 }
0x2a7e   :  { %10992 = vmatprep.subr.bf16.mxu0 %v11825_v19 }
0x2a7f   :  { %11012 = vmatpush3.bf16.msra.mxu1 %v11011_v11 }
0x2a80   :  { %11013 = vmatprep.subr.bf16.mxu1 %v11825_v19 }
0x2a81   :  { %10994 = vmatpush3.bf16.msra.mxu0 %v10993_v18  ;;  %v3796_v18 = vld [vmem:[#allocation6 + $0x270] sm:$0xff] }
0x2a82   :  { %11016 = vmatprep.subr.bf16.mxu0 %v11825_v19 }
0x2a83   :  { %v11630_v50 = vpop.eup %11629  ;;  %11015 = vmatpush3.bf16.msra.mxu1 %v11014_v62  ;;  %v11023_v62 = vpack.c.bf16 %v3797_v54, %v3796_v18 }
0x2a84   :  { %v11632_v45 = vpop.eup %11631  ;;  %v3330_v43 = vsel %vm3302_vm2, %v11630_v50, 0.0 }
0x2a85   :  { %v3331_v6 = vrot.slane %v3330_v43, 4  ;;  %v3323_v46 = vsel %vm3302_vm2, %v11632_v45, 0.0 }
0x2a86   :  { %v3324_v51 = vrot.slane %v3323_v46, 4 }
0x2a87   :  { %v3332_v20 = vadd.f32 %v3331_v6, %v3330_v43 }
0x2a88   :  { %v3325_v4 = vadd.f32 %v3324_v51, %v3323_v46 }
0x2a89   :  { %v3333_v59 = vrot.slane %v3332_v20, 2 }
0x2a8a   :  { %v3326_v8 = vrot.slane %v3325_v4, 2 }
0x2a8b   :  { %v3334_v10 = vadd.f32 %v3333_v59, %v3332_v20 }
0x2a8c   :  { %v3327_v3 = vadd.f32 %v3326_v8, %v3325_v4 }
0x2a8d   :  { %v3335_v12 = vrot.slane %v3334_v10, 1 }
0x2a8e   :  { %v3328_v60 = vrot.slane %v3327_v3, 1 }
0x2a8f   :  { %v3336_v61 = vadd.f32 %v3335_v12, %v3334_v10 }
0x2a90   :  { %v3329_v58 = vadd.f32 %v3328_v60, %v3327_v3 }
0x2a91   :  { %11633 = vrcp.f32 %v3336_v61 }
0x2a92   :  { %11635 = vrcp.f32 %v3329_v58 }
0x2a9b   :  { %v11634_v7 = vpop.eup %11633 }
0x2a9c   :  { %v11636_v1 = vpop.eup %11635  ;;  %v3340_v2 = vmul.f32 %v11634_v7, %v11630_v50 }
0x2a9d   :  { %v3338_v35 = vmul.f32 %v11636_v1, %v11632_v45  ;;  %v9255_v1 = vld [vmem:[#allocation6 + $0x200] ss:$0 sm:$0xff] }
0x2a9e   :  { %3348 = vperm.xlu1 %11430, %v3340_v2  }
0x2a9f   :  { %3343 = vperm.xlu0 %11429, %v3338_v35  }
0x2aa3   :  { %3618 = vrot.lane.b32.xlu0 %v12575_v21, %s11827_s2 }
0x2b1d   :  { %v3349_v42 = vpop.permute.xlu1 %3348 }
0x2b1e   :  { %v3352_v49 = vmul.f32 %v3349_v42, %v12526_v27  ;;  %v3344_v56 = vpop.permute.xlu0 %3343 }
0x2b1f   :  { %v3351_v50 = vmul.f32 %v3344_v56, %v12514_v34 }
0x2b20   :  { %v3360_v45 = vsel %vm3011_vm1, %v3352_v49, 0.0 }
0x2b21   :  { %v3361_v43 = vrot.slane %v3360_v45, 4  ;;  %v3353_v6 = vsel %vm3011_vm1, %v3351_v50, 0.0 }
0x2b22   :  { %v3354_v46 = vrot.slane %v3353_v6, 4  ;;  %v3619_v16 = vpop.permute.xlu0 %3618 }
0x2b23   :  { %v3362_v51 = vadd.f32 %v3361_v43, %v3360_v45  ;;  %v9262_v43 = vld [vmem:[#allocation6 + $0x280] ss:$0 sm:$0xff] }
0x2b24   :  { %v3355_v20 = vadd.f32 %v3354_v46, %v3353_v6 }
0x2b25   :  { %v3363_v4 = vrot.slane %v3362_v51, 2 }
0x2b26   :  { %v3356_v59 = vrot.slane %v3355_v20, 2 }
0x2b27   :  { %v3364_v8 = vadd.f32 %v3363_v4, %v3362_v51 }
0x2b28   :  { %v3357_v10 = vadd.f32 %v3356_v59, %v3355_v20 }
0x2b29   :  { %v3365_v3 = vrot.slane %v3364_v8, 1 }
0x2b2a   :  { %v3358_v12 = vrot.slane %v3357_v10, 1 }
0x2b2b   :  { %v3366_v60 = vadd.f32 %v3365_v3, %v3364_v8  ;;  %v3910_v3 = vld [vmem:[#allocation6 + $0x20] sm:$0xff] (!%p9264_p13) }
0x2b2c   :  { %v3359_v61 = vadd.f32 %v3358_v12, %v3357_v10  ;;  %v3911_v12 = vld [vmem:[#allocation6 + $0x28] sm:$0xff] (!%p9264_p13) }
0x2b2e   :  { %v3379_v58 = vsel %vm565_vm5, %v3366_v60, %v3359_v61  ;;  %v11831_v60 = vmov (!%p9264_p13), 0.0|0.0   ;;  %v11026_v61 = vpack.c.bf16 (!%p9264_p13), %v3911_v12, %v3910_v3 }
0x2b2f   :  { %10122 = vmatmul.mubr.msk.f32.vlgmr.msra.gmra.mrb[24].mxu0 %vm3011_vm1, %v3379_v58  ;;  %10159 = vmatmul.mubr.msk.f32.vlgmr.msra.gmra.mrb[30].mxu1 %vm3011_vm1, %v3379_v58 }
0x2b30   :  { %10169 = vmatprep.mubr.msk.f32.mxu0 %vm11826_vm4, %v11824_v15  ;;  %11018 = vmatpush3.bf16.msra.mxu0 %v11017_v30 }
0x2b31   :  { %11019 = vmatprep.subr.bf16.mxu0 %v11825_v19 }
0x2c02   :  { %v3448_v7 = vpop.f32.mrb[24].mxu0  ;;  %v3717_v2 = vpop.f32.mrb[30].mxu1 }
0x2c03   :  { %v3522_v55 = vadd.f32 %v12571_v26, %v3448_v7  ;;  %v10123_v35 = vpop.f32.mrb[25].mxu0  ;;  %v10160_v31 = vpop.f32.mrb[31].mxu1 }
0x2c04   :  { %v3913_v35 = vld [vmem:[#allocation6 + $0x38] sm:$0xff] (!%p9264_p13) }
0x2c05   :  { %v3530_v53 = vadd.f32 %v9255_v1, %v3522_v55  ;;  %v3912_v55 = vld [vmem:[#allocation6 + $0x30] sm:$0xff] (!%p9264_p13) }
0x2c06   :  { %v11029_v31 = vpack.c.bf16 (!%p9264_p13), %v3913_v35, %v3912_v55 }
0x2c07   :  { %v3610_v17 = vadd.f32 %v12575_v21, %v3530_v53  ;;  %v3641_v21 = vld [vmem:[#allocation6 + $0x220] sm:$0xff] }
0x2c08   :  { %v11020_v36 = vpack.c.bf16 %v3642_v47, %v3641_v21 }
0x2c09   :  { %v9258_v37 = vmul.f32 -1.442695, %v3610_v17 }
0x2c0a   :  { %11021 = vmatpush3.bf16.msra.mxu0 %v11020_v36 }
0x2c0b   :  { %11637 = vpow2.f32 %v9258_v37  ;;  %11022 = vmatprep.subr.bf16.mxu0 %v11825_v19 }
0x2c15   :  { %v11638_v5 = vpop.eup %11637 }
0x2c16   :  { %v3614_v25 = vadd.f32 1.0, %v11638_v5 }
0x2c18   :  { %11639 = vrcp.f32 %v3614_v25 }
0x2c22   :  { %v11640_v48 = vpop.eup %11639 }
0x2c23   :  { %v3621_v28 = vmul.f32 %v11640_v48, %v3619_v16 }
0x2c25   :  { %3623 = vrot.lane.b32.xlu1 %v3621_v28, %s11827_s2 }
0x2c29   :  { %3634 = vrot.lane.b32.xlu1 %v12533_v63, %s11830_s3  ;;  %v3628_v63 = vsub.f32 1.0, %v11640_v48 }
0x2c97   :  { %v3624_v26 = vpop.permute.xlu1 %3623 }
0x2c98   :  { %v3626_v29 = vadd.f32 %v3624_v26, %v3530_v53  ;;  %v11833_v53 = vmov (!%p9264_p13), 0.0  }
0x2c9a   :  { %11641 = vtanh.f32 %v3626_v29 }
0x2c9b   :  { %v3635_v38 = vpop.permute.xlu1 %3634 }
0x2c9c   :  { %v3637_v14 = vmul.f32 %v11640_v48, %v3635_v38 }
0x2ca4   :  { %v11642_v40 = vpop.eup %11641 }
0x2ca5   :  { %3630 = vrot.lane.b32.xlu0 %v11642_v40, %s11828_s11 }
0x2d17   :  { %v3631_v11 = vpop.permute.xlu0 %3630 }
0x2d18   :  { %v3633_v57 = vmul.f32 %v3631_v11, %v3628_v63 }
0x2d1a   :  { %v12603_v41 = vadd.f32 %v3637_v14, %v3633_v57 }
0x2d1c   :  { %3722 = vrot.lane.b32.xlu0 %v12603_v41, %s11828_s11 }
0x2d8e   :  { %v12607_v42 = vpop.permute.xlu0 %3722 }
0x2d8f   :  { %10170 = vmatmul.mubr.msk.f32.vlgmr.msra.gmra.mrb[26].mxu0 %vm56_vm0, %v12607_v42 }
0x2d90   :  { %11024 = vmatpush3.bf16.msra.mxu0 %v11023_v62  ;;  %10176 = vmatprep.mubr.msk.f32.mxu0 %vm11826_vm4, %v11824_v15 }
0x2d91   :  { %11025 = vmatprep.subr.bf16.mxu0 (!%p9264_p13), %v11831_v60 }
0x2d93   :  { %10177 = vmatmul.mubr.msk.f32.vlgmr.msra.gmra.mrb[28].mxu0 %vm244_vm3, %v12007_v39 }
0x2d94   :  { %11027 = vmatpush3.bf16.msra.mxu0 (!%p9264_p13), %v11026_v61  ;;  %10187 = vmatprep.mubr.msk.f32.mxu0 (!%p9264_p13), %vm11832_vm10, %v11833_v53 }
0x2d95   :  { %11028 = vmatprep.subr.bf16.mxu0 (!%p9264_p13), %v11831_v60 }
0x2d98   :  { %11030 = vmatpush3.bf16.msra.mxu0 (!%p9264_p13), %v11029_v31 }
0x2e62   :  { %v3792_v49 = vpop.f32.mrb[26].mxu0 }
0x2e63   :  { %v3793_v56 = vadd.f32 %v3792_v49, %v3717_v2  ;;  %v10171_v50 = vpop.f32.mrb[27].mxu0 }
0x2e65   :  { %3886 = sbr.rel (%p9264_p13) target bundleno = 12538 (0x30fa), region = 21 }
0x2e66   :  { %v3864_v45 = vpop.f32.mrb[28].mxu0 }
0x2e67   :  { %v3868_v6 = vadd.f32 %v3864_v45, %v3793_v56  ;;  %v10178_v46 = vpop.f32.mrb[29].mxu0 }
0x2e69   :  { %v3874_v51 = vadd.f32 %v9262_v43, %v3868_v6 }
0x2e6b   :  { %3876 = vst.msk [vmem:[#allocation9 + $0x2] sm:$0x3] %vm3093_vm6, %v3874_v51  ;;  %v3887_v20 = vsel (!%p9264_p13), %vm3093_vm6, %v3874_v51, -inf }
0x2e6c   :  { %3888 = vmax.xlane.f32.xlu0 %v3887_v20 }
0x2ef9   :  { %v3889_v39 = vpop.xlane.xlu0 %3888 }
0x2efa   :  { %vm3890_vm7 = vcmp.ge.f32.partialorder %v3874_v51, %v3889_v39 }
0x2efb   :  { %v3891_v4 = vsel %vm3890_vm7, %v11902_v13, 32 }
0x2efc   :  { %v3892_v59 = vsel %vm3093_vm6, %v3891_v4, 2147483647 }
0x2efd   :  { %v3894_v8 = vshra.s32 %v3892_v59, 16  ;;  %v3893_v58 = vand.u32 65535, %v3892_v59 }
0x2eff   :  { %v3896_v10 = vcvt.s32.f32 %v3894_v8  ;;  %v3895_v1 = vcvt.s32.f32 %v3893_v58 }
0x2f01   :  { %3897 = vmin.xlane.f32.xlu0 %v3896_v10 }
0x2f8e   :  { %v3898_v7 = vpop.xlane.xlu0 %3897 }
0x2f8f   :  { %vm3899_vm8 = vcmp.eq.f32.partialorder %v3896_v10, %v3898_v7  ;;  %v3904_v17 = vcvt.f32.s32 %v3898_v7 }
0x2f90   :  { %v3900_v2 = vsel %vm3899_vm8, %v3895_v1, inf }
0x2f91   :  { %3901 = vmin.xlane.f32.xlu1 %v3900_v2  ;;  %v3905_v5 = vshll.u32 %v3904_v17, 16 }
0x301e   :  { %v3902_v37 = vpop.xlane.xlu1 %3901 }
0x301f   :  { %v3903_v25 = vcvt.f32.s32 %v3902_v37 }
0x3021   :  { %v3906_v48 = vadd.s32 %v3905_v5, %v3903_v25 }
0x3023   :  { %vm3907_vm11 = vcmp.eq.s32.totalorder %v11902_v13, %v3906_v48 }
0x3024   :  { %v9265_v16 = vsel %vm3907_vm11, 1.0, %v11833_v53 }
0x3025   :  { %10188 = vmatmul.mubr.msk.f32.vlgmr.msra.gmra.mrb[0].mxu0 %vm56_vm0, %v9265_v16 }
0x30f8   :  { %v3983_v28 = vpop.f32.mrb[0].mxu0 }
0x30f9   :  { %3987 = vst.msk [vmem:[#allocation3] sm:$0x3] %vm3100_vm9, %v3983_v28  ;;  %v10189_v26 = vpop.f32.mrb[1].mxu0 }
0x30fa PF:  { %11031 = vmatprep.subr.bf16.mxu0 %v11825_v19  ;;  %v3989_v29 = vld [vmem:[#allocation6 + $0x108] sm:$0xff]  ;;  %v3990_v23 = vld [vmem:[#allocation6 + $0x110] sm:$0xff]  ;;  %v3991_v33 = vld [vmem:[#allocation6 + $0x118] sm:$0xff]  ;;  %10198 = vmatprep.mubr.msk.f32.mxu0 %vm11826_vm4, %v11824_v15  ;;  %vm4756_vm12 = vcmask 1043459   ;;  %vm4759_vm13 = vcmask 125954   ;;  %s9280_s16 = sld [smem:[#allocation5 + $0x2]] }
0x30fb   :  { %v11032_v21 = vpack.c.bf16 %v3990_v23, %v3989_v29  ;;  %v3992_v30 = vld [vmem:[#allocation6 + $0x120] sm:$0xff]  ;;  %11643 = vset.pattern.permute.xlu0 %v11823_v0  ;;  %v4100_v36 = vld [vmem:[#allocation6 + $0x170] sm:$0xff]  ;;  %v4101_v40 = vld [vmem:[#allocation6 + $0x178] sm:$0xff]  ;;  %v4757_v8 = vsel %vm4756_vm12, %v11993_v24, %v11995_v32 }
0x30fc   :  { %v11035_v47 = vpack.c.bf16 %v3992_v30, %v3991_v33  ;;  %v4102_v38 = vld [vmem:[#allocation6 + $0x180] sm:$0xff]  ;;  %v11037_v63 = vpack.c.bf16 %v4101_v40, %v4100_v36  ;;  %v4103_v11 = vld [vmem:[#allocation6 + $0x188] sm:$0xff]  ;;  %v4249_v20 = vld [vmem:[#allocation6 + $0x190] sm:$0xff] }
0x30fd   :  { %11033 = vmatpush3.bf16.msra.mxu0 %v11032_v21  ;;  %v11041_v14 = vpack.c.bf16 %v4103_v11, %v4102_v38  ;;  %v4250_v39 = vld [vmem:[#allocation6 + $0x198] sm:$0xff]  ;;  %v4413_v10 = vld [vmem:[#allocation6 + $0x1e0] sm:$0xff]  ;;  %v4414_v3 = vld [vmem:[#allocation6 + $0x1e8] sm:$0xff] }
0x30fe   :  { %11034 = vmatprep.subr.bf16.mxu0 %v11825_v19  ;;  %11038 = vmatprep.subr.bf16.mxu1 %v11037_v63  ;;  %v11058_v4 = vpack.c.bf16 %v4250_v39, %v4249_v20  ;;  %v11061_v12 = vpack.c.bf16 %v4414_v3, %v4413_v10  ;;  %v4415_v60 = vld [vmem:[#allocation6 + $0x1f0] sm:$0xff]  ;;  %v4416_v61 = vld [vmem:[#allocation6 + $0x1f8] sm:$0xff]  ;;  %v4251_v20 = vld [vmem:[#allocation6 + $0x1a0] sm:$0xff] }
0x30ff   :  { %11040 = vmatpush3.bf16.msra.mxu1 %v11037_v63  ;;  %v11064_v58 = vpack.c.bf16 %v4416_v61, %v4415_v60  ;;  %v4252_v39 = vld [vmem:[#allocation6 + $0x1a8] sm:$0xff]  ;;  %v4523_v10 = vld [vmem:[#allocation6 + $0x238] sm:$0xff]  ;;  %v4524_v61 = vld [vmem:[#allocation6 + $0x240] sm:$0xff] }
0x3100   :  { %11042 = vmatprep.subr.bf16.mxu1 %v11041_v14  ;;  %v12647_v59 = vld [vmem:[#allocation3] sm:$0x3]  ;;  %p9281_p0 = scmp.ne.s32.totalorder %s9280_s16, 0 }
0x3101   :  { %11036 = vmatpush3.bf16.msra.mxu0 %v11035_v47  ;;  %4760 = vst.msk [vmem:[#allocation3 - $0x2] sm:$0xc] %vm4759_vm13, %v4757_v8  ;;  %v11046_v8 = vpack.c.bf16 %v4252_v39, %v4251_v20  ;;  %v4254_v60 = vld [vmem:[#allocation6 + $0x1b8] sm:$0xff]  ;;  %v9272_v20 = vld [vmem:[#allocation6 + $0x200] ss:$0 sm:$0xff]  ;;  %vm11835_vm7 = vmmov (!%p9281_p0), 0  }
0x3102   :  { %11045 = vmatprep.subr.bf16.mxu0 %v11825_v19 }
0x3103   :  { %11044 = vmatpush3.bf16.msra.mxu1 %v11041_v14 }
0x3104   :  { %10199 = vmatmul.mubr.msk.f32.vlgmr.msra.gmra.mrb[0].mxu0 %vm56_vm0, %v12607_v42  ;;  %11057 = vmatprep.subr.bf16.mxu1 %v11825_v19 }
0x3105   :  { %10228 = vmatprep.mubr.msk.f32.mxu0 %vm11826_vm4, %v11824_v15  ;;  %11047 = vmatpush3.bf16.msra.mxu0 %v11046_v8 }
0x3106   :  { %11048 = vmatprep.subr.bf16.mxu0 %v11825_v19 }
0x31d7   :  { %v4059_v57 = vpop.f32.mrb[0].mxu0 }
0x31d8   :  { %v4070_v18 = vrot.slane %v4059_v57, %v12539_v44  ;;  %v10200_v54 = vpop.f32.mrb[1].mxu0 }
0x31da   :  { %v4071_v62 = vcombine.high %v4070_v18, %v4070_v18  ;;  %v4078_v49 = vrot.slane %v4070_v18, %v12539_v44 }
0x31dc   :  { %v4085_v56 = vrot.slane %v4071_v62, %v12539_v44  ;;  %v4089_v50 = vrot.slane %v4078_v49, %v12542_v52 }
0x31de   :  { %v4093_v45 = vrot.slane %v4085_v56, %v12542_v52  ;;  %v4096_v43 = vadd.f32 %v4089_v50, %v12545_v22 }
0x31e0   :  { %v4097_v6 = vadd.f32 %v4093_v45, %v12549_v9  ;;  %11644 = vtanh.f32 %v4096_v43 }
0x31e2   :  { %11646 = vtanh.f32 %v4097_v6 }
0x31ea   :  { %v11645_v46 = vpop.eup %11644 }
0x31eb   :  { %10209 = vmatprep.mubr.msk.f32.mxu1 %vm56_vm0, %v11645_v46 }
0x31ec   :  { %v11647_v51 = vpop.eup %11646 }
0x31ed   :  { %10210 = vmatmul.mubr.msk.f32.vlgmr.msra.gmra.mrb[0].mxu1 %vm56_vm0, %v11647_v51 }
0x31ee   :  { %10235 = vmatprep.mubr.msk.f32.mxu1 %vm11826_vm4, %v11824_v15  ;;  %11059 = vmatpush3.bf16.msra.mxu1 %v11058_v4  ;;  %v4522_v4 = vld [vmem:[#allocation6 + $0x230] sm:$0xff] }
0x31ef   :  { %11060 = vmatprep.subr.bf16.mxu1 %v11825_v19  ;;  %v11067_v3 = vpack.c.bf16 %v4523_v10, %v4522_v4 }
0x31f1   :  { %10236 = vmatmul.mubr.msk.f32.vlgmr.msra.gmra.mrb[2].mxu1 %vm244_vm3, %v12647_v59 }
0x31f2   :  { %11062 = vmatpush3.bf16.msra.mxu1 %v11061_v12  ;;  %10246 = vmatprep.mubr.msk.f32.mxu1 %vm11826_vm4, %v11824_v15  ;;  %v4253_v12 = vld [vmem:[#allocation6 + $0x1b0] sm:$0xff] }
0x31f3   :  { %11063 = vmatprep.subr.bf16.mxu1 %v11825_v19 }
0x31f6   :  { %11065 = vmatpush3.bf16.msra.mxu1 %v11064_v58  ;;  %v11049_v58 = vpack.c.bf16 %v4254_v60, %v4253_v12 }
0x31f7   :  { %11066 = vmatprep.subr.bf16.mxu1 %v11825_v19 }
0x31f8   :  { %11050 = vmatpush3.bf16.msra.mxu0 %v11049_v58 }
0x31f9   :  { %10247 = vmatmul.mubr.msk.f32.vlgmr.msra.gmra.mrb[4].mxu1 %vm56_vm0, %v12607_v42  ;;  %11051 = vmatprep.subr.bf16.mxu0 %v11825_v19 }
0x31fa   :  { %10265 = vmatprep.mubr.msk.f32.mxu1 %vm11826_vm4, %v11824_v15  ;;  %11068 = vmatpush3.bf16.msra.mxu1 %v11067_v3 }
0x31fb   :  { %11069 = vmatprep.subr.bf16.mxu1 %v11825_v19 }
0x32c0   :  { %v10211_v7 = vpop.f32.mrb[0].mxu1 }
0x32c1   :  { %v4192_v1 = vsel %vm3302_vm2, %v10211_v7, -inf  ;;  %v4176_v2 = vpop.f32.mrb[1].mxu1 }
0x32c2   :  { %v4193_v55 = vrot.slane %v4192_v1, 4  ;;  %v4185_v35 = vsel %vm3302_vm2, %v4176_v2, -inf }
0x32c3   :  { %v4186_v31 = vrot.slane %v4185_v35, 4 }
0x32c4   :  { %v4194_v53 = vmax.f32 %v4192_v1, %v4193_v55  ;;  %v4256_v55 = vld [vmem:[#allocation6 + $0x1c8] sm:$0xff] }
0x32c5   :  { %v4187_v17 = vmax.f32 %v4185_v35, %v4186_v31  ;;  %v4526_v35 = vld [vmem:[#allocation6 + $0x250] sm:$0xff] }
0x32c6   :  { %v4195_v37 = vrot.slane %v4194_v53, 2 }
0x32c7   :  { %v4188_v5 = vrot.slane %v4187_v17, 2 }
0x32c8   :  { %v4196_v25 = vmax.f32 %v4194_v53, %v4195_v37  ;;  %v4527_v53 = vld [vmem:[#allocation6 + $0x258] sm:$0xff]  ;;  %v4257_v37 = vld [vmem:[#allocation6 + $0x1d0] sm:$0xff] }
0x32c9   :  { %v4189_v48 = vmax.f32 %v4187_v17, %v4188_v5  ;;  %v11073_v17 = vpack.c.bf16 %v4527_v53, %v4526_v35  ;;  %v4258_v5 = vld [vmem:[#allocation6 + $0x1d8] sm:$0xff] }
0x32ca   :  { %v4197_v16 = vrot.slane %v4196_v25, 1  ;;  %v4519_v53 = vld [vmem:[#allocation6 + $0x218] sm:$0xff] }
0x32cb   :  { %v4190_v28 = vrot.slane %v4189_v48, 1 }
0x32cc   :  { %v4198_v42 = vmax.f32 %v4196_v25, %v4197_v16  ;;  %v4528_v25 = vld [vmem:[#allocation6 + $0x260] sm:$0xff]  ;;  %v4529_v16 = vld [vmem:[#allocation6 + $0x268] sm:$0xff] }
0x32cd   :  { %v4191_v26 = vmax.f32 %v4189_v48, %v4190_v28  ;;  %v11055_v48 = vpack.c.bf16 %v4258_v5, %v4257_v37  ;;  %v11076_v28 = vpack.c.bf16 %v4529_v16, %v4528_v25  ;;  %v4521_v5 = vld [vmem:[#allocation6 + $0x228] sm:$0xff] }
0x32ce   :  { %v4200_v29 = vsub.f32 %v10211_v7, %v4198_v42  ;;  %v4525_v7 = vld [vmem:[#allocation6 + $0x248] sm:$0xff]  ;;  %v4403_v42 = vpop.f32.mrb[2].mxu1 }
0x32cf   :  { %v4199_v23 = vsub.f32 %v4176_v2, %v4191_v26  ;;  %v11070_v1 = vpack.c.bf16 %v4525_v7, %v4524_v61  ;;  %v4255_v2 = vld [vmem:[#allocation6 + $0x1c0] sm:$0xff]  ;;  %v10237_v26 = vpop.f32.mrb[3].mxu1 }
0x32d0   :  { %v4203_v33 = vmul.f32 1.442695, %v4200_v29  ;;  %v11052_v31 = vpack.c.bf16 %v4256_v55, %v4255_v2  ;;  %v9273_v29 = vld [vmem:[#allocation6 + $0x208] ss:$0 sm:$0xff] }
0x32d1   :  { %v4201_v21 = vmul.f32 1.442695, %v4199_v23  ;;  %11071 = vmatpush3.bf16.msra.mxu1 %v11070_v1  ;;  %v4488_v23 = vpop.f32.mrb[4].mxu1 }
0x32d2   :  { %11648 = vpow2.f32 %v4203_v33  ;;  %11072 = vmatprep.subr.bf16.mxu1 %v11825_v19  ;;  %11053 = vmatpush3.bf16.msra.mxu0 %v11052_v31  ;;  %v4489_v33 = vadd.f32 %v9273_v29, %v4488_v23  ;;  %v4518_v31 = vld [vmem:[#allocation6 + $0x210] sm:$0xff] }
0x32d3   :  { %11650 = vpow2.f32 %v4201_v21  ;;  %11054 = vmatprep.subr.bf16.mxu0 %v11825_v19  ;;  %v10248_v21 = vpop.f32.mrb[5].mxu1  ;;  %v11079_v37 = vpack.c.bf16 %v4519_v53, %v4518_v31  ;;  %v4675_v23 = vld [vmem:[#allocation6 + $0x270] sm:$0xff] }
0x32d4   :  { %4500 = vrot.lane.b32.xlu1 %v4489_v33, %s11827_s2 }
0x32d5   :  { %11074 = vmatpush3.bf16.msra.mxu1 %v11073_v17  ;;  %v4520_v17 = vld [vmem:[#allocation6 + $0x220] sm:$0xff] }
0x32d6   :  { %11075 = vmatprep.subr.bf16.mxu1 %v11825_v19  ;;  %11056 = vmatpush3.bf16.msra.mxu0 %v11055_v48  ;;  %v11082_v25 = vpack.c.bf16 %v4521_v5, %v4520_v17 }
0x32d7   :  { %11078 = vmatprep.subr.bf16.mxu0 %v11825_v19 }
0x32d9   :  { %11077 = vmatpush3.bf16.msra.mxu1 %v11076_v28 }
0x32dc   :  { %v11649_v30 = vpop.eup %11648 }
0x32dd   :  { %v11651_v47 = vpop.eup %11650  ;;  %v4212_v36 = vsel %vm3302_vm2, %v11649_v30, 0.0 }
0x32de   :  { %v4213_v40 = vrot.slane %v4212_v36, 4  ;;  %v4205_v38 = vsel %vm3302_vm2, %v11651_v47, 0.0 }
0x32df   :  { %v4206_v63 = vrot.slane %v4205_v38, 4 }
0x32e0   :  { %v4214_v11 = vadd.f32 %v4213_v40, %v4212_v36 }
0x32e1   :  { %v4207_v14 = vadd.f32 %v4206_v63, %v4205_v38 }
0x32e2   :  { %v4215_v57 = vrot.slane %v4214_v11, 2 }
0x32e3   :  { %v4208_v18 = vrot.slane %v4207_v14, 2 }
0x32e4   :  { %v4216_v54 = vadd.f32 %v4215_v57, %v4214_v11 }
0x32e5   :  { %v4209_v62 = vadd.f32 %v4208_v18, %v4207_v14 }
0x32e6   :  { %v4217_v49 = vrot.slane %v4216_v54, 1 }
0x32e7   :  { %v4210_v56 = vrot.slane %v4209_v62, 1 }
0x32e8   :  { %v4218_v45 = vadd.f32 %v4217_v49, %v4216_v54 }
0x32e9   :  { %v4211_v50 = vadd.f32 %v4210_v56, %v4209_v62 }
0x32eb   :  { %11652 = vrcp.f32 %v4211_v50 }
0x32ec   :  { %11654 = vrcp.f32 %v4218_v45 }
0x32f5   :  { %v11653_v43 = vpop.eup %11652 }
0x32f6   :  { %v4220_v6 = vmul.f32 %v11653_v43, %v11651_v47  ;;  %v11655_v46 = vpop.eup %11654 }
0x32f7   :  { %v4222_v51 = vmul.f32 %v11655_v46, %v11649_v30 }
0x32f8   :  { %4225 = vperm.xlu0 %11643, %v4220_v6  }
0x32fc   :  { %4230 = vperm.xlu0 %11643, %v4222_v51  }
0x3346   :  { %v4501_v7 = vpop.permute.xlu1 %4500 }
0x3377   :  { %v4226_v30 = vpop.permute.xlu0 %4225 }
0x3378   :  { %v4233_v47 = vmul.f32 %v4226_v30, %v12514_v34 }
0x337a   :  { %v4235_v36 = vsel %vm3011_vm1, %v4233_v47, 0.0 }
0x337b   :  { %v4236_v40 = vrot.slane %v4235_v36, 4  ;;  %v4231_v38 = vpop.permute.xlu0 %4230 }
0x337c   :  { %v4234_v63 = vmul.f32 %v4231_v38, %v12526_v27  ;;  %v9279_v38 = vld [vmem:[#allocation6 + $0x280] ss:$0 sm:$0xff] }
0x337d   :  { %v4237_v11 = vadd.f32 %v4236_v40, %v4235_v36 }
0x337e   :  { %v4242_v14 = vsel %vm3011_vm1, %v4234_v63, 0.0 }
0x337f   :  { %v4238_v57 = vrot.slane %v4237_v11, 2  ;;  %v4243_v18 = vrot.slane %v4242_v14, 4 }
0x3381   :  { %v4239_v54 = vadd.f32 %v4238_v57, %v4237_v11  ;;  %v4244_v62 = vadd.f32 %v4243_v18, %v4242_v14 }
0x3383   :  { %v4245_v49 = vrot.slane %v4244_v62, 2  ;;  %v4240_v56 = vrot.slane %v4239_v54, 1 }
0x3385   :  { %v4246_v50 = vadd.f32 %v4245_v49, %v4244_v62  ;;  %v4241_v43 = vadd.f32 %v4240_v56, %v4239_v54  ;;  %v4789_v56 = vld [vmem:[#allocation6 + $0x20] sm:$0xff] (!%p9281_p0) }
0x3387   :  { %v4247_v45 = vrot.slane %v4246_v50, 1 }
0x3389   :  { %v4248_v6 = vadd.f32 %v4247_v45, %v4246_v50  ;;  %v4790_v50 = vld [vmem:[#allocation6 + $0x28] sm:$0xff] (!%p9281_p0)  ;;  %v11834_v45 = vmov (!%p9281_p0), 0.0|0.0  }
0x338b   :  { %v4261_v46 = vsel %vm565_vm5, %v4248_v6, %v4241_v43  ;;  %v11088_v43 = vpack.c.bf16 (!%p9281_p0), %v4790_v50, %v4789_v56 }
0x338c   :  { %10229 = vmatmul.mubr.msk.f32.vlgmr.msra.gmra.mrb[2].mxu0 %vm3011_vm1, %v4261_v46  ;;  %10266 = vmatmul.mubr.msk.f32.vlgmr.msra.gmra.mrb[6].mxu1 %vm3011_vm1, %v4261_v46 }
0x338d   :  { %10276 = vmatprep.mubr.msk.f32.mxu0 %vm11826_vm4, %v11824_v15  ;;  %11080 = vmatpush3.bf16.msra.mxu0 %v11079_v37 }
0x338e   :  { %11081 = vmatprep.subr.bf16.mxu0 %v11825_v19 }
0x3391   :  { %11083 = vmatpush3.bf16.msra.mxu0 %v11082_v25 }
0x3392   :  { %11084 = vmatprep.subr.bf16.mxu0 %v11825_v19 }
0x345f   :  { %v4330_v51 = vpop.f32.mrb[2].mxu0  ;;  %v4596_v39 = vpop.f32.mrb[6].mxu1 }
0x3460   :  { %v4404_v4 = vadd.f32 %v4403_v42, %v4330_v51  ;;  %v10230_v8 = vpop.f32.mrb[3].mxu0  ;;  %v10267_v10 = vpop.f32.mrb[7].mxu1 }
0x3461   :  { %v11836_v10 = vmov (!%p9281_p0), 0.0  }
0x3462   :  { %v4412_v3 = vadd.f32 %v9272_v20, %v4404_v4  ;;  %v4792_v4 = vld [vmem:[#allocation6 + $0x38] sm:$0xff] (!%p9281_p0) }
0x3464   :  { %v4492_v12 = vadd.f32 %v4489_v33, %v4412_v3  ;;  %v4676_v33 = vld [vmem:[#allocation6 + $0x278] sm:$0xff] }
0x3465   :  { %v11085_v21 = vpack.c.bf16 %v4676_v33, %v4675_v23 }
0x3466   :  { %v9275_v60 = vmul.f32 -1.442695, %v4492_v12 }
0x3468   :  { %11656 = vpow2.f32 %v9275_v60 }
0x3472   :  { %v11657_v61 = vpop.eup %11656 }
0x3473   :  { %v4496_v58 = vadd.f32 1.0, %v11657_v61 }
0x3475   :  { %11658 = vrcp.f32 %v4496_v58 }
0x347f   :  { %v11659_v1 = vpop.eup %11658 }
0x3480   :  { %v4503_v2 = vmul.f32 %v11659_v1, %v4501_v7  ;;  %v4510_v16 = vsub.f32 1.0, %v11659_v1  ;;  %v4516_v26 = vmul.f32 %v11659_v1, %v12603_v41 }
0x3482   :  { %4505 = vrot.lane.b32.xlu1 %v4503_v2, %s11827_s2 }
0x34f4   :  { %v4506_v55 = vpop.permute.xlu1 %4505 }
0x34f5   :  { %v4508_v35 = vadd.f32 %v4506_v55, %v4412_v3 }
0x34f7   :  { %11660 = vtanh.f32 %v4508_v35 }
0x3501   :  { %v11661_v48 = vpop.eup %11660 }
0x3502   :  { %4512 = vrot.lane.b32.xlu0 %v11661_v48, %s11828_s11 }
0x3574   :  { %v4513_v28 = vpop.permute.xlu0 %4512 }
0x3575   :  { %v4515_v42 = vmul.f32 %v4513_v28, %v4510_v16 }
0x3577   :  { %v12688_v29 = vadd.f32 %v4516_v26, %v4515_v42 }
0x3579   :  { %4601 = vrot.lane.b32.xlu1 %v12688_v29, %s11828_s11 }
0x35eb   :  { %v12692_v30 = vpop.permute.xlu1 %4601 }
0x35ec   :  { %10277 = vmatmul.mubr.msk.f32.vlgmr.msra.gmra.mrb[4].mxu0 %vm56_vm0, %v12692_v30 }
0x35ed   :  { %11086 = vmatpush3.bf16.msra.mxu0 %v11085_v21  ;;  %10283 = vmatprep.mubr.msk.f32.mxu0 %vm11826_vm4, %v11824_v15 }
0x35ee   :  { %11087 = vmatprep.subr.bf16.mxu0 (!%p9281_p0), %v11834_v45 }
0x35f0   :  { %10284 = vmatmul.mubr.msk.f32.vlgmr.msra.gmra.mrb[6].mxu0 %vm244_vm3, %v12647_v59 }
0x35f1   :  { %11089 = vmatpush3.bf16.msra.mxu0 (!%p9281_p0), %v11088_v43  ;;  %10294 = vmatprep.mubr.msk.f32.mxu0 (!%p9281_p0), %vm11835_vm7, %v11836_v10 }
0x35f2   :  { %11090 = vmatprep.subr.bf16.mxu0 (!%p9281_p0), %v11834_v45 }
0x36bf   :  { %v4671_v41 = vpop.f32.mrb[4].mxu0 }
0x36c0   :  { %v4672_v47 = vadd.f32 %v4671_v41, %v4596_v39  ;;  %v10278_v36 = vpop.f32.mrb[5].mxu0  ;;  %v4791_v39 = vld [vmem:[#allocation6 + $0x30] sm:$0xff] (!%p9281_p0) }
0x36c1   :  { %v11091_v8 = vpack.c.bf16 (!%p9281_p0), %v4792_v4, %v4791_v39 }
0x36c2   :  { %4765 = sbr.rel (%p9281_p0) target bundleno = 14679 (0x3957), region = 25 }
0x36c3   :  { %v4743_v40 = vpop.f32.mrb[6].mxu0  ;;  %11092 = vmatpush3.bf16.msra.mxu0 (!%p9281_p0), %v11091_v8 }
0x36c4   :  { %v4747_v63 = vadd.f32 %v4743_v40, %v4672_v47  ;;  %v10285_v11 = vpop.f32.mrb[7].mxu0 }
0x36c6   :  { %v4753_v14 = vadd.f32 %v9279_v38, %v4747_v63 }
0x36c8   :  { %4755 = vst.msk [vmem:[#allocation9 + $0x4] sm:$0x3] %vm3093_vm6, %v4753_v14  ;;  %v4766_v57 = vsel (!%p9281_p0), %vm3093_vm6, %v4753_v14, -inf }
0x36c9   :  { %4767 = vmax.xlane.f32.xlu0 %v4766_v57 }
0x3756   :  { %v4768_v18 = vpop.xlane.xlu0 %4767 }
0x3757   :  { %vm4769_vm14 = vcmp.ge.f32.partialorder %v4753_v14, %v4768_v18 }
0x3758   :  { %v4770_v59 = vsel %vm4769_vm14, %v11902_v13, 32 }
0x3759   :  { %v4771_v54 = vsel %vm3093_vm6, %v4770_v59, 2147483647 }
0x375a   :  { %v4773_v62 = vshra.s32 %v4771_v54, 16  ;;  %v4772_v6 = vand.u32 65535, %v4771_v54 }
0x375c   :  { %v4775_v49 = vcvt.s32.f32 %v4773_v62  ;;  %v4774_v51 = vcvt.s32.f32 %v4772_v6 }
0x375e   :  { %4776 = vmin.xlane.f32.xlu0 %v4775_v49 }
0x37eb   :  { %v4777_v46 = vpop.xlane.xlu0 %4776 }
0x37ec   :  { %vm4778_vm15 = vcmp.eq.f32.partialorder %v4775_v49, %v4777_v46  ;;  %v4783_v3 = vcvt.f32.s32 %v4777_v46 }
0x37ed   :  { %v4779_v20 = vsel %vm4778_vm15, %v4774_v51, inf }
0x37ee   :  { %4780 = vmin.xlane.f32.xlu1 %v4779_v20  ;;  %v4784_v60 = vshll.u32 %v4783_v3, 16 }
0x387b   :  { %v4781_v12 = vpop.xlane.xlu1 %4780 }
0x387c   :  { %v4782_v61 = vcvt.f32.s32 %v4781_v12 }
0x387e   :  { %v4785_v58 = vadd.s32 %v4784_v60, %v4782_v61 }
0x3880   :  { %vm4786_vm8 = vcmp.eq.s32.totalorder %v11902_v13, %v4785_v58 }
0x3881   :  { %v9282_v7 = vsel %vm4786_vm8, 1.0, %v11836_v10 }
0x3882   :  { %10295 = vmatmul.mubr.msk.f32.vlgmr.msra.gmra.mrb[0].mxu0 %vm56_vm0, %v9282_v7 }
0x3955   :  { %v4862_v1 = vpop.f32.mrb[0].mxu0 }
0x3956   :  { %4866 = vst.msk [vmem:[#allocation3] sm:$0x3] %vm3100_vm9, %v4862_v1  ;;  %v10296_v2 = vpop.f32.mrb[1].mxu0 }
0x3957 PF:  { %11093 = vmatprep.subr.bf16.mxu0 %v11825_v19  ;;  %v4868_v55 = vld [vmem:[#allocation6 + $0x108] sm:$0xff]  ;;  %v4869_v35 = vld [vmem:[#allocation6 + $0x110] sm:$0xff]  ;;  %v4870_v31 = vld [vmem:[#allocation6 + $0x118] sm:$0xff]  ;;  %10305 = vmatprep.mubr.msk.f32.mxu0 %vm11826_vm4, %v11824_v15  ;;  %vm5635_vm10 = vcmask 1044484   ;;  %vm5638_vm11 = vcmask 126979   ;;  %s9297_s17 = sld [smem:[#allocation5 + $0x3]] }
0x3958   :  { %v11094_v53 = vpack.c.bf16 %v4869_v35, %v4868_v55  ;;  %v4871_v17 = vld [vmem:[#allocation6 + $0x120] sm:$0xff]  ;;  %11662 = vset.pattern.permute.xlu0 %v11823_v0  ;;  %v4979_v5 = vld [vmem:[#allocation6 + $0x170] sm:$0xff]  ;;  %v4980_v25 = vld [vmem:[#allocation6 + $0x178] sm:$0xff]  ;;  %v5636_v62 = vsel %vm5635_vm10, %v11993_v24, %v11995_v32 }
0x3959   :  { %v11097_v37 = vpack.c.bf16 %v4871_v17, %v4870_v31  ;;  %v4981_v48 = vld [vmem:[#allocation6 + $0x180] sm:$0xff]  ;;  %v11099_v16 = vpack.c.bf16 %v4980_v25, %v4979_v5  ;;  %v4982_v28 = vld [vmem:[#allocation6 + $0x188] sm:$0xff]  ;;  %v5128_v57 = vld [vmem:[#allocation6 + $0x190] sm:$0xff] }
0x395a   :  { %11095 = vmatpush3.bf16.msra.mxu0 %v11094_v53  ;;  %v11103_v42 = vpack.c.bf16 %v4982_v28, %v4981_v48  ;;  %v5129_v18 = vld [vmem:[#allocation6 + $0x198] sm:$0xff]  ;;  %v5292_v49 = vld [vmem:[#allocation6 + $0x1e0] sm:$0xff]  ;;  %v5293_v56 = vld [vmem:[#allocation6 + $0x1e8] sm:$0xff] }
0x395b   :  { %11096 = vmatprep.subr.bf16.mxu0 %v11825_v19  ;;  %11100 = vmatprep.subr.bf16.mxu1 %v11099_v16  ;;  %v11120_v59 = vpack.c.bf16 %v5129_v18, %v5128_v57  ;;  %v11123_v50 = vpack.c.bf16 %v5293_v56, %v5292_v49  ;;  %v5294_v45 = vld [vmem:[#allocation6 + $0x1f0] sm:$0xff]  ;;  %v5295_v43 = vld [vmem:[#allocation6 + $0x1f8] sm:$0xff]  ;;  %v5130_v57 = vld [vmem:[#allocation6 + $0x1a0] sm:$0xff] }
0x395c   :  { %11102 = vmatpush3.bf16.msra.mxu1 %v11099_v16  ;;  %v11126_v6 = vpack.c.bf16 %v5295_v43, %v5294_v45  ;;  %v5131_v18 = vld [vmem:[#allocation6 + $0x1a8] sm:$0xff]  ;;  %v5402_v49 = vld [vmem:[#allocation6 + $0x238] sm:$0xff]  ;;  %v5403_v43 = vld [vmem:[#allocation6 + $0x240] sm:$0xff] }
0x395d   :  { %11104 = vmatprep.subr.bf16.mxu1 %v11103_v42  ;;  %v12729_v54 = vld [vmem:[#allocation3] sm:$0x3]  ;;  %p9298_p1 = scmp.ne.s32.totalorder %s9297_s17, 0 }
0x395e   :  { %11098 = vmatpush3.bf16.msra.mxu0 %v11097_v37  ;;  %5639 = vst.msk [vmem:[#allocation3 - $0x3] sm:$0x18] %vm5638_vm11, %v5636_v62  ;;  %v11108_v62 = vpack.c.bf16 %v5131_v18, %v5130_v57  ;;  %v5133_v45 = vld [vmem:[#allocation6 + $0x1b8] sm:$0xff]  ;;  %v9289_v57 = vld [vmem:[#allocation6 + $0x200] ss:$0 sm:$0xff]  ;;  %vm11838_vm14 = vmmov (!%p9298_p1), 0  }
0x395f   :  { %11107 = vmatprep.subr.bf16.mxu0 %v11825_v19 }
0x3960   :  { %11106 = vmatpush3.bf16.msra.mxu1 %v11103_v42 }
0x3961   :  { %10306 = vmatmul.mubr.msk.f32.vlgmr.msra.gmra.mrb[0].mxu0 %vm56_vm0, %v12692_v30  ;;  %11119 = vmatprep.subr.bf16.mxu1 %v11825_v19 }
0x3962   :  { %10335 = vmatprep.mubr.msk.f32.mxu0 %vm11826_vm4, %v11824_v15  ;;  %11109 = vmatpush3.bf16.msra.mxu0 %v11108_v62 }
0x3963   :  { %11110 = vmatprep.subr.bf16.mxu0 %v11825_v19 }
0x3a34   :  { %v4938_v26 = vpop.f32.mrb[0].mxu0 }
0x3a35   :  { %v4949_v23 = vrot.slane %v4938_v26, %v12539_v44  ;;  %v10307_v33 = vpop.f32.mrb[1].mxu0 }
0x3a37   :  { %v4950_v21 = vcombine.high %v4949_v23, %v4949_v23  ;;  %v4957_v41 = vrot.slane %v4949_v23, %v12539_v44 }
0x3a39   :  { %v4964_v47 = vrot.slane %v4950_v21, %v12539_v44  ;;  %v4968_v36 = vrot.slane %v4957_v41, %v12542_v52 }
0x3a3b   :  { %v4972_v40 = vrot.slane %v4964_v47, %v12542_v52  ;;  %v4975_v38 = vadd.f32 %v4968_v36, %v12545_v22 }
0x3a3d   :  { %v4976_v63 = vadd.f32 %v4972_v40, %v12549_v9  ;;  %11663 = vtanh.f32 %v4975_v38 }
0x3a3f   :  { %11665 = vtanh.f32 %v4976_v63 }
0x3a47   :  { %v11664_v11 = vpop.eup %11663 }
0x3a48   :  { %10316 = vmatprep.mubr.msk.f32.mxu1 %vm56_vm0, %v11664_v11 }
0x3a49   :  { %v11666_v14 = vpop.eup %11665 }
0x3a4a   :  { %10317 = vmatmul.mubr.msk.f32.vlgmr.msra.gmra.mrb[0].mxu1 %vm56_vm0, %v11666_v14 }
0x3a4b   :  { %10342 = vmatprep.mubr.msk.f32.mxu1 %vm11826_vm4, %v11824_v15  ;;  %11121 = vmatpush3.bf16.msra.mxu1 %v11120_v59  ;;  %v5401_v59 = vld [vmem:[#allocation6 + $0x230] sm:$0xff] }
0x3a4c   :  { %11122 = vmatprep.subr.bf16.mxu1 %v11825_v19  ;;  %v11129_v56 = vpack.c.bf16 %v5402_v49, %v5401_v59 }
0x3a4e   :  { %10343 = vmatmul.mubr.msk.f32.vlgmr.msra.gmra.mrb[2].mxu1 %vm244_vm3, %v12729_v54 }
0x3a4f   :  { %11124 = vmatpush3.bf16.msra.mxu1 %v11123_v50  ;;  %10353 = vmatprep.mubr.msk.f32.mxu1 %vm11826_vm4, %v11824_v15  ;;  %v5132_v50 = vld [vmem:[#allocation6 + $0x1b0] sm:$0xff] }
0x3a50   :  { %11125 = vmatprep.subr.bf16.mxu1 %v11825_v19 }
0x3a53   :  { %11127 = vmatpush3.bf16.msra.mxu1 %v11126_v6  ;;  %v11111_v6 = vpack.c.bf16 %v5133_v45, %v5132_v50 }
0x3a54   :  { %11128 = vmatprep.subr.bf16.mxu1 %v11825_v19 }
0x3a55   :  { %11112 = vmatpush3.bf16.msra.mxu0 %v11111_v6 }
0x3a56   :  { %10354 = vmatmul.mubr.msk.f32.vlgmr.msra.gmra.mrb[4].mxu1 %vm56_vm0, %v12692_v30  ;;  %11113 = vmatprep.subr.bf16.mxu0 %v11825_v19 }
0x3a57   :  { %10372 = vmatprep.mubr.msk.f32.mxu1 %vm11826_vm4, %v11824_v15  ;;  %11130 = vmatpush3.bf16.msra.mxu1 %v11129_v56 }
0x3a58   :  { %11131 = vmatprep.subr.bf16.mxu1 %v11825_v19 }
0x3b1d   :  { %v10318_v46 = vpop.f32.mrb[0].mxu1 }
0x3b1e   :  { %v5071_v51 = vsel %vm3302_vm2, %v10318_v46, -inf  ;;  %v5055_v20 = vpop.f32.mrb[1].mxu1 }
0x3b1f   :  { %v5072_v39 = vrot.slane %v5071_v51, 4  ;;  %v5064_v4 = vsel %vm3302_vm2, %v5055_v20, -inf }
0x3b20   :  { %v5065_v8 = vrot.slane %v5064_v4, 4 }
0x3b21   :  { %v5073_v10 = vmax.f32 %v5071_v51, %v5072_v39  ;;  %v5135_v39 = vld [vmem:[#allocation6 + $0x1c8] sm:$0xff] }
0x3b22   :  { %v5066_v3 = vmax.f32 %v5064_v4, %v5065_v8  ;;  %v5405_v4 = vld [vmem:[#allocation6 + $0x250] sm:$0xff] }
0x3b23   :  { %v5074_v12 = vrot.slane %v5073_v10, 2 }
0x3b24   :  { %v5067_v60 = vrot.slane %v5066_v3, 2 }
0x3b25   :  { %v5075_v61 = vmax.f32 %v5073_v10, %v5074_v12  ;;  %v5406_v10 = vld [vmem:[#allocation6 + $0x258] sm:$0xff]  ;;  %v5136_v12 = vld [vmem:[#allocation6 + $0x1d0] sm:$0xff] }
0x3b26   :  { %v5068_v58 = vmax.f32 %v5066_v3, %v5067_v60  ;;  %v11135_v3 = vpack.c.bf16 %v5406_v10, %v5405_v4  ;;  %v5137_v60 = vld [vmem:[#allocation6 + $0x1d8] sm:$0xff] }
0x3b27   :  { %v5076_v7 = vrot.slane %v5075_v61, 1  ;;  %v5398_v10 = vld [vmem:[#allocation6 + $0x218] sm:$0xff] }
0x3b28   :  { %v5069_v1 = vrot.slane %v5068_v58, 1 }
0x3b29   :  { %v5077_v30 = vmax.f32 %v5075_v61, %v5076_v7  ;;  %v5407_v61 = vld [vmem:[#allocation6 + $0x260] sm:$0xff]  ;;  %v5408_v7 = vld [vmem:[#allocation6 + $0x268] sm:$0xff] }
0x3b2a   :  { %v5070_v2 = vmax.f32 %v5068_v58, %v5069_v1  ;;  %v11117_v58 = vpack.c.bf16 %v5137_v60, %v5136_v12  ;;  %v11138_v1 = vpack.c.bf16 %v5408_v7, %v5407_v61  ;;  %v5400_v60 = vld [vmem:[#allocation6 + $0x228] sm:$0xff] }
0x3b2b   :  { %v5079_v55 = vsub.f32 %v10318_v46, %v5077_v30  ;;  %v5404_v46 = vld [vmem:[#allocation6 + $0x248] sm:$0xff]  ;;  %v5282_v30 = vpop.f32.mrb[2].mxu1 }
0x3b2c   :  { %v5078_v35 = vsub.f32 %v5055_v20, %v5070_v2  ;;  %v11132_v51 = vpack.c.bf16 %v5404_v46, %v5403_v43  ;;  %v5134_v20 = vld [vmem:[#allocation6 + $0x1c0] sm:$0xff]  ;;  %v10344_v2 = vpop.f32.mrb[3].mxu1 }
0x3b2d   :  { %v5082_v31 = vmul.f32 1.442695, %v5079_v55  ;;  %v11114_v8 = vpack.c.bf16 %v5135_v39, %v5134_v20  ;;  %v9290_v55 = vld [vmem:[#allocation6 + $0x208] ss:$0 sm:$0xff] }
0x3b2e   :  { %v5080_v53 = vmul.f32 1.442695, %v5078_v35  ;;  %11133 = vmatpush3.bf16.msra.mxu1 %v11132_v51  ;;  %v5367_v35 = vpop.f32.mrb[4].mxu1 }
0x3b2f   :  { %11667 = vpow2.f32 %v5082_v31  ;;  %11134 = vmatprep.subr.bf16.mxu1 %v11825_v19  ;;  %11115 = vmatpush3.bf16.msra.mxu0 %v11114_v8  ;;  %v5368_v31 = vadd.f32 %v9290_v55, %v5367_v35  ;;  %v5397_v8 = vld [vmem:[#allocation6 + $0x210] sm:$0xff] }
0x3b30   :  { %11669 = vpow2.f32 %v5080_v53  ;;  %11116 = vmatprep.subr.bf16.mxu0 %v11825_v19  ;;  %v10355_v53 = vpop.f32.mrb[5].mxu1  ;;  %v11141_v12 = vpack.c.bf16 %v5398_v10, %v5397_v8  ;;  %v5554_v35 = vld [vmem:[#allocation6 + $0x270] sm:$0xff] }
0x3b31   :  { %5379 = vrot.lane.b32.xlu1 %v5368_v31, %s11827_s2 }
0x3b32   :  { %11136 = vmatpush3.bf16.msra.mxu1 %v11135_v3  ;;  %v5399_v3 = vld [vmem:[#allocation6 + $0x220] sm:$0xff] }
0x3b33   :  { %11137 = vmatprep.subr.bf16.mxu1 %v11825_v19  ;;  %11118 = vmatpush3.bf16.msra.mxu0 %v11117_v58  ;;  %v11144_v61 = vpack.c.bf16 %v5400_v60, %v5399_v3 }
0x3b34   :  { %11140 = vmatprep.subr.bf16.mxu0 %v11825_v19 }
0x3b36   :  { %11139 = vmatpush3.bf16.msra.mxu1 %v11138_v1 }
0x3b39   :  { %v11668_v17 = vpop.eup %11667 }
0x3b3a   :  { %v11670_v37 = vpop.eup %11669  ;;  %v5091_v5 = vsel %vm3302_vm2, %v11668_v17, 0.0 }
0x3b3b   :  { %v5092_v25 = vrot.slane %v5091_v5, 4  ;;  %v5084_v48 = vsel %vm3302_vm2, %v11670_v37, 0.0 }
0x3b3c   :  { %v5085_v16 = vrot.slane %v5084_v48, 4 }
0x3b3d   :  { %v5093_v28 = vadd.f32 %v5092_v25, %v5091_v5 }
0x3b3e   :  { %v5086_v42 = vadd.f32 %v5085_v16, %v5084_v48 }
0x3b3f   :  { %v5094_v26 = vrot.slane %v5093_v28, 2 }
0x3b40   :  { %v5087_v23 = vrot.slane %v5086_v42, 2 }
0x3b41   :  { %v5095_v33 = vadd.f32 %v5094_v26, %v5093_v28 }
0x3b42   :  { %v5088_v21 = vadd.f32 %v5087_v23, %v5086_v42 }
0x3b43   :  { %v5096_v41 = vrot.slane %v5095_v33, 1 }
0x3b44   :  { %v5089_v47 = vrot.slane %v5088_v21, 1 }
0x3b45   :  { %v5097_v40 = vadd.f32 %v5096_v41, %v5095_v33 }
0x3b46   :  { %v5090_v36 = vadd.f32 %v5089_v47, %v5088_v21 }
0x3b48   :  { %11671 = vrcp.f32 %v5090_v36 }
0x3b49   :  { %11673 = vrcp.f32 %v5097_v40 }
0x3b52   :  { %v11672_v38 = vpop.eup %11671 }
0x3b53   :  { %v5099_v63 = vmul.f32 %v11672_v38, %v11670_v37  ;;  %v11674_v11 = vpop.eup %11673 }
0x3b54   :  { %v5101_v14 = vmul.f32 %v11674_v11, %v11668_v17 }
0x3b55   :  { %5104 = vperm.xlu0 %11662, %v5099_v63  }
0x3b59   :  { %5109 = vperm.xlu0 %11662, %v5101_v14  }
0x3ba3   :  { %v5380_v46 = vpop.permute.xlu1 %5379 }
0x3bd4   :  { %v5105_v17 = vpop.permute.xlu0 %5104 }
0x3bd5   :  { %v5112_v37 = vmul.f32 %v5105_v17, %v12514_v34 }
0x3bd7   :  { %v5114_v5 = vsel %vm3011_vm1, %v5112_v37, 0.0 }
0x3bd8   :  { %v5115_v25 = vrot.slane %v5114_v5, 4  ;;  %v5110_v48 = vpop.permute.xlu0 %5109 }
0x3bd9   :  { %v5113_v16 = vmul.f32 %v5110_v48, %v12526_v27  ;;  %v9296_v48 = vld [vmem:[#allocation6 + $0x280] ss:$0 sm:$0xff] }
0x3bda   :  { %v5116_v28 = vadd.f32 %v5115_v25, %v5114_v5 }
0x3bdb   :  { %v5121_v42 = vsel %vm3011_vm1, %v5113_v16, 0.0 }
0x3bdc   :  { %v5117_v26 = vrot.slane %v5116_v28, 2  ;;  %v5122_v23 = vrot.slane %v5121_v42, 4 }
0x3bde   :  { %v5118_v33 = vadd.f32 %v5117_v26, %v5116_v28  ;;  %v5123_v21 = vadd.f32 %v5122_v23, %v5121_v42 }
0x3be0   :  { %v5124_v41 = vrot.slane %v5123_v21, 2  ;;  %v5119_v47 = vrot.slane %v5118_v33, 1 }
0x3be2   :  { %v5125_v36 = vadd.f32 %v5124_v41, %v5123_v21  ;;  %v5120_v38 = vadd.f32 %v5119_v47, %v5118_v33  ;;  %v5668_v47 = vld [vmem:[#allocation6 + $0x20] sm:$0xff] (!%p9298_p1) }
0x3be4   :  { %v5126_v40 = vrot.slane %v5125_v36, 1 }
0x3be6   :  { %v5127_v63 = vadd.f32 %v5126_v40, %v5125_v36  ;;  %v5669_v36 = vld [vmem:[#allocation6 + $0x28] sm:$0xff] (!%p9298_p1)  ;;  %v11837_v40 = vmov (!%p9298_p1), 0.0|0.0  }
0x3be8   :  { %v5140_v11 = vsel %vm565_vm5, %v5127_v63, %v5120_v38  ;;  %v11150_v38 = vpack.c.bf16 (!%p9298_p1), %v5669_v36, %v5668_v47 }
0x3be9   :  { %10336 = vmatmul.mubr.msk.f32.vlgmr.msra.gmra.mrb[2].mxu0 %vm3011_vm1, %v5140_v11  ;;  %10373 = vmatmul.mubr.msk.f32.vlgmr.msra.gmra.mrb[6].mxu1 %vm3011_vm1, %v5140_v11 }
0x3bea   :  { %10383 = vmatprep.mubr.msk.f32.mxu0 %vm11826_vm4, %v11824_v15  ;;  %11142 = vmatpush3.bf16.msra.mxu0 %v11141_v12 }
0x3beb   :  { %11143 = vmatprep.subr.bf16.mxu0 %v11825_v19 }
0x3bee   :  { %11145 = vmatpush3.bf16.msra.mxu0 %v11144_v61 }
0x3bef   :  { %11146 = vmatprep.subr.bf16.mxu0 %v11825_v19 }
0x3cbc   :  { %v5209_v14 = vpop.f32.mrb[2].mxu0  ;;  %v5475_v18 = vpop.f32.mrb[6].mxu1 }
0x3cbd   :  { %v5283_v59 = vadd.f32 %v5282_v30, %v5209_v14  ;;  %v10337_v62 = vpop.f32.mrb[3].mxu0  ;;  %v10374_v49 = vpop.f32.mrb[7].mxu1 }
0x3cbe   :  { %v11839_v49 = vmov (!%p9298_p1), 0.0  }
0x3cbf   :  { %v5291_v56 = vadd.f32 %v9289_v57, %v5283_v59  ;;  %v5671_v59 = vld [vmem:[#allocation6 + $0x38] sm:$0xff] (!%p9298_p1) }
0x3cc1   :  { %v5371_v50 = vadd.f32 %v5368_v31, %v5291_v56  ;;  %v5555_v31 = vld [vmem:[#allocation6 + $0x278] sm:$0xff] }
0x3cc2   :  { %v11147_v53 = vpack.c.bf16 %v5555_v31, %v5554_v35 }
0x3cc3   :  { %v9292_v45 = vmul.f32 -1.442695, %v5371_v50 }
0x3cc5   :  { %11675 = vpow2.f32 %v9292_v45 }
0x3ccf   :  { %v11676_v43 = vpop.eup %11675 }
0x3cd0   :  { %v5375_v6 = vadd.f32 1.0, %v11676_v43 }
0x3cd2   :  { %11677 = vrcp.f32 %v5375_v6 }
0x3cdc   :  { %v11678_v51 = vpop.eup %11677 }
0x3cdd   :  { %v5382_v20 = vmul.f32 %v11678_v51, %v5380_v46  ;;  %v5389_v7 = vsub.f32 1.0, %v11678_v51  ;;  %v5395_v2 = vmul.f32 %v11678_v51, %v12688_v29 }
0x3cdf   :  { %5384 = vrot.lane.b32.xlu1 %v5382_v20, %s11827_s2 }
0x3d51   :  { %v5385_v39 = vpop.permute.xlu1 %5384 }
0x3d52   :  { %v5387_v4 = vadd.f32 %v5385_v39, %v5291_v56 }
0x3d54   :  { %11679 = vtanh.f32 %v5387_v4 }
0x3d5e   :  { %v11680_v58 = vpop.eup %11679 }
0x3d5f   :  { %5391 = vrot.lane.b32.xlu0 %v11680_v58, %s11828_s11 }
0x3dd1   :  { %v5392_v1 = vpop.permute.xlu0 %5391 }
0x3dd2   :  { %v5394_v30 = vmul.f32 %v5392_v1, %v5389_v7 }
0x3dd4   :  { %v12770_v55 = vadd.f32 %v5395_v2, %v5394_v30 }
0x3dd6   :  { %5480 = vrot.lane.b32.xlu1 %v12770_v55, %s11828_s11 }
0x3e48   :  { %v12774_v17 = vpop.permute.xlu1 %5480 }
0x3e49   :  { %10384 = vmatmul.mubr.msk.f32.vlgmr.msra.gmra.mrb[4].mxu0 %vm56_vm0, %v12774_v17 }
0x3e4a   :  { %11148 = vmatpush3.bf16.msra.mxu0 %v11147_v53  ;;  %10390 = vmatprep.mubr.msk.f32.mxu0 %vm11826_vm4, %v11824_v15 }
0x3e4b   :  { %11149 = vmatprep.subr.bf16.mxu0 (!%p9298_p1), %v11837_v40 }
0x3e4d   :  { %10391 = vmatmul.mubr.msk.f32.vlgmr.msra.gmra.mrb[6].mxu0 %vm244_vm3, %v12729_v54 }
0x3e4e   :  { %11151 = vmatpush3.bf16.msra.mxu0 (!%p9298_p1), %v11150_v38  ;;  %10401 = vmatprep.mubr.msk.f32.mxu0 (!%p9298_p1), %vm11838_vm14, %v11839_v49 }
0x3e4f   :  { %11152 = vmatprep.subr.bf16.mxu0 (!%p9298_p1), %v11837_v40 }
0x3f1c   :  { %v5550_v29 = vpop.f32.mrb[4].mxu0 }
0x3f1d   :  { %v5551_v37 = vadd.f32 %v5550_v29, %v5475_v18  ;;  %v10385_v5 = vpop.f32.mrb[5].mxu0  ;;  %v5670_v18 = vld [vmem:[#allocation6 + $0x30] sm:$0xff] (!%p9298_p1) }
0x3f1e   :  { %v11153_v62 = vpack.c.bf16 (!%p9298_p1), %v5671_v59, %v5670_v18 }
0x3f1f   :  { %5644 = sbr.rel (%p9298_p1) target bundleno = 16820 (0x41b4), region = 29 }
0x3f20   :  { %v5622_v25 = vpop.f32.mrb[6].mxu0  ;;  %11154 = vmatpush3.bf16.msra.mxu0 (!%p9298_p1), %v11153_v62 }
0x3f21   :  { %v5626_v16 = vadd.f32 %v5622_v25, %v5551_v37  ;;  %v10392_v28 = vpop.f32.mrb[7].mxu0 }
0x3f23   :  { %v5632_v42 = vadd.f32 %v9296_v48, %v5626_v16 }
0x3f25   :  { %5634 = vst.msk [vmem:[#allocation9 + $0x6] sm:$0x3] %vm3093_vm6, %v5632_v42  ;;  %v5645_v26 = vsel (!%p9298_p1), %vm3093_vm6, %v5632_v42, -inf }
0x3f26   :  { %5646 = vmax.xlane.f32.xlu0 %v5645_v26 }
0x3fb3   :  { %v5647_v23 = vpop.xlane.xlu0 %5646 }
0x3fb4   :  { %vm5648_vm12 = vcmp.ge.f32.partialorder %v5632_v42, %v5647_v23 }
0x3fb5   :  { %v5649_v54 = vsel %vm5648_vm12, %v11902_v13, 32 }
0x3fb6   :  { %v5650_v33 = vsel %vm3093_vm6, %v5649_v54, 2147483647 }
0x3fb7   :  { %v5652_v21 = vshra.s32 %v5650_v33, 16  ;;  %v5651_v63 = vand.u32 65535, %v5650_v33 }
0x3fb9   :  { %v5654_v41 = vcvt.s32.f32 %v5652_v21  ;;  %v5653_v14 = vcvt.s32.f32 %v5651_v63 }
0x3fbb   :  { %5655 = vmin.xlane.f32.xlu0 %v5654_v41 }
0x4048   :  { %v5656_v11 = vpop.xlane.xlu0 %5655 }
0x4049   :  { %vm5657_vm13 = vcmp.eq.f32.partialorder %v5654_v41, %v5656_v11  ;;  %v5662_v56 = vcvt.f32.s32 %v5656_v11 }
0x404a   :  { %v5658_v57 = vsel %vm5657_vm13, %v5653_v14, inf }
0x404b   :  { %5659 = vmin.xlane.f32.xlu1 %v5658_v57  ;;  %v5663_v45 = vshll.u32 %v5662_v56, 16 }
0x40d8   :  { %v5660_v50 = vpop.xlane.xlu1 %5659 }
0x40d9   :  { %v5661_v43 = vcvt.f32.s32 %v5660_v50 }
0x40db   :  { %v5664_v6 = vadd.s32 %v5663_v45, %v5661_v43 }
0x40dd   :  { %vm5665_vm15 = vcmp.eq.s32.totalorder %v11902_v13, %v5664_v6 }
0x40de   :  { %v9299_v46 = vsel %vm5665_vm15, 1.0, %v11839_v49 }
0x40df   :  { %10402 = vmatmul.mubr.msk.f32.vlgmr.msra.gmra.mrb[0].mxu0 %vm56_vm0, %v9299_v46 }
0x41b2   :  { %v5741_v51 = vpop.f32.mrb[0].mxu0 }
0x41b3   :  { %5745 = vst.msk [vmem:[#allocation3] sm:$0x3] %vm3100_vm9, %v5741_v51  ;;  %v10403_v20 = vpop.f32.mrb[1].mxu0 }
0x41b4 PF:  { %11155 = vmatprep.subr.bf16.mxu0 %v11825_v19  ;;  %v5747_v39 = vld [vmem:[#allocation6 + $0x108] sm:$0xff]  ;;  %v5748_v4 = vld [vmem:[#allocation6 + $0x110] sm:$0xff]  ;;  %v5749_v8 = vld [vmem:[#allocation6 + $0x118] sm:$0xff]  ;;  %10412 = vmatprep.mubr.msk.f32.mxu0 %vm11826_vm4, %v11824_v15  ;;  %vm6514_vm7 = vcmask 1045509   ;;  %vm6517_vm8 = vcmask 128004   ;;  %s9314_s18 = sld [smem:[#allocation5 + $0x4]] }
0x41b5   :  { %v11156_v10 = vpack.c.bf16 %v5748_v4, %v5747_v39  ;;  %v5750_v3 = vld [vmem:[#allocation6 + $0x120] sm:$0xff]  ;;  %11681 = vset.pattern.permute.xlu0 %v11823_v0  ;;  %v5858_v60 = vld [vmem:[#allocation6 + $0x170] sm:$0xff]  ;;  %v5859_v61 = vld [vmem:[#allocation6 + $0x178] sm:$0xff]  ;;  %v6515_v21 = vsel %vm6514_vm7, %v11993_v24, %v11995_v32 }
0x41b6   :  { %v11159_v12 = vpack.c.bf16 %v5750_v3, %v5749_v8  ;;  %v5860_v58 = vld [vmem:[#allocation6 + $0x180] sm:$0xff]  ;;  %v11161_v7 = vpack.c.bf16 %v5859_v61, %v5858_v60  ;;  %v5861_v1 = vld [vmem:[#allocation6 + $0x188] sm:$0xff]  ;;  %v6007_v26 = vld [vmem:[#allocation6 + $0x190] sm:$0xff] }
0x41b7   :  { %11157 = vmatpush3.bf16.msra.mxu0 %v11156_v10  ;;  %v11165_v30 = vpack.c.bf16 %v5861_v1, %v5860_v58  ;;  %v6008_v23 = vld [vmem:[#allocation6 + $0x198] sm:$0xff]  ;;  %v6171_v41 = vld [vmem:[#allocation6 + $0x1e0] sm:$0xff]  ;;  %v6172_v47 = vld [vmem:[#allocation6 + $0x1e8] sm:$0xff] }
0x41b8   :  { %11158 = vmatprep.subr.bf16.mxu0 %v11825_v19  ;;  %11162 = vmatprep.subr.bf16.mxu1 %v11161_v7  ;;  %v11182_v54 = vpack.c.bf16 %v6008_v23, %v6007_v26  ;;  %v11185_v36 = vpack.c.bf16 %v6172_v47, %v6171_v41  ;;  %v6173_v40 = vld [vmem:[#allocation6 + $0x1f0] sm:$0xff]  ;;  %v6174_v38 = vld [vmem:[#allocation6 + $0x1f8] sm:$0xff]  ;;  %v6009_v26 = vld [vmem:[#allocation6 + $0x1a0] sm:$0xff] }
0x41b9   :  { %11164 = vmatpush3.bf16.msra.mxu1 %v11161_v7  ;;  %v11188_v63 = vpack.c.bf16 %v6174_v38, %v6173_v40  ;;  %v6010_v23 = vld [vmem:[#allocation6 + $0x1a8] sm:$0xff]  ;;  %v6281_v41 = vld [vmem:[#allocation6 + $0x238] sm:$0xff]  ;;  %v6282_v38 = vld [vmem:[#allocation6 + $0x240] sm:$0xff] }
0x41ba   :  { %11166 = vmatprep.subr.bf16.mxu1 %v11165_v30  ;;  %v12811_v33 = vld [vmem:[#allocation3] sm:$0x3]  ;;  %p9315_p2 = scmp.ne.s32.totalorder %s9314_s18, 0 }
0x41bb   :  { %11160 = vmatpush3.bf16.msra.mxu0 %v11159_v12  ;;  %6518 = vst.msk [vmem:[#allocation3 - $0x4] sm:$0x30] %vm6517_vm8, %v6515_v21  ;;  %v11170_v21 = vpack.c.bf16 %v6010_v23, %v6009_v26  ;;  %v6012_v40 = vld [vmem:[#allocation6 + $0x1b8] sm:$0xff]  ;;  %v9306_v26 = vld [vmem:[#allocation6 + $0x200] ss:$0 sm:$0xff]  ;;  %vm11841_vm12 = vmmov (!%p9315_p2), 0  }
0x41bc   :  { %11169 = vmatprep.subr.bf16.mxu0 %v11825_v19 }
0x41bd   :  { %11168 = vmatpush3.bf16.msra.mxu1 %v11165_v30 }
0x41be   :  { %10413 = vmatmul.mubr.msk.f32.vlgmr.msra.gmra.mrb[0].mxu0 %vm56_vm0, %v12774_v17  ;;  %11181 = vmatprep.subr.bf16.mxu1 %v11825_v19 }
0x41bf   :  { %10442 = vmatprep.mubr.msk.f32.mxu0 %vm11826_vm4, %v11824_v15  ;;  %11171 = vmatpush3.bf16.msra.mxu0 %v11170_v21 }
0x41c0   :  { %11172 = vmatprep.subr.bf16.mxu0 %v11825_v19 }
0x4291   :  { %v5817_v2 = vpop.f32.mrb[0].mxu0 }
0x4292   :  { %v5828_v35 = vrot.slane %v5817_v2, %v12539_v44  ;;  %v10414_v31 = vpop.f32.mrb[1].mxu0 }
0x4294   :  { %v5829_v53 = vcombine.high %v5828_v35, %v5828_v35  ;;  %v5836_v29 = vrot.slane %v5828_v35, %v12539_v44 }
0x4296   :  { %v5843_v37 = vrot.slane %v5829_v53, %v12539_v44  ;;  %v5847_v5 = vrot.slane %v5836_v29, %v12542_v52 }
0x4298   :  { %v5851_v25 = vrot.slane %v5843_v37, %v12542_v52  ;;  %v5854_v48 = vadd.f32 %v5847_v5, %v12545_v22 }
0x429a   :  { %v5855_v16 = vadd.f32 %v5851_v25, %v12549_v9  ;;  %11682 = vtanh.f32 %v5854_v48 }
0x429c   :  { %11684 = vtanh.f32 %v5855_v16 }
0x42a4   :  { %v11683_v28 = vpop.eup %11682 }
0x42a5   :  { %10423 = vmatprep.mubr.msk.f32.mxu1 %vm56_vm0, %v11683_v28 }
0x42a6   :  { %v11685_v42 = vpop.eup %11684 }
0x42a7   :  { %10424 = vmatmul.mubr.msk.f32.vlgmr.msra.gmra.mrb[0].mxu1 %vm56_vm0, %v11685_v42 }
0x42a8   :  { %10449 = vmatprep.mubr.msk.f32.mxu1 %vm11826_vm4, %v11824_v15  ;;  %11183 = vmatpush3.bf16.msra.mxu1 %v11182_v54  ;;  %v6280_v54 = vld [vmem:[#allocation6 + $0x230] sm:$0xff] }
0x42a9   :  { %11184 = vmatprep.subr.bf16.mxu1 %v11825_v19  ;;  %v11191_v47 = vpack.c.bf16 %v6281_v41, %v6280_v54 }
0x42ab   :  { %10450 = vmatmul.mubr.msk.f32.vlgmr.msra.gmra.mrb[2].mxu1 %vm244_vm3, %v12811_v33 }
0x42ac   :  { %11186 = vmatpush3.bf16.msra.mxu1 %v11185_v36  ;;  %10460 = vmatprep.mubr.msk.f32.mxu1 %vm11826_vm4, %v11824_v15  ;;  %v6011_v36 = vld [vmem:[#allocation6 + $0x1b0] sm:$0xff] }
0x42ad   :  { %11187 = vmatprep.subr.bf16.mxu1 %v11825_v19 }
0x42b0   :  { %11189 = vmatpush3.bf16.msra.mxu1 %v11188_v63  ;;  %v11173_v63 = vpack.c.bf16 %v6012_v40, %v6011_v36 }
0x42b1   :  { %11190 = vmatprep.subr.bf16.mxu1 %v11825_v19 }
0x42b2   :  { %11174 = vmatpush3.bf16.msra.mxu0 %v11173_v63 }
0x42b3   :  { %10461 = vmatmul.mubr.msk.f32.vlgmr.msra.gmra.mrb[4].mxu1 %vm56_vm0, %v12774_v17  ;;  %11175 = vmatprep.subr.bf16.mxu0 %v11825_v19 }
0x42b4   :  { %10479 = vmatprep.mubr.msk.f32.mxu1 %vm11826_vm4, %v11824_v15  ;;  %11192 = vmatpush3.bf16.msra.mxu1 %v11191_v47 }
0x42b5   :  { %11193 = vmatprep.subr.bf16.mxu1 %v11825_v19 }
0x437a   :  { %v10425_v11 = vpop.f32.mrb[0].mxu1 }
0x437b   :  { %v5950_v14 = vsel %vm3302_vm2, %v10425_v11, -inf  ;;  %v5934_v57 = vpop.f32.mrb[1].mxu1 }
0x437c   :  { %v5951_v18 = vrot.slane %v5950_v14, 4  ;;  %v5943_v59 = vsel %vm3302_vm2, %v5934_v57, -inf }
0x437d   :  { %v5944_v62 = vrot.slane %v5943_v59, 4 }
0x437e   :  { %v5952_v49 = vmax.f32 %v5950_v14, %v5951_v18  ;;  %v6014_v18 = vld [vmem:[#allocation6 + $0x1c8] sm:$0xff] }
0x437f   :  { %v5945_v56 = vmax.f32 %v5943_v59, %v5944_v62  ;;  %v6284_v59 = vld [vmem:[#allocation6 + $0x250] sm:$0xff] }
0x4380   :  { %v5953_v50 = vrot.slane %v5952_v49, 2 }
0x4381   :  { %v5946_v45 = vrot.slane %v5945_v56, 2 }
0x4382   :  { %v5954_v43 = vmax.f32 %v5952_v49, %v5953_v50  ;;  %v6285_v49 = vld [vmem:[#allocation6 + $0x258] sm:$0xff]  ;;  %v6015_v50 = vld [vmem:[#allocation6 + $0x1d0] sm:$0xff] }
0x4383   :  { %v5947_v6 = vmax.f32 %v5945_v56, %v5946_v45  ;;  %v11197_v56 = vpack.c.bf16 %v6285_v49, %v6284_v59  ;;  %v6016_v45 = vld [vmem:[#allocation6 + $0x1d8] sm:$0xff] }
0x4384   :  { %v5955_v46 = vrot.slane %v5954_v43, 1  ;;  %v6277_v49 = vld [vmem:[#allocation6 + $0x218] sm:$0xff] }
0x4385   :  { %v5948_v51 = vrot.slane %v5947_v6, 1 }
0x4386   :  { %v5956_v17 = vmax.f32 %v5954_v43, %v5955_v46  ;;  %v6286_v43 = vld [vmem:[#allocation6 + $0x260] sm:$0xff]  ;;  %v6287_v46 = vld [vmem:[#allocation6 + $0x268] sm:$0xff] }
0x4387   :  { %v5949_v20 = vmax.f32 %v5947_v6, %v5948_v51  ;;  %v11179_v6 = vpack.c.bf16 %v6016_v45, %v6015_v50  ;;  %v11200_v51 = vpack.c.bf16 %v6287_v46, %v6286_v43  ;;  %v6279_v45 = vld [vmem:[#allocation6 + $0x228] sm:$0xff] }
0x4388   :  { %v5958_v39 = vsub.f32 %v10425_v11, %v5956_v17  ;;  %v6283_v11 = vld [vmem:[#allocation6 + $0x248] sm:$0xff]  ;;  %v6161_v17 = vpop.f32.mrb[2].mxu1 }
0x4389   :  { %v5957_v4 = vsub.f32 %v5934_v57, %v5949_v20  ;;  %v11194_v14 = vpack.c.bf16 %v6283_v11, %v6282_v38  ;;  %v6013_v57 = vld [vmem:[#allocation6 + $0x1c0] sm:$0xff]  ;;  %v10451_v20 = vpop.f32.mrb[3].mxu1 }
0x438a   :  { %v5961_v8 = vmul.f32 1.442695, %v5958_v39  ;;  %v11176_v62 = vpack.c.bf16 %v6014_v18, %v6013_v57  ;;  %v9307_v39 = vld [vmem:[#allocation6 + $0x208] ss:$0 sm:$0xff] }
0x438b   :  { %v5959_v10 = vmul.f32 1.442695, %v5957_v4  ;;  %11195 = vmatpush3.bf16.msra.mxu1 %v11194_v14  ;;  %v6246_v4 = vpop.f32.mrb[4].mxu1 }
0x438c   :  { %11686 = vpow2.f32 %v5961_v8  ;;  %11196 = vmatprep.subr.bf16.mxu1 %v11825_v19  ;;  %11177 = vmatpush3.bf16.msra.mxu0 %v11176_v62  ;;  %v6247_v8 = vadd.f32 %v9307_v39, %v6246_v4  ;;  %v6276_v62 = vld [vmem:[#allocation6 + $0x210] sm:$0xff] }
0x438d   :  { %11688 = vpow2.f32 %v5959_v10  ;;  %11178 = vmatprep.subr.bf16.mxu0 %v11825_v19  ;;  %v10462_v10 = vpop.f32.mrb[5].mxu1  ;;  %v11203_v50 = vpack.c.bf16 %v6277_v49, %v6276_v62  ;;  %v6433_v4 = vld [vmem:[#allocation6 + $0x270] sm:$0xff] }
0x438e   :  { %6258 = vrot.lane.b32.xlu1 %v6247_v8, %s11827_s2 }
0x438f   :  { %11198 = vmatpush3.bf16.msra.mxu1 %v11197_v56  ;;  %v6278_v56 = vld [vmem:[#allocation6 + $0x220] sm:$0xff] }
0x4390   :  { %11199 = vmatprep.subr.bf16.mxu1 %v11825_v19  ;;  %11180 = vmatpush3.bf16.msra.mxu0 %v11179_v6  ;;  %v11206_v43 = vpack.c.bf16 %v6279_v45, %v6278_v56 }
0x4391   :  { %11202 = vmatprep.subr.bf16.mxu0 %v11825_v19 }
0x4393   :  { %11201 = vmatpush3.bf16.msra.mxu1 %v11200_v51 }
0x4396   :  { %v11687_v3 = vpop.eup %11686 }
0x4397   :  { %v11689_v12 = vpop.eup %11688  ;;  %v5970_v60 = vsel %vm3302_vm2, %v11687_v3, 0.0 }
0x4398   :  { %v5971_v61 = vrot.slane %v5970_v60, 4  ;;  %v5963_v58 = vsel %vm3302_vm2, %v11689_v12, 0.0 }
0x4399   :  { %v5964_v7 = vrot.slane %v5963_v58, 4 }
0x439a   :  { %v5972_v1 = vadd.f32 %v5971_v61, %v5970_v60 }
0x439b   :  { %v5965_v30 = vadd.f32 %v5964_v7, %v5963_v58 }
0x439c   :  { %v5973_v2 = vrot.slane %v5972_v1, 2 }
0x439d   :  { %v5966_v35 = vrot.slane %v5965_v30, 2 }
0x439e   :  { %v5974_v31 = vadd.f32 %v5973_v2, %v5972_v1 }
0x439f   :  { %v5967_v53 = vadd.f32 %v5966_v35, %v5965_v30 }
0x43a0   :  { %v5975_v29 = vrot.slane %v5974_v31, 1 }
0x43a1   :  { %v5968_v37 = vrot.slane %v5967_v53, 1 }
0x43a2   :  { %v5976_v25 = vadd.f32 %v5975_v29, %v5974_v31 }
0x43a3   :  { %v5969_v5 = vadd.f32 %v5968_v37, %v5967_v53 }
0x43a5   :  { %11690 = vrcp.f32 %v5969_v5 }
0x43a6   :  { %11692 = vrcp.f32 %v5976_v25 }
0x43af   :  { %v11691_v48 = vpop.eup %11690 }
0x43b0   :  { %v5978_v16 = vmul.f32 %v11691_v48, %v11689_v12  ;;  %v11693_v28 = vpop.eup %11692 }
0x43b1   :  { %v5980_v42 = vmul.f32 %v11693_v28, %v11687_v3 }
0x43b2   :  { %5983 = vperm.xlu0 %11681, %v5978_v16  }
0x43b6   :  { %5988 = vperm.xlu0 %11681, %v5980_v42  }
0x4400   :  { %v6259_v11 = vpop.permute.xlu1 %6258 }
0x4431   :  { %v5984_v3 = vpop.permute.xlu0 %5983 }
0x4432   :  { %v5991_v12 = vmul.f32 %v5984_v3, %v12514_v34 }
0x4434   :  { %v5993_v60 = vsel %vm3011_vm1, %v5991_v12, 0.0 }
0x4435   :  { %v5994_v61 = vrot.slane %v5993_v60, 4  ;;  %v5989_v58 = vpop.permute.xlu0 %5988 }
0x4436   :  { %v5992_v7 = vmul.f32 %v5989_v58, %v12526_v27  ;;  %v9313_v58 = vld [vmem:[#allocation6 + $0x280] ss:$0 sm:$0xff] }
0x4437   :  { %v5995_v1 = vadd.f32 %v5994_v61, %v5993_v60 }
0x4438   :  { %v6000_v30 = vsel %vm3011_vm1, %v5992_v7, 0.0 }
0x4439   :  { %v5996_v2 = vrot.slane %v5995_v1, 2  ;;  %v6001_v35 = vrot.slane %v6000_v30, 4 }
0x443b   :  { %v5997_v31 = vadd.f32 %v5996_v2, %v5995_v1  ;;  %v6002_v53 = vadd.f32 %v6001_v35, %v6000_v30 }
0x443d   :  { %v6003_v29 = vrot.slane %v6002_v53, 2  ;;  %v5998_v37 = vrot.slane %v5997_v31, 1 }
0x443f   :  { %v6004_v5 = vadd.f32 %v6003_v29, %v6002_v53  ;;  %v5999_v48 = vadd.f32 %v5998_v37, %v5997_v31  ;;  %v6547_v37 = vld [vmem:[#allocation6 + $0x20] sm:$0xff] (!%p9315_p2) }
0x4441   :  { %v6005_v25 = vrot.slane %v6004_v5, 1 }
0x4443   :  { %v6006_v16 = vadd.f32 %v6005_v25, %v6004_v5  ;;  %v6548_v5 = vld [vmem:[#allocation6 + $0x28] sm:$0xff] (!%p9315_p2)  ;;  %v11840_v25 = vmov (!%p9315_p2), 0.0|0.0  }
0x4445   :  { %v6019_v28 = vsel %vm565_vm5, %v6006_v16, %v5999_v48  ;;  %v11212_v48 = vpack.c.bf16 (!%p9315_p2), %v6548_v5, %v6547_v37 }
0x4446   :  { %10443 = vmatmul.mubr.msk.f32.vlgmr.msra.gmra.mrb[2].mxu0 %vm3011_vm1, %v6019_v28  ;;  %10480 = vmatmul.mubr.msk.f32.vlgmr.msra.gmra.mrb[6].mxu1 %vm3011_vm1, %v6019_v28 }
0x4447   :  { %10490 = vmatprep.mubr.msk.f32.mxu0 %vm11826_vm4, %v11824_v15  ;;  %11204 = vmatpush3.bf16.msra.mxu0 %v11203_v50 }
0x4448   :  { %11205 = vmatprep.subr.bf16.mxu0 %v11825_v19 }
0x444b   :  { %11207 = vmatpush3.bf16.msra.mxu0 %v11206_v43 }
0x444c   :  { %11208 = vmatprep.subr.bf16.mxu0 %v11825_v19 }
0x4519   :  { %v6088_v42 = vpop.f32.mrb[2].mxu0  ;;  %v6354_v23 = vpop.f32.mrb[6].mxu1 }
0x451a   :  { %v6162_v54 = vadd.f32 %v6161_v17, %v6088_v42  ;;  %v10444_v21 = vpop.f32.mrb[3].mxu0  ;;  %v10481_v41 = vpop.f32.mrb[7].mxu1 }
0x451b   :  { %v11842_v41 = vmov (!%p9315_p2), 0.0  }
0x451c   :  { %v6170_v47 = vadd.f32 %v9306_v26, %v6162_v54  ;;  %v6550_v54 = vld [vmem:[#allocation6 + $0x38] sm:$0xff] (!%p9315_p2) }
0x451e   :  { %v6250_v36 = vadd.f32 %v6247_v8, %v6170_v47  ;;  %v6434_v8 = vld [vmem:[#allocation6 + $0x278] sm:$0xff] }
0x451f   :  { %v11209_v10 = vpack.c.bf16 %v6434_v8, %v6433_v4 }
0x4520   :  { %v9309_v40 = vmul.f32 -1.442695, %v6250_v36 }
0x4522   :  { %11694 = vpow2.f32 %v9309_v40 }
0x452c   :  { %v11695_v38 = vpop.eup %11694 }
0x452d   :  { %v6254_v63 = vadd.f32 1.0, %v11695_v38 }
0x452f   :  { %11696 = vrcp.f32 %v6254_v63 }
0x4539   :  { %v11697_v14 = vpop.eup %11696 }
0x453a   :  { %v6261_v57 = vmul.f32 %v11697_v14, %v6259_v11  ;;  %v6268_v46 = vsub.f32 1.0, %v11697_v14  ;;  %v6274_v20 = vmul.f32 %v11697_v14, %v12770_v55 }
0x453c   :  { %6263 = vrot.lane.b32.xlu1 %v6261_v57, %s11827_s2 }
0x45ae   :  { %v6264_v18 = vpop.permute.xlu1 %6263 }
0x45af   :  { %v6266_v59 = vadd.f32 %v6264_v18, %v6170_v47 }
0x45b1   :  { %11698 = vtanh.f32 %v6266_v59 }
0x45bb   :  { %v11699_v6 = vpop.eup %11698 }
0x45bc   :  { %6270 = vrot.lane.b32.xlu0 %v11699_v6, %s11828_s11 }
0x462e   :  { %v6271_v51 = vpop.permute.xlu0 %6270 }
0x462f   :  { %v6273_v17 = vmul.f32 %v6271_v51, %v6268_v46 }
0x4631   :  { %v12852_v39 = vadd.f32 %v6274_v20, %v6273_v17 }
0x4633   :  { %6359 = vrot.lane.b32.xlu1 %v12852_v39, %s11828_s11 }
0x46a5   :  { %v12856_v3 = vpop.permute.xlu1 %6359 }
0x46a6   :  { %10491 = vmatmul.mubr.msk.f32.vlgmr.msra.gmra.mrb[4].mxu0 %vm56_vm0, %v12856_v3 }
0x46a7   :  { %11210 = vmatpush3.bf16.msra.mxu0 %v11209_v10  ;;  %10497 = vmatprep.mubr.msk.f32.mxu0 %vm11826_vm4, %v11824_v15 }
0x46a8   :  { %11211 = vmatprep.subr.bf16.mxu0 (!%p9315_p2), %v11840_v25 }
0x46aa   :  { %10498 = vmatmul.mubr.msk.f32.vlgmr.msra.gmra.mrb[6].mxu0 %vm244_vm3, %v12811_v33 }
0x46ab   :  { %11213 = vmatpush3.bf16.msra.mxu0 (!%p9315_p2), %v11212_v48  ;;  %10508 = vmatprep.mubr.msk.f32.mxu0 (!%p9315_p2), %vm11841_vm12, %v11842_v41 }
0x46ac   :  { %11214 = vmatprep.subr.bf16.mxu0 (!%p9315_p2), %v11840_v25 }
0x4779   :  { %v6429_v55 = vpop.f32.mrb[4].mxu0 }
0x477a   :  { %v6430_v12 = vadd.f32 %v6429_v55, %v6354_v23  ;;  %v10492_v60 = vpop.f32.mrb[5].mxu0  ;;  %v6549_v23 = vld [vmem:[#allocation6 + $0x30] sm:$0xff] (!%p9315_p2) }
0x477b   :  { %v11215_v21 = vpack.c.bf16 (!%p9315_p2), %v6550_v54, %v6549_v23 }
0x477c   :  { %6523 = sbr.rel (%p9315_p2) target bundleno = 18961 (0x4a11), region = 33 }
0x477d   :  { %v6501_v61 = vpop.f32.mrb[6].mxu0  ;;  %11216 = vmatpush3.bf16.msra.mxu0 (!%p9315_p2), %v11215_v21 }
0x477e   :  { %v6505_v7 = vadd.f32 %v6501_v61, %v6430_v12  ;;  %v10499_v1 = vpop.f32.mrb[7].mxu0 }
0x4780   :  { %v6511_v30 = vadd.f32 %v9313_v58, %v6505_v7 }
0x4782   :  { %6513 = vst.msk [vmem:[#allocation9 + $0x8] sm:$0x3] %vm3093_vm6, %v6511_v30  ;;  %v6524_v2 = vsel (!%p9315_p2), %vm3093_vm6, %v6511_v30, -inf }
0x4783   :  { %6525 = vmax.xlane.f32.xlu0 %v6524_v2 }
0x4810   :  { %v6526_v35 = vpop.xlane.xlu0 %6525 }
0x4811   :  { %vm6527_vm10 = vcmp.ge.f32.partialorder %v6511_v30, %v6526_v35 }
0x4812   :  { %v6528_v33 = vsel %vm6527_vm10, %v11902_v13, 32 }
0x4813   :  { %v6529_v31 = vsel %vm3093_vm6, %v6528_v33, 2147483647 }
0x4814   :  { %v6531_v53 = vshra.s32 %v6529_v31, 16  ;;  %v6530_v16 = vand.u32 65535, %v6529_v31 }
0x4816   :  { %v6533_v29 = vcvt.s32.f32 %v6531_v53  ;;  %v6532_v42 = vcvt.s32.f32 %v6530_v16 }
0x4818   :  { %6534 = vmin.xlane.f32.xlu0 %v6533_v29 }
0x48a5   :  { %v6535_v28 = vpop.xlane.xlu0 %6534 }
0x48a6   :  { %vm6536_vm11 = vcmp.eq.f32.partialorder %v6533_v29, %v6535_v28  ;;  %v6541_v47 = vcvt.f32.s32 %v6535_v28 }
0x48a7   :  { %v6537_v26 = vsel %vm6536_vm11, %v6532_v42, inf }
0x48a8   :  { %6538 = vmin.xlane.f32.xlu1 %v6537_v26  ;;  %v6542_v40 = vshll.u32 %v6541_v47, 16 }
0x4935   :  { %v6539_v36 = vpop.xlane.xlu1 %6538 }
0x4936   :  { %v6540_v38 = vcvt.f32.s32 %v6539_v36 }
0x4938   :  { %v6543_v63 = vadd.s32 %v6542_v40, %v6540_v38 }
0x493a   :  { %vm6544_vm13 = vcmp.eq.s32.totalorder %v11902_v13, %v6543_v63 }
0x493b   :  { %v9316_v11 = vsel %vm6544_vm13, 1.0, %v11842_v41 }
0x493c   :  { %10509 = vmatmul.mubr.msk.f32.vlgmr.msra.gmra.mrb[0].mxu0 %vm56_vm0, %v9316_v11 }
0x4a0f   :  { %v6620_v14 = vpop.f32.mrb[0].mxu0 }
0x4a10   :  { %6624 = vst.msk [vmem:[#allocation3] sm:$0x3] %vm3100_vm9, %v6620_v14  ;;  %v10510_v57 = vpop.f32.mrb[1].mxu0 }
0x4a11 PF:  { %11217 = vmatprep.subr.bf16.mxu0 %v11825_v19  ;;  %v6626_v18 = vld [vmem:[#allocation6 + $0x108] sm:$0xff]  ;;  %v6627_v59 = vld [vmem:[#allocation6 + $0x110] sm:$0xff]  ;;  %v6628_v62 = vld [vmem:[#allocation6 + $0x118] sm:$0xff]  ;;  %10519 = vmatprep.mubr.msk.f32.mxu0 %vm11826_vm4, %v11824_v15  ;;  %vm7393_vm14 = vcmask 1046534   ;;  %vm7396_vm15 = vcmask 129029   ;;  %s9331_s19 = sld [smem:[#allocation5 + $0x5]] }
0x4a12   :  { %v11218_v49 = vpack.c.bf16 %v6627_v59, %v6626_v18  ;;  %v6629_v56 = vld [vmem:[#allocation6 + $0x120] sm:$0xff]  ;;  %11700 = vset.pattern.permute.xlu0 %v11823_v0  ;;  %v6737_v45 = vld [vmem:[#allocation6 + $0x170] sm:$0xff]  ;;  %v6738_v43 = vld [vmem:[#allocation6 + $0x178] sm:$0xff]  ;;  %v7394_v53 = vsel %vm7393_vm14, %v11993_v24, %v11995_v32 }
0x4a13   :  { %v11221_v50 = vpack.c.bf16 %v6629_v56, %v6628_v62  ;;  %v6739_v6 = vld [vmem:[#allocation6 + $0x180] sm:$0xff]  ;;  %v11223_v46 = vpack.c.bf16 %v6738_v43, %v6737_v45  ;;  %v6740_v51 = vld [vmem:[#allocation6 + $0x188] sm:$0xff]  ;;  %v6886_v2 = vld [vmem:[#allocation6 + $0x190] sm:$0xff] }
0x4a14   :  { %11219 = vmatpush3.bf16.msra.mxu0 %v11218_v49  ;;  %v11227_v17 = vpack.c.bf16 %v6740_v51, %v6739_v6  ;;  %v6887_v35 = vld [vmem:[#allocation6 + $0x198] sm:$0xff]  ;;  %v7050_v29 = vld [vmem:[#allocation6 + $0x1e0] sm:$0xff]  ;;  %v7051_v37 = vld [vmem:[#allocation6 + $0x1e8] sm:$0xff] }
0x4a15   :  { %11220 = vmatprep.subr.bf16.mxu0 %v11825_v19  ;;  %11224 = vmatprep.subr.bf16.mxu1 %v11223_v46  ;;  %v11244_v33 = vpack.c.bf16 %v6887_v35, %v6886_v2  ;;  %v11247_v5 = vpack.c.bf16 %v7051_v37, %v7050_v29  ;;  %v7052_v25 = vld [vmem:[#allocation6 + $0x1f0] sm:$0xff]  ;;  %v7053_v48 = vld [vmem:[#allocation6 + $0x1f8] sm:$0xff]  ;;  %v6888_v2 = vld [vmem:[#allocation6 + $0x1a0] sm:$0xff] }
0x4a16   :  { %11226 = vmatpush3.bf16.msra.mxu1 %v11223_v46  ;;  %v11250_v16 = vpack.c.bf16 %v7053_v48, %v7052_v25  ;;  %v6889_v35 = vld [vmem:[#allocation6 + $0x1a8] sm:$0xff]  ;;  %v7160_v29 = vld [vmem:[#allocation6 + $0x238] sm:$0xff]  ;;  %v7161_v48 = vld [vmem:[#allocation6 + $0x240] sm:$0xff] }
0x4a17   :  { %11228 = vmatprep.subr.bf16.mxu1 %v11227_v17  ;;  %v12893_v31 = vld [vmem:[#allocation3] sm:$0x3]  ;;  %p9332_p3 = scmp.ne.s32.totalorder %s9331_s19, 0 }
0x4a18   :  { %11222 = vmatpush3.bf16.msra.mxu0 %v11221_v50  ;;  %7397 = vst.msk [vmem:[#allocation3 - $0x5] sm:$0x60] %vm7396_vm15, %v7394_v53  ;;  %v11232_v53 = vpack.c.bf16 %v6889_v35, %v6888_v2  ;;  %v6891_v25 = vld [vmem:[#allocation6 + $0x1b8] sm:$0xff]  ;;  %v9323_v2 = vld [vmem:[#allocation6 + $0x200] ss:$0 sm:$0xff]  ;;  %vm11844_vm10 = vmmov (!%p9332_p3), 0  }
0x4a19   :  { %11231 = vmatprep.subr.bf16.mxu0 %v11825_v19 }
0x4a1a   :  { %11230 = vmatpush3.bf16.msra.mxu1 %v11227_v17 }
0x4a1b   :  { %10520 = vmatmul.mubr.msk.f32.vlgmr.msra.gmra.mrb[0].mxu0 %vm56_vm0, %v12856_v3  ;;  %11243 = vmatprep.subr.bf16.mxu1 %v11825_v19 }
0x4a1c   :  { %10549 = vmatprep.mubr.msk.f32.mxu0 %vm11826_vm4, %v11824_v15  ;;  %11233 = vmatpush3.bf16.msra.mxu0 %v11232_v53 }
0x4a1d   :  { %11234 = vmatprep.subr.bf16.mxu0 %v11825_v19 }
0x4aee   :  { %v6696_v20 = vpop.f32.mrb[0].mxu0 }
0x4aef   :  { %v6707_v4 = vrot.slane %v6696_v20, %v12539_v44  ;;  %v10521_v8 = vpop.f32.mrb[1].mxu0 }
0x4af1   :  { %v6708_v10 = vcombine.high %v6707_v4, %v6707_v4  ;;  %v6715_v55 = vrot.slane %v6707_v4, %v12539_v44 }
0x4af3   :  { %v6722_v12 = vrot.slane %v6708_v10, %v12539_v44  ;;  %v6726_v60 = vrot.slane %v6715_v55, %v12542_v52 }
0x4af5   :  { %v6730_v61 = vrot.slane %v6722_v12, %v12542_v52  ;;  %v6733_v58 = vadd.f32 %v6726_v60, %v12545_v22 }
0x4af7   :  { %v6734_v7 = vadd.f32 %v6730_v61, %v12549_v9  ;;  %11701 = vtanh.f32 %v6733_v58 }
0x4af9   :  { %11703 = vtanh.f32 %v6734_v7 }
0x4b01   :  { %v11702_v1 = vpop.eup %11701 }
0x4b02   :  { %10530 = vmatprep.mubr.msk.f32.mxu1 %vm56_vm0, %v11702_v1 }
0x4b03   :  { %v11704_v30 = vpop.eup %11703 }
0x4b04   :  { %10531 = vmatmul.mubr.msk.f32.vlgmr.msra.gmra.mrb[0].mxu1 %vm56_vm0, %v11704_v30 }
0x4b05   :  { %10556 = vmatprep.mubr.msk.f32.mxu1 %vm11826_vm4, %v11824_v15  ;;  %11245 = vmatpush3.bf16.msra.mxu1 %v11244_v33  ;;  %v7159_v33 = vld [vmem:[#allocation6 + $0x230] sm:$0xff] }
0x4b06   :  { %11246 = vmatprep.subr.bf16.mxu1 %v11825_v19  ;;  %v11253_v37 = vpack.c.bf16 %v7160_v29, %v7159_v33 }
0x4b08   :  { %10557 = vmatmul.mubr.msk.f32.vlgmr.msra.gmra.mrb[2].mxu1 %vm244_vm3, %v12893_v31 }
0x4b09   :  { %11248 = vmatpush3.bf16.msra.mxu1 %v11247_v5  ;;  %10567 = vmatprep.mubr.msk.f32.mxu1 %vm11826_vm4, %v11824_v15  ;;  %v6890_v5 = vld [vmem:[#allocation6 + $0x1b0] sm:$0xff] }
0x4b0a   :  { %11249 = vmatprep.subr.bf16.mxu1 %v11825_v19 }
0x4b0d   :  { %11251 = vmatpush3.bf16.msra.mxu1 %v11250_v16  ;;  %v11235_v16 = vpack.c.bf16 %v6891_v25, %v6890_v5 }
0x4b0e   :  { %11252 = vmatprep.subr.bf16.mxu1 %v11825_v19 }
0x4b0f   :  { %11236 = vmatpush3.bf16.msra.mxu0 %v11235_v16 }
0x4b10   :  { %10568 = vmatmul.mubr.msk.f32.vlgmr.msra.gmra.mrb[4].mxu1 %vm56_vm0, %v12856_v3  ;;  %11237 = vmatprep.subr.bf16.mxu0 %v11825_v19 }
0x4b11   :  { %10586 = vmatprep.mubr.msk.f32.mxu1 %vm11826_vm4, %v11824_v15  ;;  %11254 = vmatpush3.bf16.msra.mxu1 %v11253_v37 }
0x4b12   :  { %11255 = vmatprep.subr.bf16.mxu1 %v11825_v19 }
0x4bd7   :  { %v10532_v28 = vpop.f32.mrb[0].mxu1 }
0x4bd8   :  { %v6829_v42 = vsel %vm3302_vm2, %v10532_v28, -inf  ;;  %v6813_v26 = vpop.f32.mrb[1].mxu1 }
0x4bd9   :  { %v6830_v23 = vrot.slane %v6829_v42, 4  ;;  %v6822_v54 = vsel %vm3302_vm2, %v6813_v26, -inf }
0x4bda   :  { %v6823_v21 = vrot.slane %v6822_v54, 4 }
0x4bdb   :  { %v6831_v41 = vmax.f32 %v6829_v42, %v6830_v23  ;;  %v6893_v23 = vld [vmem:[#allocation6 + $0x1c8] sm:$0xff] }
0x4bdc   :  { %v6824_v47 = vmax.f32 %v6822_v54, %v6823_v21  ;;  %v7163_v54 = vld [vmem:[#allocation6 + $0x250] sm:$0xff] }
0x4bdd   :  { %v6832_v36 = vrot.slane %v6831_v41, 2 }
0x4bde   :  { %v6825_v40 = vrot.slane %v6824_v47, 2 }
0x4bdf   :  { %v6833_v38 = vmax.f32 %v6831_v41, %v6832_v36  ;;  %v7164_v41 = vld [vmem:[#allocation6 + $0x258] sm:$0xff]  ;;  %v6894_v36 = vld [vmem:[#allocation6 + $0x1d0] sm:$0xff] }
0x4be0   :  { %v6826_v63 = vmax.f32 %v6824_v47, %v6825_v40  ;;  %v11259_v47 = vpack.c.bf16 %v7164_v41, %v7163_v54  ;;  %v6895_v40 = vld [vmem:[#allocation6 + $0x1d8] sm:$0xff] }
0x4be1   :  { %v6834_v11 = vrot.slane %v6833_v38, 1  ;;  %v7156_v41 = vld [vmem:[#allocation6 + $0x218] sm:$0xff] }
0x4be2   :  { %v6827_v14 = vrot.slane %v6826_v63, 1 }
0x4be3   :  { %v6835_v3 = vmax.f32 %v6833_v38, %v6834_v11  ;;  %v7165_v38 = vld [vmem:[#allocation6 + $0x260] sm:$0xff]  ;;  %v7166_v11 = vld [vmem:[#allocation6 + $0x268] sm:$0xff] }
0x4be4   :  { %v6828_v57 = vmax.f32 %v6826_v63, %v6827_v14  ;;  %v11241_v63 = vpack.c.bf16 %v6895_v40, %v6894_v36  ;;  %v11262_v14 = vpack.c.bf16 %v7166_v11, %v7165_v38  ;;  %v7158_v40 = vld [vmem:[#allocation6 + $0x228] sm:$0xff] }
0x4be5   :  { %v6837_v18 = vsub.f32 %v10532_v28, %v6835_v3  ;;  %v7162_v28 = vld [vmem:[#allocation6 + $0x248] sm:$0xff]  ;;  %v7040_v3 = vpop.f32.mrb[2].mxu1 }
0x4be6   :  { %v6836_v59 = vsub.f32 %v6813_v26, %v6828_v57  ;;  %v11256_v42 = vpack.c.bf16 %v7162_v28, %v7161_v48  ;;  %v6892_v26 = vld [vmem:[#allocation6 + $0x1c0] sm:$0xff]  ;;  %v10558_v57 = vpop.f32.mrb[3].mxu1 }
0x4be7   :  { %v6840_v62 = vmul.f32 1.442695, %v6837_v18  ;;  %v11238_v21 = vpack.c.bf16 %v6893_v23, %v6892_v26  ;;  %v9324_v18 = vld [vmem:[#allocation6 + $0x208] ss:$0 sm:$0xff] }
0x4be8   :  { %v6838_v49 = vmul.f32 1.442695, %v6836_v59  ;;  %11257 = vmatpush3.bf16.msra.mxu1 %v11256_v42  ;;  %v7125_v59 = vpop.f32.mrb[4].mxu1 }
0x4be9   :  { %11705 = vpow2.f32 %v6840_v62  ;;  %11258 = vmatprep.subr.bf16.mxu1 %v11825_v19  ;;  %11239 = vmatpush3.bf16.msra.mxu0 %v11238_v21  ;;  %v7126_v62 = vadd.f32 %v9324_v18, %v7125_v59  ;;  %v7155_v21 = vld [vmem:[#allocation6 + $0x210] sm:$0xff] }
0x4bea   :  { %11707 = vpow2.f32 %v6838_v49  ;;  %11240 = vmatprep.subr.bf16.mxu0 %v11825_v19  ;;  %v10569_v49 = vpop.f32.mrb[5].mxu1  ;;  %v11265_v36 = vpack.c.bf16 %v7156_v41, %v7155_v21  ;;  %v7312_v59 = vld [vmem:[#allocation6 + $0x270] sm:$0xff] }
0x4beb   :  { %7137 = vrot.lane.b32.xlu1 %v7126_v62, %s11827_s2 }
0x4bec   :  { %11260 = vmatpush3.bf16.msra.mxu1 %v11259_v47  ;;  %v7157_v47 = vld [vmem:[#allocation6 + $0x220] sm:$0xff] }
0x4bed   :  { %11261 = vmatprep.subr.bf16.mxu1 %v11825_v19  ;;  %11242 = vmatpush3.bf16.msra.mxu0 %v11241_v63  ;;  %v11268_v38 = vpack.c.bf16 %v7158_v40, %v7157_v47 }
0x4bee   :  { %11264 = vmatprep.subr.bf16.mxu0 %v11825_v19 }
0x4bf0   :  { %11263 = vmatpush3.bf16.msra.mxu1 %v11262_v14 }
0x4bf3   :  { %v11706_v56 = vpop.eup %11705 }
0x4bf4   :  { %v11708_v50 = vpop.eup %11707  ;;  %v6849_v45 = vsel %vm3302_vm2, %v11706_v56, 0.0 }
0x4bf5   :  { %v6850_v43 = vrot.slane %v6849_v45, 4  ;;  %v6842_v6 = vsel %vm3302_vm2, %v11708_v50, 0.0 }
0x4bf6   :  { %v6843_v46 = vrot.slane %v6842_v6, 4 }
0x4bf7   :  { %v6851_v51 = vadd.f32 %v6850_v43, %v6849_v45 }
0x4bf8   :  { %v6844_v17 = vadd.f32 %v6843_v46, %v6842_v6 }
0x4bf9   :  { %v6852_v20 = vrot.slane %v6851_v51, 2 }
0x4bfa   :  { %v6845_v4 = vrot.slane %v6844_v17, 2 }
0x4bfb   :  { %v6853_v8 = vadd.f32 %v6852_v20, %v6851_v51 }
0x4bfc   :  { %v6846_v10 = vadd.f32 %v6845_v4, %v6844_v17 }
0x4bfd   :  { %v6854_v55 = vrot.slane %v6853_v8, 1 }
0x4bfe   :  { %v6847_v12 = vrot.slane %v6846_v10, 1 }
0x4bff   :  { %v6855_v61 = vadd.f32 %v6854_v55, %v6853_v8 }
0x4c00   :  { %v6848_v60 = vadd.f32 %v6847_v12, %v6846_v10 }
0x4c02   :  { %11709 = vrcp.f32 %v6848_v60 }
0x4c03   :  { %11711 = vrcp.f32 %v6855_v61 }
0x4c0c   :  { %v11710_v58 = vpop.eup %11709 }
0x4c0d   :  { %v6857_v7 = vmul.f32 %v11710_v58, %v11708_v50  ;;  %v11712_v1 = vpop.eup %11711 }
0x4c0e   :  { %v6859_v30 = vmul.f32 %v11712_v1, %v11706_v56 }
0x4c0f   :  { %6862 = vperm.xlu0 %11700, %v6857_v7  }
0x4c13   :  { %6867 = vperm.xlu0 %11700, %v6859_v30  }
0x4c5d   :  { %v7138_v28 = vpop.permute.xlu1 %7137 }
0x4c8e   :  { %v6863_v56 = vpop.permute.xlu0 %6862 }
0x4c8f   :  { %v6870_v50 = vmul.f32 %v6863_v56, %v12514_v34 }
0x4c91   :  { %v6872_v45 = vsel %vm3011_vm1, %v6870_v50, 0.0 }
0x4c92   :  { %v6873_v43 = vrot.slane %v6872_v45, 4  ;;  %v6868_v6 = vpop.permute.xlu0 %6867 }
0x4c93   :  { %v6871_v46 = vmul.f32 %v6868_v6, %v12526_v27  ;;  %v9330_v6 = vld [vmem:[#allocation6 + $0x280] ss:$0 sm:$0xff] }
0x4c94   :  { %v6874_v51 = vadd.f32 %v6873_v43, %v6872_v45 }
0x4c95   :  { %v6879_v17 = vsel %vm3011_vm1, %v6871_v46, 0.0 }
0x4c96   :  { %v6875_v20 = vrot.slane %v6874_v51, 2  ;;  %v6880_v4 = vrot.slane %v6879_v17, 4 }
0x4c98   :  { %v6876_v8 = vadd.f32 %v6875_v20, %v6874_v51  ;;  %v6881_v10 = vadd.f32 %v6880_v4, %v6879_v17 }
0x4c9a   :  { %v6882_v55 = vrot.slane %v6881_v10, 2  ;;  %v6877_v12 = vrot.slane %v6876_v8, 1 }
0x4c9c   :  { %v6883_v60 = vadd.f32 %v6882_v55, %v6881_v10  ;;  %v6878_v58 = vadd.f32 %v6877_v12, %v6876_v8  ;;  %v7426_v12 = vld [vmem:[#allocation6 + $0x20] sm:$0xff] (!%p9332_p3) }
0x4c9e   :  { %v6884_v61 = vrot.slane %v6883_v60, 1 }
0x4ca0   :  { %v6885_v7 = vadd.f32 %v6884_v61, %v6883_v60  ;;  %v7427_v60 = vld [vmem:[#allocation6 + $0x28] sm:$0xff] (!%p9332_p3)  ;;  %v11843_v61 = vmov (!%p9332_p3), 0.0|0.0  }
0x4ca2   :  { %v6898_v1 = vsel %vm565_vm5, %v6885_v7, %v6878_v58  ;;  %v11274_v58 = vpack.c.bf16 (!%p9332_p3), %v7427_v60, %v7426_v12 }
0x4ca3   :  { %10550 = vmatmul.mubr.msk.f32.vlgmr.msra.gmra.mrb[2].mxu0 %vm3011_vm1, %v6898_v1  ;;  %10587 = vmatmul.mubr.msk.f32.vlgmr.msra.gmra.mrb[6].mxu1 %vm3011_vm1, %v6898_v1 }
0x4ca4   :  { %10597 = vmatprep.mubr.msk.f32.mxu0 %vm11826_vm4, %v11824_v15  ;;  %11266 = vmatpush3.bf16.msra.mxu0 %v11265_v36 }
0x4ca5   :  { %11267 = vmatprep.subr.bf16.mxu0 %v11825_v19 }
0x4ca8   :  { %11269 = vmatpush3.bf16.msra.mxu0 %v11268_v38 }
0x4ca9   :  { %11270 = vmatprep.subr.bf16.mxu0 %v11825_v19 }
0x4d76   :  { %v6967_v30 = vpop.f32.mrb[2].mxu0  ;;  %v7233_v35 = vpop.f32.mrb[6].mxu1 }
0x4d77   :  { %v7041_v33 = vadd.f32 %v7040_v3, %v6967_v30  ;;  %v10551_v53 = vpop.f32.mrb[3].mxu0  ;;  %v10588_v29 = vpop.f32.mrb[7].mxu1 }
0x4d78   :  { %v11845_v29 = vmov (!%p9332_p3), 0.0  }
0x4d79   :  { %v7049_v37 = vadd.f32 %v9323_v2, %v7041_v33  ;;  %v7429_v33 = vld [vmem:[#allocation6 + $0x38] sm:$0xff] (!%p9332_p3) }
0x4d7b   :  { %v7129_v5 = vadd.f32 %v7126_v62, %v7049_v37  ;;  %v7313_v62 = vld [vmem:[#allocation6 + $0x278] sm:$0xff] }
0x4d7c   :  { %v11271_v49 = vpack.c.bf16 %v7313_v62, %v7312_v59 }
0x4d7d   :  { %v9326_v25 = vmul.f32 -1.442695, %v7129_v5 }
0x4d7f   :  { %11713 = vpow2.f32 %v9326_v25 }
0x4d89   :  { %v11714_v48 = vpop.eup %11713 }
0x4d8a   :  { %v7133_v16 = vadd.f32 1.0, %v11714_v48 }
0x4d8c   :  { %11715 = vrcp.f32 %v7133_v16 }
0x4d96   :  { %v11716_v42 = vpop.eup %11715 }
0x4d97   :  { %v7140_v26 = vmul.f32 %v11716_v42, %v7138_v28  ;;  %v7147_v11 = vsub.f32 1.0, %v11716_v42  ;;  %v7153_v57 = vmul.f32 %v11716_v42, %v12852_v39 }
0x4d99   :  { %7142 = vrot.lane.b32.xlu1 %v7140_v26, %s11827_s2 }
0x4e0b   :  { %v7143_v23 = vpop.permute.xlu1 %7142 }
0x4e0c   :  { %v7145_v54 = vadd.f32 %v7143_v23, %v7049_v37 }
0x4e0e   :  { %11717 = vtanh.f32 %v7145_v54 }
0x4e18   :  { %v11718_v63 = vpop.eup %11717 }
0x4e19   :  { %7149 = vrot.lane.b32.xlu0 %v11718_v63, %s11828_s11 }
0x4e8b   :  { %v7150_v14 = vpop.permute.xlu0 %7149 }
0x4e8c   :  { %v7152_v3 = vmul.f32 %v7150_v14, %v7147_v11 }
0x4e8e   :  { %v12934_v18 = vadd.f32 %v7153_v57, %v7152_v3 }
0x4e90   :  { %7238 = vrot.lane.b32.xlu1 %v12934_v18, %s11828_s11 }
0x4f02   :  { %v12938_v56 = vpop.permute.xlu1 %7238 }
0x4f03   :  { %10598 = vmatmul.mubr.msk.f32.vlgmr.msra.gmra.mrb[4].mxu0 %vm56_vm0, %v12938_v56 }
0x4f04   :  { %11272 = vmatpush3.bf16.msra.mxu0 %v11271_v49  ;;  %10604 = vmatprep.mubr.msk.f32.mxu0 %vm11826_vm4, %v11824_v15 }
0x4f05   :  { %11273 = vmatprep.subr.bf16.mxu0 (!%p9332_p3), %v11843_v61 }
0x4f07   :  { %10605 = vmatmul.mubr.msk.f32.vlgmr.msra.gmra.mrb[6].mxu0 %vm244_vm3, %v12893_v31 }
0x4f08   :  { %11275 = vmatpush3.bf16.msra.mxu0 (!%p9332_p3), %v11274_v58  ;;  %10615 = vmatprep.mubr.msk.f32.mxu0 (!%p9332_p3), %vm11844_vm10, %v11845_v29 }
0x4f09   :  { %11276 = vmatprep.subr.bf16.mxu0 (!%p9332_p3), %v11843_v61 }
0x4fd6   :  { %v7308_v39 = vpop.f32.mrb[4].mxu0 }
0x4fd7   :  { %v7309_v50 = vadd.f32 %v7308_v39, %v7233_v35  ;;  %v10599_v45 = vpop.f32.mrb[5].mxu0  ;;  %v7428_v35 = vld [vmem:[#allocation6 + $0x30] sm:$0xff] (!%p9332_p3) }
0x4fd8   :  { %v11277_v53 = vpack.c.bf16 (!%p9332_p3), %v7429_v33, %v7428_v35 }
0x4fd9   :  { %7402 = sbr.rel (%p9332_p3) target bundleno = 21102 (0x526e), region = 37 }
0x4fda   :  { %v7380_v43 = vpop.f32.mrb[6].mxu0  ;;  %11278 = vmatpush3.bf16.msra.mxu0 (!%p9332_p3), %v11277_v53 }
0x4fdb   :  { %v7384_v46 = vadd.f32 %v7380_v43, %v7309_v50  ;;  %v10606_v51 = vpop.f32.mrb[7].mxu0 }
0x4fdd   :  { %v7390_v17 = vadd.f32 %v9330_v6, %v7384_v46 }
0x4fdf   :  { %7392 = vst.msk [vmem:[#allocation9 + $0xa] sm:$0x3] %vm3093_vm6, %v7390_v17  ;;  %v7403_v20 = vsel (!%p9332_p3), %vm3093_vm6, %v7390_v17, -inf }
0x4fe0   :  { %7404 = vmax.xlane.f32.xlu0 %v7403_v20 }
0x506d   :  { %v7405_v4 = vpop.xlane.xlu0 %7404 }
0x506e   :  { %vm7406_vm7 = vcmp.ge.f32.partialorder %v7390_v17, %v7405_v4 }
0x506f   :  { %v7407_v31 = vsel %vm7406_vm7, %v11902_v13, 32 }
0x5070   :  { %v7408_v8 = vsel %vm3093_vm6, %v7407_v31, 2147483647 }
0x5071   :  { %v7410_v10 = vshra.s32 %v7408_v8, 16  ;;  %v7409_v7 = vand.u32 65535, %v7408_v8 }
0x5073   :  { %v7412_v55 = vcvt.s32.f32 %v7410_v10  ;;  %v7411_v30 = vcvt.s32.f32 %v7409_v7 }
0x5075   :  { %7413 = vmin.xlane.f32.xlu0 %v7412_v55 }
0x5102   :  { %v7414_v1 = vpop.xlane.xlu0 %7413 }
0x5103   :  { %vm7415_vm8 = vcmp.eq.f32.partialorder %v7412_v55, %v7414_v1  ;;  %v7420_v37 = vcvt.f32.s32 %v7414_v1 }
0x5104   :  { %v7416_v2 = vsel %vm7415_vm8, %v7411_v30, inf }
0x5105   :  { %7417 = vmin.xlane.f32.xlu1 %v7416_v2  ;;  %v7421_v25 = vshll.u32 %v7420_v37, 16 }
0x5192   :  { %v7418_v5 = vpop.xlane.xlu1 %7417 }
0x5193   :  { %v7419_v48 = vcvt.f32.s32 %v7418_v5 }
0x5195   :  { %v7422_v16 = vadd.s32 %v7421_v25, %v7419_v48 }
0x5197   :  { %vm7423_vm11 = vcmp.eq.s32.totalorder %v11902_v13, %v7422_v16 }
0x5198   :  { %v9333_v28 = vsel %vm7423_vm11, 1.0, %v11845_v29 }
0x5199   :  { %10616 = vmatmul.mubr.msk.f32.vlgmr.msra.gmra.mrb[0].mxu0 %vm56_vm0, %v9333_v28 }
0x526c   :  { %v7499_v42 = vpop.f32.mrb[0].mxu0 }
0x526d   :  { %7503 = vst.msk [vmem:[#allocation3] sm:$0x3] %vm3100_vm9, %v7499_v42  ;;  %v10617_v26 = vpop.f32.mrb[1].mxu0 }
0x526e PF:  { %11279 = vmatprep.subr.bf16.mxu0 %v11825_v19  ;;  %v7505_v23 = vld [vmem:[#allocation6 + $0x108] sm:$0xff]  ;;  %v7506_v54 = vld [vmem:[#allocation6 + $0x110] sm:$0xff]  ;;  %v7507_v21 = vld [vmem:[#allocation6 + $0x118] sm:$0xff]  ;;  %10626 = vmatprep.mubr.msk.f32.mxu0 %vm11826_vm4, %v11824_v15  ;;  %vm8272_vm12 = vcmask 1047559   ;;  %vm8275_vm13 = vcmask 130054   ;;  %s9348_s20 = sld [smem:[#allocation5 + $0x6]] }
0x526f   :  { %v11280_v41 = vpack.c.bf16 %v7506_v54, %v7505_v23  ;;  %v7508_v47 = vld [vmem:[#allocation6 + $0x120] sm:$0xff]  ;;  %11719 = vset.pattern.permute.xlu0 %v11823_v0  ;;  %v7616_v40 = vld [vmem:[#allocation6 + $0x170] sm:$0xff]  ;;  %v7617_v38 = vld [vmem:[#allocation6 + $0x178] sm:$0xff]  ;;  %v8273_v10 = vsel %vm8272_vm12, %v11993_v24, %v11995_v32 }
0x5270   :  { %v11283_v36 = vpack.c.bf16 %v7508_v47, %v7507_v21  ;;  %v7618_v63 = vld [vmem:[#allocation6 + $0x180] sm:$0xff]  ;;  %v11285_v11 = vpack.c.bf16 %v7617_v38, %v7616_v40  ;;  %v7619_v14 = vld [vmem:[#allocation6 + $0x188] sm:$0xff]  ;;  %v7765_v20 = vld [vmem:[#allocation6 + $0x190] sm:$0xff] }
0x5271   :  { %11281 = vmatpush3.bf16.msra.mxu0 %v11280_v41  ;;  %v11289_v3 = vpack.c.bf16 %v7619_v14, %v7618_v63  ;;  %v7766_v4 = vld [vmem:[#allocation6 + $0x198] sm:$0xff]  ;;  %v7929_v55 = vld [vmem:[#allocation6 + $0x1e0] sm:$0xff]  ;;  %v7930_v12 = vld [vmem:[#allocation6 + $0x1e8] sm:$0xff] }
0x5272   :  { %11282 = vmatprep.subr.bf16.mxu0 %v11825_v19  ;;  %11286 = vmatprep.subr.bf16.mxu1 %v11285_v11  ;;  %v11306_v31 = vpack.c.bf16 %v7766_v4, %v7765_v20  ;;  %v11309_v60 = vpack.c.bf16 %v7930_v12, %v7929_v55  ;;  %v7931_v61 = vld [vmem:[#allocation6 + $0x1f0] sm:$0xff]  ;;  %v7932_v58 = vld [vmem:[#allocation6 + $0x1f8] sm:$0xff] }
0x5273   :  { %11288 = vmatpush3.bf16.msra.mxu1 %v11285_v11  ;;  %v11312_v7 = vpack.c.bf16 %v7932_v58, %v7931_v61  ;;  %v8038_v20 = vld [vmem:[#allocation6 + $0x230] sm:$0xff]  ;;  %v7770_v12 = vld [vmem:[#allocation6 + $0x1b8] sm:$0xff]  ;;  %v8041_v58 = vld [vmem:[#allocation6 + $0x248] sm:$0xff] }
0x5274   :  { %11290 = vmatprep.subr.bf16.mxu1 %v11289_v3  ;;  %v12975_v8 = vld [vmem:[#allocation3] sm:$0x3]  ;;  %v7769_v55 = vld [vmem:[#allocation6 + $0x1b0] sm:$0xff]  ;;  %p9349_p4 = scmp.ne.s32.totalorder %s9348_s20, 0 }
0x5275   :  { %11284 = vmatpush3.bf16.msra.mxu0 %v11283_v36  ;;  %8276 = vst.msk [vmem:[#allocation3 - $0x6] sm:$0xc0] %vm8275_vm13, %v8273_v10  ;;  %v11297_v61 = vpack.c.bf16 %v7770_v12, %v7769_v55  ;;  %vm11847_vm7 = vmmov (!%p9349_p4), 0  }
0x5276   :  { %11293 = vmatprep.subr.bf16.mxu0 %v11825_v19 }
0x5277   :  { %11292 = vmatpush3.bf16.msra.mxu1 %v11289_v3 }
0x5278   :  { %10627 = vmatmul.mubr.msk.f32.vlgmr.msra.gmra.mrb[0].mxu0 %vm56_vm0, %v12938_v56  ;;  %11305 = vmatprep.subr.bf16.mxu1 %v11825_v19 }
0x5279   :  { %10656 = vmatprep.mubr.msk.f32.mxu0 %vm11826_vm4, %v11824_v15 }
0x534b   :  { %v7575_v57 = vpop.f32.mrb[0].mxu0 }
0x534c   :  { %v7586_v59 = vrot.slane %v7575_v57, %v12539_v44  ;;  %v10628_v62 = vpop.f32.mrb[1].mxu0 }
0x534e   :  { %v7587_v49 = vcombine.high %v7586_v59, %v7586_v59  ;;  %v7594_v39 = vrot.slane %v7586_v59, %v12539_v44 }
0x5350   :  { %v7601_v50 = vrot.slane %v7587_v49, %v12539_v44  ;;  %v7605_v45 = vrot.slane %v7594_v39, %v12542_v52 }
0x5352   :  { %v7609_v43 = vrot.slane %v7601_v50, %v12542_v52  ;;  %v7612_v6 = vadd.f32 %v7605_v45, %v12545_v22 }
0x5354   :  { %v7613_v46 = vadd.f32 %v7609_v43, %v12549_v9  ;;  %11720 = vtanh.f32 %v7612_v6 }
0x5356   :  { %11722 = vtanh.f32 %v7613_v46 }
0x535e   :  { %v11721_v51 = vpop.eup %11720 }
0x535f   :  { %10637 = vmatprep.mubr.msk.f32.mxu1 %vm56_vm0, %v11721_v51  ;;  %v7767_v51 = vld [vmem:[#allocation6 + $0x1a0] sm:$0xff] }
0x5360   :  { %v11723_v17 = vpop.eup %11722 }
0x5361   :  { %10638 = vmatmul.mubr.msk.f32.vlgmr.msra.gmra.mrb[0].mxu1 %vm56_vm0, %v11723_v17  ;;  %v7768_v17 = vld [vmem:[#allocation6 + $0x1a8] sm:$0xff] }
0x5362   :  { %10663 = vmatprep.mubr.msk.f32.mxu1 %vm11826_vm4, %v11824_v15  ;;  %11307 = vmatpush3.bf16.msra.mxu1 %v11306_v31  ;;  %v11294_v4 = vpack.c.bf16 %v7768_v17, %v7767_v51  ;;  %v8039_v31 = vld [vmem:[#allocation6 + $0x238] sm:$0xff] }
0x5363   :  { %11308 = vmatprep.subr.bf16.mxu1 %v11825_v19  ;;  %v11315_v10 = vpack.c.bf16 %v8039_v31, %v8038_v20 }
0x5364   :  { %11295 = vmatpush3.bf16.msra.mxu0 %v11294_v4 }
0x5365   :  { %10664 = vmatmul.mubr.msk.f32.vlgmr.msra.gmra.mrb[2].mxu1 %vm244_vm3, %v12975_v8  ;;  %11296 = vmatprep.subr.bf16.mxu0 %v11825_v19 }
0x5366   :  { %11310 = vmatpush3.bf16.msra.mxu1 %v11309_v60  ;;  %10674 = vmatprep.mubr.msk.f32.mxu1 %vm11826_vm4, %v11824_v15  ;;  %v8040_v60 = vld [vmem:[#allocation6 + $0x240] sm:$0xff] }
0x5367   :  { %11311 = vmatprep.subr.bf16.mxu1 %v11825_v19 }
0x5368   :  { %11298 = vmatpush3.bf16.msra.mxu0 %v11297_v61 }
0x5369   :  { %11299 = vmatprep.subr.bf16.mxu0 %v11825_v19 }
0x536a   :  { %11313 = vmatpush3.bf16.msra.mxu1 %v11312_v7  ;;  %v11318_v7 = vpack.c.bf16 %v8041_v58, %v8040_v60 }
0x536b   :  { %11314 = vmatprep.subr.bf16.mxu1 %v11825_v19 }
0x536d   :  { %10675 = vmatmul.mubr.msk.f32.vlgmr.msra.gmra.mrb[4].mxu1 %vm56_vm0, %v12938_v56 }
0x536e   :  { %10693 = vmatprep.mubr.msk.f32.mxu1 %vm11826_vm4, %v11824_v15  ;;  %11316 = vmatpush3.bf16.msra.mxu1 %v11315_v10 }
0x536f   :  { %11317 = vmatprep.subr.bf16.mxu1 %v11825_v19 }
0x5372   :  { %11319 = vmatpush3.bf16.msra.mxu1 %v11318_v7 }
0x5373   :  { %11320 = vmatprep.subr.bf16.mxu1 %v11825_v19 }
0x5434   :  { %v10639_v24 = vpop.f32.mrb[0].mxu1 }
0x5435   :  { %v7708_v32 = vsel %vm3302_vm2, %v10639_v24, -inf  ;;  %v7692_v1 = vpop.f32.mrb[1].mxu1 }
0x5436   :  { %v7709_v30 = vrot.slane %v7708_v32, 4  ;;  %v7701_v2 = vsel %vm3302_vm2, %v7692_v1, -inf }
0x5437   :  { %v7702_v35 = vrot.slane %v7701_v2, 4 }
0x5438   :  { %v7710_v33 = vmax.f32 %v7708_v32, %v7709_v30  ;;  %v7772_v32 = vld [vmem:[#allocation6 + $0x1c8] sm:$0xff] }
0x5439   :  { %v7703_v53 = vmax.f32 %v7701_v2, %v7702_v35  ;;  %v8043_v2 = vld [vmem:[#allocation6 + $0x258] sm:$0xff] }
0x543a   :  { %v7711_v29 = vrot.slane %v7710_v33, 2 }
0x543b   :  { %v7704_v37 = vrot.slane %v7703_v53, 2 }
0x543c   :  { %v7712_v5 = vmax.f32 %v7710_v33, %v7711_v29  ;;  %v7773_v33 = vld [vmem:[#allocation6 + $0x1d0] sm:$0xff]  ;;  %v8044_v29 = vld [vmem:[#allocation6 + $0x260] sm:$0xff] }
0x543d   :  { %v7705_v25 = vmax.f32 %v7703_v53, %v7704_v37  ;;  %v7774_v53 = vld [vmem:[#allocation6 + $0x1d8] sm:$0xff] }
0x543e   :  { %v7713_v48 = vrot.slane %v7712_v5, 1  ;;  %v11303_v37 = vpack.c.bf16 %v7774_v53, %v7773_v33 }
0x543f   :  { %v7706_v16 = vrot.slane %v7705_v25, 1 }
0x5440   :  { %v7714_v56 = vmax.f32 %v7712_v5, %v7713_v48  ;;  %v8045_v5 = vld [vmem:[#allocation6 + $0x268] sm:$0xff]  ;;  %v7919_v48 = vpop.f32.mrb[2].mxu1 }
0x5441   :  { %v7707_v28 = vmax.f32 %v7705_v25, %v7706_v16  ;;  %v11324_v25 = vpack.c.bf16 %v8045_v5, %v8044_v29  ;;  %v10665_v16 = vpop.f32.mrb[3].mxu1 }
0x5442   :  { %v7716_v42 = vsub.f32 %v10639_v24, %v7714_v56  ;;  %v7771_v24 = vld [vmem:[#allocation6 + $0x1c0] sm:$0xff]  ;;  %v9341_v56 = vld [vmem:[#allocation6 + $0x208] ss:$0 sm:$0xff]  ;;  %v8191_v16 = vld [vmem:[#allocation6 + $0x270] sm:$0xff] }
0x5443   :  { %v7715_v26 = vsub.f32 %v7692_v1, %v7707_v28  ;;  %v8042_v1 = vld [vmem:[#allocation6 + $0x250] sm:$0xff]  ;;  %v11300_v30 = vpack.c.bf16 %v7772_v32, %v7771_v24  ;;  %v8004_v28 = vpop.f32.mrb[4].mxu1 }
0x5444   :  { %v7719_v23 = vmul.f32 1.442695, %v7716_v42  ;;  %v11321_v35 = vpack.c.bf16 %v8043_v2, %v8042_v1  ;;  %v8005_v42 = vadd.f32 %v9341_v56, %v8004_v28  ;;  %v8034_v32 = vld [vmem:[#allocation6 + $0x210] sm:$0xff]  ;;  %v8035_v1 = vld [vmem:[#allocation6 + $0x218] sm:$0xff] }
0x5445   :  { %v7717_v54 = vmul.f32 1.442695, %v7715_v26  ;;  %11301 = vmatpush3.bf16.msra.mxu0 %v11300_v30  ;;  %v10676_v26 = vpop.f32.mrb[5].mxu1  ;;  %v8036_v30 = vld [vmem:[#allocation6 + $0x220] sm:$0xff]  ;;  %v11327_v2 = vpack.c.bf16 %v8035_v1, %v8034_v32  ;;  %v8192_v56 = vld [vmem:[#allocation6 + $0x278] sm:$0xff] }
0x5446   :  { %11724 = vpow2.f32 %v7719_v23  ;;  %11322 = vmatpush3.bf16.msra.mxu1 %v11321_v35  ;;  %11302 = vmatprep.subr.bf16.mxu0 %v11825_v19  ;;  %v8037_v35 = vld [vmem:[#allocation6 + $0x228] sm:$0xff]  ;;  %v11333_v28 = vpack.c.bf16 %v8192_v56, %v8191_v16 }
0x5447   :  { %11726 = vpow2.f32 %v7717_v54  ;;  %11323 = vmatprep.subr.bf16.mxu1 %v11825_v19  ;;  %8016 = vrot.lane.b32.xlu1 %v8005_v42, %s11827_s2  ;;  %v11330_v33 = vpack.c.bf16 %v8037_v35, %v8036_v30 }
0x5449   :  { %11304 = vmatpush3.bf16.msra.mxu0 %v11303_v37 }
0x544a   :  { %11325 = vmatpush3.bf16.msra.mxu1 %v11324_v25  ;;  %11326 = vmatprep.subr.bf16.mxu0 %v11825_v19 }
0x5450   :  { %v11725_v21 = vpop.eup %11724 }
0x5451   :  { %v11727_v41 = vpop.eup %11726  ;;  %v7728_v47 = vsel %vm3302_vm2, %v11725_v21, 0.0 }
0x5452   :  { %v7729_v36 = vrot.slane %v7728_v47, 4  ;;  %v7721_v40 = vsel %vm3302_vm2, %v11727_v41, 0.0 }
0x5453   :  { %v7722_v38 = vrot.slane %v7721_v40, 4 }
0x5454   :  { %v7730_v63 = vadd.f32 %v7729_v36, %v7728_v47 }
0x5455   :  { %v7723_v11 = vadd.f32 %v7722_v38, %v7721_v40 }
0x5456   :  { %v7731_v14 = vrot.slane %v7730_v63, 2 }
0x5457   :  { %v7724_v3 = vrot.slane %v7723_v11, 2 }
0x5458   :  { %v7732_v57 = vadd.f32 %v7731_v14, %v7730_v63 }
0x5459   :  { %v7725_v59 = vadd.f32 %v7724_v3, %v7723_v11 }
0x545a   :  { %v7733_v62 = vrot.slane %v7732_v57, 1 }
0x545b   :  { %v7726_v49 = vrot.slane %v7725_v59, 1 }
0x545c   :  { %v7734_v50 = vadd.f32 %v7733_v62, %v7732_v57 }
0x545d   :  { %v7727_v39 = vadd.f32 %v7726_v49, %v7725_v59 }
0x545f   :  { %11728 = vrcp.f32 %v7727_v39 }
0x5460   :  { %11730 = vrcp.f32 %v7734_v50 }
0x5469   :  { %v11729_v45 = vpop.eup %11728 }
0x546a   :  { %v7736_v43 = vmul.f32 %v11729_v45, %v11727_v41  ;;  %v11731_v6 = vpop.eup %11730 }
0x546b   :  { %v7738_v46 = vmul.f32 %v11731_v6, %v11725_v21  ;;  %v9340_v6 = vld [vmem:[#allocation6 + $0x200] ss:$0 sm:$0xff] }
0x546c   :  { %7741 = vperm.xlu0 %11719, %v7736_v43  }
0x5470   :  { %7746 = vperm.xlu0 %11719, %v7738_v46  }
0x54b9   :  { %v8017_v60 = vpop.permute.xlu1 %8016 }
0x54eb   :  { %v7742_v23 = vpop.permute.xlu0 %7741 }
0x54ec   :  { %v7749_v54 = vmul.f32 %v7742_v23, %v12514_v34 }
0x54ee   :  { %v7751_v21 = vsel %vm3011_vm1, %v7749_v54, 0.0 }
0x54ef   :  { %v7752_v41 = vrot.slane %v7751_v21, 4  ;;  %v7747_v47 = vpop.permute.xlu0 %7746 }
0x54f0   :  { %v7750_v36 = vmul.f32 %v7747_v47, %v12526_v27 }
0x54f1   :  { %v7753_v40 = vadd.f32 %v7752_v41, %v7751_v21  ;;  %v9347_v21 = vld [vmem:[#allocation6 + $0x280] ss:$0 sm:$0xff] }
0x54f2   :  { %v7758_v38 = vsel %vm3011_vm1, %v7750_v36, 0.0 }
0x54f3   :  { %v7754_v63 = vrot.slane %v7753_v40, 2  ;;  %v7759_v11 = vrot.slane %v7758_v38, 4 }
0x54f5   :  { %v7755_v14 = vadd.f32 %v7754_v63, %v7753_v40  ;;  %v7760_v3 = vadd.f32 %v7759_v11, %v7758_v38 }
0x54f7   :  { %v7761_v57 = vrot.slane %v7760_v3, 2  ;;  %v7756_v59 = vrot.slane %v7755_v14, 1 }
0x54f9   :  { %v7762_v62 = vadd.f32 %v7761_v57, %v7760_v3  ;;  %v7757_v39 = vadd.f32 %v7756_v59, %v7755_v14  ;;  %v8305_v3 = vld [vmem:[#allocation6 + $0x20] sm:$0xff] (!%p9349_p4)  ;;  %v8306_v57 = vld [vmem:[#allocation6 + $0x28] sm:$0xff] (!%p9349_p4)  ;;  %v11846_v59 = vmov (!%p9349_p4), 0.0|0.0  }
0x54fb   :  { %v7763_v49 = vrot.slane %v7762_v62, 1 }
0x54fd   :  { %v7764_v50 = vadd.f32 %v7763_v49, %v7762_v62  ;;  %v11336_v62 = vpack.c.bf16 (!%p9349_p4), %v8306_v57, %v8305_v3 }
0x54ff   :  { %v7777_v45 = vsel %vm565_vm5, %v7764_v50, %v7757_v39 }
0x5500   :  { %10657 = vmatmul.mubr.msk.f32.vlgmr.msra.gmra.mrb[2].mxu0 %vm3011_vm1, %v7777_v45  ;;  %10694 = vmatmul.mubr.msk.f32.vlgmr.msra.gmra.mrb[6].mxu1 %vm3011_vm1, %v7777_v45 }
0x5501   :  { %10704 = vmatprep.mubr.msk.f32.mxu0 %vm11826_vm4, %v11824_v15  ;;  %11328 = vmatpush3.bf16.msra.mxu0 %v11327_v2 }
0x5502   :  { %11329 = vmatprep.subr.bf16.mxu0 %v11825_v19 }
0x5505   :  { %11331 = vmatpush3.bf16.msra.mxu0 %v11330_v33 }
0x5506   :  { %11332 = vmatprep.subr.bf16.mxu0 %v11825_v19 }
0x55d3   :  { %v7846_v43 = vpop.f32.mrb[2].mxu0  ;;  %v8112_v46 = vpop.f32.mrb[6].mxu1 }
0x55d4   :  { %v7920_v51 = vadd.f32 %v7919_v48, %v7846_v43  ;;  %v10658_v17 = vpop.f32.mrb[3].mxu0  ;;  %v10695_v20 = vpop.f32.mrb[7].mxu1  ;;  %v8307_v43 = vld [vmem:[#allocation6 + $0x30] sm:$0xff] (!%p9349_p4) }
0x55d6   :  { %v7928_v4 = vadd.f32 %v9340_v6, %v7920_v51  ;;  %v8308_v6 = vld [vmem:[#allocation6 + $0x38] sm:$0xff] (!%p9349_p4)  ;;  %v11848_v51 = vmov (!%p9349_p4), 0.0  }
0x55d8   :  { %v8008_v31 = vadd.f32 %v8005_v42, %v7928_v4 }
0x55da   :  { %v9343_v10 = vmul.f32 -1.442695, %v8008_v31 }
0x55dc   :  { %11732 = vpow2.f32 %v9343_v10 }
0x55e6   :  { %v11733_v55 = vpop.eup %11732 }
0x55e7   :  { %v8012_v12 = vadd.f32 1.0, %v11733_v55 }
0x55e9   :  { %11734 = vrcp.f32 %v8012_v12 }
0x55f3   :  { %v11735_v61 = vpop.eup %11734 }
0x55f4   :  { %v8019_v58 = vmul.f32 %v11735_v61, %v8017_v60  ;;  %v8026_v29 = vsub.f32 1.0, %v11735_v61  ;;  %v8032_v25 = vmul.f32 %v11735_v61, %v12934_v18 }
0x55f6   :  { %8021 = vrot.lane.b32.xlu1 %v8019_v58, %s11827_s2 }
0x5668   :  { %v8022_v7 = vpop.permute.xlu1 %8021 }
0x5669   :  { %v8024_v24 = vadd.f32 %v8022_v7, %v7928_v4 }
0x566b   :  { %11736 = vtanh.f32 %v8024_v24 }
0x5675   :  { %v11737_v53 = vpop.eup %11736 }
0x5676   :  { %8028 = vrot.lane.b32.xlu0 %v11737_v53, %s11828_s11 }
0x56e8   :  { %v8029_v37 = vpop.permute.xlu0 %8028 }
0x56e9   :  { %v8031_v5 = vmul.f32 %v8029_v37, %v8026_v29 }
0x56eb   :  { %v13016_v48 = vadd.f32 %v8032_v25, %v8031_v5 }
0x56ed   :  { %8117 = vrot.lane.b32.xlu1 %v13016_v48, %s11828_s11 }
0x575f   :  { %v13020_v42 = vpop.permute.xlu1 %8117 }
0x5760   :  { %10705 = vmatmul.mubr.msk.f32.vlgmr.msra.gmra.mrb[4].mxu0 %vm56_vm0, %v13020_v42 }
0x5761   :  { %11334 = vmatpush3.bf16.msra.mxu0 %v11333_v28  ;;  %10711 = vmatprep.mubr.msk.f32.mxu0 %vm11826_vm4, %v11824_v15 }
0x5762   :  { %11335 = vmatprep.subr.bf16.mxu0 (!%p9349_p4), %v11846_v59 }
0x5764   :  { %10712 = vmatmul.mubr.msk.f32.vlgmr.msra.gmra.mrb[6].mxu0 %vm244_vm3, %v12975_v8 }
0x5765   :  { %11337 = vmatpush3.bf16.msra.mxu0 (!%p9349_p4), %v11336_v62  ;;  %10722 = vmatprep.mubr.msk.f32.mxu0 (!%p9349_p4), %vm11847_vm7, %v11848_v51 }
0x5766   :  { %11338 = vmatprep.subr.bf16.mxu0 (!%p9349_p4), %v11846_v59 }
0x5833   :  { %v8187_v18 = vpop.f32.mrb[4].mxu0 }
0x5834   :  { %v8188_v26 = vadd.f32 %v8187_v18, %v8112_v46  ;;  %v10706_v23 = vpop.f32.mrb[5].mxu0  ;;  %v11339_v46 = vpack.c.bf16 (!%p9349_p4), %v8308_v6, %v8307_v43 }
0x5836   :  { %8281 = sbr.rel (%p9349_p4) target bundleno = 23243 (0x5acb), region = 41  ;;  %11340 = vmatpush3.bf16.msra.mxu0 (!%p9349_p4), %v11339_v46 }
0x5837   :  { %v8259_v54 = vpop.f32.mrb[6].mxu0 }
0x5838   :  { %v8263_v41 = vadd.f32 %v8259_v54, %v8188_v26  ;;  %v10713_v47 = vpop.f32.mrb[7].mxu0 }
0x583a   :  { %v8269_v36 = vadd.f32 %v9347_v21, %v8263_v41 }
0x583c   :  { %8271 = vst.msk [vmem:[#allocation9 + $0xc] sm:$0x3] %vm3093_vm6, %v8269_v36  ;;  %v8282_v40 = vsel (!%p9349_p4), %vm3093_vm6, %v8269_v36, -inf }
0x583d   :  { %8283 = vmax.xlane.f32.xlu0 %v8282_v40 }
0x58ca   :  { %v8284_v38 = vpop.xlane.xlu0 %8283 }
0x58cb   :  { %vm8285_vm14 = vcmp.ge.f32.partialorder %v8269_v36, %v8284_v38 }
0x58cc   :  { %v8286_v8 = vsel %vm8285_vm14, %v11902_v13, 32 }
0x58cd   :  { %v8287_v63 = vsel %vm3093_vm6, %v8286_v8, 2147483647 }
0x58ce   :  { %v8289_v11 = vshra.s32 %v8287_v63, 16  ;;  %v8288_v49 = vand.u32 65535, %v8287_v63 }
0x58d0   :  { %v8291_v14 = vcvt.s32.f32 %v8289_v11  ;;  %v8290_v50 = vcvt.s32.f32 %v8288_v49 }
0x58d2   :  { %8292 = vmin.xlane.f32.xlu0 %v8291_v14 }
0x595f   :  { %v8293_v39 = vpop.xlane.xlu0 %8292 }
0x5960   :  { %vm8294_vm15 = vcmp.eq.f32.partialorder %v8291_v14, %v8293_v39  ;;  %v8299_v17 = vcvt.f32.s32 %v8293_v39 }
0x5961   :  { %v8295_v45 = vsel %vm8294_vm15, %v8290_v50, inf }
0x5962   :  { %8296 = vmin.xlane.f32.xlu1 %v8295_v45  ;;  %v8300_v4 = vshll.u32 %v8299_v17, 16 }
0x59ef   :  { %v8297_v20 = vpop.xlane.xlu1 %8296 }
0x59f0   :  { %v8298_v31 = vcvt.f32.s32 %v8297_v20 }
0x59f2   :  { %v8301_v10 = vadd.s32 %v8300_v4, %v8298_v31 }
0x59f4   :  { %vm8302_vm8 = vcmp.eq.s32.totalorder %v11902_v13, %v8301_v10 }
0x59f5   :  { %v9350_v55 = vsel %vm8302_vm8, 1.0, %v11848_v51 }
0x59f6   :  { %10723 = vmatmul.mubr.msk.f32.vlgmr.msra.gmra.mrb[0].mxu0 %vm56_vm0, %v9350_v55 }
0x5ac9   :  { %v8378_v12 = vpop.f32.mrb[0].mxu0 }
0x5aca   :  { %8382 = vst.msk [vmem:[#allocation3] sm:$0x3] %vm3100_vm9, %v8378_v12  ;;  %v10724_v60 = vpop.f32.mrb[1].mxu0 }
0x5acb PF:  { %11341 = vmatprep.subr.bf16.mxu0 %v11825_v19  ;;  %v8384_v61 = vld [vmem:[#allocation6 + $0x108] sm:$0xff]  ;;  %v8385_v58 = vld [vmem:[#allocation6 + $0x110] sm:$0xff]  ;;  %v8386_v7 = vld [vmem:[#allocation6 + $0x118] sm:$0xff]  ;;  %10733 = vmatprep.mubr.msk.f32.mxu0 %vm11826_vm4, %v11824_v15  ;;  %s11849_s21 = smov [#allocation9]  }
0x5acc   :  { %v11342_v24 = vpack.c.bf16 %v8385_v58, %v8384_v61  ;;  %v8387_v32 = vld [vmem:[#allocation6 + $0x120] sm:$0xff]  ;;  %11738 = vset.pattern.permute.xlu0 %v11823_v0  ;;  %v8495_v1 = vld [vmem:[#allocation6 + $0x170] sm:$0xff]  ;;  %v8496_v30 = vld [vmem:[#allocation6 + $0x178] sm:$0xff]  ;;  %s9156_s22 = sshll.u32 %s11849_s21, 4  ;;  %s9157_s22 = int_to_ptr.vmem [resolvable:$true] %s9156_s22 }
0x5acd   :  { %v11345_v13 = vpack.c.bf16 %v8387_v32, %v8386_v7  ;;  %v8497_v2 = vld [vmem:[#allocation6 + $0x180] sm:$0xff]  ;;  %v11347_v35 = vpack.c.bf16 %v8496_v30, %v8495_v1  ;;  %v8498_v33 = vld [vmem:[#allocation6 + $0x188] sm:$0xff]  ;;  %v8645_v21 = vld [vmem:[#allocation6 + $0x198] sm:$0xff]  ;;  %s11791_s0 = scalar_lea.vmem %s9157_s22, 256  ;;  %p11796_p6 = scmp.lt.s32.totalorder %s9157_s22, %s9157_s22 }
0x5ace   :  { %11343 = vmatpush3.bf16.msra.mxu0 %v11342_v24  ;;  %v11351_v53 = vpack.c.bf16 %v8498_v33, %v8497_v2  ;;  %v8808_v47 = vld [vmem:[#allocation6 + $0x1e0] sm:$0xff]  ;;  %v8810_v36 = vld [vmem:[#allocation6 + $0x1f0] sm:$0xff]  ;;  %v8811_v40 = vld [vmem:[#allocation6 + $0x1f8] sm:$0xff]  ;;  %p11792_p5 = scmp.ne.s32.totalorder %s9157_s22, %s11791_s0  ;;  %p11797_p7 = scmp.lt.s32.totalorder %s11791_s0, %s11791_s0 }
0x5acf   :  { %11344 = vmatprep.subr.bf16.mxu0 %v11825_v19  ;;  %11348 = vmatprep.subr.bf16.mxu1 %v11347_v35  ;;  %v11374_v38 = vpack.c.bf16 %v8811_v40, %v8810_v36  ;;  %v8922_v40 = vld [vmem:[#allocation6 + $0x258] sm:$0xff] }
0x5ad0   :  { %11350 = vmatpush3.bf16.msra.mxu1 %v11347_v35  ;;  %p11798_p8 = por %p11797_p7, %p11796_p6 }
0x5ad1   :  { %11352 = vmatprep.subr.bf16.mxu1 %v11351_v53 }
0x5ad2   :  { %11346 = vmatpush3.bf16.msra.mxu0 %v11345_v13  ;;  %p11799_p9 = pnand %p11798_p8, %p11792_p5 }
0x5ad3   :  { %11355 = vmatprep.subr.bf16.mxu0 %v11825_v19 }
0x5ad4   :  { %11354 = vmatpush3.bf16.msra.mxu1 %v11351_v53 }
0x5ad5   :  { %10734 = vmatmul.mubr.msk.f32.vlgmr.msra.gmra.mrb[0].mxu0 %vm56_vm0, %v13020_v42  ;;  %11367 = vmatprep.subr.bf16.mxu1 %v11825_v19 }
0x5ad6   :  { %10763 = vmatprep.mubr.msk.f32.mxu0 %vm11826_vm4, %v11824_v15 }
0x5ba8   :  { %v8454_v0 = vpop.f32.mrb[0].mxu0 }
0x5ba9   :  { %v8465_v29 = vrot.slane %v8454_v0, %v12539_v44  ;;  %v10735_v37 = vpop.f32.mrb[1].mxu0 }
0x5bab   :  { %v8466_v5 = vcombine.high %v8465_v29, %v8465_v29  ;;  %v8473_v25 = vrot.slane %v8465_v29, %v12539_v44 }
0x5bad   :  { %v8480_v16 = vrot.slane %v8466_v5, %v12539_v44  ;;  %v8484_v56 = vrot.slane %v8473_v25, %v12542_v52  ;;  %v8644_v44 = vld [vmem:[#allocation6 + $0x190] sm:$0xff]  ;;  %v8646_v5 = vld [vmem:[#allocation6 + $0x1a0] sm:$0xff]  ;;  %v8647_v25 = vld [vmem:[#allocation6 + $0x1a8] sm:$0xff] }
0x5bae   :  { %v11368_v41 = vpack.c.bf16 %v8645_v21, %v8644_v44  ;;  %v8920_v21 = vld [vmem:[#allocation6 + $0x248] sm:$0xff] }
0x5baf   :  { %v8488_v28 = vrot.slane %v8480_v16, %v12542_v52  ;;  %v8491_v18 = vadd.f32 %v8484_v56, %v12545_v22  ;;  %v8809_v52 = vld [vmem:[#allocation6 + $0x1e8] sm:$0xff]  ;;  %v13057_v22 = vld [vmem:[#allocation3] sm:$0x3]  ;;  %v8917_v16 = vld [vmem:[#allocation6 + $0x230] sm:$0xff]  ;;  %v11356_v56 = vpack.c.bf16 %v8647_v25, %v8646_v5 }
0x5bb1   :  { %v8492_v26 = vadd.f32 %v8488_v28, %v12549_v9  ;;  %11739 = vtanh.f32 %v8491_v18  ;;  %v11371_v9 = vpack.c.bf16 %v8809_v52, %v8808_v47  ;;  %v8918_v28 = vld [vmem:[#allocation6 + $0x238] sm:$0xff]  ;;  %11357 = vmatpush3.bf16.msra.mxu0 %v11356_v56  ;;  %v8650_v47 = vld [vmem:[#allocation6 + $0x1c0] sm:$0xff]  ;;  %v8651_v52 = vld [vmem:[#allocation6 + $0x1c8] sm:$0xff] }
0x5bb2   :  { %v11377_v18 = vpack.c.bf16 %v8918_v28, %v8917_v16  ;;  %11358 = vmatprep.subr.bf16.mxu0 %v11825_v19  ;;  %v11362_v36 = vpack.c.bf16 %v8651_v52, %v8650_v47 }
0x5bb3   :  { %11741 = vtanh.f32 %v8492_v26  ;;  %v8648_v26 = vld [vmem:[#allocation6 + $0x1b0] sm:$0xff] }
0x5bbb   :  { %v11740_v23 = vpop.eup %11739 }
0x5bbc   :  { %10744 = vmatprep.mubr.msk.f32.mxu1 %vm56_vm0, %v11740_v23  ;;  %v8649_v23 = vld [vmem:[#allocation6 + $0x1b8] sm:$0xff] }
0x5bbd   :  { %v11742_v54 = vpop.eup %11741  ;;  %v11359_v44 = vpack.c.bf16 %v8649_v23, %v8648_v26  ;;  %v8914_v26 = vld [vmem:[#allocation6 + $0x218] sm:$0xff]  ;;  %v8915_v23 = vld [vmem:[#allocation6 + $0x220] sm:$0xff] }
0x5bbe   :  { %10745 = vmatmul.mubr.msk.f32.vlgmr.msra.gmra.mrb[0].mxu1 %vm56_vm0, %v11742_v54  ;;  %v8919_v54 = vld [vmem:[#allocation6 + $0x240] sm:$0xff] }
0x5bbf   :  { %10770 = vmatprep.mubr.msk.f32.mxu1 %vm11826_vm4, %v11824_v15  ;;  %11369 = vmatpush3.bf16.msra.mxu1 %v11368_v41  ;;  %v11380_v41 = vpack.c.bf16 %v8920_v21, %v8919_v54 }
0x5bc0   :  { %11370 = vmatprep.subr.bf16.mxu1 %v11825_v19  ;;  %11360 = vmatpush3.bf16.msra.mxu0 %v11359_v44  ;;  %v8916_v44 = vld [vmem:[#allocation6 + $0x228] sm:$0xff] }
0x5bc1   :  { %11361 = vmatprep.subr.bf16.mxu0 %v11825_v19  ;;  %v11392_v21 = vpack.c.bf16 %v8916_v44, %v8915_v23 }
0x5bc2   :  { %10771 = vmatmul.mubr.msk.f32.vlgmr.msra.gmra.mrb[2].mxu1 %vm244_vm3, %v13057_v22 }
0x5bc3   :  { %11372 = vmatpush3.bf16.msra.mxu1 %v11371_v9  ;;  %10781 = vmatprep.mubr.msk.f32.mxu1 %vm11826_vm4, %v11824_v15  ;;  %v8921_v9 = vld [vmem:[#allocation6 + $0x250] sm:$0xff] }
0x5bc4   :  { %11373 = vmatprep.subr.bf16.mxu1 %v11825_v19  ;;  %11363 = vmatpush3.bf16.msra.mxu0 %v11362_v36 }
0x5bc5   :  { %11364 = vmatprep.subr.bf16.mxu0 %v11825_v19 }
0x5bc7   :  { %11375 = vmatpush3.bf16.msra.mxu1 %v11374_v38  ;;  %v11383_v38 = vpack.c.bf16 %v8922_v40, %v8921_v9 }
0x5bc8   :  { %11376 = vmatprep.subr.bf16.mxu1 %v11825_v19 }
0x5bca   :  { %10782 = vmatmul.mubr.msk.f32.vlgmr.msra.gmra.mrb[4].mxu1 %vm56_vm0, %v13020_v42 }
0x5bcb   :  { %10800 = vmatprep.mubr.msk.f32.mxu1 %vm11826_vm4, %v11824_v15  ;;  %11378 = vmatpush3.bf16.msra.mxu1 %v11377_v18  ;;  %v8913_v18 = vld [vmem:[#allocation6 + $0x210] sm:$0xff] }
0x5bcc   :  { %11379 = vmatprep.subr.bf16.mxu1 %v11825_v19  ;;  %v11389_v54 = vpack.c.bf16 %v8914_v26, %v8913_v18 }
0x5bcf   :  { %11381 = vmatpush3.bf16.msra.mxu1 %v11380_v41 }
0x5bd0   :  { %11382 = vmatprep.subr.bf16.mxu1 %v11825_v19 }
0x5bd3   :  { %11384 = vmatpush3.bf16.msra.mxu1 %v11383_v38  ;;  %v9070_v38 = vld [vmem:[#allocation6 + $0x270] sm:$0xff] }
0x5bd4   :  { %11385 = vmatprep.subr.bf16.mxu1 %v11825_v19 }
0x5c91   :  { %v10746_v8 = vpop.f32.mrb[0].mxu1 }
0x5c92   :  { %v8587_v63 = vsel %vm3302_vm2, %v10746_v8, -inf  ;;  %v8571_v11 = vpop.f32.mrb[1].mxu1 }
0x5c93   :  { %v8588_v14 = vrot.slane %v8587_v63, 4  ;;  %v8580_v3 = vsel %vm3302_vm2, %v8571_v11, -inf }
0x5c94   :  { %v8581_v57 = vrot.slane %v8580_v3, 4 }
0x5c95   :  { %v8589_v59 = vmax.f32 %v8587_v63, %v8588_v14  ;;  %v8653_v63 = vld [vmem:[#allocation6 + $0x1d8] sm:$0xff] }
0x5c96   :  { %v8582_v62 = vmax.f32 %v8580_v3, %v8581_v57  ;;  %v8924_v3 = vld [vmem:[#allocation6 + $0x268] sm:$0xff] }
0x5c97   :  { %v8590_v49 = vrot.slane %v8589_v59, 2 }
0x5c98   :  { %v8583_v39 = vrot.slane %v8582_v62, 2 }
0x5c99   :  { %v8591_v50 = vmax.f32 %v8589_v59, %v8590_v49  ;;  %v8798_v59 = vpop.f32.mrb[2].mxu1  ;;  %v9358_v49 = vld [vmem:[#allocation6 + $0x208] ss:$0 sm:$0xff] }
0x5c9a   :  { %v8584_v45 = vmax.f32 %v8582_v62, %v8583_v39  ;;  %v10772_v62 = vpop.f32.mrb[3].mxu1 }
0x5c9b   :  { %v8592_v43 = vrot.slane %v8591_v50, 1 }
0x5c9c   :  { %v8585_v6 = vrot.slane %v8584_v45, 1 }
0x5c9d   :  { %v8593_v42 = vmax.f32 %v8591_v50, %v8592_v43  ;;  %v8883_v39 = vpop.f32.mrb[4].mxu1 }
0x5c9e   :  { %v8586_v46 = vmax.f32 %v8584_v45, %v8585_v6  ;;  %v8884_v50 = vadd.f32 %v9358_v49, %v8883_v39  ;;  %v10783_v45 = vpop.f32.mrb[5].mxu1 }
0x5c9f   :  { %v8595_v51 = vsub.f32 %v10746_v8, %v8593_v42  ;;  %v8652_v8 = vld [vmem:[#allocation6 + $0x1d0] sm:$0xff] }
0x5ca0   :  { %v8594_v17 = vsub.f32 %v8571_v11, %v8586_v46  ;;  %v8923_v11 = vld [vmem:[#allocation6 + $0x260] sm:$0xff]  ;;  %v11365_v14 = vpack.c.bf16 %v8653_v63, %v8652_v8  ;;  %8895 = vrot.lane.b32.xlu1 %v8884_v50, %s11827_s2  ;;  %v9071_v8 = vld [vmem:[#allocation6 + $0x278] sm:$0xff] }
0x5ca1   :  { %v8598_v20 = vmul.f32 1.442695, %v8595_v51  ;;  %v11386_v57 = vpack.c.bf16 %v8924_v3, %v8923_v11  ;;  %v11395_v63 = vpack.c.bf16 %v9071_v8, %v9070_v38 }
0x5ca2   :  { %v8596_v4 = vmul.f32 1.442695, %v8594_v17  ;;  %11366 = vmatpush3.bf16.msra.mxu0 %v11365_v14 }
0x5ca3   :  { %11743 = vpow2.f32 %v8598_v20  ;;  %11387 = vmatpush3.bf16.msra.mxu1 %v11386_v57  ;;  %11388 = vmatprep.subr.bf16.mxu0 %v11825_v19  ;;  %v9364_v57 = vld [vmem:[#allocation6 + $0x280] ss:$0 sm:$0xff] }
0x5ca4   :  { %11745 = vpow2.f32 %v8596_v4 }
0x5cad   :  { %v11744_v31 = vpop.eup %11743 }
0x5cae   :  { %v11746_v10 = vpop.eup %11745  ;;  %v8607_v55 = vsel %vm3302_vm2, %v11744_v31, 0.0 }
0x5caf   :  { %v8608_v12 = vrot.slane %v8607_v55, 4  ;;  %v8600_v60 = vsel %vm3302_vm2, %v11746_v10, 0.0 }
0x5cb0   :  { %v8601_v61 = vrot.slane %v8600_v60, 4 }
0x5cb1   :  { %v8609_v58 = vadd.f32 %v8608_v12, %v8607_v55 }
0x5cb2   :  { %v8602_v7 = vadd.f32 %v8601_v61, %v8600_v60 }
0x5cb3   :  { %v8610_v24 = vrot.slane %v8609_v58, 2 }
0x5cb4   :  { %v8603_v32 = vrot.slane %v8602_v7, 2 }
0x5cb5   :  { %v8611_v13 = vadd.f32 %v8610_v24, %v8609_v58 }
0x5cb6   :  { %v8604_v1 = vadd.f32 %v8603_v32, %v8602_v7 }
0x5cb7   :  { %v8612_v30 = vrot.slane %v8611_v13, 1 }
0x5cb8   :  { %v8605_v2 = vrot.slane %v8604_v1, 1 }
0x5cb9   :  { %v8613_v33 = vadd.f32 %v8612_v30, %v8611_v13  ;;  %v9357_v13 = vld [vmem:[#allocation6 + $0x200] ss:$0 sm:$0xff] }
0x5cba   :  { %v8606_v35 = vadd.f32 %v8605_v2, %v8604_v1 }
0x5cbc   :  { %11747 = vrcp.f32 %v8606_v35 }
0x5cbd   :  { %11749 = vrcp.f32 %v8613_v33 }
0x5cc6   :  { %v11748_v53 = vpop.eup %11747 }
0x5cc7   :  { %v8615_v0 = vmul.f32 %v11748_v53, %v11746_v10  ;;  %v11750_v29 = vpop.eup %11749 }
0x5cc8   :  { %v8617_v37 = vmul.f32 %v11750_v29, %v11744_v31 }
0x5cc9   :  { %8620 = vperm.xlu0 %11738, %v8615_v0  }
0x5ccd   :  { %8625 = vperm.xlu0 %11738, %v8617_v37  }
0x5d12   :  { %v8896_v5 = vpop.permute.xlu1 %8895 }
0x5d48   :  { %v8621_v43 = vpop.permute.xlu0 %8620 }
0x5d49   :  { %v8628_v6 = vmul.f32 %v8621_v43, %v12514_v34 }
0x5d4b   :  { %v8630_v42 = vsel %vm3011_vm1, %v8628_v6, 0.0 }
0x5d4c   :  { %v8631_v46 = vrot.slane %v8630_v42, 4  ;;  %v8626_v51 = vpop.permute.xlu0 %8625 }
0x5d4d   :  { %v8629_v17 = vmul.f32 %v8626_v51, %v12526_v27 }
0x5d4e   :  { %v8632_v20 = vadd.f32 %v8631_v46, %v8630_v42 }
0x5d4f   :  { %v8637_v4 = vsel %vm3011_vm1, %v8629_v17, 0.0 }
0x5d50   :  { %v8633_v31 = vrot.slane %v8632_v20, 2  ;;  %v8638_v10 = vrot.slane %v8637_v4, 4 }
0x5d52   :  { %v8634_v55 = vadd.f32 %v8633_v31, %v8632_v20  ;;  %v8639_v12 = vadd.f32 %v8638_v10, %v8637_v4 }
0x5d54   :  { %v8640_v60 = vrot.slane %v8639_v12, 2  ;;  %v8635_v61 = vrot.slane %v8634_v55, 1 }
0x5d56   :  { %v8641_v58 = vadd.f32 %v8640_v60, %v8639_v12  ;;  %v8636_v24 = vadd.f32 %v8635_v61, %v8634_v55 }
0x5d58   :  { %v8642_v7 = vrot.slane %v8641_v58, 1 }
0x5d5a   :  { %v8643_v32 = vadd.f32 %v8642_v7, %v8641_v58 }
0x5d5c   :  { %v8656_v34 = vsel %vm565_vm5, %v8643_v32, %v8636_v24 }
0x5d5d   :  { %10764 = vmatmul.mubr.msk.f32.vlgmr.msra.gmra.mrb[2].mxu0 %vm3011_vm1, %v8656_v34  ;;  %10801 = vmatmul.mubr.msk.f32.vlgmr.msra.gmra.mrb[6].mxu1 %vm3011_vm1, %v8656_v34 }
0x5d5e   :  { %10811 = vmatprep.mubr.msk.f32.mxu0 %vm11826_vm4, %v11824_v15  ;;  %11390 = vmatpush3.bf16.msra.mxu0 %v11389_v54 }
0x5d5f   :  { %11391 = vmatprep.subr.bf16.mxu0 %v11825_v19 }
0x5d62   :  { %11393 = vmatpush3.bf16.msra.mxu0 %v11392_v21 }
0x5d63   :  { %11394 = vmatprep.subr.bf16.mxu0 %v11825_v19 }
0x5e30   :  { %v8725_v27 = vpop.f32.mrb[2].mxu0  ;;  %v8991_v1 = vpop.f32.mrb[6].mxu1 }
0x5e31   :  { %v8799_v30 = vadd.f32 %v8798_v59, %v8725_v27  ;;  %v10765_v2 = vpop.f32.mrb[3].mxu0  ;;  %v10802_v35 = vpop.f32.mrb[7].mxu1 }
0x5e33   :  { %v8807_v33 = vadd.f32 %v9357_v13, %v8799_v30 }
0x5e35   :  { %v8887_v53 = vadd.f32 %v8884_v50, %v8807_v33 }
0x5e37   :  { %v9360_v0 = vmul.f32 -1.442695, %v8887_v53 }
0x5e39   :  { %11751 = vpow2.f32 %v9360_v0 }
0x5e43   :  { %v11752_v29 = vpop.eup %11751 }
0x5e44   :  { %v8891_v37 = vadd.f32 1.0, %v11752_v29 }
0x5e46   :  { %11753 = vrcp.f32 %v8891_v37 }
0x5e50   :  { %v11754_v25 = vpop.eup %11753 }
0x5e51   :  { %v8898_v16 = vmul.f32 %v11754_v25, %v8896_v5  ;;  %v8905_v47 = vsub.f32 1.0, %v11754_v25  ;;  %v8911_v36 = vmul.f32 %v11754_v25, %v13016_v48 }
0x5e53   :  { %8900 = vrot.lane.b32.xlu1 %v8898_v16, %s11827_s2 }
0x5ec5   :  { %v8901_v56 = vpop.permute.xlu1 %8900 }
0x5ec6   :  { %v8903_v28 = vadd.f32 %v8901_v56, %v8807_v33 }
0x5ec8   :  { %11755 = vtanh.f32 %v8903_v28 }
0x5ed2   :  { %v11756_v41 = vpop.eup %11755 }
0x5ed3   :  { %8907 = vrot.lane.b32.xlu0 %v11756_v41, %s11828_s11 }
0x5f45   :  { %v8908_v52 = vpop.permute.xlu0 %8907 }
0x5f46   :  { %v8910_v9 = vmul.f32 %v8908_v52, %v8905_v47 }
0x5f48   :  { %v8912_v40 = vadd.f32 %v8911_v36, %v8910_v9 }
0x5f4a   :  { %8996 = vrot.lane.b32.xlu1 %v8912_v40, %s11828_s11 }
0x5fbc   :  { %v8997_v11 = vpop.permute.xlu1 %8996 }
0x5fbd   :  { %10812 = vmatmul.mubr.msk.f32.vlgmr.msra.gmra.mrb[4].mxu0 %vm56_vm0, %v8997_v11 }
0x5fbe   :  { %11396 = vmatpush3.bf16.msra.mxu0 %v11395_v63  ;;  %10818 = vmatprep.mubr.msk.f32.mxu0 %vm11826_vm4, %v11824_v15 }
0x5fc1   :  { %10819 = vmatmul.mubr.msk.f32.vlgmr.msra.gmra.mrb[6].mxu0 %vm244_vm3, %v13057_v22 }
0x6090   :  { %v9066_v19 = vpop.f32.mrb[4].mxu0 }
0x6091   :  { %v9067_v14 = vadd.f32 %v9066_v19, %v8991_v1  ;;  %v10813_v3 = vpop.f32.mrb[5].mxu0 }
0x6094   :  { %v9138_v48 = vpop.f32.mrb[6].mxu0 }
0x6095   :  { %v9142_v59 = vadd.f32 %v9138_v48, %v9067_v14  ;;  %v10820_v62 = vpop.f32.mrb[7].mxu0 }
0x6097   :  { %v9148_v49 = vadd.f32 %v9364_v57, %v9142_v59 }
0x6099   :  { %9150 = vst.msk [vmem:[#allocation9 + $0xe] sm:$0x3] %vm3093_vm6, %v9148_v49 }
0x609a   :  { %11802 = shalt.err (!%p11799_p9)
}
0x609b   :  { %s11803_s25 = scalar_lea.hbm %s13121_s4, 256 }
0x609c   :  { %p11804_p10 = scmp.ne.s32.totalorder %s13121_s4, %s11803_s25  ;;  %p11807_p11 = scmp.lt.u32.totalorder %s11803_s25, %s13121_s4 }
0x609e   :  { %p11809_p12 = pnand %p11807_p11, %p11804_p10 }
0x60a0   :  { %11812 = shalt.err (!%p11809_p12)
}
0x60a1   :  { %s11850_s30 = smov 2  }
0x60a2   :  { %9162 = dma.vmem_to_hbm [thread:$0]  %s9157_s22, 256, %s13121_s4, [#allocation8], %s11830_s3, %s11830_s3, %s11850_s30  }
0x60a3   :  { %11817 = dma.done.wait [#allocation8], 256  }
0x60a4   :  { %11818 = vsyncadd [#allocation8], 4294967040 }
0x60a5   :  { %9166 = vsyncpa [#allocation7], 1 }
0x60a6   :  { %9167 = vsyncpa [#allocation8], 1 }

</bundles_post_ra>
